<compile_context>
chip_gen: v6e
topology: v6e:2x2x1
jax: 0.10.0
libtpu: 0.0.40
codegen_flags: <defaults>
</compile_context>

<pallas_src>
import jax
import jax.numpy as jnp
from jax import lax
from jax.experimental import pallas as pl
from jax.experimental.pallas import tpu as pltpu

EPS = 1e-5
_VMEM_LIMIT = 32 * 1024 * 1024  # explicit scoped-VMEM budget (safe on v5e/v6e/v7x)


# ------------------------------ small helpers ------------------------------

def _round_up(x, m):
    return (x + m - 1) // m * m


def _pick_row_tile(m, target=256):
    """Largest multiple of 8 <= target that divides m (else `target`-ish)."""
    t = min(target, _round_up(m, 8))
    t = max(8, t - (t % 8))
    for cand in range(t, 7, -8):
        if m % cand == 0:
            return cand
    return t


def _pad_rows(x2d, m_pad):
    m = x2d.shape[0]
    if m_pad == m:
        return x2d
    return jnp.pad(x2d, ((0, m_pad - m), (0, 0)))


# ----------------------------- Pallas kernels ------------------------------

def _matmul_bias_kernel(x_ref, w_ref, b_ref, o_ref):
    # (tm, K)bf16 @ (K, N)bf16 -> f32 accumulate, + bias, -> bf16 store.
    y = jnp.dot(x_ref[...], w_ref[...], preferred_element_type=jnp.float32)
    o_ref[...] = (y + b_ref[...]).astype(o_ref.dtype)


def _make_conv3x3_stats_kernel(H, W, n_in):
    """3x3 conv (padding=1) over one image + per-channel sum / sum-of-squares.

    Refs: n_in padded-NHWC inputs, n_in weights (9, Cin_p, CP),
          outputs y (1, H*W, CP) f32 and stats (2, CP) f32 (resident
          accumulator across the batch grid axis), scratch acc (H*W, CP) f32.
    """

    def kernel(*refs):
        x_refs = refs[:n_in]
        w_refs = refs[n_in:2 * n_in]
        y_ref, stats_ref = refs[2 * n_in], refs[2 * n_in + 1]
        acc_ref = refs[2 * n_in + 2]

        acc_ref[...] = jnp.zeros_like(acc_ref)
        for i in range(n_in):
            xv = x_refs[i][...]                 # (1, H+2, W+2, Cin_p) bf16
            xv = xv.reshape(xv.shape[1:])       # (H+2, W+2, Cin_p)
            wv = w_refs[i][...]                 # (9, Cin_p, CP) bf16
            for dy in range(3):
                for dx in range(3):
                    patch = xv[dy:dy + H, dx:dx + W, :].reshape(H * W, -1)
                    acc_ref[...] += jnp.dot(
                        patch, wv[dy * 3 + dx],
                        preferred_element_type=jnp.float32)

        acc = acc_ref[...]                      # (H*W, CP) f32
        y_ref[...] = acc.reshape(1, H * W, acc.shape[-1])

        @pl.when(pl.program_id(0) == 0)
        def _init():
            stats_ref[...] = jnp.zeros_like(stats_ref)

        s = jnp.sum(acc, axis=0, keepdims=True)
        ss = jnp.sum(acc * acc, axis=0, keepdims=True)
        stats_ref[...] += jnp.concatenate([s, ss], axis=0)

    return kernel


def _bn_apply_relu_kernel(y_ref, sc_ref, sh_ref, o_ref):
    # Folded BN: out = max(y * scale + shift, 0); f32 math, cast on store.
    y = y_ref[...]
    o_ref[...] = jnp.maximum(y * sc_ref[...] + sh_ref[...], 0.0).astype(o_ref.dtype)


# ---------------------------- pallas_call wrappers --------------------------

def _call_matmul_bias(x, w, b, tm):
    m, k = x.shape
    n = w.shape[1]
    return pl.pallas_call(
        _matmul_bias_kernel,
        out_shape=jax.ShapeDtypeStruct((m, n), jnp.bfloat16),
        grid=(m // tm,),
        in_specs=[
            pl.BlockSpec((tm, k), lambda i: (i, 0)),
            pl.BlockSpec((k, n), lambda i: (0, 0)),
            pl.BlockSpec((1, n), lambda i: (0, 0)),
        ],
        out_specs=pl.BlockSpec((tm, n), lambda i: (i, 0)),
        compiler_params=pltpu.CompilerParams(
            dimension_semantics=("parallel",),
            vmem_limit_bytes=_VMEM_LIMIT),
    )(x, w, b)


def _call_conv3x3_stats(inputs, weights, H, W, CP):
    n_img = inputs[0].shape[0]
    n_in = len(inputs)
    kernel = _make_conv3x3_stats_kernel(H, W, n_in)
    in_specs = (
        [pl.BlockSpec((1, H + 2, W + 2, x.shape[-1]), lambda n: (n, 0, 0, 0))
         for x in inputs]
        + [pl.BlockSpec(w.shape, lambda n: (0, 0, 0)) for w in weights]
    )
    return pl.pallas_call(
        kernel,
        out_shape=(jax.ShapeDtypeStruct((n_img, H * W, CP), jnp.float32),
                   jax.ShapeDtypeStruct((2, CP), jnp.float32)),
        grid=(n_img,),
        in_specs=in_specs,
        out_specs=(pl.BlockSpec((1, H * W, CP), lambda n: (n, 0, 0)),
                   pl.BlockSpec((2, CP), lambda n: (0, 0))),
        scratch_shapes=[pltpu.VMEM((H * W, CP), jnp.float32)],
        compiler_params=pltpu.CompilerParams(
            dimension_semantics=("arbitrary",),   # stats accumulate across images
            vmem_limit_bytes=_VMEM_LIMIT),
    )(*inputs, *weights)


def _call_bn_apply_relu(y2d, scale, shift, out_dtype, tm):
    m, cp = y2d.shape
    return pl.pallas_call(
        _bn_apply_relu_kernel,
        out_shape=jax.ShapeDtypeStruct((m, cp), out_dtype),
        grid=(m // tm,),
        in_specs=[
            pl.BlockSpec((tm, cp), lambda i: (i, 0)),
            pl.BlockSpec((1, cp), lambda i: (0, 0)),
            pl.BlockSpec((1, cp), lambda i: (0, 0)),
        ],
        out_specs=pl.BlockSpec((tm, cp), lambda i: (i, 0)),
        compiler_params=pltpu.CompilerParams(
            dimension_semantics=("parallel",),
            vmem_limit_bytes=_VMEM_LIMIT),
    )(y2d, scale, shift)


# --------------------------- parameter preparation -------------------------

def prepare_params(p):
    """One-time (outside jit) relayout: channel-pad to 128 lanes, cast bf16."""
    cin = p["up_w"].shape[0]
    cout = p["up_w"].shape[1]
    cp = _round_up(cout, 128)

    # ConvTranspose2d weight (Cin, Cout, 2, 2) -> (Cin, dy, dx, CP) -> (Cin, 4*CP)
    w_up = jnp.zeros((cin, 2, 2, cp), jnp.float32)
    w_up = w_up.at[..., :cout].set(jnp.transpose(p["up_w"], (0, 2, 3, 1)))
    w_up = w_up.reshape(cin, 4 * cp).astype(jnp.bfloat16)
    b_up = jnp.zeros((2, 2, cp), jnp.float32)
    b_up = b_up.at[..., :cout].set(jnp.broadcast_to(p["up_b"], (2, 2, cout)))
    b_up = b_up.reshape(1, 4 * cp)

    def embed3x3(ws):  # ws: (3, 3, Ci, Cout) -> (9, CP, CP) bf16, zero-padded
        ci = ws.shape[2]
        out = jnp.zeros((3, 3, cp, cp), jnp.float32)
        out = out.at[:, :, :ci, :cout].set(ws)
        return out.reshape(9, cp, cp).astype(jnp.bfloat16)

    # conv1 weight (Cout, 2*Cout, 3, 3): split K into [upsampled | skip] halves
    # so the channel concat never has to be materialized.
    w1 = jnp.transpose(p["c1_w"], (2, 3, 1, 0))            # (3, 3, 2*Cout, Cout)
    w1a = embed3x3(w1[:, :, :cout, :])                     # consumes upsampled x
    w1b = embed3x3(w1[:, :, cout:, :])                     # consumes skip
    w2 = embed3x3(jnp.transpose(p["c2_w"], (2, 3, 1, 0)))  # (3, 3, Cout, Cout)

    def padc(v):
        return jnp.zeros((cp,), jnp.float32).at[:cout].set(v)

    # NOTE: conv biases c1_b / c2_b are intentionally omitted — a per-channel
    # constant added before training-mode BatchNorm is exactly cancelled by
    # the batch-mean subtraction.
    return dict(w_up=w_up, b_up=b_up, w1a=w1a, w1b=w1b, w2=w2,
                g1=padc(p["bn1_g"]), b1=padc(p["bn1_b"]),
                g2=padc(p["bn2_g"]), b2=padc(p["bn2_b"]))


def _bn_scale_shift(stats, gamma_p, beta_p, count):
    """Fold training-mode BN (biased var, eps=1e-5) into scale/shift."""
    mean = stats[0] / count
    var = jnp.maximum(stats[1] / count - mean * mean, 0.0)
    scale = gamma_p * lax.rsqrt(var + EPS)
    shift = beta_p - mean * scale
    return scale[None, :], shift[None, :]


# ------------------------------- forward pass ------------------------------

def decoder_block_forward(x_nchw, skip_nchw, prep):
    """DecoderBlock.forward(x, skip). Inputs/outputs are NCHW float32."""
    N, Cin, h, w = x_nchw.shape
    Cout = skip_nchw.shape[1]
    CP = prep["g1"].shape[0]
    H, W = 2 * h, 2 * w

    # --- ConvTranspose2d(Cin, Cout, k=2, s=2): lane-dense row-tiled matmul ---
    x2d = jnp.transpose(x_nchw, (0, 2, 3, 1)).reshape(N * h * w, Cin)
    x2d = x2d.astype(jnp.bfloat16)
    mu = N * h * w
    tm_u = _pick_row_tile(mu)
    up2d = _call_matmul_bias(_pad_rows(x2d, _round_up(mu, tm_u)),
                             prep["w_up"], prep["b_up"], tm_u)
    up = (up2d[:mu]
          .reshape(N, h, w, 2, 2, CP)
          .transpose(0, 1, 3, 2, 4, 5)
          .reshape(N, H, W, CP))                           # bf16, channel-padded

    # --- skip: NCHW -> NHWC, channel-pad to CP (concat stays virtual) ---
    skip = jnp.transpose(skip_nchw, (0, 2, 3, 1)).astype(jnp.bfloat16)
    skip = jnp.pad(skip, ((0, 0), (0, 0), (0, 0), (0, CP - Cout)))

    def pad_sp(t):  # 1-pixel spatial halo for the 3x3 convs
        return jnp.pad(t, ((0, 0), (1, 1), (1, 1), (0, 0)))

    M = N * H * W
    tm = _pick_row_tile(M)
    m_pad = _round_up(M, tm)

    # --- conv1(3x3) over [up | skip] + batch-stat pass, then BN+ReLU pass ---
    y1, s1 = _call_conv3x3_stats([pad_sp(up), pad_sp(skip)],
                                 [prep["w1a"], prep["w1b"]], H, W, CP)
    sc1, sh1 = _bn_scale_shift(s1, prep["g1"], prep["b1"], M)
    z1 = _call_bn_apply_relu(_pad_rows(y1.reshape(M, CP), m_pad),
                             sc1, sh1, jnp.bfloat16, tm)[:M]
    z1 = z1.reshape(N, H, W, CP)

    # --- conv2(3x3) + batch-stat pass, then BN+ReLU pass (f32 output) ---
    y2, s2 = _call_conv3x3_stats([pad_sp(z1)], [prep["w2"]], H, W, CP)
    sc2, sh2 = _bn_scale_shift(s2, prep["g2"], prep["b2"], M)
    z2 = _call_bn_apply_relu(_pad_rows(y2.reshape(M, CP), m_pad),
                             sc2, sh2, jnp.float32, tm)[:M]

    out = z2.reshape(N, H, W, CP)[..., :Cout]
    return jnp.transpose(out, (0, 3, 1, 2))                # back to NCHW


# --------------------------- pure-JAX f32 reference -------------------------

def reference_forward(x, skip, p):
    N, Cin, h, w = x.shape
    Cout = p["up_b"].shape[0]
    t = jnp.einsum("ncij,codx->noidjx", x, p["up_w"])
    up = t.reshape(N, Cout, 2 * h, 2 * w) + p["up_b"][None, :, None, None]
    xc = jnp.concatenate([up, skip], axis=1)

    def conv_bn_relu(xi, wgt, b, g, beta):
        y = lax.conv_general_dilated(
            xi, wgt, (1, 1), ((1, 1), (1, 1)),
            dimension_numbers=("NCHW", "OIHW", "NCHW"),
        ) + b[None, :, None, None]
        mean = jnp.mean(y, axis=(0, 2, 3), keepdims=True)
        var = jnp.mean(jnp.square(y - mean), axis=(0, 2, 3), keepdims=True)
        y = (y - mean) * lax.rsqrt(var + EPS)
        y = y * g[None, :, None, None] + beta[None, :, None, None]
        return jnp.maximum(y, 0.0)

    z = conv_bn_relu(xc, p["c1_w"], p["c1_b"], p["bn1_g"], p["bn1_b"])
    z = conv_bn_relu(z, p["c2_w"], p["c2_b"], p["bn2_g"], p["bn2_b"])
    return z


# ----------------------------------- main -----------------------------------

if __name__ == "__main__":
    N = 2
    in_channels = 16
    out_channels = 8
    h = w = 8                      # x spatial; skip is 2h x 2w

    key = jax.random.PRNGKey(0)
    ks = jax.random.split(key, 12)

    params = {
        "up_w": 0.1 * jax.random.normal(ks[0], (in_channels, out_channels, 2, 2), jnp.float32),
        "up_b": 0.1 * jax.random.normal(ks[1], (out_channels,), jnp.float32),
        "c1_w": 0.1 * jax.random.normal(ks[2], (out_channels, 2 * out_channels, 3, 3), jnp.float32),
        "c1_b": 0.1 * jax.random.normal(ks[3], (out_channels,), jnp.float32),
        "bn1_g": 1.0 + 0.1 * jax.random.normal(ks[4], (out_channels,), jnp.float32),
        "bn1_b": 0.1 * jax.random.normal(ks[5], (out_channels,), jnp.float32),
        "c2_w": 0.1 * jax.random.normal(ks[6], (out_channels, out_channels, 3, 3), jnp.float32),
        "c2_b": 0.1 * jax.random.normal(ks[7], (out_channels,), jnp.float32),
        "bn2_g": 1.0 + 0.1 * jax.random.normal(ks[8], (out_channels,), jnp.float32),
        "bn2_b": 0.1 * jax.random.normal(ks[9], (out_channels,), jnp.float32),
    }

    x = 0.5 * jax.random.normal(ks[10], (N, in_channels, h, w), jnp.float32)
    skip = 0.5 * jax.random.normal(ks[11], (N, out_channels, 2 * h, 2 * w), jnp.float32)

    prep = prepare_params(params)              # weight relayout done outside jit
    fwd = jax.jit(decoder_block_forward)
    out = jax.block_until_ready(fwd(x, skip, prep))

    ref = reference_forward(x, skip, params)   # exact f32 reference (with conv biases)
    assert out.shape == (N, out_channels, 2 * h, 2 * w), out.shape
    max_diff = float(jnp.max(jnp.abs(out - ref)))
    # bf16 activations/weights with f32 accumulation -> ~1e-2 worst-case abs error.
    assert jnp.allclose(out, ref, rtol=3e-2, atol=3e-2), f"max abs diff = {max_diff}"

    print("KERNEL_OK")
</pallas_src>

<mosaic_0001>
module attributes {stable_mosaic.version = 11 : i64} {
  func.func @_matmul_bias_kernel(%arg0: i32, %arg1: memref<128x16xbf16, #tpu.memory_space<vmem>>, %arg2: memref<16x512xbf16, #tpu.memory_space<vmem>>, %arg3: memref<1x512xf32, #tpu.memory_space<vmem>>, %arg4: memref<128x512xbf16, #tpu.memory_space<vmem>>) attributes {dimension_semantics = [#tpu.dimension_semantics<parallel>], iteration_bounds = array<i64: 1>, scalar_prefetch = 0 : i64, scratch_operands = 0 : i64, tpu.core_type = #tpu.core_type<tc>, window_params = [{transform_indices = @transform_0, window_bounds = array<i64: 128, 16>}, {pipeline_mode = #tpu.pipeline_mode<synchronous>, transform_indices = @transform_1, window_bounds = array<i64: 16, 512>}, {pipeline_mode = #tpu.pipeline_mode<synchronous>, transform_indices = @transform_2, window_bounds = array<i64: 1, 512>}, {transform_indices = @transform_3, window_bounds = array<i64: 128, 512>}]} {
    %c0 = arith.constant 0 : index
    %c0_0 = arith.constant 0 : index
    %0 = vector.load %arg1[%c0, %c0_0] : memref<128x16xbf16, #tpu.memory_space<vmem>>, vector<128x16xbf16>
    %c0_1 = arith.constant 0 : index
    %c0_2 = arith.constant 0 : index
    %1 = vector.load %arg2[%c0_1, %c0_2] : memref<16x512xbf16, #tpu.memory_space<vmem>>, vector<16x512xbf16>
    %cst = arith.constant dense<0.000000e+00> : vector<128x512xf32>
    %2 = tpu.matmul %0, %1, %cst {dimension_numbers = #tpu.dot_dimension_numbers<[1], [0], [0], [1], [0, 0, 1, 1], [], []>} : vector<128x16xbf16>, vector<16x512xbf16>, vector<128x512xf32> -> vector<128x512xf32>
    %c0_3 = arith.constant 0 : index
    %c0_4 = arith.constant 0 : index
    %3 = vector.load %arg3[%c0_3, %c0_4] : memref<1x512xf32, #tpu.memory_space<vmem>>, vector<1x512xf32>
    %4 = vector.broadcast %3 : vector<1x512xf32> to vector<128x512xf32>
    %5 = arith.addf %2, %4 : vector<128x512xf32>
    %6 = arith.truncf %5 : vector<128x512xf32> to vector<128x512xbf16>
    %c0_5 = arith.constant 0 : index
    %c0_6 = arith.constant 0 : index
    %7 = vector.load %arg4[%c0_5, %c0_6] : memref<128x512xbf16, #tpu.memory_space<vmem>>, vector<128x512xbf16>
    tpu.vector_store %arg4[%c0_5, %c0_6], %6 {strides = array<i32>} : memref<128x512xbf16, #tpu.memory_space<vmem>>, vector<128x512xbf16>,
    return
  }
  func.func @transform_0(%arg0: i32) -> (i32, i32) {
    %c0_i32 = arith.constant 0 : i32
    %c0_i32_0 = arith.constant 0 : i32
    return %arg0, %c0_i32 : i32, i32
  }
  func.func @transform_1(%arg0: i32) -> (i32, i32) {
    %c0_i32 = arith.constant 0 : i32
    %c0_i32_0 = arith.constant 0 : i32
    %c0_i32_1 = arith.constant 0 : i32
    return %c0_i32, %c0_i32_0 : i32, i32
  }
  func.func @transform_2(%arg0: i32) -> (i32, i32) {
    %c0_i32 = arith.constant 0 : i32
    %c0_i32_0 = arith.constant 0 : i32
    %c0_i32_1 = arith.constant 0 : i32
    return %c0_i32, %c0_i32_0 : i32, i32
  }
  func.func @transform_3(%arg0: i32) -> (i32, i32) {
    %c0_i32 = arith.constant 0 : i32
    %c0_i32_0 = arith.constant 0 : i32
    return %arg0, %c0_i32 : i32, i32
  }
}

module attributes {stable_mosaic.version = 11 : i64} {
  func.func @_bn_apply_relu_kernel(%arg0: i32, %arg1: memref<256x128xf32, #tpu.memory_space<vmem>>, %arg2: memref<1x128xf32, #tpu.memory_space<vmem>>, %arg3: memref<1x128xf32, #tpu.memory_space<vmem>>, %arg4: memref<256x128xbf16, #tpu.memory_space<vmem>>) attributes {dimension_semantics = [#tpu.dimension_semantics<parallel>], iteration_bounds = array<i64: 2>, scalar_prefetch = 0 : i64, scratch_operands = 0 : i64, tpu.core_type = #tpu.core_type<tc>, window_params = [{transform_indices = @transform_0, window_bounds = array<i64: 256, 128>}, {pipeline_mode = #tpu.pipeline_mode<synchronous>, transform_indices = @transform_1, window_bounds = array<i64: 1, 128>}, {pipeline_mode = #tpu.pipeline_mode<synchronous>, transform_indices = @transform_2, window_bounds = array<i64: 1, 128>}, {transform_indices = @transform_3, window_bounds = array<i64: 256, 128>}]} {
    %c0 = arith.constant 0 : index
    %c0_0 = arith.constant 0 : index
    %0 = vector.load %arg1[%c0, %c0_0] : memref<256x128xf32, #tpu.memory_space<vmem>>, vector<256x128xf32>
    %c0_1 = arith.constant 0 : index
    %c0_2 = arith.constant 0 : index
    %1 = vector.load %arg2[%c0_1, %c0_2] : memref<1x128xf32, #tpu.memory_space<vmem>>, vector<1x128xf32>
    %2 = vector.broadcast %1 : vector<1x128xf32> to vector<256x128xf32>
    %3 = arith.mulf %0, %2 : vector<256x128xf32>
    %c0_3 = arith.constant 0 : index
    %c0_4 = arith.constant 0 : index
    %4 = vector.load %arg3[%c0_3, %c0_4] : memref<1x128xf32, #tpu.memory_space<vmem>>, vector<1x128xf32>
    %5 = vector.broadcast %4 : vector<1x128xf32> to vector<256x128xf32>
    %6 = arith.addf %3, %5 : vector<256x128xf32>
    %cst = arith.constant 0.000000e+00 : f32
    %7 = vector.broadcast %cst : f32 to vector<256x128xf32>
    %8 = arith.maximumf %6, %7 : vector<256x128xf32>
    %9 = arith.truncf %8 : vector<256x128xf32> to vector<256x128xbf16>
    %c0_5 = arith.constant 0 : index
    %c0_6 = arith.constant 0 : index
    %10 = vector.load %arg4[%c0_5, %c0_6] : memref<256x128xbf16, #tpu.memory_space<vmem>>, vector<256x128xbf16>
    tpu.vector_store %arg4[%c0_5, %c0_6], %9 {strides = array<i32>} : memref<256x128xbf16, #tpu.memory_space<vmem>>, vector<256x128xbf16>,
    return
  }
  func.func @transform_0(%arg0: i32) -> (i32, i32) {
    %c0_i32 = arith.constant 0 : i32
    %c0_i32_0 = arith.constant 0 : i32
    return %arg0, %c0_i32 : i32, i32
  }
  func.func @transform_1(%arg0: i32) -> (i32, i32) {
    %c0_i32 = arith.constant 0 : i32
    %c0_i32_0 = arith.constant 0 : i32
    %c0_i32_1 = arith.constant 0 : i32
    return %c0_i32, %c0_i32_0 : i32, i32
  }
  func.func @transform_2(%arg0: i32) -> (i32, i32) {
    %c0_i32 = arith.constant 0 : i32
    %c0_i32_0 = arith.constant 0 : i32
    %c0_i32_1 = arith.constant 0 : i32
    return %c0_i32, %c0_i32_0 : i32, i32
  }
  func.func @transform_3(%arg0: i32) -> (i32, i32) {
    %c0_i32 = arith.constant 0 : i32
    %c0_i32_0 = arith.constant 0 : i32
    return %arg0, %c0_i32 : i32, i32
  }
}

module attributes {stable_mosaic.version = 11 : i64} {
  func.func @kernel(%arg0: i32, %arg1: memref<1x18x18x128xbf16, #tpu.memory_space<vmem>>, %arg2: memref<1x18x18x128xbf16, #tpu.memory_space<vmem>>, %arg3: memref<9x128x128xbf16, #tpu.memory_space<vmem>>, %arg4: memref<9x128x128xbf16, #tpu.memory_space<vmem>>, %arg5: memref<1x256x128xf32, #tpu.memory_space<vmem>>, %arg6: memref<2x128xf32, #tpu.memory_space<vmem>>, %arg7: memref<256x128xf32, #tpu.memory_space<vmem>>) attributes {dimension_semantics = [#tpu.dimension_semantics<arbitrary>], iteration_bounds = array<i64: 2>, scalar_prefetch = 0 : i64, scratch_operands = 1 : i64, tpu.core_type = #tpu.core_type<tc>, window_params = [{transform_indices = @transform_0, window_bounds = array<i64: 1, 18, 18, 128>}, {transform_indices = @transform_1, window_bounds = array<i64: 1, 18, 18, 128>}, {pipeline_mode = #tpu.pipeline_mode<synchronous>, transform_indices = @transform_2, window_bounds = array<i64: 9, 128, 128>}, {pipeline_mode = #tpu.pipeline_mode<synchronous>, transform_indices = @transform_3, window_bounds = array<i64: 9, 128, 128>}, {transform_indices = @transform_4, window_bounds = array<i64: 1, 256, 128>}, {pipeline_mode = #tpu.pipeline_mode<synchronous>, transform_indices = @transform_5, window_bounds = array<i64: 2, 128>}]} {
    %cst = arith.constant 0.000000e+00 : f32
    %0 = vector.broadcast %cst : f32 to vector<256x128xf32>
    %c0 = arith.constant 0 : index
    %c0_0 = arith.constant 0 : index
    %1 = vector.load %arg7[%c0, %c0_0] : memref<256x128xf32, #tpu.memory_space<vmem>>, vector<256x128xf32>
    tpu.vector_store %arg7[%c0, %c0_0], %0 {strides = array<i32>} : memref<256x128xf32, #tpu.memory_space<vmem>>, vector<256x128xf32>,
    %c0_1 = arith.constant 0 : index
    %c0_2 = arith.constant 0 : index
    %c0_3 = arith.constant 0 : index
    %c0_4 = arith.constant 0 : index
    %2 = vector.load %arg1[%c0_1, %c0_2, %c0_3, %c0_4] : memref<1x18x18x128xbf16, #tpu.memory_space<vmem>>, vector<1x18x18x128xbf16>
    %3 = vector.shape_cast %2 : vector<1x18x18x128xbf16> to vector<18x18x128xbf16>
    %c0_5 = arith.constant 0 : index
    %c0_6 = arith.constant 0 : index
    %c0_7 = arith.constant 0 : index
    %4 = vector.load %arg3[%c0_5, %c0_6, %c0_7] : memref<9x128x128xbf16, #tpu.memory_space<vmem>>, vector<9x128x128xbf16>
    %5 = vector.extract_strided_slice %3 {offsets = [0, 0, 0], sizes = [16, 16, 128], strides = [1, 1, 1]} : vector<18x18x128xbf16> to vector<16x16x128xbf16>
    %6 = vector.shape_cast %5 : vector<16x16x128xbf16> to vector<256x128xbf16>
    %c0_8 = arith.constant 0 : index
    %c0_9 = arith.constant 0 : index
    %7 = vector.load %arg7[%c0_8, %c0_9] : memref<256x128xf32, #tpu.memory_space<vmem>>, vector<256x128xf32>
    %8 = vector.extract_strided_slice %4 {offsets = [0, 0, 0], sizes = [1, 128, 128], strides = [1, 1, 1]} : vector<9x128x128xbf16> to vector<1x128x128xbf16>
    %9 = vector.shape_cast %8 : vector<1x128x128xbf16> to vector<128x128xbf16>
    %cst_10 = arith.constant dense<0.000000e+00> : vector<256x128xf32>
    %10 = tpu.matmul %6, %9, %cst_10 {dimension_numbers = #tpu.dot_dimension_numbers<[1], [0], [0], [1], [0, 0, 1, 1], [], []>} : vector<256x128xbf16>, vector<128x128xbf16>, vector<256x128xf32> -> vector<256x128xf32>
    %11 = arith.addf %7, %10 : vector<256x128xf32>
    %c0_11 = arith.constant 0 : index
    %c0_12 = arith.constant 0 : index
    %12 = vector.load %arg7[%c0_11, %c0_12] : memref<256x128xf32, #tpu.memory_space<vmem>>, vector<256x128xf32>
    tpu.vector_store %arg7[%c0_11, %c0_12], %11 {strides = array<i32>} : memref<256x128xf32, #tpu.memory_space<vmem>>, vector<256x128xf32>,
    %13 = vector.extract_strided_slice %3 {offsets = [0, 1, 0], sizes = [16, 16, 128], strides = [1, 1, 1]} : vector<18x18x128xbf16> to vector<16x16x128xbf16>
    %14 = vector.shape_cast %13 : vector<16x16x128xbf16> to vector<256x128xbf16>
    %c0_13 = arith.constant 0 : index
    %c0_14 = arith.constant 0 : index
    %15 = vector.load %arg7[%c0_13, %c0_14] : memref<256x128xf32, #tpu.memory_space<vmem>>, vector<256x128xf32>
    %16 = vector.extract_strided_slice %4 {offsets = [1, 0, 0], sizes = [1, 128, 128], strides = [1, 1, 1]} : vector<9x128x128xbf16> to vector<1x128x128xbf16>
    %17 = vector.shape_cast %16 : vector<1x128x128xbf16> to vector<128x128xbf16>
    %cst_15 = arith.constant dense<0.000000e+00> : vector<256x128xf32>
    %18 = tpu.matmul %14, %17, %cst_15 {dimension_numbers = #tpu.dot_dimension_numbers<[1], [0], [0], [1], [0, 0, 1, 1], [], []>} : vector<256x128xbf16>, vector<128x128xbf16>, vector<256x128xf32> -> vector<256x128xf32>
    %19 = arith.addf %15, %18 : vector<256x128xf32>
    %c0_16 = arith.constant 0 : index
    %c0_17 = arith.constant 0 : index
    %20 = vector.load %arg7[%c0_16, %c0_17] : memref<256x128xf32, #tpu.memory_space<vmem>>, vector<256x128xf32>
    tpu.vector_store %arg7[%c0_16, %c0_17], %19 {strides = array<i32>} : memref<256x128xf32, #tpu.memory_space<vmem>>, vector<256x128xf32>,
    %21 = vector.extract_strided_slice %3 {offsets = [0, 2, 0], sizes = [16, 16, 128], strides = [1, 1, 1]} : vector<18x18x128xbf16> to vector<16x16x128xbf16>
    %22 = vector.shape_cast %21 : vector<16x16x128xbf16> to vector<256x128xbf16>
    %c0_18 = arith.constant 0 : index
    %c0_19 = arith.constant 0 : index
    %23 = vector.load %arg7[%c0_18, %c0_19] : memref<256x128xf32, #tpu.memory_space<vmem>>, vector<256x128xf32>
    %24 = vector.extract_strided_slice %4 {offsets = [2, 0, 0], sizes = [1, 128, 128], strides = [1, 1, 1]} : vector<9x128x128xbf16> to vector<1x128x128xbf16>
    %25 = vector.shape_cast %24 : vector<1x128x128xbf16> to vector<128x128xbf16>
    %cst_20 = arith.constant dense<0.000000e+00> : vector<256x128xf32>
    %26 = tpu.matmul %22, %25, %cst_20 {dimension_numbers = #tpu.dot_dimension_numbers<[1], [0], [0], [1], [0, 0, 1, 1], [], []>} : vector<256x128xbf16>, vector<128x128xbf16>, vector<256x128xf32> -> vector<256x128xf32>
    %27 = arith.addf %23, %26 : vector<256x128xf32>
    %c0_21 = arith.constant 0 : index
    %c0_22 = arith.constant 0 : index
    %28 = vector.load %arg7[%c0_21, %c0_22] : memref<256x128xf32, #tpu.memory_space<vmem>>, vector<256x128xf32>
    tpu.vector_store %arg7[%c0_21, %c0_22], %27 {strides = array<i32>} : memref<256x128xf32, #tpu.memory_space<vmem>>, vector<256x128xf32>,
    %29 = vector.extract_strided_slice %3 {offsets = [1, 0, 0], sizes = [16, 16, 128], strides = [1, 1, 1]} : vector<18x18x128xbf16> to vector<16x16x128xbf16>
    %30 = vector.shape_cast %29 : vector<16x16x128xbf16> to vector<256x128xbf16>
    %c0_23 = arith.constant 0 : index
    %c0_24 = arith.constant 0 : index
    %31 = vector.load %arg7[%c0_23, %c0_24] : memref<256x128xf32, #tpu.memory_space<vmem>>, vector<256x128xf32>
    %32 = vector.extract_strided_slice %4 {offsets = [3, 0, 0], sizes = [1, 128, 128], strides = [1, 1, 1]} : vector<9x128x128xbf16> to vector<1x128x128xbf16>
    %33 = vector.shape_cast %32 : vector<1x128x128xbf16> to vector<128x128xbf16>
    %cst_25 = arith.constant dense<0.000000e+00> : vector<256x128xf32>
    %34 = tpu.matmul %30, %33, %cst_25 {dimension_numbers = #tpu.dot_dimension_numbers<[1], [0], [0], [1], [0, 0, 1, 1], [], []>} : vector<256x128xbf16>, vector<128x128xbf16>, vector<256x128xf32> -> vector<256x128xf32>
    %35 = arith.addf %31, %34 : vector<256x128xf32>
    %c0_26 = arith.constant 0 : index
    %c0_27 = arith.constant 0 : index
    %36 = vector.load %arg7[%c0_26, %c0_27] : memref<256x128xf32, #tpu.memory_space<vmem>>, vector<256x128xf32>
    tpu.vector_store %arg7[%c0_26, %c0_27], %35 {strides = array<i32>} : memref<256x128xf32, #tpu.memory_space<vmem>>, vector<256x128xf32>,
    %37 = vector.extract_strided_slice %3 {offsets = [1, 1, 0], sizes = [16, 16, 128], strides = [1, 1, 1]} : vector<18x18x128xbf16> to vector<16x16x128xbf16>
    %38 = vector.shape_cast %37 : vector<16x16x128xbf16> to vector<256x128xbf16>
    %c0_28 = arith.constant 0 : index
    %c0_29 = arith.constant 0 : index
    %39 = vector.load %arg7[%c0_28, %c0_29] : memref<256x128xf32, #tpu.memory_space<vmem>>, vector<256x128xf32>
    %40 = vector.extract_strided_slice %4 {offsets = [4, 0, 0], sizes = [1, 128, 128], strides = [1, 1, 1]} : vector<9x128x128xbf16> to vector<1x128x128xbf16>
    %41 = vector.shape_cast %40 : vector<1x128x128xbf16> to vector<128x128xbf16>
    %cst_30 = arith.constant dense<0.000000e+00> : vector<256x128xf32>
    %42 = tpu.matmul %38, %41, %cst_30 {dimension_numbers = #tpu.dot_dimension_numbers<[1], [0], [0], [1], [0, 0, 1, 1], [], []>} : vector<256x128xbf16>, vector<128x128xbf16>, vector<256x128xf32> -> vector<256x128xf32>
    %43 = arith.addf %39, %42 : vector<256x128xf32>
    %c0_31 = arith.constant 0 : index
    %c0_32 = arith.constant 0 : index
    %44 = vector.load %arg7[%c0_31, %c0_32] : memref<256x128xf32, #tpu.memory_space<vmem>>, vector<256x128xf32>
    tpu.vector_store %arg7[%c0_31, %c0_32], %43 {strides = array<i32>} : memref<256x128xf32, #tpu.memory_space<vmem>>, vector<256x128xf32>,
    %45 = vector.extract_strided_slice %3 {offsets = [1, 2, 0], sizes = [16, 16, 128], strides = [1, 1, 1]} : vector<18x18x128xbf16> to vector<16x16x128xbf16>
    %46 = vector.shape_cast %45 : vector<16x16x128xbf16> to vector<256x128xbf16>
    %c0_33 = arith.constant 0 : index
    %c0_34 = arith.constant 0 : index
    %47 = vector.load %arg7[%c0_33, %c0_34] : memref<256x128xf32, #tpu.memory_space<vmem>>, vector<256x128xf32>
    %48 = vector.extract_strided_slice %4 {offsets = [5, 0, 0], sizes = [1, 128, 128], strides = [1, 1, 1]} : vector<9x128x128xbf16> to vector<1x128x128xbf16>
    %49 = vector.shape_cast %48 : vector<1x128x128xbf16> to vector<128x128xbf16>
    %cst_35 = arith.constant dense<0.000000e+00> : vector<256x128xf32>
    %50 = tpu.matmul %46, %49, %cst_35 {dimension_numbers = #tpu.dot_dimension_numbers<[1], [0], [0], [1], [0, 0, 1, 1], [], []>} : vector<256x128xbf16>, vector<128x128xbf16>, vector<256x128xf32> -> vector<256x128xf32>
    %51 = arith.addf %47, %50 : vector<256x128xf32>
    %c0_36 = arith.constant 0 : index
    %c0_37 = arith.constant 0 : index
    %52 = vector.load %arg7[%c0_36, %c0_37] : memref<256x128xf32, #tpu.memory_space<vmem>>, vector<256x128xf32>
    tpu.vector_store %arg7[%c0_36, %c0_37], %51 {strides = array<i32>} : memref<256x128xf32, #tpu.memory_space<vmem>>, vector<256x128xf32>,
    %53 = vector.extract_strided_slice %3 {offsets = [2, 0, 0], sizes = [16, 16, 128], strides = [1, 1, 1]} : vector<18x18x128xbf16> to vector<16x16x128xbf16>
    %54 = vector.shape_cast %53 : vector<16x16x128xbf16> to vector<256x128xbf16>
    %c0_38 = arith.constant 0 : index
    %c0_39 = arith.constant 0 : index
    %55 = vector.load %arg7[%c0_38, %c0_39] : memref<256x128xf32, #tpu.memory_space<vmem>>, vector<256x128xf32>
    %56 = vector.extract_strided_slice %4 {offsets = [6, 0, 0], sizes = [1, 128, 128], strides = [1, 1, 1]} : vector<9x128x128xbf16> to vector<1x128x128xbf16>
    %57 = vector.shape_cast %56 : vector<1x128x128xbf16> to vector<128x128xbf16>
    %cst_40 = arith.constant dense<0.000000e+00> : vector<256x128xf32>
    %58 = tpu.matmul %54, %57, %cst_40 {dimension_numbers = #tpu.dot_dimension_numbers<[1], [0], [0], [1], [0, 0, 1, 1], [], []>} : vector<256x128xbf16>, vector<128x128xbf16>, vector<256x128xf32> -> vector<256x128xf32>
    %59 = arith.addf %55, %58 : vector<256x128xf32>
    %c0_41 = arith.constant 0 : index
    %c0_42 = arith.constant 0 : index
    %60 = vector.load %arg7[%c0_41, %c0_42] : memref<256x128xf32, #tpu.memory_space<vmem>>, vector<256x128xf32>
    tpu.vector_store %arg7[%c0_41, %c0_42], %59 {strides = array<i32>} : memref<256x128xf32, #tpu.memory_space<vmem>>, vector<256x128xf32>,
    %61 = vector.extract_strided_slice %3 {offsets = [2, 1, 0], sizes = [16, 16, 128], strides = [1, 1, 1]} : vector<18x18x128xbf16> to vector<16x16x128xbf16>
    %62 = vector.shape_cast %61 : vector<16x16x128xbf16> to vector<256x128xbf16>
    %c0_43 = arith.constant 0 : index
    %c0_44 = arith.constant 0 : index
    %63 = vector.load %arg7[%c0_43, %c0_44] : memref<256x128xf32, #tpu.memory_space<vmem>>, vector<256x128xf32>
    %64 = vector.extract_strided_slice %4 {offsets = [7, 0, 0], sizes = [1, 128, 128], strides = [1, 1, 1]} : vector<9x128x128xbf16> to vector<1x128x128xbf16>
    %65 = vector.shape_cast %64 : vector<1x128x128xbf16> to vector<128x128xbf16>
    %cst_45 = arith.constant dense<0.000000e+00> : vector<256x128xf32>
    %66 = tpu.matmul %62, %65, %cst_45 {dimension_numbers = #tpu.dot_dimension_numbers<[1], [0], [0], [1], [0, 0, 1, 1], [], []>} : vector<256x128xbf16>, vector<128x128xbf16>, vector<256x128xf32> -> vector<256x128xf32>
    %67 = arith.addf %63, %66 : vector<256x128xf32>
    %c0_46 = arith.constant 0 : index
    %c0_47 = arith.constant 0 : index
    %68 = vector.load %arg7[%c0_46, %c0_47] : memref<256x128xf32, #tpu.memory_space<vmem>>, vector<256x128xf32>
    tpu.vector_store %arg7[%c0_46, %c0_47], %67 {strides = array<i32>} : memref<256x128xf32, #tpu.memory_space<vmem>>, vector<256x128xf32>,
    %69 = vector.extract_strided_slice %3 {offsets = [2, 2, 0], sizes = [16, 16, 128], strides = [1, 1, 1]} : vector<18x18x128xbf16> to vector<16x16x128xbf16>
    %70 = vector.shape_cast %69 : vector<16x16x128xbf16> to vector<256x128xbf16>
    %c0_48 = arith.constant 0 : index
    %c0_49 = arith.constant 0 : index
    %71 = vector.load %arg7[%c0_48, %c0_49] : memref<256x128xf32, #tpu.memory_space<vmem>>, vector<256x128xf32>
    %72 = vector.extract_strided_slice %4 {offsets = [8, 0, 0], sizes = [1, 128, 128], strides = [1, 1, 1]} : vector<9x128x128xbf16> to vector<1x128x128xbf16>
    %73 = vector.shape_cast %72 : vector<1x128x128xbf16> to vector<128x128xbf16>
    %cst_50 = arith.constant dense<0.000000e+00> : vector<256x128xf32>
    %74 = tpu.matmul %70, %73, %cst_50 {dimension_numbers = #tpu.dot_dimension_numbers<[1], [0], [0], [1], [0, 0, 1, 1], [], []>} : vector<256x128xbf16>, vector<128x128xbf16>, vector<256x128xf32> -> vector<256x128xf32>
    %75 = arith.addf %71, %74 : vector<256x128xf32>
    %c0_51 = arith.constant 0 : index
    %c0_52 = arith.constant 0 : index
    %76 = vector.load %arg7[%c0_51, %c0_52] : memref<256x128xf32, #tpu.memory_space<vmem>>, vector<256x128xf32>
    tpu.vector_store %arg7[%c0_51, %c0_52], %75 {strides = array<i32>} : memref<256x128xf32, #tpu.memory_space<vmem>>, vector<256x128xf32>,
    %c0_53 = arith.constant 0 : index
    %c0_54 = arith.constant 0 : index
    %c0_55 = arith.constant 0 : index
    %c0_56 = arith.constant 0 : index
    %77 = vector.load %arg2[%c0_53, %c0_54, %c0_55, %c0_56] : memref<1x18x18x128xbf16, #tpu.memory_space<vmem>>, vector<1x18x18x128xbf16>
    %78 = vector.shape_cast %77 : vector<1x18x18x128xbf16> to vector<18x18x128xbf16>
    %c0_57 = arith.constant 0 : index
    %c0_58 = arith.constant 0 : index
    %c0_59 = arith.constant 0 : index
    %79 = vector.load %arg4[%c0_57, %c0_58, %c0_59] : memref<9x128x128xbf16, #tpu.memory_space<vmem>>, vector<9x128x128xbf16>
    %80 = vector.extract_strided_slice %78 {offsets = [0, 0, 0], sizes = [16, 16, 128], strides = [1, 1, 1]} : vector<18x18x128xbf16> to vector<16x16x128xbf16>
    %81 = vector.shape_cast %80 : vector<16x16x128xbf16> to vector<256x128xbf16>
    %c0_60 = arith.constant 0 : index
    %c0_61 = arith.constant 0 : index
    %82 = vector.load %arg7[%c0_60, %c0_61] : memref<256x128xf32, #tpu.memory_space<vmem>>, vector<256x128xf32>
    %83 = vector.extract_strided_slice %79 {offsets = [0, 0, 0], sizes = [1, 128, 128], strides = [1, 1, 1]} : vector<9x128x128xbf16> to vector<1x128x128xbf16>
    %84 = vector.shape_cast %83 : vector<1x128x128xbf16> to vector<128x128xbf16>
    %cst_62 = arith.constant dense<0.000000e+00> : vector<256x128xf32>
    %85 = tpu.matmul %81, %84, %cst_62 {dimension_numbers = #tpu.dot_dimension_numbers<[1], [0], [0], [1], [0, 0, 1, 1], [], []>} : vector<256x128xbf16>, vector<128x128xbf16>, vector<256x128xf32> -> vector<256x128xf32>
    %86 = arith.addf %82, %85 : vector<256x128xf32>
    %c0_63 = arith.constant 0 : index
    %c0_64 = arith.constant 0 : index
    %87 = vector.load %arg7[%c0_63, %c0_64] : memref<256x128xf32, #tpu.memory_space<vmem>>, vector<256x128xf32>
    tpu.vector_store %arg7[%c0_63, %c0_64], %86 {strides = array<i32>} : memref<256x128xf32, #tpu.memory_space<vmem>>, vector<256x128xf32>,
    %88 = vector.extract_strided_slice %78 {offsets = [0, 1, 0], sizes = [16, 16, 128], strides = [1, 1, 1]} : vector<18x18x128xbf16> to vector<16x16x128xbf16>
    %89 = vector.shape_cast %88 : vector<16x16x128xbf16> to vector<256x128xbf16>
    %c0_65 = arith.constant 0 : index
    %c0_66 = arith.constant 0 : index
    %90 = vector.load %arg7[%c0_65, %c0_66] : memref<256x128xf32, #tpu.memory_space<vmem>>, vector<256x128xf32>
    %91 = vector.extract_strided_slice %79 {offsets = [1, 0, 0], sizes = [1, 128, 128], strides = [1, 1, 1]} : vector<9x128x128xbf16> to vector<1x128x128xbf16>
    %92 = vector.shape_cast %91 : vector<1x128x128xbf16> to vector<128x128xbf16>
    %cst_67 = arith.constant dense<0.000000e+00> : vector<256x128xf32>
    %93 = tpu.matmul %89, %92, %cst_67 {dimension_numbers = #tpu.dot_dimension_numbers<[1], [0], [0], [1], [0, 0, 1, 1], [], []>} : vector<256x128xbf16>, vector<128x128xbf16>, vector<256x128xf32> -> vector<256x128xf32>
    %94 = arith.addf %90, %93 : vector<256x128xf32>
    %c0_68 = arith.constant 0 : index
    %c0_69 = arith.constant 0 : index
    %95 = vector.load %arg7[%c0_68, %c0_69] : memref<256x128xf32, #tpu.memory_space<vmem>>, vector<256x128xf32>
    tpu.vector_store %arg7[%c0_68, %c0_69], %94 {strides = array<i32>} : memref<256x128xf32, #tpu.memory_space<vmem>>, vector<256x128xf32>,
    %96 = vector.extract_strided_slice %78 {offsets = [0, 2, 0], sizes = [16, 16, 128], strides = [1, 1, 1]} : vector<18x18x128xbf16> to vector<16x16x128xbf16>
    %97 = vector.shape_cast %96 : vector<16x16x128xbf16> to vector<256x128xbf16>
    %c0_70 = arith.constant 0 : index
    %c0_71 = arith.constant 0 : index
    %98 = vector.load %arg7[%c0_70, %c0_71] : memref<256x128xf32, #tpu.memory_space<vmem>>, vector<256x128xf32>
    %99 = vector.extract_strided_slice %79 {offsets = [2, 0, 0], sizes = [1, 128, 128], strides = [1, 1, 1]} : vector<9x128x128xbf16> to vector<1x128x128xbf16>
    %100 = vector.shape_cast %99 : vector<1x128x128xbf16> to vector<128x128xbf16>
    %cst_72 = arith.constant dense<0.000000e+00> : vector<256x128xf32>
    %101 = tpu.matmul %97, %100, %cst_72 {dimension_numbers = #tpu.dot_dimension_numbers<[1], [0], [0], [1], [0, 0, 1, 1], [], []>} : vector<256x128xbf16>, vector<128x128xbf16>, vector<256x128xf32> -> vector<256x128xf32>
    %102 = arith.addf %98, %101 : vector<256x128xf32>
    %c0_73 = arith.constant 0 : index
    %c0_74 = arith.constant 0 : index
    %103 = vector.load %arg7[%c0_73, %c0_74] : memref<256x128xf32, #tpu.memory_space<vmem>>, vector<256x128xf32>
    tpu.vector_store %arg7[%c0_73, %c0_74], %102 {strides = array<i32>} : memref<256x128xf32, #tpu.memory_space<vmem>>, vector<256x128xf32>,
    %104 = vector.extract_strided_slice %78 {offsets = [1, 0, 0], sizes = [16, 16, 128], strides = [1, 1, 1]} : vector<18x18x128xbf16> to vector<16x16x128xbf16>
    %105 = vector.shape_cast %104 : vector<16x16x128xbf16> to vector<256x128xbf16>
    %c0_75 = arith.constant 0 : index
    %c0_76 = arith.constant 0 : index
    %106 = vector.load %arg7[%c0_75, %c0_76] : memref<256x128xf32, #tpu.memory_space<vmem>>, vector<256x128xf32>
    %107 = vector.extract_strided_slice %79 {offsets = [3, 0, 0], sizes = [1, 128, 128], strides = [1, 1, 1]} : vector<9x128x128xbf16> to vector<1x128x128xbf16>
    %108 = vector.shape_cast %107 : vector<1x128x128xbf16> to vector<128x128xbf16>
    %cst_77 = arith.constant dense<0.000000e+00> : vector<256x128xf32>
    %109 = tpu.matmul %105, %108, %cst_77 {dimension_numbers = #tpu.dot_dimension_numbers<[1], [0], [0], [1], [0, 0, 1, 1], [], []>} : vector<256x128xbf16>, vector<128x128xbf16>, vector<256x128xf32> -> vector<256x128xf32>
    %110 = arith.addf %106, %109 : vector<256x128xf32>
    %c0_78 = arith.constant 0 : index
    %c0_79 = arith.constant 0 : index
    %111 = vector.load %arg7[%c0_78, %c0_79] : memref<256x128xf32, #tpu.memory_space<vmem>>, vector<256x128xf32>
    tpu.vector_store %arg7[%c0_78, %c0_79], %110 {strides = array<i32>} : memref<256x128xf32, #tpu.memory_space<vmem>>, vector<256x128xf32>,
    %112 = vector.extract_strided_slice %78 {offsets = [1, 1, 0], sizes = [16, 16, 128], strides = [1, 1, 1]} : vector<18x18x128xbf16> to vector<16x16x128xbf16>
    %113 = vector.shape_cast %112 : vector<16x16x128xbf16> to vector<256x128xbf16>
    %c0_80 = arith.constant 0 : index
    %c0_81 = arith.constant 0 : index
    %114 = vector.load %arg7[%c0_80, %c0_81] : memref<256x128xf32, #tpu.memory_space<vmem>>, vector<256x128xf32>
    %115 = vector.extract_strided_slice %79 {offsets = [4, 0, 0], sizes = [1, 128, 128], strides = [1, 1, 1]} : vector<9x128x128xbf16> to vector<1x128x128xbf16>
    %116 = vector.shape_cast %115 : vector<1x128x128xbf16> to vector<128x128xbf16>
    %cst_82 = arith.constant dense<0.000000e+00> : vector<256x128xf32>
    %117 = tpu.matmul %113, %116, %cst_82 {dimension_numbers = #tpu.dot_dimension_numbers<[1], [0], [0], [1], [0, 0, 1, 1], [], []>} : vector<256x128xbf16>, vector<128x128xbf16>, vector<256x128xf32> -> vector<256x128xf32>
    %118 = arith.addf %114, %117 : vector<256x128xf32>
    %c0_83 = arith.constant 0 : index
    %c0_84 = arith.constant 0 : index
    %119 = vector.load %arg7[%c0_83, %c0_84] : memref<256x128xf32, #tpu.memory_space<vmem>>, vector<256x128xf32>
    tpu.vector_store %arg7[%c0_83, %c0_84], %118 {strides = array<i32>} : memref<256x128xf32, #tpu.memory_space<vmem>>, vector<256x128xf32>,
    %120 = vector.extract_strided_slice %78 {offsets = [1, 2, 0], sizes = [16, 16, 128], strides = [1, 1, 1]} : vector<18x18x128xbf16> to vector<16x16x128xbf16>
    %121 = vector.shape_cast %120 : vector<16x16x128xbf16> to vector<256x128xbf16>
    %c0_85 = arith.constant 0 : index
    %c0_86 = arith.constant 0 : index
    %122 = vector.load %arg7[%c0_85, %c0_86] : memref<256x128xf32, #tpu.memory_space<vmem>>, vector<256x128xf32>
    %123 = vector.extract_strided_slice %79 {offsets = [5, 0, 0], sizes = [1, 128, 128], strides = [1, 1, 1]} : vector<9x128x128xbf16> to vector<1x128x128xbf16>
    %124 = vector.shape_cast %123 : vector<1x128x128xbf16> to vector<128x128xbf16>
    %cst_87 = arith.constant dense<0.000000e+00> : vector<256x128xf32>
    %125 = tpu.matmul %121, %124, %cst_87 {dimension_numbers = #tpu.dot_dimension_numbers<[1], [0], [0], [1], [0, 0, 1, 1], [], []>} : vector<256x128xbf16>, vector<128x128xbf16>, vector<256x128xf32> -> vector<256x128xf32>
    %126 = arith.addf %122, %125 : vector<256x128xf32>
    %c0_88 = arith.constant 0 : index
    %c0_89 = arith.constant 0 : index
    %127 = vector.load %arg7[%c0_88, %c0_89] : memref<256x128xf32, #tpu.memory_space<vmem>>, vector<256x128xf32>
    tpu.vector_store %arg7[%c0_88, %c0_89], %126 {strides = array<i32>} : memref<256x128xf32, #tpu.memory_space<vmem>>, vector<256x128xf32>,
    %128 = vector.extract_strided_slice %78 {offsets = [2, 0, 0], sizes = [16, 16, 128], strides = [1, 1, 1]} : vector<18x18x128xbf16> to vector<16x16x128xbf16>
    %129 = vector.shape_cast %128 : vector<16x16x128xbf16> to vector<256x128xbf16>
    %c0_90 = arith.constant 0 : index
    %c0_91 = arith.constant 0 : index
    %130 = vector.load %arg7[%c0_90, %c0_91] : memref<256x128xf32, #tpu.memory_space<vmem>>, vector<256x128xf32>
    %131 = vector.extract_strided_slice %79 {offsets = [6, 0, 0], sizes = [1, 128, 128], strides = [1, 1, 1]} : vector<9x128x128xbf16> to vector<1x128x128xbf16>
    %132 = vector.shape_cast %131 : vector<1x128x128xbf16> to vector<128x128xbf16>
    %cst_92 = arith.constant dense<0.000000e+00> : vector<256x128xf32>
    %133 = tpu.matmul %129, %132, %cst_92 {dimension_numbers = #tpu.dot_dimension_numbers<[1], [0], [0], [1], [0, 0, 1, 1], [], []>} : vector<256x128xbf16>, vector<128x128xbf16>, vector<256x128xf32> -> vector<256x128xf32>
    %134 = arith.addf %130, %133 : vector<256x128xf32>
    %c0_93 = arith.constant 0 : index
    %c0_94 = arith.constant 0 : index
    %135 = vector.load %arg7[%c0_93, %c0_94] : memref<256x128xf32, #tpu.memory_space<vmem>>, vector<256x128xf32>
    tpu.vector_store %arg7[%c0_93, %c0_94], %134 {strides = array<i32>} : memref<256x128xf32, #tpu.memory_space<vmem>>, vector<256x128xf32>,
    %136 = vector.extract_strided_slice %78 {offsets = [2, 1, 0], sizes = [16, 16, 128], strides = [1, 1, 1]} : vector<18x18x128xbf16> to vector<16x16x128xbf16>
    %137 = vector.shape_cast %136 : vector<16x16x128xbf16> to vector<256x128xbf16>
    %c0_95 = arith.constant 0 : index
    %c0_96 = arith.constant 0 : index
    %138 = vector.load %arg7[%c0_95, %c0_96] : memref<256x128xf32, #tpu.memory_space<vmem>>, vector<256x128xf32>
    %139 = vector.extract_strided_slice %79 {offsets = [7, 0, 0], sizes = [1, 128, 128], strides = [1, 1, 1]} : vector<9x128x128xbf16> to vector<1x128x128xbf16>
    %140 = vector.shape_cast %139 : vector<1x128x128xbf16> to vector<128x128xbf16>
    %cst_97 = arith.constant dense<0.000000e+00> : vector<256x128xf32>
    %141 = tpu.matmul %137, %140, %cst_97 {dimension_numbers = #tpu.dot_dimension_numbers<[1], [0], [0], [1], [0, 0, 1, 1], [], []>} : vector<256x128xbf16>, vector<128x128xbf16>, vector<256x128xf32> -> vector<256x128xf32>
    %142 = arith.addf %138, %141 : vector<256x128xf32>
    %c0_98 = arith.constant 0 : index
    %c0_99 = arith.constant 0 : index
    %143 = vector.load %arg7[%c0_98, %c0_99] : memref<256x128xf32, #tpu.memory_space<vmem>>, vector<256x128xf32>
    tpu.vector_store %arg7[%c0_98, %c0_99], %142 {strides = array<i32>} : memref<256x128xf32, #tpu.memory_space<vmem>>, vector<256x128xf32>,
    %144 = vector.extract_strided_slice %78 {offsets = [2, 2, 0], sizes = [16, 16, 128], strides = [1, 1, 1]} : vector<18x18x128xbf16> to vector<16x16x128xbf16>
    %145 = vector.shape_cast %144 : vector<16x16x128xbf16> to vector<256x128xbf16>
    %c0_100 = arith.constant 0 : index
    %c0_101 = arith.constant 0 : index
    %146 = vector.load %arg7[%c0_100, %c0_101] : memref<256x128xf32, #tpu.memory_space<vmem>>, vector<256x128xf32>
    %147 = vector.extract_strided_slice %79 {offsets = [8, 0, 0], sizes = [1, 128, 128], strides = [1, 1, 1]} : vector<9x128x128xbf16> to vector<1x128x128xbf16>
    %148 = vector.shape_cast %147 : vector<1x128x128xbf16> to vector<128x128xbf16>
    %cst_102 = arith.constant dense<0.000000e+00> : vector<256x128xf32>
    %149 = tpu.matmul %145, %148, %cst_102 {dimension_numbers = #tpu.dot_dimension_numbers<[1], [0], [0], [1], [0, 0, 1, 1], [], []>} : vector<256x128xbf16>, vector<128x128xbf16>, vector<256x128xf32> -> vector<256x128xf32>
    %150 = arith.addf %146, %149 : vector<256x128xf32>
    %c0_103 = arith.constant 0 : index
    %c0_104 = arith.constant 0 : index
    %151 = vector.load %arg7[%c0_103, %c0_104] : memref<256x128xf32, #tpu.memory_space<vmem>>, vector<256x128xf32>
    tpu.vector_store %arg7[%c0_103, %c0_104], %150 {strides = array<i32>} : memref<256x128xf32, #tpu.memory_space<vmem>>, vector<256x128xf32>,
    %c0_105 = arith.constant 0 : index
    %c0_106 = arith.constant 0 : index
    %152 = vector.load %arg7[%c0_105, %c0_106] : memref<256x128xf32, #tpu.memory_space<vmem>>, vector<256x128xf32>
    %153 = vector.shape_cast %152 : vector<256x128xf32> to vector<1x256x128xf32>
    %c0_107 = arith.constant 0 : index
    %c0_108 = arith.constant 0 : index
    %c0_109 = arith.constant 0 : index
    %154 = vector.load %arg5[%c0_107, %c0_108, %c0_109] : memref<1x256x128xf32, #tpu.memory_space<vmem>>, vector<1x256x128xf32>
    tpu.vector_store %arg5[%c0_107, %c0_108, %c0_109], %153 {strides = array<i32>} : memref<1x256x128xf32, #tpu.memory_space<vmem>>, vector<1x256x128xf32>,
    %c0_i32 = arith.constant 0 : i32
    %155 = arith.cmpi eq, %arg0, %c0_i32 : i32
    %156 = arith.extui %155 : i1 to i32
    %c0_i32_110 = arith.constant 0 : i32
    %157 = arith.cmpi ne, %156, %c0_i32_110 : i32
    scf.if %157 {
      %cst_117 = arith.constant 0.000000e+00 : f32
      %167 = vector.broadcast %cst_117 : f32 to vector<2x128xf32>
      %c0_118 = arith.constant 0 : index
      %c0_119 = arith.constant 0 : index
      %168 = vector.load %arg6[%c0_118, %c0_119] : memref<2x128xf32, #tpu.memory_space<vmem>>, vector<2x128xf32>
      tpu.vector_store %arg6[%c0_118, %c0_119], %167 {strides = array<i32>} : memref<2x128xf32, #tpu.memory_space<vmem>>, vector<2x128xf32>,
    } else {
    }
    %cst_111 = arith.constant dense<0.000000e+00> : vector<128xf32>
    %158 = vector.multi_reduction <add>, %152, %cst_111 [0] : vector<256x128xf32> to vector<128xf32>
    %159 = vector.shape_cast %158 : vector<128xf32> to vector<1x128xf32>
    %160 = arith.mulf %152, %152 : vector<256x128xf32>
    %cst_112 = arith.constant dense<0.000000e+00> : vector<128xf32>
    %161 = vector.multi_reduction <add>, %160, %cst_112 [0] : vector<256x128xf32> to vector<128xf32>
    %162 = vector.shape_cast %161 : vector<128xf32> to vector<1x128xf32>
    %c0_113 = arith.constant 0 : index
    %c0_114 = arith.constant 0 : index
    %163 = vector.load %arg6[%c0_113, %c0_114] : memref<2x128xf32, #tpu.memory_space<vmem>>, vector<2x128xf32>
    %164 = tpu.concatenate %159, %162 in 0 : vector<1x128xf32>, vector<1x128xf32> -> vector<2x128xf32>
    %165 = arith.addf %163, %164 : vector<2x128xf32>
    %c0_115 = arith.constant 0 : index
    %c0_116 = arith.constant 0 : index
    %166 = vector.load %arg6[%c0_115, %c0_116] : memref<2x128xf32, #tpu.memory_space<vmem>>, vector<2x128xf32>
    tpu.vector_store %arg6[%c0_115, %c0_116], %165 {strides = array<i32>} : memref<2x128xf32, #tpu.memory_space<vmem>>, vector<2x128xf32>,
    return
  }
  func.func @transform_0(%arg0: i32) -> (i32, i32, i32, i32) {
    %c0_i32 = arith.constant 0 : i32
    %c0_i32_0 = arith.constant 0 : i32
    %c0_i32_1 = arith.constant 0 : i32
    %c0_i32_2 = arith.constant 0 : i32
    return %arg0, %c0_i32, %c0_i32_0, %c0_i32_1 : i32, i32, i32, i32
  }
  func.func @transform_1(%arg0: i32) -> (i32, i32, i32, i32) {
    %c0_i32 = arith.constant 0 : i32
    %c0_i32_0 = arith.constant 0 : i32
    %c0_i32_1 = arith.constant 0 : i32
    %c0_i32_2 = arith.constant 0 : i32
    return %arg0, %c0_i32, %c0_i32_0, %c0_i32_1 : i32, i32, i32, i32
  }
  func.func @transform_2(%arg0: i32) -> (i32, i32, i32) {
    %c0_i32 = arith.constant 0 : i32
    %c0_i32_0 = arith.constant 0 : i32
    %c0_i32_1 = arith.constant 0 : i32
    %c0_i32_2 = arith.constant 0 : i32
    return %c0_i32, %c0_i32_0, %c0_i32_1 : i32, i32, i32
  }
  func.func @transform_3(%arg0: i32) -> (i32, i32, i32) {
    %c0_i32 = arith.constant 0 : i32
    %c0_i32_0 = arith.constant 0 : i32
    %c0_i32_1 = arith.constant 0 : i32
    %c0_i32_2 = arith.constant 0 : i32
    return %c0_i32, %c0_i32_0, %c0_i32_1 : i32, i32, i32
  }
  func.func @transform_4(%arg0: i32) -> (i32, i32, i32) {
    %c0_i32 = arith.constant 0 : i32
    %c0_i32_0 = arith.constant 0 : i32
    %c0_i32_1 = arith.constant 0 : i32
    return %arg0, %c0_i32, %c0_i32_0 : i32, i32, i32
  }
  func.func @transform_5(%arg0: i32) -> (i32, i32) {
    %c0_i32 = arith.constant 0 : i32
    %c0_i32_0 = arith.constant 0 : i32
    %c0_i32_1 = arith.constant 0 : i32
    return %c0_i32, %c0_i32_0 : i32, i32
  }
}

module attributes {stable_mosaic.version = 11 : i64} {
  func.func @kernel(%arg0: i32, %arg1: memref<1x18x18x128xbf16, #tpu.memory_space<vmem>>, %arg2: memref<9x128x128xbf16, #tpu.memory_space<vmem>>, %arg3: memref<1x256x128xf32, #tpu.memory_space<vmem>>, %arg4: memref<2x128xf32, #tpu.memory_space<vmem>>, %arg5: memref<256x128xf32, #tpu.memory_space<vmem>>) attributes {dimension_semantics = [#tpu.dimension_semantics<arbitrary>], iteration_bounds = array<i64: 2>, scalar_prefetch = 0 : i64, scratch_operands = 1 : i64, tpu.core_type = #tpu.core_type<tc>, window_params = [{transform_indices = @transform_0, window_bounds = array<i64: 1, 18, 18, 128>}, {pipeline_mode = #tpu.pipeline_mode<synchronous>, transform_indices = @transform_1, window_bounds = array<i64: 9, 128, 128>}, {transform_indices = @transform_2, window_bounds = array<i64: 1, 256, 128>}, {pipeline_mode = #tpu.pipeline_mode<synchronous>, transform_indices = @transform_3, window_bounds = array<i64: 2, 128>}]} {
    %cst = arith.constant 0.000000e+00 : f32
    %0 = vector.broadcast %cst : f32 to vector<256x128xf32>
    %c0 = arith.constant 0 : index
    %c0_0 = arith.constant 0 : index
    %1 = vector.load %arg5[%c0, %c0_0] : memref<256x128xf32, #tpu.memory_space<vmem>>, vector<256x128xf32>
    tpu.vector_store %arg5[%c0, %c0_0], %0 {strides = array<i32>} : memref<256x128xf32, #tpu.memory_space<vmem>>, vector<256x128xf32>,
    %c0_1 = arith.constant 0 : index
    %c0_2 = arith.constant 0 : index
    %c0_3 = arith.constant 0 : index
    %c0_4 = arith.constant 0 : index
    %2 = vector.load %arg1[%c0_1, %c0_2, %c0_3, %c0_4] : memref<1x18x18x128xbf16, #tpu.memory_space<vmem>>, vector<1x18x18x128xbf16>
    %3 = vector.shape_cast %2 : vector<1x18x18x128xbf16> to vector<18x18x128xbf16>
    %c0_5 = arith.constant 0 : index
    %c0_6 = arith.constant 0 : index
    %c0_7 = arith.constant 0 : index
    %4 = vector.load %arg2[%c0_5, %c0_6, %c0_7] : memref<9x128x128xbf16, #tpu.memory_space<vmem>>, vector<9x128x128xbf16>
    %5 = vector.extract_strided_slice %3 {offsets = [0, 0, 0], sizes = [16, 16, 128], strides = [1, 1, 1]} : vector<18x18x128xbf16> to vector<16x16x128xbf16>
    %6 = vector.shape_cast %5 : vector<16x16x128xbf16> to vector<256x128xbf16>
    %c0_8 = arith.constant 0 : index
    %c0_9 = arith.constant 0 : index
    %7 = vector.load %arg5[%c0_8, %c0_9] : memref<256x128xf32, #tpu.memory_space<vmem>>, vector<256x128xf32>
    %8 = vector.extract_strided_slice %4 {offsets = [0, 0, 0], sizes = [1, 128, 128], strides = [1, 1, 1]} : vector<9x128x128xbf16> to vector<1x128x128xbf16>
    %9 = vector.shape_cast %8 : vector<1x128x128xbf16> to vector<128x128xbf16>
    %cst_10 = arith.constant dense<0.000000e+00> : vector<256x128xf32>
    %10 = tpu.matmul %6, %9, %cst_10 {dimension_numbers = #tpu.dot_dimension_numbers<[1], [0], [0], [1], [0, 0, 1, 1], [], []>} : vector<256x128xbf16>, vector<128x128xbf16>, vector<256x128xf32> -> vector<256x128xf32>
    %11 = arith.addf %7, %10 : vector<256x128xf32>
    %c0_11 = arith.constant 0 : index
    %c0_12 = arith.constant 0 : index
    %12 = vector.load %arg5[%c0_11, %c0_12] : memref<256x128xf32, #tpu.memory_space<vmem>>, vector<256x128xf32>
    tpu.vector_store %arg5[%c0_11, %c0_12], %11 {strides = array<i32>} : memref<256x128xf32, #tpu.memory_space<vmem>>, vector<256x128xf32>,
    %13 = vector.extract_strided_slice %3 {offsets = [0, 1, 0], sizes = [16, 16, 128], strides = [1, 1, 1]} : vector<18x18x128xbf16> to vector<16x16x128xbf16>
    %14 = vector.shape_cast %13 : vector<16x16x128xbf16> to vector<256x128xbf16>
    %c0_13 = arith.constant 0 : index
    %c0_14 = arith.constant 0 : index
    %15 = vector.load %arg5[%c0_13, %c0_14] : memref<256x128xf32, #tpu.memory_space<vmem>>, vector<256x128xf32>
    %16 = vector.extract_strided_slice %4 {offsets = [1, 0, 0], sizes = [1, 128, 128], strides = [1, 1, 1]} : vector<9x128x128xbf16> to vector<1x128x128xbf16>
    %17 = vector.shape_cast %16 : vector<1x128x128xbf16> to vector<128x128xbf16>
    %cst_15 = arith.constant dense<0.000000e+00> : vector<256x128xf32>
    %18 = tpu.matmul %14, %17, %cst_15 {dimension_numbers = #tpu.dot_dimension_numbers<[1], [0], [0], [1], [0, 0, 1, 1], [], []>} : vector<256x128xbf16>, vector<128x128xbf16>, vector<256x128xf32> -> vector<256x128xf32>
    %19 = arith.addf %15, %18 : vector<256x128xf32>
    %c0_16 = arith.constant 0 : index
    %c0_17 = arith.constant 0 : index
    %20 = vector.load %arg5[%c0_16, %c0_17] : memref<256x128xf32, #tpu.memory_space<vmem>>, vector<256x128xf32>
    tpu.vector_store %arg5[%c0_16, %c0_17], %19 {strides = array<i32>} : memref<256x128xf32, #tpu.memory_space<vmem>>, vector<256x128xf32>,
    %21 = vector.extract_strided_slice %3 {offsets = [0, 2, 0], sizes = [16, 16, 128], strides = [1, 1, 1]} : vector<18x18x128xbf16> to vector<16x16x128xbf16>
    %22 = vector.shape_cast %21 : vector<16x16x128xbf16> to vector<256x128xbf16>
    %c0_18 = arith.constant 0 : index
    %c0_19 = arith.constant 0 : index
    %23 = vector.load %arg5[%c0_18, %c0_19] : memref<256x128xf32, #tpu.memory_space<vmem>>, vector<256x128xf32>
    %24 = vector.extract_strided_slice %4 {offsets = [2, 0, 0], sizes = [1, 128, 128], strides = [1, 1, 1]} : vector<9x128x128xbf16> to vector<1x128x128xbf16>
    %25 = vector.shape_cast %24 : vector<1x128x128xbf16> to vector<128x128xbf16>
    %cst_20 = arith.constant dense<0.000000e+00> : vector<256x128xf32>
    %26 = tpu.matmul %22, %25, %cst_20 {dimension_numbers = #tpu.dot_dimension_numbers<[1], [0], [0], [1], [0, 0, 1, 1], [], []>} : vector<256x128xbf16>, vector<128x128xbf16>, vector<256x128xf32> -> vector<256x128xf32>
    %27 = arith.addf %23, %26 : vector<256x128xf32>
    %c0_21 = arith.constant 0 : index
    %c0_22 = arith.constant 0 : index
    %28 = vector.load %arg5[%c0_21, %c0_22] : memref<256x128xf32, #tpu.memory_space<vmem>>, vector<256x128xf32>
    tpu.vector_store %arg5[%c0_21, %c0_22], %27 {strides = array<i32>} : memref<256x128xf32, #tpu.memory_space<vmem>>, vector<256x128xf32>,
    %29 = vector.extract_strided_slice %3 {offsets = [1, 0, 0], sizes = [16, 16, 128], strides = [1, 1, 1]} : vector<18x18x128xbf16> to vector<16x16x128xbf16>
    %30 = vector.shape_cast %29 : vector<16x16x128xbf16> to vector<256x128xbf16>
    %c0_23 = arith.constant 0 : index
    %c0_24 = arith.constant 0 : index
    %31 = vector.load %arg5[%c0_23, %c0_24] : memref<256x128xf32, #tpu.memory_space<vmem>>, vector<256x128xf32>
    %32 = vector.extract_strided_slice %4 {offsets = [3, 0, 0], sizes = [1, 128, 128], strides = [1, 1, 1]} : vector<9x128x128xbf16> to vector<1x128x128xbf16>
    %33 = vector.shape_cast %32 : vector<1x128x128xbf16> to vector<128x128xbf16>
    %cst_25 = arith.constant dense<0.000000e+00> : vector<256x128xf32>
    %34 = tpu.matmul %30, %33, %cst_25 {dimension_numbers = #tpu.dot_dimension_numbers<[1], [0], [0], [1], [0, 0, 1, 1], [], []>} : vector<256x128xbf16>, vector<128x128xbf16>, vector<256x128xf32> -> vector<256x128xf32>
    %35 = arith.addf %31, %34 : vector<256x128xf32>
    %c0_26 = arith.constant 0 : index
    %c0_27 = arith.constant 0 : index
    %36 = vector.load %arg5[%c0_26, %c0_27] : memref<256x128xf32, #tpu.memory_space<vmem>>, vector<256x128xf32>
    tpu.vector_store %arg5[%c0_26, %c0_27], %35 {strides = array<i32>} : memref<256x128xf32, #tpu.memory_space<vmem>>, vector<256x128xf32>,
    %37 = vector.extract_strided_slice %3 {offsets = [1, 1, 0], sizes = [16, 16, 128], strides = [1, 1, 1]} : vector<18x18x128xbf16> to vector<16x16x128xbf16>
    %38 = vector.shape_cast %37 : vector<16x16x128xbf16> to vector<256x128xbf16>
    %c0_28 = arith.constant 0 : index
    %c0_29 = arith.constant 0 : index
    %39 = vector.load %arg5[%c0_28, %c0_29] : memref<256x128xf32, #tpu.memory_space<vmem>>, vector<256x128xf32>
    %40 = vector.extract_strided_slice %4 {offsets = [4, 0, 0], sizes = [1, 128, 128], strides = [1, 1, 1]} : vector<9x128x128xbf16> to vector<1x128x128xbf16>
    %41 = vector.shape_cast %40 : vector<1x128x128xbf16> to vector<128x128xbf16>
    %cst_30 = arith.constant dense<0.000000e+00> : vector<256x128xf32>
    %42 = tpu.matmul %38, %41, %cst_30 {dimension_numbers = #tpu.dot_dimension_numbers<[1], [0], [0], [1], [0, 0, 1, 1], [], []>} : vector<256x128xbf16>, vector<128x128xbf16>, vector<256x128xf32> -> vector<256x128xf32>
    %43 = arith.addf %39, %42 : vector<256x128xf32>
    %c0_31 = arith.constant 0 : index
    %c0_32 = arith.constant 0 : index
    %44 = vector.load %arg5[%c0_31, %c0_32] : memref<256x128xf32, #tpu.memory_space<vmem>>, vector<256x128xf32>
    tpu.vector_store %arg5[%c0_31, %c0_32], %43 {strides = array<i32>} : memref<256x128xf32, #tpu.memory_space<vmem>>, vector<256x128xf32>,
    %45 = vector.extract_strided_slice %3 {offsets = [1, 2, 0], sizes = [16, 16, 128], strides = [1, 1, 1]} : vector<18x18x128xbf16> to vector<16x16x128xbf16>
    %46 = vector.shape_cast %45 : vector<16x16x128xbf16> to vector<256x128xbf16>
    %c0_33 = arith.constant 0 : index
    %c0_34 = arith.constant 0 : index
    %47 = vector.load %arg5[%c0_33, %c0_34] : memref<256x128xf32, #tpu.memory_space<vmem>>, vector<256x128xf32>
    %48 = vector.extract_strided_slice %4 {offsets = [5, 0, 0], sizes = [1, 128, 128], strides = [1, 1, 1]} : vector<9x128x128xbf16> to vector<1x128x128xbf16>
    %49 = vector.shape_cast %48 : vector<1x128x128xbf16> to vector<128x128xbf16>
    %cst_35 = arith.constant dense<0.000000e+00> : vector<256x128xf32>
    %50 = tpu.matmul %46, %49, %cst_35 {dimension_numbers = #tpu.dot_dimension_numbers<[1], [0], [0], [1], [0, 0, 1, 1], [], []>} : vector<256x128xbf16>, vector<128x128xbf16>, vector<256x128xf32> -> vector<256x128xf32>
    %51 = arith.addf %47, %50 : vector<256x128xf32>
    %c0_36 = arith.constant 0 : index
    %c0_37 = arith.constant 0 : index
    %52 = vector.load %arg5[%c0_36, %c0_37] : memref<256x128xf32, #tpu.memory_space<vmem>>, vector<256x128xf32>
    tpu.vector_store %arg5[%c0_36, %c0_37], %51 {strides = array<i32>} : memref<256x128xf32, #tpu.memory_space<vmem>>, vector<256x128xf32>,
    %53 = vector.extract_strided_slice %3 {offsets = [2, 0, 0], sizes = [16, 16, 128], strides = [1, 1, 1]} : vector<18x18x128xbf16> to vector<16x16x128xbf16>
    %54 = vector.shape_cast %53 : vector<16x16x128xbf16> to vector<256x128xbf16>
    %c0_38 = arith.constant 0 : index
    %c0_39 = arith.constant 0 : index
    %55 = vector.load %arg5[%c0_38, %c0_39] : memref<256x128xf32, #tpu.memory_space<vmem>>, vector<256x128xf32>
    %56 = vector.extract_strided_slice %4 {offsets = [6, 0, 0], sizes = [1, 128, 128], strides = [1, 1, 1]} : vector<9x128x128xbf16> to vector<1x128x128xbf16>
    %57 = vector.shape_cast %56 : vector<1x128x128xbf16> to vector<128x128xbf16>
    %cst_40 = arith.constant dense<0.000000e+00> : vector<256x128xf32>
    %58 = tpu.matmul %54, %57, %cst_40 {dimension_numbers = #tpu.dot_dimension_numbers<[1], [0], [0], [1], [0, 0, 1, 1], [], []>} : vector<256x128xbf16>, vector<128x128xbf16>, vector<256x128xf32> -> vector<256x128xf32>
    %59 = arith.addf %55, %58 : vector<256x128xf32>
    %c0_41 = arith.constant 0 : index
    %c0_42 = arith.constant 0 : index
    %60 = vector.load %arg5[%c0_41, %c0_42] : memref<256x128xf32, #tpu.memory_space<vmem>>, vector<256x128xf32>
    tpu.vector_store %arg5[%c0_41, %c0_42], %59 {strides = array<i32>} : memref<256x128xf32, #tpu.memory_space<vmem>>, vector<256x128xf32>,
    %61 = vector.extract_strided_slice %3 {offsets = [2, 1, 0], sizes = [16, 16, 128], strides = [1, 1, 1]} : vector<18x18x128xbf16> to vector<16x16x128xbf16>
    %62 = vector.shape_cast %61 : vector<16x16x128xbf16> to vector<256x128xbf16>
    %c0_43 = arith.constant 0 : index
    %c0_44 = arith.constant 0 : index
    %63 = vector.load %arg5[%c0_43, %c0_44] : memref<256x128xf32, #tpu.memory_space<vmem>>, vector<256x128xf32>
    %64 = vector.extract_strided_slice %4 {offsets = [7, 0, 0], sizes = [1, 128, 128], strides = [1, 1, 1]} : vector<9x128x128xbf16> to vector<1x128x128xbf16>
    %65 = vector.shape_cast %64 : vector<1x128x128xbf16> to vector<128x128xbf16>
    %cst_45 = arith.constant dense<0.000000e+00> : vector<256x128xf32>
    %66 = tpu.matmul %62, %65, %cst_45 {dimension_numbers = #tpu.dot_dimension_numbers<[1], [0], [0], [1], [0, 0, 1, 1], [], []>} : vector<256x128xbf16>, vector<128x128xbf16>, vector<256x128xf32> -> vector<256x128xf32>
    %67 = arith.addf %63, %66 : vector<256x128xf32>
    %c0_46 = arith.constant 0 : index
    %c0_47 = arith.constant 0 : index
    %68 = vector.load %arg5[%c0_46, %c0_47] : memref<256x128xf32, #tpu.memory_space<vmem>>, vector<256x128xf32>
    tpu.vector_store %arg5[%c0_46, %c0_47], %67 {strides = array<i32>} : memref<256x128xf32, #tpu.memory_space<vmem>>, vector<256x128xf32>,
    %69 = vector.extract_strided_slice %3 {offsets = [2, 2, 0], sizes = [16, 16, 128], strides = [1, 1, 1]} : vector<18x18x128xbf16> to vector<16x16x128xbf16>
    %70 = vector.shape_cast %69 : vector<16x16x128xbf16> to vector<256x128xbf16>
    %c0_48 = arith.constant 0 : index
    %c0_49 = arith.constant 0 : index
    %71 = vector.load %arg5[%c0_48, %c0_49] : memref<256x128xf32, #tpu.memory_space<vmem>>, vector<256x128xf32>
    %72 = vector.extract_strided_slice %4 {offsets = [8, 0, 0], sizes = [1, 128, 128], strides = [1, 1, 1]} : vector<9x128x128xbf16> to vector<1x128x128xbf16>
    %73 = vector.shape_cast %72 : vector<1x128x128xbf16> to vector<128x128xbf16>
    %cst_50 = arith.constant dense<0.000000e+00> : vector<256x128xf32>
    %74 = tpu.matmul %70, %73, %cst_50 {dimension_numbers = #tpu.dot_dimension_numbers<[1], [0], [0], [1], [0, 0, 1, 1], [], []>} : vector<256x128xbf16>, vector<128x128xbf16>, vector<256x128xf32> -> vector<256x128xf32>
    %75 = arith.addf %71, %74 : vector<256x128xf32>
    %c0_51 = arith.constant 0 : index
    %c0_52 = arith.constant 0 : index
    %76 = vector.load %arg5[%c0_51, %c0_52] : memref<256x128xf32, #tpu.memory_space<vmem>>, vector<256x128xf32>
    tpu.vector_store %arg5[%c0_51, %c0_52], %75 {strides = array<i32>} : memref<256x128xf32, #tpu.memory_space<vmem>>, vector<256x128xf32>,
    %c0_53 = arith.constant 0 : index
    %c0_54 = arith.constant 0 : index
    %77 = vector.load %arg5[%c0_53, %c0_54] : memref<256x128xf32, #tpu.memory_space<vmem>>, vector<256x128xf32>
    %78 = vector.shape_cast %77 : vector<256x128xf32> to vector<1x256x128xf32>
    %c0_55 = arith.constant 0 : index
    %c0_56 = arith.constant 0 : index
    %c0_57 = arith.constant 0 : index
    %79 = vector.load %arg3[%c0_55, %c0_56, %c0_57] : memref<1x256x128xf32, #tpu.memory_space<vmem>>, vector<1x256x128xf32>
    tpu.vector_store %arg3[%c0_55, %c0_56, %c0_57], %78 {strides = array<i32>} : memref<1x256x128xf32, #tpu.memory_space<vmem>>, vector<1x256x128xf32>,
    %c0_i32 = arith.constant 0 : i32
    %80 = arith.cmpi eq, %arg0, %c0_i32 : i32
    %81 = arith.extui %80 : i1 to i32
    %c0_i32_58 = arith.constant 0 : i32
    %82 = arith.cmpi ne, %81, %c0_i32_58 : i32
    scf.if %82 {
      %cst_65 = arith.constant 0.000000e+00 : f32
      %92 = vector.broadcast %cst_65 : f32 to vector<2x128xf32>
      %c0_66 = arith.constant 0 : index
      %c0_67 = arith.constant 0 : index
      %93 = vector.load %arg4[%c0_66, %c0_67] : memref<2x128xf32, #tpu.memory_space<vmem>>, vector<2x128xf32>
      tpu.vector_store %arg4[%c0_66, %c0_67], %92 {strides = array<i32>} : memref<2x128xf32, #tpu.memory_space<vmem>>, vector<2x128xf32>,
    } else {
    }
    %cst_59 = arith.constant dense<0.000000e+00> : vector<128xf32>
    %83 = vector.multi_reduction <add>, %77, %cst_59 [0] : vector<256x128xf32> to vector<128xf32>
    %84 = vector.shape_cast %83 : vector<128xf32> to vector<1x128xf32>
    %85 = arith.mulf %77, %77 : vector<256x128xf32>
    %cst_60 = arith.constant dense<0.000000e+00> : vector<128xf32>
    %86 = vector.multi_reduction <add>, %85, %cst_60 [0] : vector<256x128xf32> to vector<128xf32>
    %87 = vector.shape_cast %86 : vector<128xf32> to vector<1x128xf32>
    %c0_61 = arith.constant 0 : index
    %c0_62 = arith.constant 0 : index
    %88 = vector.load %arg4[%c0_61, %c0_62] : memref<2x128xf32, #tpu.memory_space<vmem>>, vector<2x128xf32>
    %89 = tpu.concatenate %84, %87 in 0 : vector<1x128xf32>, vector<1x128xf32> -> vector<2x128xf32>
    %90 = arith.addf %88, %89 : vector<2x128xf32>
    %c0_63 = arith.constant 0 : index
    %c0_64 = arith.constant 0 : index
    %91 = vector.load %arg4[%c0_63, %c0_64] : memref<2x128xf32, #tpu.memory_space<vmem>>, vector<2x128xf32>
    tpu.vector_store %arg4[%c0_63, %c0_64], %90 {strides = array<i32>} : memref<2x128xf32, #tpu.memory_space<vmem>>, vector<2x128xf32>,
    return
  }
  func.func @transform_0(%arg0: i32) -> (i32, i32, i32, i32) {
    %c0_i32 = arith.constant 0 : i32
    %c0_i32_0 = arith.constant 0 : i32
    %c0_i32_1 = arith.constant 0 : i32
    %c0_i32_2 = arith.constant 0 : i32
    return %arg0, %c0_i32, %c0_i32_0, %c0_i32_1 : i32, i32, i32, i32
  }
  func.func @transform_1(%arg0: i32) -> (i32, i32, i32) {
    %c0_i32 = arith.constant 0 : i32
    %c0_i32_0 = arith.constant 0 : i32
    %c0_i32_1 = arith.constant 0 : i32
    %c0_i32_2 = arith.constant 0 : i32
    return %c0_i32, %c0_i32_0, %c0_i32_1 : i32, i32, i32
  }
  func.func @transform_2(%arg0: i32) -> (i32, i32, i32) {
    %c0_i32 = arith.constant 0 : i32
    %c0_i32_0 = arith.constant 0 : i32
    %c0_i32_1 = arith.constant 0 : i32
    return %arg0, %c0_i32, %c0_i32_0 : i32, i32, i32
  }
  func.func @transform_3(%arg0: i32) -> (i32, i32) {
    %c0_i32 = arith.constant 0 : i32
    %c0_i32_0 = arith.constant 0 : i32
    %c0_i32_1 = arith.constant 0 : i32
    return %c0_i32, %c0_i32_0 : i32, i32
  }
}

module attributes {stable_mosaic.version = 11 : i64} {
  func.func @_bn_apply_relu_kernel(%arg0: i32, %arg1: memref<256x128xf32, #tpu.memory_space<vmem>>, %arg2: memref<1x128xf32, #tpu.memory_space<vmem>>, %arg3: memref<1x128xf32, #tpu.memory_space<vmem>>, %arg4: memref<256x128xf32, #tpu.memory_space<vmem>>) attributes {dimension_semantics = [#tpu.dimension_semantics<parallel>], iteration_bounds = array<i64: 2>, scalar_prefetch = 0 : i64, scratch_operands = 0 : i64, tpu.core_type = #tpu.core_type<tc>, window_params = [{transform_indices = @transform_0, window_bounds = array<i64: 256, 128>}, {pipeline_mode = #tpu.pipeline_mode<synchronous>, transform_indices = @transform_1, window_bounds = array<i64: 1, 128>}, {pipeline_mode = #tpu.pipeline_mode<synchronous>, transform_indices = @transform_2, window_bounds = array<i64: 1, 128>}, {transform_indices = @transform_3, window_bounds = array<i64: 256, 128>}]} {
    %c0 = arith.constant 0 : index
    %c0_0 = arith.constant 0 : index
    %0 = vector.load %arg1[%c0, %c0_0] : memref<256x128xf32, #tpu.memory_space<vmem>>, vector<256x128xf32>
    %c0_1 = arith.constant 0 : index
    %c0_2 = arith.constant 0 : index
    %1 = vector.load %arg2[%c0_1, %c0_2] : memref<1x128xf32, #tpu.memory_space<vmem>>, vector<1x128xf32>
    %2 = vector.broadcast %1 : vector<1x128xf32> to vector<256x128xf32>
    %3 = arith.mulf %0, %2 : vector<256x128xf32>
    %c0_3 = arith.constant 0 : index
    %c0_4 = arith.constant 0 : index
    %4 = vector.load %arg3[%c0_3, %c0_4] : memref<1x128xf32, #tpu.memory_space<vmem>>, vector<1x128xf32>
    %5 = vector.broadcast %4 : vector<1x128xf32> to vector<256x128xf32>
    %6 = arith.addf %3, %5 : vector<256x128xf32>
    %cst = arith.constant 0.000000e+00 : f32
    %7 = vector.broadcast %cst : f32 to vector<256x128xf32>
    %8 = arith.maximumf %6, %7 : vector<256x128xf32>
    %c0_5 = arith.constant 0 : index
    %c0_6 = arith.constant 0 : index
    %9 = vector.load %arg4[%c0_5, %c0_6] : memref<256x128xf32, #tpu.memory_space<vmem>>, vector<256x128xf32>
    tpu.vector_store %arg4[%c0_5, %c0_6], %8 {strides = array<i32>} : memref<256x128xf32, #tpu.memory_space<vmem>>, vector<256x128xf32>,
    return
  }
  func.func @transform_0(%arg0: i32) -> (i32, i32) {
    %c0_i32 = arith.constant 0 : i32
    %c0_i32_0 = arith.constant 0 : i32
    return %arg0, %c0_i32 : i32, i32
  }
  func.func @transform_1(%arg0: i32) -> (i32, i32) {
    %c0_i32 = arith.constant 0 : i32
    %c0_i32_0 = arith.constant 0 : i32
    %c0_i32_1 = arith.constant 0 : i32
    return %c0_i32, %c0_i32_0 : i32, i32
  }
  func.func @transform_2(%arg0: i32) -> (i32, i32) {
    %c0_i32 = arith.constant 0 : i32
    %c0_i32_0 = arith.constant 0 : i32
    %c0_i32_1 = arith.constant 0 : i32
    return %c0_i32, %c0_i32_0 : i32, i32
  }
  func.func @transform_3(%arg0: i32) -> (i32, i32) {
    %c0_i32 = arith.constant 0 : i32
    %c0_i32_0 = arith.constant 0 : i32
    return %arg0, %c0_i32 : i32, i32
  }
}

</mosaic_0001>

<bundles_post_ra>
// kernel: decoder_block_forward.5
= control target key start
LH: loop header
LB: loop body
LE: loop exit
PB: predicated region body
PF: predicated region fallthrough
CT: control target
= control target key end

     0   :  { %v703_v1 = vmov 0   ;;  %vm117_vm0 = vcmask 130048   ;;  %v37_v13 = vlaneseq  ;;  %s947_s1 = inlined_call_operand.vmem [shape: bf16[16,512], index: 1, kind: input, shape index: {}]   ;;  %s948_s0 = inlined_call_operand.vmem [shape: bf16[128,16], index: 0, kind: input, shape index: {}]   ;;  %s949_s2 = inlined_call_operand.vmem [shape: f32[1,512], index: 2, kind: input, shape index: {}]   ;;  %s950_s3 = inlined_call_operand.vmem [shape: bf16[128,512], index: 3, kind: output, shape index: {}]  }
   0x1   :  { %v689_v0 = vld [vmem:[%s947_s1 + $0x4] ss:$16 sps:$4 sm:$0xff]   ;;  %174 = vmatprep.mubr.bf16.mxu0 %v703_v1  ;;  %287 = vmatprep.mubr.bf16.mxu1 %v703_v1  ;;  %v691_v2 = vld [vmem:[%s947_s1 + $0xc] ss:$16 sps:$4 sm:$0xff]   ;;  %v693_v3 = vld [vmem:[%s947_s1] ss:$16 sps:$4 sm:$0xff]  }
   0x2   :  { %156 = vmatprep.subr.bf16.mxu0 %v689_v0  ;;  %v694_v4 = vld [vmem:[%s947_s1 + $0x8] ss:$16 sps:$4 sm:$0xff]   ;;  %269 = vmatprep.subr.bf16.mxu1 %v691_v2  ;;  %v695_v5 = vld [vmem:[%s948_s0] sm:$0xff]   ;;  %v697_v7 = vld [vmem:[%s948_s0 + $0x10] sm:$0xff]   ;;  %v38_v14 = vshrl.u32 %v37_v13, 7 }
   0x3   :  { %157 = vmatpush1.bf16.msra.mxu0 %v693_v3  ;;  %270 = vmatpush1.bf16.msra.mxu1 %v694_v4  ;;  %v696_v6 = vld [vmem:[%s948_s0 + $0x8] sm:$0xff]   ;;  %v698_v8 = vld [vmem:[%s948_s0 + $0x18] sm:$0xff]   ;;  %v699_v9 = vld [vmem:[%s948_s0 + $0x20] sm:$0xff]  }
   0x4   :  { %v700_v10 = vld [vmem:[%s948_s0 + $0x28] sm:$0xff]   ;;  %v701_v11 = vld [vmem:[%s948_s0 + $0x30] sm:$0xff]   ;;  %v702_v12 = vld [vmem:[%s948_s0 + $0x38] sm:$0xff]   ;;  %v39_v15 = vsub.s32 0, %v38_v14  ;;  %v47_v16 = vsub.s32 2, %v38_v14  ;;  %v43_v17 = vsub.s32 1, %v38_v14 }
   0x5   :  { %v51_v18 = vsub.s32 3, %v38_v14  ;;  %v35_v19 = vld [vmem:[%s949_s2] sm:$0xf] }
   0x6   :  { %608 = vmatmul.mubr.msk.bf16.vlgmr.msra.gmra.mxu0 %vm117_vm0, %v695_v5  ;;  %616 = vmatmul.mubr.msk.bf16.vlgmr.msra.gmra.mxu1 %vm117_vm0, %v695_v5  ;;  %v779_v20 = vrot.slane %v35_v19, %v39_v15  ;;  %v781_v21 = vrot.slane %v35_v19, %v47_v16  ;;  %v783_v22 = vrot.slane %v35_v19, %v43_v17 }
   0x7   :  { %184 = vmatprep.mubr.bf16.mxu0 %v703_v1  ;;  %297 = vmatprep.mubr.bf16.mxu1 %v703_v1  ;;  %v785_v23 = vrot.slane %v35_v19, %v51_v18 }
   0xe   :  { %609 = vmatmul.mubr.msk.bf16.gmra.mxu0 %vm117_vm0, %v696_v6  ;;  %617 = vmatmul.mubr.msk.bf16.gmra.mxu1 %vm117_vm0, %v696_v6 }
   0xf   :  { %194 = vmatprep.mubr.bf16.mxu0 %v703_v1  ;;  %307 = vmatprep.mubr.bf16.mxu1 %v703_v1 }
  0x16   :  { %610 = vmatmul.mubr.msk.bf16.gmra.mxu0 %vm117_vm0, %v697_v7  ;;  %618 = vmatmul.mubr.msk.bf16.gmra.mxu1 %vm117_vm0, %v697_v7 }
  0x17   :  { %204 = vmatprep.mubr.bf16.mxu0 %v703_v1  ;;  %317 = vmatprep.mubr.bf16.mxu1 %v703_v1 }
  0x1e   :  { %611 = vmatmul.mubr.msk.bf16.gmra.mxu0 %vm117_vm0, %v698_v8  ;;  %619 = vmatmul.mubr.msk.bf16.gmra.mxu1 %vm117_vm0, %v698_v8 }
  0x1f   :  { %214 = vmatprep.mubr.bf16.mxu0 %v703_v1  ;;  %327 = vmatprep.mubr.bf16.mxu1 %v703_v1 }
  0x26   :  { %612 = vmatmul.mubr.msk.bf16.gmra.mxu0 %vm117_vm0, %v699_v9  ;;  %620 = vmatmul.mubr.msk.bf16.gmra.mxu1 %vm117_vm0, %v699_v9 }
  0x27   :  { %224 = vmatprep.mubr.bf16.mxu0 %v703_v1  ;;  %337 = vmatprep.mubr.bf16.mxu1 %v703_v1 }
  0x2e   :  { %613 = vmatmul.mubr.msk.bf16.gmra.mxu0 %vm117_vm0, %v700_v10  ;;  %621 = vmatmul.mubr.msk.bf16.gmra.mxu1 %vm117_vm0, %v700_v10 }
  0x2f   :  { %234 = vmatprep.mubr.bf16.mxu0 %v703_v1  ;;  %347 = vmatprep.mubr.bf16.mxu1 %v703_v1 }
  0x36   :  { %614 = vmatmul.mubr.msk.bf16.gmra.mxu0 %vm117_vm0, %v701_v11  ;;  %622 = vmatmul.mubr.msk.bf16.gmra.mxu1 %vm117_vm0, %v701_v11 }
  0x37   :  { %244 = vmatprep.mubr.bf16.mxu0 %v703_v1  ;;  %357 = vmatprep.mubr.bf16.mxu1 %v703_v1 }
  0x3e   :  { %615 = vmatmul.mubr.msk.bf16.gmra.mxu0 %vm117_vm0, %v702_v12  ;;  %623 = vmatmul.mubr.msk.bf16.gmra.mxu1 %vm117_vm0, %v702_v12 }
  0xc6   :  { %v176_v24 = vpop.f32.mrf.mxu0  ;;  %v289_v25 = vpop.f32.mrf.mxu1 }
  0xc7   :  { %v177_v28 = vadd.f32 %v176_v24, %v779_v20  ;;  %v290_v29 = vadd.f32 %v289_v25, %v781_v21 }
  0xc8   :  { %v178_v26 = vpop.f32.mrf.mxu0  ;;  %v291_v27 = vpop.f32.mrf.mxu1 }
  0xc9   :  { %v179_v30 = vadd.f32 %v178_v26, %v783_v22  ;;  %v292_v31 = vadd.f32 %v291_v27, %v785_v23 }
  0xca   :  { %v180_v32 = vpop.f32.mrf.mxu0  ;;  %v293_v33 = vpop.f32.mrf.mxu1 }
  0xcb   :  { %v656_v34 = vpack.c.bf16 %v179_v30, %v177_v28  ;;  %v657_v35 = vpack.c.bf16 %v292_v31, %v290_v29  ;;  %v181_v38 = vadd.f32 %v180_v32, %v779_v20  ;;  %v294_v39 = vadd.f32 %v293_v33, %v781_v21 }
  0xcc   :  { %v182_v36 = vpop.f32.mrf.mxu0  ;;  %v295_v37 = vpop.f32.mrf.mxu1 }
  0xcd   :  { %560 = vst [vmem:[%s950_s3] sm:$0xff] %v656_v34  ;;  %561 = vst [vmem:[%s950_s3 + $0x8] sm:$0xff] %v657_v35  ;;  %v183_v40 = vadd.f32 %v182_v36, %v783_v22  ;;  %v296_v41 = vadd.f32 %v295_v37, %v785_v23 }
  0xce   :  { %v186_v42 = vpop.f32.mrf.mxu0  ;;  %v299_v43 = vpop.f32.mrf.mxu1 }
  0xcf   :  { %v658_v44 = vpack.c.bf16 %v183_v40, %v181_v38  ;;  %v659_v45 = vpack.c.bf16 %v296_v41, %v294_v39  ;;  %v187_v48 = vadd.f32 %v186_v42, %v779_v20  ;;  %v300_v49 = vadd.f32 %v299_v43, %v781_v21 }
  0xd0   :  { %v188_v46 = vpop.f32.mrf.mxu0  ;;  %v301_v47 = vpop.f32.mrf.mxu1 }
  0xd1   :  { %562 = vst [vmem:[%s950_s3 + $0x10] sm:$0xff] %v658_v44  ;;  %563 = vst [vmem:[%s950_s3 + $0x18] sm:$0xff] %v659_v45  ;;  %v189_v50 = vadd.f32 %v188_v46, %v783_v22  ;;  %v302_v51 = vadd.f32 %v301_v47, %v785_v23 }
  0xd2   :  { %v190_v52 = vpop.f32.mrf.mxu0  ;;  %v303_v53 = vpop.f32.mrf.mxu1 }
  0xd3   :  { %v660_v54 = vpack.c.bf16 %v189_v50, %v187_v48  ;;  %v661_v55 = vpack.c.bf16 %v302_v51, %v300_v49  ;;  %v191_v58 = vadd.f32 %v190_v52, %v779_v20  ;;  %v304_v59 = vadd.f32 %v303_v53, %v781_v21 }
  0xd4   :  { %v192_v56 = vpop.f32.mrf.mxu0  ;;  %v305_v57 = vpop.f32.mrf.mxu1 }
  0xd5   :  { %564 = vst [vmem:[%s950_s3 + $0x20] sm:$0xff] %v660_v54  ;;  %565 = vst [vmem:[%s950_s3 + $0x28] sm:$0xff] %v661_v55  ;;  %v193_v60 = vadd.f32 %v192_v56, %v783_v22  ;;  %v306_v61 = vadd.f32 %v305_v57, %v785_v23 }
  0xd6   :  { %v196_v62 = vpop.f32.mrf.mxu0  ;;  %v309_v63 = vpop.f32.mrf.mxu1 }
  0xd7   :  { %v662_v0 = vpack.c.bf16 %v193_v60, %v191_v58  ;;  %v663_v1 = vpack.c.bf16 %v306_v61, %v304_v59  ;;  %v197_v4 = vadd.f32 %v196_v62, %v779_v20  ;;  %v310_v5 = vadd.f32 %v309_v63, %v781_v21 }
  0xd8   :  { %v198_v2 = vpop.f32.mrf.mxu0  ;;  %v311_v3 = vpop.f32.mrf.mxu1 }
  0xd9   :  { %566 = vst [vmem:[%s950_s3 + $0x30] sm:$0xff] %v662_v0  ;;  %567 = vst [vmem:[%s950_s3 + $0x38] sm:$0xff] %v663_v1  ;;  %v199_v6 = vadd.f32 %v198_v2, %v783_v22  ;;  %v312_v7 = vadd.f32 %v311_v3, %v785_v23 }
  0xda   :  { %v200_v8 = vpop.f32.mrf.mxu0  ;;  %v313_v9 = vpop.f32.mrf.mxu1 }
  0xdb   :  { %v664_v10 = vpack.c.bf16 %v199_v6, %v197_v4  ;;  %v665_v11 = vpack.c.bf16 %v312_v7, %v310_v5  ;;  %v201_v14 = vadd.f32 %v200_v8, %v779_v20  ;;  %v314_v15 = vadd.f32 %v313_v9, %v781_v21 }
  0xdc   :  { %v202_v12 = vpop.f32.mrf.mxu0  ;;  %v315_v13 = vpop.f32.mrf.mxu1 }
  0xdd   :  { %568 = vst [vmem:[%s950_s3 + $0x40] sm:$0xff] %v664_v10  ;;  %569 = vst [vmem:[%s950_s3 + $0x48] sm:$0xff] %v665_v11  ;;  %v203_v16 = vadd.f32 %v202_v12, %v783_v22  ;;  %v316_v17 = vadd.f32 %v315_v13, %v785_v23 }
  0xde   :  { %v206_v18 = vpop.f32.mrf.mxu0  ;;  %v319_v19 = vpop.f32.mrf.mxu1 }
  0xdf   :  { %v666_v24 = vpack.c.bf16 %v203_v16, %v201_v14  ;;  %v667_v25 = vpack.c.bf16 %v316_v17, %v314_v15  ;;  %v207_v28 = vadd.f32 %v206_v18, %v779_v20  ;;  %v320_v29 = vadd.f32 %v319_v19, %v781_v21 }
  0xe0   :  { %v208_v26 = vpop.f32.mrf.mxu0  ;;  %v321_v27 = vpop.f32.mrf.mxu1 }
  0xe1   :  { %570 = vst [vmem:[%s950_s3 + $0x50] sm:$0xff] %v666_v24  ;;  %571 = vst [vmem:[%s950_s3 + $0x58] sm:$0xff] %v667_v25  ;;  %v209_v30 = vadd.f32 %v208_v26, %v783_v22  ;;  %v322_v31 = vadd.f32 %v321_v27, %v785_v23 }
  0xe2   :  { %v210_v32 = vpop.f32.mrf.mxu0  ;;  %v323_v33 = vpop.f32.mrf.mxu1 }
  0xe3   :  { %v668_v34 = vpack.c.bf16 %v209_v30, %v207_v28  ;;  %v669_v35 = vpack.c.bf16 %v322_v31, %v320_v29  ;;  %v211_v38 = vadd.f32 %v210_v32, %v779_v20  ;;  %v324_v39 = vadd.f32 %v323_v33, %v781_v21 }
  0xe4   :  { %v212_v36 = vpop.f32.mrf.mxu0  ;;  %v325_v37 = vpop.f32.mrf.mxu1 }
  0xe5   :  { %572 = vst [vmem:[%s950_s3 + $0x60] sm:$0xff] %v668_v34  ;;  %573 = vst [vmem:[%s950_s3 + $0x68] sm:$0xff] %v669_v35  ;;  %v213_v40 = vadd.f32 %v212_v36, %v783_v22  ;;  %v326_v41 = vadd.f32 %v325_v37, %v785_v23 }
  0xe6   :  { %v216_v42 = vpop.f32.mrf.mxu0  ;;  %v329_v43 = vpop.f32.mrf.mxu1 }
  0xe7   :  { %v670_v44 = vpack.c.bf16 %v213_v40, %v211_v38  ;;  %v671_v45 = vpack.c.bf16 %v326_v41, %v324_v39  ;;  %v217_v48 = vadd.f32 %v216_v42, %v779_v20  ;;  %v330_v49 = vadd.f32 %v329_v43, %v781_v21 }
  0xe8   :  { %v218_v46 = vpop.f32.mrf.mxu0  ;;  %v331_v47 = vpop.f32.mrf.mxu1 }
  0xe9   :  { %574 = vst [vmem:[%s950_s3 + $0x70] sm:$0xff] %v670_v44  ;;  %575 = vst [vmem:[%s950_s3 + $0x78] sm:$0xff] %v671_v45  ;;  %v219_v50 = vadd.f32 %v218_v46, %v783_v22  ;;  %v332_v51 = vadd.f32 %v331_v47, %v785_v23 }
  0xea   :  { %v220_v52 = vpop.f32.mrf.mxu0  ;;  %v333_v53 = vpop.f32.mrf.mxu1 }
  0xeb   :  { %v672_v54 = vpack.c.bf16 %v219_v50, %v217_v48  ;;  %v673_v55 = vpack.c.bf16 %v332_v51, %v330_v49  ;;  %v221_v58 = vadd.f32 %v220_v52, %v779_v20  ;;  %v334_v59 = vadd.f32 %v333_v53, %v781_v21 }
  0xec   :  { %v222_v56 = vpop.f32.mrf.mxu0  ;;  %v335_v57 = vpop.f32.mrf.mxu1 }
  0xed   :  { %576 = vst [vmem:[%s950_s3 + $0x80] sm:$0xff] %v672_v54  ;;  %577 = vst [vmem:[%s950_s3 + $0x88] sm:$0xff] %v673_v55  ;;  %v223_v60 = vadd.f32 %v222_v56, %v783_v22  ;;  %v336_v61 = vadd.f32 %v335_v57, %v785_v23 }
  0xee   :  { %v226_v62 = vpop.f32.mrf.mxu0  ;;  %v339_v63 = vpop.f32.mrf.mxu1 }
  0xef   :  { %v674_v0 = vpack.c.bf16 %v223_v60, %v221_v58  ;;  %v675_v1 = vpack.c.bf16 %v336_v61, %v334_v59  ;;  %v227_v4 = vadd.f32 %v226_v62, %v779_v20  ;;  %v340_v5 = vadd.f32 %v339_v63, %v781_v21 }
  0xf0   :  { %v228_v2 = vpop.f32.mrf.mxu0  ;;  %v341_v3 = vpop.f32.mrf.mxu1 }
  0xf1   :  { %578 = vst [vmem:[%s950_s3 + $0x90] sm:$0xff] %v674_v0  ;;  %579 = vst [vmem:[%s950_s3 + $0x98] sm:$0xff] %v675_v1  ;;  %v229_v6 = vadd.f32 %v228_v2, %v783_v22  ;;  %v342_v7 = vadd.f32 %v341_v3, %v785_v23 }
  0xf2   :  { %v230_v8 = vpop.f32.mrf.mxu0  ;;  %v343_v9 = vpop.f32.mrf.mxu1 }
  0xf3   :  { %v676_v10 = vpack.c.bf16 %v229_v6, %v227_v4  ;;  %v677_v11 = vpack.c.bf16 %v342_v7, %v340_v5  ;;  %v231_v14 = vadd.f32 %v230_v8, %v779_v20  ;;  %v344_v15 = vadd.f32 %v343_v9, %v781_v21 }
  0xf4   :  { %v232_v12 = vpop.f32.mrf.mxu0  ;;  %v345_v13 = vpop.f32.mrf.mxu1 }
  0xf5   :  { %580 = vst [vmem:[%s950_s3 + $0xa0] sm:$0xff] %v676_v10  ;;  %581 = vst [vmem:[%s950_s3 + $0xa8] sm:$0xff] %v677_v11  ;;  %v233_v16 = vadd.f32 %v232_v12, %v783_v22  ;;  %v346_v17 = vadd.f32 %v345_v13, %v785_v23 }
  0xf6   :  { %v236_v18 = vpop.f32.mrf.mxu0  ;;  %v349_v19 = vpop.f32.mrf.mxu1 }
  0xf7   :  { %v678_v24 = vpack.c.bf16 %v233_v16, %v231_v14  ;;  %v679_v25 = vpack.c.bf16 %v346_v17, %v344_v15  ;;  %v237_v28 = vadd.f32 %v236_v18, %v779_v20  ;;  %v350_v29 = vadd.f32 %v349_v19, %v781_v21 }
  0xf8   :  { %v238_v26 = vpop.f32.mrf.mxu0  ;;  %v351_v27 = vpop.f32.mrf.mxu1 }
  0xf9   :  { %582 = vst [vmem:[%s950_s3 + $0xb0] sm:$0xff] %v678_v24  ;;  %583 = vst [vmem:[%s950_s3 + $0xb8] sm:$0xff] %v679_v25  ;;  %v239_v30 = vadd.f32 %v238_v26, %v783_v22  ;;  %v352_v31 = vadd.f32 %v351_v27, %v785_v23 }
  0xfa   :  { %v240_v32 = vpop.f32.mrf.mxu0  ;;  %v353_v33 = vpop.f32.mrf.mxu1 }
  0xfb   :  { %v680_v34 = vpack.c.bf16 %v239_v30, %v237_v28  ;;  %v681_v35 = vpack.c.bf16 %v352_v31, %v350_v29  ;;  %v241_v38 = vadd.f32 %v240_v32, %v779_v20  ;;  %v354_v39 = vadd.f32 %v353_v33, %v781_v21 }
  0xfc   :  { %v242_v36 = vpop.f32.mrf.mxu0  ;;  %v355_v37 = vpop.f32.mrf.mxu1 }
  0xfd   :  { %584 = vst [vmem:[%s950_s3 + $0xc0] sm:$0xff] %v680_v34  ;;  %585 = vst [vmem:[%s950_s3 + $0xc8] sm:$0xff] %v681_v35  ;;  %v243_v40 = vadd.f32 %v242_v36, %v783_v22  ;;  %v356_v41 = vadd.f32 %v355_v37, %v785_v23 }
  0xfe   :  { %v246_v42 = vpop.f32.mrf.mxu0  ;;  %v359_v43 = vpop.f32.mrf.mxu1 }
  0xff   :  { %v682_v44 = vpack.c.bf16 %v243_v40, %v241_v38  ;;  %v683_v45 = vpack.c.bf16 %v356_v41, %v354_v39  ;;  %v247_v48 = vadd.f32 %v246_v42, %v779_v20  ;;  %v360_v49 = vadd.f32 %v359_v43, %v781_v21 }
 0x100   :  { %v248_v46 = vpop.f32.mrf.mxu0  ;;  %v361_v47 = vpop.f32.mrf.mxu1 }
 0x101   :  { %586 = vst [vmem:[%s950_s3 + $0xd0] sm:$0xff] %v682_v44  ;;  %587 = vst [vmem:[%s950_s3 + $0xd8] sm:$0xff] %v683_v45  ;;  %v249_v50 = vadd.f32 %v248_v46, %v783_v22  ;;  %v362_v51 = vadd.f32 %v361_v47, %v785_v23 }
 0x102   :  { %v250_v52 = vpop.f32.mrf.mxu0  ;;  %v363_v53 = vpop.f32.mrf.mxu1 }
 0x103   :  { %v684_v54 = vpack.c.bf16 %v249_v50, %v247_v48  ;;  %v685_v55 = vpack.c.bf16 %v362_v51, %v360_v49  ;;  %v251_v58 = vadd.f32 %v250_v52, %v779_v20  ;;  %v364_v59 = vadd.f32 %v363_v53, %v781_v21 }
 0x104   :  { %v252_v56 = vpop.f32.mrf.mxu0  ;;  %v365_v57 = vpop.f32.mrf.mxu1 }
 0x105   :  { %588 = vst [vmem:[%s950_s3 + $0xe0] sm:$0xff] %v684_v54  ;;  %589 = vst [vmem:[%s950_s3 + $0xe8] sm:$0xff] %v685_v55  ;;  %v253_v60 = vadd.f32 %v252_v56, %v783_v22  ;;  %v366_v61 = vadd.f32 %v365_v57, %v785_v23 }
 0x107   :  { %v686_v62 = vpack.c.bf16 %v253_v60, %v251_v58  ;;  %v687_v63 = vpack.c.bf16 %v366_v61, %v364_v59 }
 0x109   :  { %590 = vst [vmem:[%s950_s3 + $0xf0] sm:$0xff] %v686_v62  ;;  %591 = vst [vmem:[%s950_s3 + $0xf8] sm:$0xff] %v687_v63 }

// kernel: decoder_block_forward.7
= control target key start
LH: loop header
LB: loop body
LE: loop exit
PB: predicated region body
PF: predicated region fallthrough
CT: control target
= control target key end

     0   :  { %s740_s12 = smov 0   ;;  %s887_s0 = inlined_call_operand.vmem [shape: f32[512,128], index: 0, kind: input, shape index: {}]   ;;  %s888_s1 = inlined_call_operand.vmem [shape: f32[1,128], index: 1, kind: input, shape index: {}]   ;;  %s889_s2 = inlined_call_operand.vmem [shape: f32[1,128], index: 2, kind: input, shape index: {}]   ;;  %s890_s3 = inlined_call_operand.vmem [shape: bf16[512,128], index: 3, kind: output, shape index: {}]  }
   0x1 LB: > { %s532_s13 = sadd.s32 4294967295, %s718_s12   ;;  %p536_p0 = scmp.ge.s32.totalorder %s718_s12, 1  ;;  %s718_s12 = sphi %s740_s12, %s13_s12  }
   0x2   : > { %p138_p1 = scmp.lt.s32.totalorder %s718_s12, 3 }
   0x4   : > { %p139_p2 = pnand %p536_p0, %p138_p1 }
   0x5   : > { %s537_s14 = sshll.u32 (!%p139_p2), %s532_s13, 5 }
   0x6   : > { %142 = sbr.rel (%p139_p2) target bundleno = 49 (0x31), region = 32  ;;  %p163_p3 = scmp.lt.s32.totalorder (!%p139_p2), %s537_s14, 63 }
   0xb   : > { %s892_s14 = smov (!%p163_p3, %s537_s14), 63  ;;  %v754_v0 = vld [vmem:[%s888_s1] ss:$0 sm:$0xff] }
   0xc   : > { %s538_s15 = sshll.u32 %s892_s14, 3  ;;  %v764_v1 = vld [vmem:[%s889_s2] ss:$0 sm:$0xff]  ;;  %s540_s23 = sshll.u32 %s892_s14, 2 }
   0xd   : > { %s759_s20 = scalar_lea.vmem %s887_s0, %s538_s15  ;;  %s796_s26 = scalar_lea.vmem %s890_s3, %s540_s23 }
   0xe   : > { %v174_v2 = vld [vmem:[%s759_s20] sm:$0xff]  ;;  %v175_v3 = vld [vmem:[%s759_s20 + $0x8] sm:$0xff]  ;;  %v176_v4 = vld [vmem:[%s759_s20 + $0x10] sm:$0xff] }
   0xf   : > { %v213_v5 = vmul.f32 %v754_v0, %v174_v2  ;;  %v214_v6 = vmul.f32 %v754_v0, %v175_v3  ;;  %v177_v7 = vld [vmem:[%s759_s20 + $0x18] sm:$0xff]  ;;  %v215_v8 = vmul.f32 %v754_v0, %v176_v4  ;;  %v178_v9 = vld [vmem:[%s759_s20 + $0x20] sm:$0xff]  ;;  %v179_v10 = vld [vmem:[%s759_s20 + $0x28] sm:$0xff] }
  0x10   : > { %v216_v11 = vmul.f32 %v754_v0, %v177_v7  ;;  %v217_v12 = vmul.f32 %v754_v0, %v178_v9  ;;  %v218_v13 = vmul.f32 %v754_v0, %v179_v10  ;;  %v180_v14 = vld [vmem:[%s759_s20 + $0x30] sm:$0xff]  ;;  %v181_v15 = vld [vmem:[%s759_s20 + $0x38] sm:$0xff]  ;;  %v182_v24 = vld [vmem:[%s759_s20 + $0x40] sm:$0xff] }
  0x11   : > { %v252_v16 = vadd.f32 %v764_v1, %v213_v5  ;;  %v253_v17 = vadd.f32 %v764_v1, %v214_v6  ;;  %v254_v18 = vadd.f32 %v764_v1, %v215_v8  ;;  %v219_v19 = vmul.f32 %v754_v0, %v180_v14  ;;  %v183_v25 = vld [vmem:[%s759_s20 + $0x48] sm:$0xff]  ;;  %v184_v30 = vld [vmem:[%s759_s20 + $0x50] sm:$0xff]  ;;  %v185_v35 = vld [vmem:[%s759_s20 + $0x58] sm:$0xff] }
  0x12   : > { %v255_v20 = vadd.f32 %v764_v1, %v216_v11  ;;  %v256_v21 = vadd.f32 %v764_v1, %v217_v12  ;;  %v257_v22 = vadd.f32 %v764_v1, %v218_v13  ;;  %v220_v23 = vmul.f32 %v754_v0, %v181_v15  ;;  %v186_v36 = vld [vmem:[%s759_s20 + $0x60] sm:$0xff]  ;;  %v187_v41 = vld [vmem:[%s759_s20 + $0x68] sm:$0xff]  ;;  %v188_v42 = vld [vmem:[%s759_s20 + $0x70] sm:$0xff] }
  0x13   : > { %v284_v26 = vmax.f32 %v252_v16, 0.0  ;;  %v285_v27 = vmax.f32 %v253_v17, 0.0  ;;  %v286_v28 = vmax.f32 %v254_v18, 0.0  ;;  %v258_v29 = vadd.f32 %v764_v1, %v219_v19  ;;  %v189_v51 = vld [vmem:[%s759_s20 + $0x78] sm:$0xff]  ;;  %v190_v56 = vld [vmem:[%s759_s20 + $0x80] sm:$0xff]  ;;  %v191_v61 = vld [vmem:[%s759_s20 + $0x88] sm:$0xff] }
  0x14   : > { %v287_v31 = vmax.f32 %v255_v20, 0.0  ;;  %v288_v32 = vmax.f32 %v256_v21, 0.0  ;;  %v289_v33 = vmax.f32 %v257_v22, 0.0  ;;  %v259_v34 = vadd.f32 %v764_v1, %v220_v23  ;;  %v192_v4 = vld [vmem:[%s759_s20 + $0x90] sm:$0xff]  ;;  %v193_v5 = vld [vmem:[%s759_s20 + $0x98] sm:$0xff]  ;;  %v194_v10 = vld [vmem:[%s759_s20 + $0xa0] sm:$0xff] }
  0x15   : > { %v612_v37 = vpack.c.bf16 %v285_v27, %v284_v26  ;;  %v290_v38 = vmax.f32 %v258_v29, 0.0  ;;  %v221_v39 = vmul.f32 %v754_v0, %v182_v24  ;;  %v222_v40 = vmul.f32 %v754_v0, %v183_v25  ;;  %v195_v15 = vld [vmem:[%s759_s20 + $0xa8] sm:$0xff]  ;;  %v196_v20 = vld [vmem:[%s759_s20 + $0xb0] sm:$0xff]  ;;  %v197_v25 = vld [vmem:[%s759_s20 + $0xb8] sm:$0xff] }
  0x16   : > { %v617_v43 = vpack.c.bf16 %v287_v31, %v286_v28  ;;  %v622_v44 = vpack.c.bf16 %v289_v33, %v288_v32  ;;  %v291_v45 = vmax.f32 %v259_v34, 0.0  ;;  %v223_v46 = vmul.f32 %v754_v0, %v184_v30  ;;  %v198_v30 = vld [vmem:[%s759_s20 + $0xc0] sm:$0xff] }
  0x17   : > { %613 = vst [vmem:[%s796_s26] sm:$0xff] %v612_v37   ;;  %v260_v47 = vadd.f32 %v764_v1, %v221_v39  ;;  %v261_v48 = vadd.f32 %v764_v1, %v222_v40  ;;  %v224_v49 = vmul.f32 %v754_v0, %v185_v35  ;;  %v225_v50 = vmul.f32 %v754_v0, %v186_v36  ;;  %v199_v35 = vld [vmem:[%s759_s20 + $0xc8] sm:$0xff]  ;;  %v200_v40 = vld [vmem:[%s759_s20 + $0xd0] sm:$0xff] }
  0x18   : > { %689 = vst [vmem:[%s796_s26 + $0x8] sm:$0xff] %v617_v43   ;;  %690 = vst [vmem:[%s796_s26 + $0x10] sm:$0xff] %v622_v44   ;;  %v627_v52 = vpack.c.bf16 %v291_v45, %v290_v38  ;;  %v262_v53 = vadd.f32 %v764_v1, %v223_v46  ;;  %v226_v54 = vmul.f32 %v754_v0, %v187_v41  ;;  %v201_v41 = vld [vmem:[%s759_s20 + $0xd8] sm:$0xff]  ;;  %v202_v46 = vld [vmem:[%s759_s20 + $0xe0] sm:$0xff] }
  0x19   : > { %v227_v55 = vmul.f32 %v754_v0, %v188_v42  ;;  %v292_v57 = vmax.f32 %v260_v47, 0.0  ;;  %v293_v58 = vmax.f32 %v261_v48, 0.0  ;;  %v263_v59 = vadd.f32 %v764_v1, %v224_v49 }
  0x1a   : > { %v264_v60 = vadd.f32 %v764_v1, %v225_v50  ;;  %691 = vst [vmem:[%s796_s26 + $0x18] sm:$0xff] %v627_v52   ;;  %v294_v62 = vmax.f32 %v262_v53, 0.0  ;;  %v265_v63 = vadd.f32 %v764_v1, %v226_v54  ;;  %v228_v2 = vmul.f32 %v754_v0, %v189_v51  ;;  %v203_v51 = vld [vmem:[%s759_s20 + $0xe8] sm:$0xff] }
  0x1b   : > { %v266_v3 = vadd.f32 %v764_v1, %v227_v55  ;;  %v632_v6 = vpack.c.bf16 %v293_v58, %v292_v57  ;;  %v295_v7 = vmax.f32 %v263_v59, 0.0  ;;  %v229_v9 = vmul.f32 %v754_v0, %v190_v56  ;;  %v204_v56 = vld [vmem:[%s759_s20 + $0xf0] sm:$0xff] }
  0x1c   : > { %v296_v8 = vmax.f32 %v264_v60, 0.0  ;;  %v297_v11 = vmax.f32 %v265_v63, 0.0  ;;  %v267_v12 = vadd.f32 %v764_v1, %v228_v2  ;;  %v230_v14 = vmul.f32 %v754_v0, %v191_v61  ;;  %v205_v61 = vld [vmem:[%s759_s20 + $0xf8] sm:$0xff] }
  0x1d   : > { %v298_v13 = vmax.f32 %v266_v3, 0.0  ;;  %692 = vst [vmem:[%s796_s26 + $0x20] sm:$0xff] %v632_v6   ;;  %v637_v16 = vpack.c.bf16 %v295_v7, %v294_v62  ;;  %v268_v17 = vadd.f32 %v764_v1, %v229_v9  ;;  %v231_v18 = vmul.f32 %v754_v0, %v192_v4 }
  0x1e   : > { %v232_v19 = vmul.f32 %v754_v0, %v193_v5  ;;  %v642_v21 = vpack.c.bf16 %v297_v11, %v296_v8  ;;  %v299_v22 = vmax.f32 %v267_v12, 0.0  ;;  %v269_v23 = vadd.f32 %v764_v1, %v230_v14 }
  0x1f   : > { %v233_v24 = vmul.f32 %v754_v0, %v194_v10  ;;  %693 = vst [vmem:[%s796_s26 + $0x28] sm:$0xff] %v637_v16   ;;  %v300_v26 = vmax.f32 %v268_v17, 0.0  ;;  %v270_v27 = vadd.f32 %v764_v1, %v231_v18  ;;  %v234_v29 = vmul.f32 %v754_v0, %v195_v15 }
  0x20   : > { %v271_v28 = vadd.f32 %v764_v1, %v232_v19  ;;  %694 = vst [vmem:[%s796_s26 + $0x30] sm:$0xff] %v642_v21   ;;  %v647_v31 = vpack.c.bf16 %v299_v22, %v298_v13  ;;  %v301_v32 = vmax.f32 %v269_v23, 0.0  ;;  %v235_v34 = vmul.f32 %v754_v0, %v196_v20 }
  0x21   : > { %v272_v33 = vadd.f32 %v764_v1, %v233_v24  ;;  %v302_v36 = vmax.f32 %v270_v27, 0.0  ;;  %v273_v38 = vadd.f32 %v764_v1, %v234_v29  ;;  %v236_v39 = vmul.f32 %v754_v0, %v197_v25 }
  0x22   : > { %v303_v37 = vmax.f32 %v271_v28, 0.0  ;;  %695 = vst [vmem:[%s796_s26 + $0x38] sm:$0xff] %v647_v31   ;;  %v652_v42 = vpack.c.bf16 %v301_v32, %v300_v26  ;;  %v274_v44 = vadd.f32 %v764_v1, %v235_v34  ;;  %v237_v45 = vmul.f32 %v754_v0, %v198_v30 }
  0x23   : > { %v304_v43 = vmax.f32 %v272_v33, 0.0  ;;  %v305_v48 = vmax.f32 %v273_v38, 0.0  ;;  %v275_v49 = vadd.f32 %v764_v1, %v236_v39  ;;  %v238_v50 = vmul.f32 %v754_v0, %v199_v35 }
  0x24   : > { %v657_v47 = vpack.c.bf16 %v303_v37, %v302_v36  ;;  %696 = vst [vmem:[%s796_s26 + $0x40] sm:$0xff] %v652_v42   ;;  %v306_v52 = vmax.f32 %v274_v44, 0.0  ;;  %v276_v53 = vadd.f32 %v764_v1, %v237_v45  ;;  %v239_v54 = vmul.f32 %v754_v0, %v200_v40 }
  0x25   : > { %v240_v55 = vmul.f32 %v754_v0, %v201_v41  ;;  %v662_v57 = vpack.c.bf16 %v305_v48, %v304_v43  ;;  %v307_v58 = vmax.f32 %v275_v49, 0.0  ;;  %v277_v59 = vadd.f32 %v764_v1, %v238_v50 }
  0x26   : > { %697 = vst [vmem:[%s796_s26 + $0x48] sm:$0xff] %v657_v47   ;;  %v241_v60 = vmul.f32 %v754_v0, %v202_v46  ;;  %v308_v62 = vmax.f32 %v276_v53, 0.0  ;;  %v278_v63 = vadd.f32 %v764_v1, %v239_v54  ;;  %v242_v3 = vmul.f32 %v754_v0, %v203_v51 }
  0x27   : > { %v279_v2 = vadd.f32 %v764_v1, %v240_v55  ;;  %698 = vst [vmem:[%s796_s26 + $0x50] sm:$0xff] %v662_v57   ;;  %v667_v4 = vpack.c.bf16 %v307_v58, %v306_v52  ;;  %v309_v5 = vmax.f32 %v277_v59, 0.0  ;;  %v243_v7 = vmul.f32 %v754_v0, %v204_v56 }
  0x28   : > { %v280_v6 = vadd.f32 %v764_v1, %v241_v60  ;;  %v310_v8 = vmax.f32 %v278_v63, 0.0  ;;  %v281_v10 = vadd.f32 %v764_v1, %v242_v3  ;;  %v244_v11 = vmul.f32 %v754_v0, %v205_v61 }
  0x29   : > { %v311_v9 = vmax.f32 %v279_v2, 0.0  ;;  %699 = vst [vmem:[%s796_s26 + $0x58] sm:$0xff] %v667_v4   ;;  %v672_v12 = vpack.c.bf16 %v309_v5, %v308_v62  ;;  %v282_v14 = vadd.f32 %v764_v1, %v243_v7 }
  0x2a   : > { %v312_v13 = vmax.f32 %v280_v6, 0.0  ;;  %v313_v16 = vmax.f32 %v281_v10, 0.0  ;;  %v283_v17 = vadd.f32 %v764_v1, %v244_v11 }
  0x2b   : > { %v677_v15 = vpack.c.bf16 %v311_v9, %v310_v8  ;;  %700 = vst [vmem:[%s796_s26 + $0x60] sm:$0xff] %v672_v12   ;;  %v314_v18 = vmax.f32 %v282_v14, 0.0 }
  0x2c   : > { %v682_v19 = vpack.c.bf16 %v313_v16, %v312_v13  ;;  %v315_v20 = vmax.f32 %v283_v17, 0.0 }
  0x2d   : > { %701 = vst [vmem:[%s796_s26 + $0x68] sm:$0xff] %v677_v15  }
  0x2e   : > { %702 = vst [vmem:[%s796_s26 + $0x70] sm:$0xff] %v682_v19   ;;  %v687_v21 = vpack.c.bf16 %v315_v20, %v314_v18 }
  0x30   : > { %703 = vst [vmem:[%s796_s26 + $0x78] sm:$0xff] %v687_v21  }
  0x31 PF: > { %s13_s12 = sadd.s32 1, %s718_s12  }
  0x32   : > { %p10_p4 = scmp.ge.s32.totalorder %s13_s12, 4  }
  0x34   :  { %12 = sbr.rel (!%p10_p4) target bundleno = 1 (0x1), region = 62 }

// kernel: decoder_block_forward.9
= control target key start
LH: loop header
LB: loop body
LE: loop exit
PB: predicated region body
PF: predicated region fallthrough
CT: control target
= control target key end

     0   :  { %s453_s12 = smov 0   ;;  %s612_s0 = inlined_call_operand.vmem [shape: f32[512,128], index: 0, kind: input, shape index: {}]   ;;  %s613_s1 = inlined_call_operand.vmem [shape: f32[1,128], index: 1, kind: input, shape index: {}]   ;;  %s614_s2 = inlined_call_operand.vmem [shape: f32[1,128], index: 2, kind: input, shape index: {}]   ;;  %s615_s3 = inlined_call_operand.vmem [shape: f32[512,128], index: 3, kind: output, shape index: {}]  }
   0x1 LB: > { %s404_s13 = sadd.s32 4294967295, %s431_s12   ;;  %p408_p0 = scmp.ge.s32.totalorder %s431_s12, 1  ;;  %s431_s12 = sphi %s453_s12, %s13_s12  }
   0x2   : > { %p138_p1 = scmp.lt.s32.totalorder %s431_s12, 3 }
   0x4   : > { %p139_p2 = pnand %p408_p0, %p138_p1 }
   0x5   : > { %s409_s14 = sshll.u32 (!%p139_p2), %s404_s13, 5 }
   0x6   : > { %142 = sbr.rel (%p139_p2) target bundleno = 44 (0x2c), region = 32  ;;  %p163_p3 = scmp.lt.s32.totalorder (!%p139_p2), %s409_s14, 63 }
   0xb   : > { %s617_s14 = smov (!%p163_p3, %s409_s14), 63  ;;  %v464_v0 = vld [vmem:[%s613_s1] ss:$0 sm:$0xff] }
   0xc   : > { %s410_s15 = sshll.u32 %s617_s14, 3  ;;  %v474_v1 = vld [vmem:[%s614_s2] ss:$0 sm:$0xff] }
   0xd   : > { %s469_s20 = scalar_lea.vmem %s612_s0, %s410_s15  ;;  %s497_s25 = scalar_lea.vmem %s615_s3, %s410_s15 }
   0xe   : > { %v174_v2 = vld [vmem:[%s469_s20] sm:$0xff]  ;;  %v175_v3 = vld [vmem:[%s469_s20 + $0x8] sm:$0xff]  ;;  %v176_v4 = vld [vmem:[%s469_s20 + $0x10] sm:$0xff] }
   0xf   : > { %v213_v5 = vmul.f32 %v464_v0, %v174_v2  ;;  %v214_v6 = vmul.f32 %v464_v0, %v175_v3  ;;  %v215_v7 = vmul.f32 %v464_v0, %v176_v4  ;;  %v177_v8 = vld [vmem:[%s469_s20 + $0x18] sm:$0xff]  ;;  %v178_v9 = vld [vmem:[%s469_s20 + $0x20] sm:$0xff]  ;;  %v179_v10 = vld [vmem:[%s469_s20 + $0x28] sm:$0xff] }
  0x10   : > { %v216_v11 = vmul.f32 %v464_v0, %v177_v8  ;;  %v217_v12 = vmul.f32 %v464_v0, %v178_v9  ;;  %v218_v13 = vmul.f32 %v464_v0, %v179_v10  ;;  %v180_v14 = vld [vmem:[%s469_s20 + $0x30] sm:$0xff]  ;;  %v181_v15 = vld [vmem:[%s469_s20 + $0x38] sm:$0xff]  ;;  %v182_v24 = vld [vmem:[%s469_s20 + $0x40] sm:$0xff] }
  0x11   : > { %v252_v16 = vadd.f32 %v474_v1, %v213_v5  ;;  %v253_v17 = vadd.f32 %v474_v1, %v214_v6  ;;  %v254_v18 = vadd.f32 %v474_v1, %v215_v7  ;;  %v219_v19 = vmul.f32 %v464_v0, %v180_v14  ;;  %v183_v25 = vld [vmem:[%s469_s20 + $0x48] sm:$0xff]  ;;  %v184_v26 = vld [vmem:[%s469_s20 + $0x50] sm:$0xff]  ;;  %v185_v31 = vld [vmem:[%s469_s20 + $0x58] sm:$0xff] }
  0x12   : > { %v255_v20 = vadd.f32 %v474_v1, %v216_v11  ;;  %v256_v21 = vadd.f32 %v474_v1, %v217_v12  ;;  %v257_v22 = vadd.f32 %v474_v1, %v218_v13  ;;  %v220_v23 = vmul.f32 %v464_v0, %v181_v15  ;;  %v186_v32 = vld [vmem:[%s469_s20 + $0x60] sm:$0xff]  ;;  %v187_v33 = vld [vmem:[%s469_s20 + $0x68] sm:$0xff]  ;;  %v188_v38 = vld [vmem:[%s469_s20 + $0x70] sm:$0xff] }
  0x13   : > { %v284_v27 = vmax.f32 %v252_v16, 0.0  ;;  %v285_v28 = vmax.f32 %v253_v17, 0.0  ;;  %v286_v29 = vmax.f32 %v254_v18, 0.0  ;;  %v258_v30 = vadd.f32 %v474_v1, %v219_v19  ;;  %v189_v43 = vld [vmem:[%s469_s20 + $0x78] sm:$0xff]  ;;  %v190_v56 = vld [vmem:[%s469_s20 + $0x80] sm:$0xff]  ;;  %v191_v57 = vld [vmem:[%s469_s20 + $0x88] sm:$0xff] }
  0x14   : > { %v287_v34 = vmax.f32 %v255_v20, 0.0  ;;  %v288_v35 = vmax.f32 %v256_v21, 0.0  ;;  %v289_v36 = vmax.f32 %v257_v22, 0.0  ;;  %v259_v37 = vadd.f32 %v474_v1, %v220_v23  ;;  %v192_v58 = vld [vmem:[%s469_s20 + $0x90] sm:$0xff]  ;;  %v193_v63 = vld [vmem:[%s469_s20 + $0x98] sm:$0xff]  ;;  %v194_v2 = vld [vmem:[%s469_s20 + $0xa0] sm:$0xff] }
  0x15   : > { %316 = vst [vmem:[%s497_s25] sm:$0xff] %v284_v27  ;;  %317 = vst [vmem:[%s497_s25 + $0x8] sm:$0xff] %v285_v28  ;;  %v290_v39 = vmax.f32 %v258_v30, 0.0  ;;  %v221_v40 = vmul.f32 %v464_v0, %v182_v24  ;;  %v222_v41 = vmul.f32 %v464_v0, %v183_v25  ;;  %v223_v42 = vmul.f32 %v464_v0, %v184_v26  ;;  %v195_v3 = vld [vmem:[%s469_s20 + $0xa8] sm:$0xff]  ;;  %v196_v8 = vld [vmem:[%s469_s20 + $0xb0] sm:$0xff] }
  0x16   : > { %318 = vst [vmem:[%s497_s25 + $0x10] sm:$0xff] %v286_v29  ;;  %319 = vst [vmem:[%s497_s25 + $0x18] sm:$0xff] %v287_v34  ;;  %v291_v44 = vmax.f32 %v259_v37, 0.0  ;;  %v224_v45 = vmul.f32 %v464_v0, %v185_v31  ;;  %v225_v46 = vmul.f32 %v464_v0, %v186_v32  ;;  %v226_v47 = vmul.f32 %v464_v0, %v187_v33  ;;  %v197_v13 = vld [vmem:[%s469_s20 + $0xb8] sm:$0xff]  ;;  %v198_v26 = vld [vmem:[%s469_s20 + $0xc0] sm:$0xff] }
  0x17   : > { %320 = vst [vmem:[%s497_s25 + $0x20] sm:$0xff] %v288_v35  ;;  %321 = vst [vmem:[%s497_s25 + $0x28] sm:$0xff] %v289_v36  ;;  %v260_v48 = vadd.f32 %v474_v1, %v221_v40  ;;  %v261_v49 = vadd.f32 %v474_v1, %v222_v41  ;;  %v262_v50 = vadd.f32 %v474_v1, %v223_v42  ;;  %v199_v27 = vld [vmem:[%s469_s20 + $0xc8] sm:$0xff]  ;;  %v200_v28 = vld [vmem:[%s469_s20 + $0xd0] sm:$0xff] }
  0x18   : > { %322 = vst [vmem:[%s497_s25 + $0x30] sm:$0xff] %v290_v39  ;;  %v227_v51 = vmul.f32 %v464_v0, %v188_v38  ;;  %323 = vst [vmem:[%s497_s25 + $0x38] sm:$0xff] %v291_v44  ;;  %v263_v52 = vadd.f32 %v474_v1, %v224_v45  ;;  %v264_v53 = vadd.f32 %v474_v1, %v225_v46  ;;  %v201_v33 = vld [vmem:[%s469_s20 + $0xd8] sm:$0xff]  ;;  %v202_v34 = vld [vmem:[%s469_s20 + $0xe0] sm:$0xff] }
  0x19   : > { %v265_v54 = vadd.f32 %v474_v1, %v226_v47  ;;  %v228_v55 = vmul.f32 %v464_v0, %v189_v43  ;;  %v292_v59 = vmax.f32 %v260_v48, 0.0  ;;  %v293_v60 = vmax.f32 %v261_v49, 0.0  ;;  %v203_v35 = vld [vmem:[%s469_s20 + $0xe8] sm:$0xff]  ;;  %v204_v40 = vld [vmem:[%s469_s20 + $0xf0] sm:$0xff]  ;;  %v205_v45 = vld [vmem:[%s469_s20 + $0xf8] sm:$0xff] }
  0x1a   : > { %v294_v61 = vmax.f32 %v262_v50, 0.0  ;;  %v266_v62 = vadd.f32 %v474_v1, %v227_v51  ;;  %v295_v4 = vmax.f32 %v263_v52, 0.0  ;;  %v296_v5 = vmax.f32 %v264_v53, 0.0 }
  0x1b   : > { %v297_v6 = vmax.f32 %v265_v54, 0.0  ;;  %v267_v7 = vadd.f32 %v474_v1, %v228_v55  ;;  %324 = vst [vmem:[%s497_s25 + $0x40] sm:$0xff] %v292_v59  ;;  %325 = vst [vmem:[%s497_s25 + $0x48] sm:$0xff] %v293_v60  ;;  %v229_v10 = vmul.f32 %v464_v0, %v190_v56  ;;  %v230_v11 = vmul.f32 %v464_v0, %v191_v57 }
  0x1c   : > { %326 = vst [vmem:[%s497_s25 + $0x50] sm:$0xff] %v294_v61  ;;  %v298_v9 = vmax.f32 %v266_v62, 0.0  ;;  %v231_v12 = vmul.f32 %v464_v0, %v192_v58  ;;  %327 = vst [vmem:[%s497_s25 + $0x58] sm:$0xff] %v295_v4  ;;  %v232_v15 = vmul.f32 %v464_v0, %v193_v63  ;;  %v233_v16 = vmul.f32 %v464_v0, %v194_v2 }
  0x1d   : > { %328 = vst [vmem:[%s497_s25 + $0x60] sm:$0xff] %v296_v5  ;;  %329 = vst [vmem:[%s497_s25 + $0x68] sm:$0xff] %v297_v6  ;;  %v299_v14 = vmax.f32 %v267_v7, 0.0  ;;  %v234_v17 = vmul.f32 %v464_v0, %v195_v3  ;;  %v268_v18 = vadd.f32 %v474_v1, %v229_v10  ;;  %v269_v19 = vadd.f32 %v474_v1, %v230_v11 }
  0x1e   : > { %330 = vst [vmem:[%s497_s25 + $0x70] sm:$0xff] %v298_v9  ;;  %v270_v20 = vadd.f32 %v474_v1, %v231_v12  ;;  %v235_v21 = vmul.f32 %v464_v0, %v196_v8  ;;  %v271_v22 = vadd.f32 %v474_v1, %v232_v15  ;;  %v272_v23 = vadd.f32 %v474_v1, %v233_v16 }
  0x1f   : > { %331 = vst [vmem:[%s497_s25 + $0x78] sm:$0xff] %v299_v14  ;;  %v273_v24 = vadd.f32 %v474_v1, %v234_v17  ;;  %v236_v25 = vmul.f32 %v464_v0, %v197_v13  ;;  %v300_v29 = vmax.f32 %v268_v18, 0.0  ;;  %v301_v30 = vmax.f32 %v269_v19, 0.0 }
  0x20   : > { %v302_v31 = vmax.f32 %v270_v20, 0.0  ;;  %v274_v32 = vadd.f32 %v474_v1, %v235_v21  ;;  %v303_v36 = vmax.f32 %v271_v22, 0.0  ;;  %v304_v37 = vmax.f32 %v272_v23, 0.0 }
  0x21   : > { %v305_v38 = vmax.f32 %v273_v24, 0.0  ;;  %v275_v39 = vadd.f32 %v474_v1, %v236_v25  ;;  %332 = vst [vmem:[%s497_s25 + $0x80] sm:$0xff] %v300_v29  ;;  %333 = vst [vmem:[%s497_s25 + $0x88] sm:$0xff] %v301_v30  ;;  %v237_v42 = vmul.f32 %v464_v0, %v198_v26  ;;  %v238_v43 = vmul.f32 %v464_v0, %v199_v27 }
  0x22   : > { %334 = vst [vmem:[%s497_s25 + $0x90] sm:$0xff] %v302_v31  ;;  %v306_v41 = vmax.f32 %v274_v32, 0.0  ;;  %v239_v44 = vmul.f32 %v464_v0, %v200_v28  ;;  %335 = vst [vmem:[%s497_s25 + $0x98] sm:$0xff] %v303_v36  ;;  %v240_v47 = vmul.f32 %v464_v0, %v201_v33  ;;  %v241_v48 = vmul.f32 %v464_v0, %v202_v34 }
  0x23   : > { %336 = vst [vmem:[%s497_s25 + $0xa0] sm:$0xff] %v304_v37  ;;  %337 = vst [vmem:[%s497_s25 + $0xa8] sm:$0xff] %v305_v38  ;;  %v307_v46 = vmax.f32 %v275_v39, 0.0  ;;  %v242_v49 = vmul.f32 %v464_v0, %v203_v35  ;;  %v276_v50 = vadd.f32 %v474_v1, %v237_v42  ;;  %v277_v51 = vadd.f32 %v474_v1, %v238_v43 }
  0x24   : > { %338 = vst [vmem:[%s497_s25 + $0xb0] sm:$0xff] %v306_v41  ;;  %v278_v52 = vadd.f32 %v474_v1, %v239_v44  ;;  %v243_v53 = vmul.f32 %v464_v0, %v204_v40  ;;  %v279_v54 = vadd.f32 %v474_v1, %v240_v47  ;;  %v280_v55 = vadd.f32 %v474_v1, %v241_v48 }
  0x25   : > { %339 = vst [vmem:[%s497_s25 + $0xb8] sm:$0xff] %v307_v46  ;;  %v281_v56 = vadd.f32 %v474_v1, %v242_v49  ;;  %v244_v57 = vmul.f32 %v464_v0, %v205_v45  ;;  %v308_v58 = vmax.f32 %v276_v50, 0.0  ;;  %v309_v59 = vmax.f32 %v277_v51, 0.0 }
  0x26   : > { %v310_v60 = vmax.f32 %v278_v52, 0.0  ;;  %v282_v61 = vadd.f32 %v474_v1, %v243_v53  ;;  %v311_v62 = vmax.f32 %v279_v54, 0.0  ;;  %v312_v63 = vmax.f32 %v280_v55, 0.0 }
  0x27   : > { %v313_v2 = vmax.f32 %v281_v56, 0.0  ;;  %v283_v3 = vadd.f32 %v474_v1, %v244_v57  ;;  %340 = vst [vmem:[%s497_s25 + $0xc0] sm:$0xff] %v308_v58  ;;  %341 = vst [vmem:[%s497_s25 + $0xc8] sm:$0xff] %v309_v59 }
  0x28   : > { %342 = vst [vmem:[%s497_s25 + $0xd0] sm:$0xff] %v310_v60  ;;  %v314_v4 = vmax.f32 %v282_v61, 0.0  ;;  %343 = vst [vmem:[%s497_s25 + $0xd8] sm:$0xff] %v311_v62 }
  0x29   : > { %344 = vst [vmem:[%s497_s25 + $0xe0] sm:$0xff] %v312_v63  ;;  %345 = vst [vmem:[%s497_s25 + $0xe8] sm:$0xff] %v313_v2  ;;  %v315_v0 = vmax.f32 %v283_v3, 0.0 }
  0x2a   : > { %346 = vst [vmem:[%s497_s25 + $0xf0] sm:$0xff] %v314_v4 }
  0x2b   : > { %347 = vst [vmem:[%s497_s25 + $0xf8] sm:$0xff] %v315_v0 }
  0x2c PF: > { %s13_s12 = sadd.s32 1, %s431_s12  }
  0x2d   : > { %p10_p4 = scmp.ge.s32.totalorder %s13_s12, 4  }
  0x2f   :  { %12 = sbr.rel (!%p10_p4) target bundleno = 1 (0x1), region = 62 }

// kernel: decoder_block_forward.8
= control target key start
LH: loop header
LB: loop body
LE: loop exit
PB: predicated region body
PF: predicated region fallthrough
CT: control target
= control target key end

     0   :  { %s5177_s12 = smov 0   ;;  %s6929_s0 = inlined_call_operand.vmem [shape: bf16[2,18,18,128], index: 0, kind: input, shape index: {}]   ;;  %s6930_s1 = inlined_call_operand.vmem [shape: bf16[9,128,128], index: 1, kind: input, shape index: {}]   ;;  %s6931_s2 = inlined_call_operand.vmem [shape: f32[2,256,128], index: 2, kind: output, shape index: {0}]   ;;  %s6932_s3 = inlined_call_operand.vmem [shape: f32[2,128], index: 3, kind: output, shape index: {1}]  }
   0x1 LB: > { %s5183_s13 = sadd.s32 4294967295, %s5154_s12   ;;  %p4224_p0 = scmp.ge.s32.totalorder %s5154_s12, 1  ;;  %s5154_s12 = sphi %s5177_s12, %s14_s12  }
   0x2   : > { %p135_p1 = scmp.lt.s32.totalorder %s5154_s12, 3 }
   0x4   : > { %p136_p2 = pnand %p4224_p0, %p135_p1 }
   0x6   : > { %139 = sbr.rel (%p136_p2) target bundleno = 623 (0x26f), region = 28 }
   0xb   : > { %v5050_v0 = vld [vmem:[%s6930_s1 + $0x38] sm:$0xff]   ;;  %p159_p3 = scmp.lt.s32.totalorder %s5183_s13, 1  ;;  %v5051_v1 = vld [vmem:[%s6930_s1 + $0x30] sm:$0xff]   ;;  %v5052_v2 = vld [vmem:[%s6930_s1 + $0x28] sm:$0xff]   ;;  %vm1573_vm0 = vcmask 1042432   ;;  %vm1574_vm1 = vcmask 1046532  }
   0xc   : > { %4592 = vmatprep.subr.bf16.mxu0 %v5050_v0  ;;  %5024 = vmatprep.subr.bf16.mxu1 %v5050_v0  ;;  %v5053_v3 = vld [vmem:[%s6930_s1 + $0x20] sm:$0xff]   ;;  %v5054_v10 = vld [vmem:[%s6930_s1 + $0x18] sm:$0xff]   ;;  %v5055_v25 = vld [vmem:[%s6930_s1 + $0x10] sm:$0xff]   ;;  %vm801_vm3 = vsmask.f32 3328  ;;  %p4372_p4 = scmp.ne.s32.totalorder %s5183_s13, 0 }
   0xd   : > { %s5195_s18 = scalar_select %p159_p3, %s5183_s13, 1  ;;  %4593 = vmatpush3.bf16.msra.mxu0 %v5050_v0  ;;  %5032 = vmatpush3.bf16.msra.mxu1 %v5050_v0  ;;  %v5056_v29 = vld [vmem:[%s6930_s1 + $0x8] sm:$0xff]   ;;  %v5057_v52 = vld [vmem:[%s6930_s1] sm:$0xff]   ;;  %v5062_v60 = vld [vmem:[%s6930_s1 + $0x78] sm:$0xff]   ;;  %vm802_vm4 = vsmask.f32 7440 }
   0xe   : > { %4594 = vmatprep.subr.bf16.mxu0 %v5051_v1  ;;  %5025 = vmatprep.subr.bf16.mxu1 %v5051_v1  ;;  %v5063_v61 = vld [vmem:[%s6930_s1 + $0xb8] sm:$0xff]   ;;  %v5071_v46 = vld [vmem:[%s6930_s1 + $0xa8] sm:$0xff]   ;;  %vm5445_vm2 = vmor %vm1573_vm0, %vm1574_vm1 }
   0xf   : > { %s5040_s21 = smul.u32 216, %s5195_s18  ;;  %vm5506_vm5 = vmor %vm801_vm3, %vm802_vm4 }
  0x11   : > { %s5204_s24 = scalar_lea.vmem %s6929_s0, %s5040_s21  ;;  %4595 = vmatpush3.bf16.msra.mxu0 %v5051_v1  ;;  %5033 = vmatpush3.bf16.msra.mxu1 %v5051_v1 }
  0x12   : > { %4596 = vmatprep.subr.bf16.mxu0 %v5052_v2  ;;  %5026 = vmatprep.subr.bf16.mxu1 %v5052_v2  ;;  %v5210_v4 = vld [vmem:[%s5204_s24] sm:$0xf]  ;;  %v5213_v5 = vld [vmem:[%s5204_s24 + $0x4] sm:$0xf]  ;;  %v5231_v11 = vld [vmem:[%s5204_s24 + $0xc] sm:$0xf] }
  0x13   : > { %v5216_v6 = vld [vmem:[%s5204_s24 + $0x60] sm:$0xf]  ;;  %v4228_v7 = vcombine.low %v5210_v4, %v5213_v5  ;;  %v5221_v8 = vld [vmem:[%s5204_s24 + $0x64] sm:$0xf]  ;;  %v5234_v12 = vld [vmem:[%s5204_s24 + $0x10] sm:$0xf] }
  0x14   : > { %v5225_v9 = vcombine.low %v5216_v6, %v5221_v8  ;;  %v829_v13 = vshrl.u32 %v5231_v11, 16  ;;  %v832_v14 = vshll.u32 %v5231_v11, 16  ;;  %v838_v15 = vshll.u32 %v5234_v12, 16  ;;  %v5267_v37 = vld [vmem:[%s5204_s24 + $0x6c] sm:$0xf] }
  0x15   : > { %4597 = vmatpush3.bf16.msra.mxu0 %v5052_v2  ;;  %5034 = vmatpush3.bf16.msra.mxu1 %v5052_v2  ;;  %v842_v16 = vshrl.u32 %v5234_v12, 16  ;;  %v805_v17 = vshrl.u32 %v5210_v4, 16  ;;  %v808_v18 = vshll.u32 %v5210_v4, 16  ;;  %v814_v19 = vshll.u32 %v5213_v5, 16  ;;  %v5273_v41 = vld [vmem:[%s5204_s24 + $0x70] sm:$0xf] }
  0x16   : > { %6961 = vst [vmem:[#allocation3_spill] sm:$0xff] %v5225_v9  ;;  %4598 = vmatprep.subr.bf16.mxu0 %v5053_v3  ;;  %5027 = vmatprep.subr.bf16.mxu1 %v5053_v3  ;;  %v818_v20 = vshrl.u32 %v5213_v5, 16  ;;  %v831_v21 = vrot.slane %v829_v13, 4  ;;  %v834_v22 = vrot.slane %v832_v14, 5  ;;  %v5245_v23 = vrot.slane %v838_v15, 5 }
  0x17   : > { %4608 = vmatprep.mubr.bf16.mxu0 %v4228_v7  ;;  %4624 = vmatprep.mubr.bf16.mxu1 %v5225_v9  ;;  %v844_v24 = vrot.slane %v842_v16, 4  ;;  %v4276_v26 = vrot.slane %v5210_v4, 9  ;;  %v1585_v27 = vrot.slane %v5234_v12, 5  ;;  %v5255_v30 = vrot.slane %v805_v17, 4  ;;  %v5285_v47 = vld [vmem:[%s5204_s24 + $0x18] sm:$0xf] }
  0x18   : > { %v835_v28 = vor.u32 %v834_v22, %v831_v21  ;;  %v1578_v31 = vrot.slane %v5213_v5, 5  ;;  %v5259_v33 = vrot.slane %v808_v18, 5  ;;  %v5261_v34 = vrot.slane %v814_v19, 5  ;;  %v5290_v49 = vld [vmem:[%s5204_s24 + $0x1c] sm:$0xf]  ;;  %v5065_v21 = vld [vmem:[%s6930_s1 + $0xb0] sm:$0xff]  }
  0x19   : > { %4599 = vmatpush3.bf16.msra.mxu0 %v5053_v3  ;;  %5035 = vmatpush3.bf16.msra.mxu1 %v5053_v3  ;;  %v845_v32 = vor.u32 %v844_v24, %v5245_v23  ;;  %v5263_v35 = vrot.slane %v818_v20, 4  ;;  %v4277_v40 = vrot.slane %v5231_v11, 9  ;;  %v5280_v44 = vrot.slane %v1585_v27, 4  ;;  %v5294_v51 = vld [vmem:[%s5204_s24 + $0x78] sm:$0xf]  ;;  %v5064_v20 = vld [vmem:[%s6930_s1 + $0x70] sm:$0xff]  }
  0x1a   : > { %4600 = vmatprep.subr.bf16.mxu0 %v5054_v10  ;;  %5028 = vmatprep.subr.bf16.mxu1 %v5054_v10  ;;  %v5276_v43 = vrot.slane %v835_v28, 4  ;;  %v5304_v57 = vld [vmem:[%s5204_s24 + $0x7c] sm:$0xf]  ;;  %v5307_v58 = vld [vmem:[%s5204_s24 + $0x24] sm:$0xf]  ;;  %v5343_v18 = vcombine.low %v5231_v11, %v5234_v12  ;;  %v5347_v19 = vcombine.low %v5267_v37, %v5273_v41  ;;  %v811_v36 = vor.u32 %v5259_v33, %v5255_v30 }
  0x1b   : > { %v5287_v48 = vrot.slane %v845_v32, 4  ;;  %v5310_v59 = vld [vmem:[%s5204_s24 + $0x28] sm:$0xf]  ;;  %v5323_v2 = vld [vmem:[%s5204_s24 + $0x84] sm:$0xf]  ;;  %v5381_v14 = vcombine.low %v5294_v51, %v5304_v57  ;;  %v6966_v16 = vmov 0  ;;  %v5473_v54 = vsel %vm5445_vm2, %v4276_v26, %v1578_v31 }
  0x1c   : > { %v5326_v3 = vld [vmem:[%s5204_s24 + $0x88] sm:$0xf]  ;;  %v5331_v13 = vld [vmem:[%s5204_s24 + $0x30] sm:$0xf]  ;;  %v5335_v15 = vld [vmem:[%s5204_s24 + $0x34] sm:$0xf]  ;;  %v1586_v24 = vsel %vm5445_vm2, %v4277_v40, %v1585_v27 }
  0x1d   : > { %4601 = vmatpush3.bf16.msra.mxu0 %v5054_v10  ;;  %5036 = vmatpush3.bf16.msra.mxu1 %v5054_v10  ;;  %v5339_v17 = vld [vmem:[%s5204_s24 + $0x90] sm:$0xf]  ;;  %6962 = vst [vmem:[#allocation4_spill] sm:$0xff] %v5347_v19  ;;  %v5361_v28 = vld [vmem:[%s5204_s24 + $0x3c] sm:$0xf]  ;;  %6963 = vst [vmem:[#allocation5_spill] sm:$0xff] %v5381_v14  ;;  %v5427_v42 = vcombine.low %v5323_v2, %v5326_v3 }
  0x1e   : > { %4602 = vmatprep.subr.bf16.mxu0 %v5055_v25  ;;  %5029 = vmatprep.subr.bf16.mxu1 %v5055_v25  ;;  %v5367_v10 = vld [vmem:[%s5204_s24 + $0x40] sm:$0xf]  ;;  %v5373_v55 = vld [vmem:[%s5204_s24 + $0x9c] sm:$0xf]  ;;  %v5397_v39 = vld [vmem:[%s5204_s24 + $0x48] sm:$0xf] }
  0x1f   : > { %v5384_v32 = vld [vmem:[%s5204_s24 + $0xa0] sm:$0xf]  ;;  %v5400_v38 = vld [vmem:[%s5204_s24 + $0x4c] sm:$0xf]  ;;  %v5409_v45 = vld [vmem:[%s5204_s24 + $0xa8] sm:$0xf] }
  0x20   : > { %v5414_v62 = vld [vmem:[%s5204_s24 + $0xac] sm:$0xf]  ;;  %v5419_v56 = vld [vmem:[%s5204_s24 + $0x54] sm:$0xf]  ;;  %6965 = vst [vmem:[#allocation7_spill] sm:$0xff] %v5427_v42  ;;  %v5073_v30 = vld [vmem:[%s6930_s1 + $0xa0] sm:$0xff]   ;;  %v5499_v33 = vcombine.low %v5397_v39, %v5400_v38 }
  0x21   : > { %4603 = vmatpush3.bf16.msra.mxu0 %v5055_v25  ;;  %5037 = vmatpush3.bf16.msra.mxu1 %v5055_v25  ;;  %v5358_v25 = vld [vmem:[%s5204_s24 + $0x94] sm:$0xf]  ;;  %v5437_v7 = vld [vmem:[%s5204_s24 + $0x58] sm:$0xf]  ;;  %v6967_v16 = vsel %vm5445_vm2, 4294967295, %v6966_v16  ;;  %v812_v53 = vrot.slane %v811_v36, 4  ;;  %v5483_v36 = vcombine.low %v5373_v55, %v5384_v32  ;;  %v5503_v1 = vcombine.low %v5409_v45, %v5414_v62 }
  0x22   : > { %4604 = vmatprep.subr.bf16.mxu0 %v5056_v29  ;;  %5030 = vmatprep.subr.bf16.mxu1 %v5056_v29  ;;  %v5441_v22 = vld [vmem:[%s5204_s24 + $0xb4] sm:$0xf]  ;;  %6968 = vst [vmem:[#allocation8_spill] sm:$0xff] %v6967_v16  ;;  %v5452_v63 = vld [vmem:[%s5204_s24 + $0xb8] sm:$0xf]  ;;  %v5465_v0 = vcombine.low %v5339_v17, %v5358_v25  ;;  %6972 = vst [vmem:[#allocation12_spill] sm:$0xff] %v5499_v33 }
  0x23   : > { %6971 = vst [vmem:[#allocation11_spill] sm:$0xff] %v5483_v36  ;;  %v5078_v4 = vld [vmem:[%s6930_s1 + $0x58] sm:$0xff]   ;;  %6973 = vst [vmem:[#allocation13_spill] sm:$0xff] %v5503_v1  ;;  %v204_v50 = vld [vmem:[%s5204_s24 + $0x8] sm:$0x1]  ;;  %v6974_v11 = vmov 0  ;;  %v817_v5 = vsel %vm5506_vm5, %v812_v53, %v5261_v34 }
  0x24   : > { %6970 = vst [vmem:[#allocation10_spill] sm:$0xff] %v5465_v0  ;;  %v5079_v26 = vld [vmem:[%s6930_s1 + $0x98] sm:$0xff]   ;;  %v6975_v11 = vsel %vm5506_vm5, 4294967295, %v6974_v11  ;;  %v824_v27 = vshll.u32 %v204_v50, 16  ;;  %v1580_v40 = vrot.slane %v1578_v31, 4  ;;  %v6979_v9 = vshrl.u32 %v5290_v49, 16 }
  0x25   : > { %4605 = vmatpush3.bf16.msra.mxu0 %v5056_v29  ;;  %5038 = vmatpush3.bf16.msra.mxu1 %v5056_v29  ;;  %v5070_v29 = vld [vmem:[%s6930_s1 + $0x68] sm:$0xff]   ;;  %6976 = vst [vmem:[#allocation14_spill] sm:$0xff] %v6975_v11  ;;  %v210_v53 = vld [vmem:[%s5204_s24 + $0x20] sm:$0x1] }
  0x26   : > { %4606 = vmatprep.subr.bf16.mxu0 %v5057_v52  ;;  %5031 = vmatprep.subr.bf16.mxu1 %v5057_v52  ;;  %v826_v31 = vrot.slane %v824_v27, 5  ;;  %v6977_v27 = vshrl.u32 %v5285_v47, 16 }
  0x29   : > { %4607 = vmatpush3.bf16.msra.mxu0 %v5057_v52  ;;  %5039 = vmatpush3.bf16.msra.mxu1 %v5057_v52  ;;  %v5377_v52 = vcombine.low %v5285_v47, %v5290_v49 }
  0x2a   : > { %4640 = vmatprep.subr.bf16.mxu1 %v5062_v60  ;;  %4688 = vmatprep.subr.bf16.mxu0 %v5063_v61 }
  0x2c   : > { %4609 = vmatmul.mubr.bf16.vlgmr.msra.gmra.mxu0 %v5343_v18  ;;  %4625 = vmatmul.mubr.bf16.vlgmr.msra.gmra.mxu1 %v5347_v19 }
  0x2d   : > { %4641 = vmatpush3.bf16.msra.mxu1 %v5062_v60  ;;  %4689 = vmatpush3.bf16.msra.mxu0 %v5063_v61  ;;  %v5423_v61 = vcombine.low %v5307_v58, %v5310_v59  ;;  %v5072_v60 = vld [vmem:[%s6930_s1 + $0x60] sm:$0xff]  }
  0x2e   : > { %4642 = vmatprep.subr.bf16.mxu1 %v5064_v20  ;;  %4690 = vmatprep.subr.bf16.mxu0 %v5065_v21 }
  0x2f   : > { %4612 = vmatprep.mubr.bf16.mxu0 %v5377_v52  ;;  %4628 = vmatprep.mubr.bf16.mxu1 %v5381_v14  ;;  %6964 = vst [vmem:[#allocation6_spill] sm:$0xff] %v5423_v61  ;;  %v5521_v14 = vcombine.low %v5441_v22, %v5452_v63 }
  0x31   : > { %4643 = vmatpush3.bf16.msra.mxu1 %v5064_v20  ;;  %4691 = vmatpush3.bf16.msra.mxu0 %v5065_v21  ;;  %v821_v20 = vor.u32 %v5263_v35, %v5261_v34  ;;  %v5461_v21 = vcombine.low %v5331_v13, %v5335_v15  ;;  %v5479_v35 = vcombine.low %v5361_v28, %v5367_v10 }
  0x32   : > { %4644 = vmatprep.subr.bf16.mxu1 %v5070_v29  ;;  %4692 = vmatprep.subr.bf16.mxu0 %v5071_v46 }
  0x33   : > { %6969 = vst [vmem:[#allocation9_spill] sm:$0xff] %v5461_v21  ;;  %v822_v12 = vrot.slane %v821_v20, 4 }
  0x34   : > { %4613 = vmatmul.mubr.bf16.gmra.mxu0 %v5423_v61  ;;  %4629 = vmatmul.mubr.bf16.gmra.mxu1 %v5427_v42  ;;  %v5517_v42 = vcombine.low %v5419_v56, %v5437_v7  ;;  %v872_v61 = vshll.u32 %v210_v53, 16 }
  0x35   : > { %4645 = vmatpush3.bf16.msra.mxu1 %v5070_v29  ;;  %4693 = vmatpush3.bf16.msra.mxu0 %v5071_v46  ;;  %v1581_v46 = vrot.slane %v204_v50, 5  ;;  %v207_v29 = vld [vmem:[%s5204_s24 + $0x14] sm:$0x1] }
  0x36   : > { %4646 = vmatprep.subr.bf16.mxu1 %v5072_v60  ;;  %4694 = vmatprep.subr.bf16.mxu0 %v5073_v30  ;;  %v848_v20 = vshll.u32 %v207_v29, 16  ;;  %v1588_v19 = vrot.slane %v207_v29, 5 }
  0x37   : > { %4616 = vmatprep.mubr.bf16.mxu0 %v5461_v21  ;;  %4632 = vmatprep.mubr.bf16.mxu1 %v5465_v0  ;;  %v5528_v50 = vsel %vm5445_vm2, %v1580_v40, %v1581_v46  ;;  %v841_v0 = vsel %vm5506_vm5, %v5276_v43, %v5245_v23  ;;  %v855_v40 = vrot.slane %v6977_v27, 4  ;;  %v5080_v23 = vld [vmem:[%s6930_s1 + $0x50] sm:$0xff]   ;;  %v862_v46 = vshll.u32 %v5290_v49, 16 }
  0x38   : > { %v850_v29 = vrot.slane %v848_v20, 5  ;;  %v1589_v34 = vsel %vm5445_vm2, %v5280_v44, %v1588_v19  ;;  %v5081_v43 = vld [vmem:[%s6930_s1 + $0x90] sm:$0xff]   ;;  %v6978_v44 = vshll.u32 %v5285_v47, 16  ;;  %v868_v21 = vrot.slane %v6979_v9, 4 }
  0x39   : > { %4647 = vmatpush3.bf16.msra.mxu1 %v5072_v60  ;;  %4695 = vmatpush3.bf16.msra.mxu0 %v5073_v30  ;;  %v827_v60 = vsel %vm5506_vm5, %v822_v12, %v826_v31  ;;  %v5550_v30 = vcombine.low %v1586_v24, %v1589_v34  ;;  %v864_v31 = vrot.slane %v862_v46, 5  ;;  %v4278_v34 = vrot.slane %v5285_v47, 9  ;;  %v5087_v47 = vld [vmem:[%s6930_s1 + $0x88] sm:$0xff]  }
  0x3a   : > { %4648 = vmatprep.subr.bf16.mxu1 %v5078_v4  ;;  %4696 = vmatprep.subr.bf16.mxu0 %v5079_v26  ;;  %v858_v19 = vrot.slane %v6978_v44, 5  ;;  %v5555_v20 = vcombine.low %v817_v5, %v827_v60  ;;  %v851_v27 = vsel %vm5506_vm5, %v5287_v48, %v850_v29  ;;  %v213_v5 = vld [vmem:[%s5204_s24 + $0x2c] sm:$0x1]  ;;  %v874_v60 = vrot.slane %v872_v61, 5 }
  0x3b   : > { %v5564_v24 = vcombine.low %v841_v0, %v851_v27  ;;  %v1592_v48 = vrot.slane %v5290_v49, 5  ;;  %v1595_v29 = vrot.slane %v210_v53, 5  ;;  %v6980_v9 = vshrl.u32 %v5307_v58, 16  ;;  %v5086_v0 = vld [vmem:[%s6930_s1 + $0x48] sm:$0xff]  }
  0x3c   : > { %4617 = vmatmul.mubr.bf16.gmra.mxu0 %v5479_v35  ;;  %4633 = vmatmul.mubr.bf16.gmra.mxu1 %v5483_v36  ;;  %v859_v12 = vor.u32 %v858_v19, %v855_v40  ;;  %v6981_v61 = vshll.u32 %v5307_v58, 16  ;;  %v886_v49 = vshll.u32 %v5310_v59, 16  ;;  %v6982_v46 = vshrl.u32 %v5310_v59, 16 }
  0x3d   : > { %4649 = vmatpush3.bf16.msra.mxu1 %v5078_v4  ;;  %4697 = vmatpush3.bf16.msra.mxu0 %v5079_v26  ;;  %v879_v44 = vrot.slane %v6980_v9, 4  ;;  %v869_v4 = vor.u32 %v868_v21, %v864_v31  ;;  %v1593_v53 = vsel %vm5445_vm2, %v4278_v34, %v1592_v48  ;;  %v1594_v19 = vrot.slane %v1592_v48, 4 }
  0x3e   : > { %4650 = vmatprep.subr.bf16.mxu1 %v5080_v23  ;;  %4698 = vmatprep.subr.bf16.mxu0 %v5081_v43  ;;  %v860_v40 = vrot.slane %v859_v12, 4  ;;  %v882_v26 = vrot.slane %v6981_v61, 5  ;;  %v892_v27 = vrot.slane %v6982_v46, 4  ;;  %v896_v9 = vshll.u32 %v213_v5, 16 }
  0x3f   : > { %4620 = vmatprep.mubr.bf16.mxu0 %v5499_v33  ;;  %4636 = vmatprep.mubr.bf16.mxu1 %v5503_v1  ;;  %v870_v12 = vrot.slane %v869_v4, 4  ;;  %v888_v61 = vrot.slane %v886_v49, 5  ;;  %v1596_v1 = vsel %vm5445_vm2, %v1594_v19, %v1595_v29  ;;  %v4279_v34 = vrot.slane %v5307_v58, 9  ;;  %v216_v58 = vld [vmem:[%s5204_s24 + $0x38] sm:$0x1] }
  0x40   : > { %v865_v21 = vsel %vm5506_vm5, %v860_v40, %v864_v31  ;;  %v883_v36 = vor.u32 %v882_v26, %v879_v44  ;;  %v898_v33 = vrot.slane %v896_v9, 5  ;;  %v1599_v48 = vrot.slane %v5310_v59, 5  ;;  %v5088_v31 = vld [vmem:[%s6930_s1 + $0x40] sm:$0xff]  }
  0x41   : > { %4651 = vmatpush3.bf16.msra.mxu1 %v5080_v23  ;;  %4699 = vmatpush3.bf16.msra.mxu0 %v5081_v43  ;;  %v5089_v44 = vld [vmem:[%s6930_s1 + $0x80] sm:$0xff]   ;;  %v875_v23 = vsel %vm5506_vm5, %v870_v12, %v874_v60  ;;  %v5600_v43 = vcombine.low %v1593_v53, %v1596_v1  ;;  %v893_v40 = vor.u32 %v892_v27, %v888_v61  ;;  %v1602_v49 = vrot.slane %v213_v5, 5 }
  0x42   : > { %4652 = vmatprep.subr.bf16.mxu1 %v5086_v0  ;;  %4700 = vmatprep.subr.bf16.mxu0 %v5087_v47  ;;  %v884_v29 = vrot.slane %v883_v36, 4  ;;  %v5603_v4 = vcombine.low %v865_v21, %v875_v23  ;;  %v1600_v59 = vsel %vm5445_vm2, %v4279_v34, %v1599_v48  ;;  %v1601_v26 = vrot.slane %v1599_v48, 4 }
  0x43   : > { %v894_v60 = vrot.slane %v893_v40, 4  ;;  %v6983_v1 = vshrl.u32 %v5331_v13, 16  ;;  %v6984_v53 = vshll.u32 %v5331_v13, 16  ;;  %v910_v27 = vshll.u32 %v5335_v15, 16 }
  0x44   : > { %4621 = vmatmul.mubr.bf16.gmra.mxu0 %v5517_v42  ;;  %4637 = vmatmul.mubr.bf16.gmra.mxu1 %v5521_v14  ;;  %v889_v19 = vsel %vm5506_vm5, %v884_v29, %v888_v61  ;;  %v1603_v5 = vsel %vm5445_vm2, %v1601_v26, %v1602_v49  ;;  %v6985_v9 = vshrl.u32 %v5335_v15, 16  ;;  %v920_v12 = vshll.u32 %v216_v58, 16  ;;  %v5090_v61 = vld [vmem:[%s6930_s1 + $0xf8] sm:$0xff]   ;;  %v219_v29 = vld [vmem:[%s5204_s24 + $0x44] sm:$0x1] }
  0x45   : > { %v903_v36 = vrot.slane %v6983_v1, 4  ;;  %v906_v46 = vrot.slane %v6984_v53, 5  ;;  %4653 = vmatpush3.bf16.msra.mxu1 %v5086_v0  ;;  %4701 = vmatpush3.bf16.msra.mxu0 %v5087_v47  ;;  %v5091_v0 = vld [vmem:[%s6930_s1 + $0x138] sm:$0xff]   ;;  %v899_v47 = vsel %vm5506_vm5, %v894_v60, %v898_v33  ;;  %v5628_v34 = vcombine.low %v1600_v59, %v1603_v5 }
  0x46   : > { %v916_v21 = vrot.slane %v6985_v9, 4  ;;  %4654 = vmatprep.subr.bf16.mxu1 %v5088_v31  ;;  %4702 = vmatprep.subr.bf16.mxu0 %v5089_v44  ;;  %v4280_v23 = vrot.slane %v5331_v13, 9  ;;  %v6986_v40 = vcombine.low %v5473_v54, %v5528_v50  ;;  %v5636_v26 = vcombine.low %v889_v19, %v899_v47 }
  0x47   : > { %v907_v48 = vor.u32 %v906_v46, %v903_v36  ;;  %4656 = vmatprep.mubr.bf16.mxu1 %v5555_v20  ;;  %v912_v49 = vrot.slane %v910_v27, 5  ;;  %v922_v1 = vrot.slane %v920_v12, 5  ;;  %v1606_v53 = vrot.slane %v5335_v15, 5  ;;  %v5092_v15 = vld [vmem:[%s6930_s1 + $0xf0] sm:$0xff]  }
  0x48   : > { %4704 = vmatprep.mubr.bf16.mxu0 %v6986_v40  ;;  %v1609_v33 = vrot.slane %v216_v58, 5  ;;  %v6987_v59 = vshrl.u32 %v5361_v28, 16  ;;  %v6988_v13 = vshll.u32 %v5361_v28, 16  ;;  %v934_v19 = vshll.u32 %v5367_v10, 16  ;;  %v5093_v27 = vld [vmem:[%s6930_s1 + $0x130] sm:$0xff]  }
  0x49   : > { %v908_v9 = vrot.slane %v907_v48, 4  ;;  %4655 = vmatpush3.bf16.msra.mxu1 %v5088_v31  ;;  %4703 = vmatpush3.bf16.msra.mxu0 %v5089_v44  ;;  %v917_v20 = vor.u32 %v916_v21, %v912_v49  ;;  %v1607_v54 = vsel %vm5445_vm2, %v4280_v23, %v1606_v53  ;;  %v1608_v50 = vrot.slane %v1606_v53, 4  ;;  %v222_v23 = vld [vmem:[%s5204_s24 + $0x50] sm:$0x1] }
  0x4a   : > { %v927_v60 = vrot.slane %v6987_v59, 4  ;;  %v930_v36 = vrot.slane %v6988_v13, 5  ;;  %4736 = vmatprep.subr.bf16.mxu1 %v5090_v61  ;;  %4784 = vmatprep.subr.bf16.mxu0 %v5091_v0  ;;  %v6989_v31 = vshrl.u32 %v5367_v10, 16  ;;  %v944_v5 = vshll.u32 %v219_v29, 16 }
  0x4b   : > { %v913_v58 = vsel %vm5506_vm5, %v908_v9, %v912_v49  ;;  %v918_v21 = vrot.slane %v917_v20, 4  ;;  %v1610_v12 = vsel %vm5445_vm2, %v1608_v50, %v1609_v33  ;;  %v936_v47 = vrot.slane %v934_v19, 5 }
  0x4c   : > { %v931_v46 = vor.u32 %v930_v36, %v927_v60  ;;  %v940_v44 = vrot.slane %v6989_v31, 4  ;;  %v4281_v48 = vrot.slane %v5361_v28, 9  ;;  %4657 = vmatmul.mubr.bf16.vlgmr.msra.gmra.mxu1 %v5564_v24  ;;  %4705 = vmatmul.mubr.bf16.vlgmr.msra.gmra.mxu0 %v5550_v30  ;;  %v5662_v40 = vcombine.low %v1607_v54, %v1610_v12  ;;  %v5689_v31 = vld [vmem:[%s5204_s24 + $0x5c] sm:$0x1] }
  0x4d   : > { %v946_v53 = vrot.slane %v944_v5, 5  ;;  %v1613_v9 = vrot.slane %v5367_v10, 5  ;;  %4737 = vmatpush3.bf16.msra.mxu1 %v5090_v61  ;;  %4785 = vmatpush3.bf16.msra.mxu0 %v5091_v0  ;;  %v923_v59 = vsel %vm5506_vm5, %v918_v21, %v922_v1  ;;  %v1616_v60 = vrot.slane %v219_v29, 5  ;;  %v5094_v29 = vld [vmem:[%s6930_s1 + $0xe8] sm:$0xff]  }
  0x4e   : > { %v932_v49 = vrot.slane %v931_v46, 4  ;;  %v941_v33 = vor.u32 %v940_v44, %v936_v47  ;;  %v6990_v28 = vshrl.u32 %v5397_v39, 16  ;;  %4660 = vmatprep.mubr.bf16.mxu1 %v5603_v4  ;;  %4708 = vmatprep.mubr.bf16.mxu0 %v5600_v43  ;;  %v5671_v36 = vcombine.low %v913_v58, %v923_v59  ;;  %v5095_v1 = vld [vmem:[%s6930_s1 + $0x128] sm:$0xff]  }
  0x4f   : > { %v1614_v61 = vsel %vm5445_vm2, %v4281_v48, %v1613_v9  ;;  %v1615_v0 = vrot.slane %v1613_v9, 4  ;;  %4738 = vmatprep.subr.bf16.mxu1 %v5092_v15  ;;  %4786 = vmatprep.subr.bf16.mxu0 %v5093_v27  ;;  %v6991_v54 = vshll.u32 %v5397_v39, 16  ;;  %v958_v19 = vshll.u32 %v5400_v38, 16 }
  0x50   : > { %v951_v13 = vrot.slane %v6990_v28, 4  ;;  %v937_v10 = vsel %vm5506_vm5, %v932_v49, %v936_v47  ;;  %v942_v20 = vrot.slane %v941_v33, 4  ;;  %v6992_v58 = vshrl.u32 %v5400_v38, 16 }
  0x51   : > { %v954_v50 = vrot.slane %v6991_v54, 5  ;;  %v1617_v44 = vsel %vm5445_vm2, %v1615_v0, %v1616_v60  ;;  %v968_v5 = vshll.u32 %v222_v23, 16  ;;  %v4282_v21 = vrot.slane %v5397_v39, 9  ;;  %4739 = vmatpush3.bf16.msra.mxu1 %v5092_v15  ;;  %4787 = vmatpush3.bf16.msra.mxu0 %v5093_v27 }
  0x52   : > { %v964_v46 = vrot.slane %v6992_v58, 4  ;;  %v1620_v12 = vrot.slane %v5400_v38, 5  ;;  %v947_v47 = vsel %vm5506_vm5, %v942_v20, %v946_v53  ;;  %v5697_v48 = vcombine.low %v1614_v61, %v1617_v44  ;;  %4740 = vmatprep.subr.bf16.mxu1 %v5094_v29  ;;  %4788 = vmatprep.subr.bf16.mxu0 %v5095_v1  ;;  %v5096_v38 = vld [vmem:[%s6930_s1 + $0xe0] sm:$0xff]  }
  0x53   : > { %v955_v49 = vor.u32 %v954_v50, %v951_v13  ;;  %v960_v9 = vrot.slane %v958_v19, 5  ;;  %v5699_v59 = vcombine.low %v937_v10, %v947_v47  ;;  %v970_v33 = vrot.slane %v968_v5, 5  ;;  %v5097_v10 = vld [vmem:[%s6930_s1 + $0x120] sm:$0xff]   ;;  %v5727_v5 = vld [vmem:[%s5204_s24 + $0x68] sm:$0x1] }
  0x54   : > { %v1621_v60 = vsel %vm5445_vm2, %v4282_v21, %v1620_v12  ;;  %v1622_v39 = vrot.slane %v1620_v12, 4  ;;  %v1623_v53 = vrot.slane %v222_v23, 5  ;;  %v6993_v28 = vshrl.u32 %v5419_v56, 16  ;;  %4661 = vmatmul.mubr.bf16.gmra.mxu1 %v5636_v26  ;;  %4709 = vmatmul.mubr.bf16.gmra.mxu0 %v5628_v34  ;;  %v5098_v21 = vld [vmem:[%s6930_s1 + $0xd8] sm:$0xff]  }
  0x55   : > { %v956_v15 = vrot.slane %v955_v49, 4  ;;  %v965_v27 = vor.u32 %v964_v46, %v960_v9  ;;  %v6994_v61 = vshll.u32 %v5419_v56, 16  ;;  %v982_v20 = vshll.u32 %v5437_v7, 16  ;;  %4664 = vmatprep.mubr.bf16.mxu1 %v5671_v36  ;;  %4712 = vmatprep.mubr.bf16.mxu0 %v5662_v40 }
  0x56   : > { %v975_v13 = vrot.slane %v6993_v28, 4  ;;  %v6995_v54 = vshrl.u32 %v5437_v7, 16  ;;  %v992_v23 = vshll.u32 %v5689_v31, 16  ;;  %v1624_v46 = vsel %vm5445_vm2, %v1622_v39, %v1623_v53  ;;  %4741 = vmatpush3.bf16.msra.mxu1 %v5094_v29  ;;  %4789 = vmatpush3.bf16.msra.mxu0 %v5095_v1  ;;  %v5099_v29 = vld [vmem:[%s6930_s1 + $0x118] sm:$0xff]  }
  0x57   : > { %v978_v0 = vrot.slane %v6994_v61, 5  ;;  %v961_v19 = vsel %vm5506_vm5, %v956_v15, %v960_v9  ;;  %v966_v58 = vrot.slane %v965_v27, 4  ;;  %v4283_v44 = vrot.slane %v5419_v56, 9  ;;  %4742 = vmatprep.subr.bf16.mxu1 %v5096_v38  ;;  %4790 = vmatprep.subr.bf16.mxu0 %v5097_v10 }
  0x58   : > { %v988_v50 = vrot.slane %v6995_v54, 4  ;;  %v5732_v12 = vcombine.low %v1621_v60, %v1624_v46  ;;  %v984_v49 = vrot.slane %v982_v20, 5  ;;  %v994_v28 = vrot.slane %v992_v23, 5  ;;  %v5100_v54 = vld [vmem:[%s6930_s1 + $0xd0] sm:$0xff]  }
  0x59   : > { %v979_v47 = vor.u32 %v978_v0, %v975_v13  ;;  %v971_v9 = vsel %vm5506_vm5, %v966_v58, %v970_v33  ;;  %v1627_v39 = vrot.slane %v5437_v7, 5  ;;  %v1630_v56 = vrot.slane %v5689_v31, 5  ;;  %v5759_v46 = vld [vmem:[%s5204_s24 + $0x74] sm:$0x1] }
  0x5a   : > { %v6996_v15 = vshrl.u32 %v5216_v6, 16  ;;  %v5743_v1 = vcombine.low %v961_v19, %v971_v9  ;;  %v989_v53 = vor.u32 %v988_v50, %v984_v49  ;;  %v6997_v33 = vshll.u32 %v5216_v6, 16  ;;  %4743 = vmatpush3.bf16.msra.mxu1 %v5096_v38  ;;  %4791 = vmatpush3.bf16.msra.mxu0 %v5097_v10  ;;  %v5101_v38 = vld [vmem:[%s6930_s1 + $0x110] sm:$0xff]  }
  0x5b   : > { %v980_v60 = vrot.slane %v979_v47, 4  ;;  %v1628_v7 = vsel %vm5445_vm2, %v4283_v44, %v1627_v39  ;;  %v1629_v31 = vrot.slane %v1627_v39, 4  ;;  %v1006_v61 = vshll.u32 %v5221_v8, 16  ;;  %4744 = vmatprep.subr.bf16.mxu1 %v5098_v21  ;;  %4792 = vmatprep.subr.bf16.mxu0 %v5099_v29 }
  0x5c   : > { %v999_v27 = vrot.slane %v6996_v15, 4  ;;  %v1002_v13 = vrot.slane %v6997_v33, 5  ;;  %v6998_v0 = vshrl.u32 %v5221_v8, 16  ;;  %v990_v50 = vrot.slane %v989_v53, 4  ;;  %4665 = vmatmul.mubr.bf16.gmra.mxu1 %v5699_v59  ;;  %4713 = vmatmul.mubr.bf16.gmra.mxu0 %v5697_v48 }
  0x5d   : > { %v985_v23 = vsel %vm5506_vm5, %v980_v60, %v984_v49  ;;  %v1016_v58 = vshll.u32 %v5727_v5, 16  ;;  %v1631_v44 = vsel %vm5445_vm2, %v1629_v31, %v1630_v56  ;;  %v1008_v47 = vrot.slane %v1006_v61, 5  ;;  %4668 = vmatprep.mubr.bf16.mxu1 %v5743_v1  ;;  %4716 = vmatprep.mubr.bf16.mxu0 %v5732_v12 }
  0x5e   : > { %v1012_v20 = vrot.slane %v6998_v0, 4  ;;  %v1003_v19 = vor.u32 %v1002_v13, %v999_v27  ;;  %v4284_v9 = vrot.slane %v5216_v6, 9  ;;  %v1634_v39 = vrot.slane %v5221_v8, 5  ;;  %4745 = vmatpush3.bf16.msra.mxu1 %v5098_v21  ;;  %4793 = vmatpush3.bf16.msra.mxu0 %v5099_v29  ;;  %v5103_v0 = vld [vmem:[%s6930_s1 + $0x108] sm:$0xff]  }
  0x5f   : > { %v995_v10 = vsel %vm5506_vm5, %v990_v50, %v994_v28  ;;  %v5772_v49 = vcombine.low %v1628_v7, %v1631_v44  ;;  %v1018_v15 = vrot.slane %v1016_v58, 5  ;;  %v5102_v28 = vld [vmem:[%s6930_s1 + $0xc8] sm:$0xff]   ;;  %v1637_v33 = vrot.slane %v5727_v5, 5  ;;  %v5798_v58 = vld [vmem:[%s5204_s24 + $0x80] sm:$0x1]  ;;  %4746 = vmatprep.subr.bf16.mxu1 %v5100_v54  ;;  %4794 = vmatprep.subr.bf16.mxu0 %v5101_v38 }
  0x60   : > { %v1004_v56 = vrot.slane %v1003_v19, 4  ;;  %v5776_v6 = vcombine.low %v985_v23, %v995_v10  ;;  %v1013_v8 = vor.u32 %v1012_v20, %v1008_v47  ;;  %v1635_v27 = vsel %vm5445_vm2, %v4284_v9, %v1634_v39 }
  0x61   : > { %v1636_v60 = vrot.slane %v1634_v39, 4  ;;  %v6999_v13 = vshrl.u32 %v5267_v37, 16  ;;  %v7000_v31 = vshll.u32 %v5267_v37, 16  ;;  %v1030_v23 = vshll.u32 %v5273_v41, 16 }
  0x62   : > { %v1009_v53 = vsel %vm5506_vm5, %v1004_v56, %v1008_v47  ;;  %v1014_v20 = vrot.slane %v1013_v8, 4  ;;  %v7001_v50 = vshrl.u32 %v5273_v41, 16  ;;  %v1040_v5 = vshll.u32 %v5759_v46, 16  ;;  %v5104_v8 = vld [vmem:[%s6930_s1 + $0xc0] sm:$0xff]   ;;  %4747 = vmatpush3.bf16.msra.mxu1 %v5100_v54  ;;  %4795 = vmatpush3.bf16.msra.mxu0 %v5101_v38 }
  0x63   : > { %v1023_v7 = vrot.slane %v6999_v13, 4  ;;  %v1026_v61 = vrot.slane %v7000_v31, 5  ;;  %v1638_v21 = vsel %vm5445_vm2, %v1636_v60, %v1637_v33  ;;  %v4285_v44 = vrot.slane %v5267_v37, 9  ;;  %4748 = vmatprep.subr.bf16.mxu1 %v5102_v28  ;;  %4796 = vmatprep.subr.bf16.mxu0 %v5103_v0 }
  0x64   : > { %v1036_v19 = vrot.slane %v7001_v50, 4  ;;  %v1641_v47 = vrot.slane %v5273_v41, 5  ;;  %v1019_v9 = vsel %vm5506_vm5, %v1014_v20, %v1018_v15  ;;  %v5806_v39 = vcombine.low %v1635_v27, %v1638_v21  ;;  %4669 = vmatmul.mubr.bf16.gmra.mxu1 %v5776_v6  ;;  %4717 = vmatmul.mubr.bf16.gmra.mxu0 %v5772_v49 }
  0x65   : > { %v1027_v29 = vor.u32 %v1026_v61, %v1023_v7  ;;  %v1032_v10 = vrot.slane %v1030_v23, 5  ;;  %v1042_v56 = vrot.slane %v1040_v5, 5  ;;  %v5811_v13 = vcombine.low %v1009_v53, %v1019_v9  ;;  %v5105_v53 = vld [vmem:[%s6930_s1 + $0x100] sm:$0xff]  }
  0x66   : > { %v1642_v60 = vsel %vm5445_vm2, %v4285_v44, %v1641_v47  ;;  %v1643_v37 = vrot.slane %v1641_v47, 4  ;;  %v1644_v15 = vrot.slane %v5759_v46, 5  ;;  %v7002_v27 = vshrl.u32 %v5294_v51, 16  ;;  %4720 = vmatprep.mubr.bf16.mxu0 %v5806_v39  ;;  %4749 = vmatpush3.bf16.msra.mxu1 %v5102_v28 }
  0x67   : > { %v1028_v31 = vrot.slane %v1027_v29, 4  ;;  %v1037_v41 = vor.u32 %v1036_v19, %v1032_v10  ;;  %v7003_v7 = vshll.u32 %v5294_v51, 16  ;;  %v1054_v46 = vshll.u32 %v5304_v57, 16  ;;  %4672 = vmatprep.mubr.bf16.mxu1 %v5811_v13  ;;  %v237_v29 = vld [vmem:[%s5204_s24 + $0x8c] sm:$0x1]  ;;  %4797 = vmatpush3.bf16.msra.mxu0 %v5103_v0 }
  0x68   : > { %v1047_v33 = vrot.slane %v7002_v27, 4  ;;  %v7004_v38 = vshrl.u32 %v5304_v57, 16  ;;  %v1064_v23 = vshll.u32 %v5798_v58, 16  ;;  %v1645_v19 = vsel %vm5445_vm2, %v1643_v37, %v1644_v15  ;;  %4750 = vmatprep.subr.bf16.mxu1 %v5104_v8  ;;  %4798 = vmatprep.subr.bf16.mxu0 %v5105_v53 }
  0x69   : > { %v1050_v61 = vrot.slane %v7003_v7, 5  ;;  %v1033_v54 = vsel %vm5506_vm5, %v1028_v31, %v1032_v10  ;;  %v1038_v50 = vrot.slane %v1037_v41, 4  ;;  %v4286_v21 = vrot.slane %v5294_v51, 9  ;;  %v5843_v31 = vld [vmem:[%s6930_s1 + $0x178] sm:$0xff]  }
  0x6a   : > { %v1060_v20 = vrot.slane %v7004_v38, 4  ;;  %v5837_v44 = vcombine.low %v1642_v60, %v1645_v19  ;;  %v1056_v47 = vrot.slane %v1054_v46, 5  ;;  %v1066_v9 = vrot.slane %v1064_v23, 5  ;;  %4751 = vmatpush3.bf16.msra.mxu1 %v5104_v8 }
  0x6b   : > { %v1051_v5 = vor.u32 %v1050_v61, %v1047_v33  ;;  %v1648_v10 = vrot.slane %v5304_v57, 5  ;;  %v1043_v37 = vsel %vm5506_vm5, %v1038_v50, %v1042_v56  ;;  %v1651_v51 = vrot.slane %v5798_v58, 5  ;;  %v5853_v57 = vld [vmem:[%s6930_s1 + $0x1b8] sm:$0xff]   ;;  %4799 = vmatpush3.bf16.msra.mxu0 %v5105_v53  ;;  %4832 = vmatprep.subr.bf16.mxu1 %v5843_v31 }
  0x6c   : > { %v7005_v60 = vshrl.u32 %v5323_v2, 16  ;;  %v5855_v28 = vcombine.low %v1033_v54, %v1043_v37  ;;  %v1061_v0 = vor.u32 %v1060_v20, %v1056_v47  ;;  %v7006_v33 = vshll.u32 %v5323_v2, 16  ;;  %4880 = vmatprep.subr.bf16.mxu0 %v5853_v57  ;;  %4721 = vmatmul.mubr.bf16.gmra.mxu0 %v5837_v44 }
  0x6d   : > { %v1052_v41 = vrot.slane %v1051_v5, 4  ;;  %v1649_v27 = vsel %vm5445_vm2, %v4286_v21, %v1648_v10  ;;  %v1650_v56 = vrot.slane %v1648_v10, 4  ;;  %v1078_v61 = vshll.u32 %v5326_v3, 16  ;;  %v240_v10 = vld [vmem:[%s5204_s24 + $0x98] sm:$0x1] }
  0x6e   : > { %v1071_v15 = vrot.slane %v7005_v60, 4  ;;  %v1074_v7 = vrot.slane %v7006_v33, 5  ;;  %v7007_v46 = vshrl.u32 %v5326_v3, 16  ;;  %v1062_v23 = vrot.slane %v1061_v0, 4  ;;  %4673 = vmatmul.mubr.bf16.gmra.mxu1 %v5855_v28 }
  0x6f   : > { %v1057_v58 = vsel %vm5506_vm5, %v1052_v41, %v1056_v47  ;;  %v1652_v54 = vsel %vm5445_vm2, %v1650_v56, %v1651_v51  ;;  %v1088_v20 = vshll.u32 %v237_v29, 16  ;;  %v4287_v50 = vrot.slane %v5323_v2, 9 }
  0x70   : > { %v1084_v38 = vrot.slane %v7007_v46, 4  ;;  %v5869_v19 = vcombine.low %v1649_v27, %v1652_v54  ;;  %v1075_v5 = vor.u32 %v1074_v7, %v1071_v15  ;;  %v1080_v21 = vrot.slane %v1078_v61, 5  ;;  %v5140_v46 = vld [vmem:[%s5204_s24 + $0x90] sm:$0xf] }
  0x71   : > { %v1655_v47 = vrot.slane %v5326_v3, 5  ;;  %v1067_v2 = vsel %vm5506_vm5, %v1062_v23, %v1066_v9  ;;  %v1090_v8 = vrot.slane %v1088_v20, 5  ;;  %v1658_v53 = vrot.slane %v237_v29, 5  ;;  %v243_v23 = vld [vmem:[%s5204_s24 + $0xa4] sm:$0x1] }
  0x72   : > { %v7008_v37 = vshrl.u32 %v5339_v17, 16  ;;  %v5881_v3 = vcombine.low %v1057_v58, %v1067_v2  ;;  %4724 = vmatprep.mubr.bf16.mxu0 %v5869_v19  ;;  %v1076_v51 = vrot.slane %v1075_v5, 4  ;;  %v1085_v60 = vor.u32 %v1084_v38, %v1080_v21 }
  0x73   : > { %v1656_v15 = vsel %vm5445_vm2, %v4287_v50, %v1655_v47  ;;  %v1657_v0 = vrot.slane %v1655_v47, 4  ;;  %v7009_v9 = vshll.u32 %v5339_v17, 16  ;;  %v1102_v29 = vshll.u32 %v5358_v25, 16  ;;  %v5141_v50 = vld [vmem:[%s5204_s24 + $0x94] sm:$0xf] }
  0x74   : > { %v1095_v41 = vrot.slane %v7008_v37, 4  ;;  %v7010_v56 = vshrl.u32 %v5358_v25, 16  ;;  %4676 = vmatprep.mubr.bf16.mxu1 %v5881_v3  ;;  %v1081_v58 = vsel %vm5506_vm5, %v1076_v51, %v1080_v21  ;;  %v1086_v7 = vrot.slane %v1085_v60, 4 }
  0x75   : > { %v1098_v27 = vrot.slane %v7009_v9, 5  ;;  %v1112_v61 = vshll.u32 %v240_v10, 16  ;;  %v4288_v38 = vrot.slane %v5140_v46, 9  ;;  %v1659_v54 = vsel %vm5445_vm2, %v1657_v0, %v1658_v53 }
  0x76   : > { %v1108_v33 = vrot.slane %v7010_v56, 4  ;;  %v1104_v20 = vrot.slane %v1102_v29, 5  ;;  %v1662_v5 = vrot.slane %v5141_v50, 5  ;;  %v1091_v25 = vsel %vm5506_vm5, %v1086_v7, %v1090_v8  ;;  %v5142_v8 = vld [vmem:[%s5204_s24 + $0xa0] sm:$0xf] }
  0x77   : > { %v1099_v17 = vor.u32 %v1098_v27, %v1095_v41  ;;  %v5901_v47 = vcombine.low %v1656_v15, %v1659_v54  ;;  %v1114_v2 = vrot.slane %v1112_v61, 5  ;;  %v1665_v21 = vrot.slane %v240_v10, 5 }
  0x78   : > { %v5903_v37 = vcombine.low %v1081_v58, %v1091_v25  ;;  %v1109_v60 = vor.u32 %v1108_v33, %v1104_v20  ;;  %v1663_v53 = vsel %vm5445_vm2, %v4288_v38, %v1662_v5  ;;  %v1664_v0 = vrot.slane %v1662_v5, 4  ;;  %v5143_v38 = vld [vmem:[%s5204_s24 + $0x9c] sm:$0xf] }
  0x79   : > { %v1100_v51 = vrot.slane %v1099_v17, 4  ;;  %v7011_v41 = vshrl.u32 %v5373_v55, 16  ;;  %v7012_v27 = vshll.u32 %v5373_v55, 16  ;;  %v1126_v15 = vshll.u32 %v5142_v8, 16  ;;  %4725 = vmatmul.mubr.bf16.gmra.mxu0 %v5901_v47 }
  0x7a   : > { %4677 = vmatmul.mubr.bf16.gmra.mxu1 %v5903_v37  ;;  %v1110_v56 = vrot.slane %v1109_v60, 4  ;;  %v7013_v33 = vshrl.u32 %v5384_v32, 16  ;;  %v1136_v7 = vshll.u32 %v243_v23, 16  ;;  %v1666_v61 = vsel %vm5445_vm2, %v1664_v0, %v1665_v21 }
  0x7b   : > { %v1119_v9 = vrot.slane %v7011_v41, 4  ;;  %v1122_v29 = vrot.slane %v7012_v27, 5  ;;  %v1105_v10 = vsel %vm5506_vm5, %v1100_v51, %v1104_v20  ;;  %v1128_v46 = vrot.slane %v1126_v15, 5  ;;  %v246_v41 = vld [vmem:[%s5204_s24 + $0xb0] sm:$0x1] }
  0x7c   : > { %v1132_v58 = vrot.slane %v7013_v33, 4  ;;  %v4289_v54 = vrot.slane %v5143_v38, 9  ;;  %v1115_v17 = vsel %vm5506_vm5, %v1110_v56, %v1114_v2  ;;  %v5923_v50 = vcombine.low %v1663_v53, %v1666_v61  ;;  %v5145_v61 = vld [vmem:[%s5204_s24 + $0xa8] sm:$0xf] }
  0x7d   : > { %v1123_v55 = vor.u32 %v1122_v29, %v1119_v9  ;;  %v1138_v20 = vrot.slane %v1136_v7, 5  ;;  %v1669_v5 = vrot.slane %v5142_v8, 5  ;;  %v5925_v25 = vcombine.low %v1105_v10, %v1115_v17  ;;  %v5144_v8 = vld [vmem:[%s5204_s24 + $0xac] sm:$0xf] }
  0x7e   : > { %v1133_v51 = vor.u32 %v1132_v58, %v1128_v46  ;;  %v1672_v60 = vrot.slane %v243_v23, 5  ;;  %4728 = vmatprep.mubr.bf16.mxu0 %v5923_v50  ;;  %v7014_v2 = vshrl.u32 %v5409_v45, 16  ;;  %v7015_v9 = vshll.u32 %v5409_v45, 16  ;;  %v249_v45 = vld [vmem:[%s5204_s24 + $0xbc] sm:$0x1] }
  0x7f   : > { %v1124_v32 = vrot.slane %v1123_v55, 4  ;;  %v1670_v21 = vsel %vm5445_vm2, %v4289_v54, %v1669_v5  ;;  %v1671_v0 = vrot.slane %v1669_v5, 4  ;;  %4680 = vmatprep.mubr.bf16.mxu1 %v5925_v25  ;;  %v1150_v15 = vshll.u32 %v5144_v8, 16 }
  0x80   : > { %v1143_v53 = vrot.slane %v7014_v2, 4  ;;  %v1146_v27 = vrot.slane %v7015_v9, 5  ;;  %v1134_v29 = vrot.slane %v1133_v51, 4  ;;  %v7016_v10 = vshrl.u32 %v5414_v62, 16 }
  0x81   : > { %v1129_v23 = vsel %vm5506_vm5, %v1124_v32, %v1128_v46  ;;  %v1673_v33 = vsel %vm5445_vm2, %v1671_v0, %v1672_v60  ;;  %v1160_v7 = vshll.u32 %v246_v41, 16  ;;  %v4290_v55 = vrot.slane %v5145_v61, 9 }
  0x82   : > { %v1156_v56 = vrot.slane %v7016_v10, 4  ;;  %v1147_v58 = vor.u32 %v1146_v27, %v1143_v53  ;;  %v1139_v38 = vsel %vm5506_vm5, %v1134_v29, %v1138_v20  ;;  %v5947_v54 = vcombine.low %v1670_v21, %v1673_v33  ;;  %v5147_v33 = vld [vmem:[%s5204_s24 + $0xb4] sm:$0xf] }
  0x83   : > { %v1152_v46 = vrot.slane %v1150_v15, 5  ;;  %v1676_v17 = vrot.slane %v5144_v8, 5  ;;  %v5949_v5 = vcombine.low %v1129_v23, %v1139_v38  ;;  %v1162_v32 = vrot.slane %v1160_v7, 5  ;;  %v5146_v23 = vld [vmem:[%s5204_s24 + $0xb8] sm:$0xf] }
  0x84   : > { %v1148_v62 = vrot.slane %v1147_v58, 4  ;;  %v1679_v51 = vrot.slane %v246_v41, 5  ;;  %4729 = vmatmul.mubr.bf16.gmra.mxu0 %v5947_v54  ;;  %v7017_v20 = vshrl.u32 %v5441_v22, 16  ;;  %v7018_v9 = vshll.u32 %v5441_v22, 16 }
  0x85   : > { %v1157_v60 = vor.u32 %v1156_v56, %v1152_v46  ;;  %v1677_v0 = vsel %vm5445_vm2, %v4290_v55, %v1676_v17  ;;  %v1678_v2 = vrot.slane %v1676_v17, 4  ;;  %4681 = vmatmul.mubr.bf16.gmra.mxu1 %v5949_v5  ;;  %v1174_v41 = vshll.u32 %v5146_v23, 16 }
  0x86   : > { %v1167_v53 = vrot.slane %v7017_v20, 4  ;;  %v1153_v21 = vsel %vm5506_vm5, %v1148_v62, %v1152_v46  ;;  %v1170_v27 = vrot.slane %v7018_v9, 5  ;;  %v7019_v29 = vshrl.u32 %v5452_v63, 16  ;;  %v5989_v9 = vld [vmem:[%s5204_s24 + $0xc4] sm:$0xf] }
  0x87   : > { %v1158_v15 = vrot.slane %v1157_v60, 4  ;;  %v1680_v10 = vsel %vm5445_vm2, %v1678_v2, %v1679_v51  ;;  %v1184_v56 = vshll.u32 %v249_v45, 16  ;;  %v4291_v58 = vrot.slane %v5147_v33, 9 }
  0x88   : > { %v1180_v8 = vrot.slane %v7019_v29, 4  ;;  %v5967_v7 = vcombine.low %v1677_v0, %v1680_v10  ;;  %v1171_v61 = vor.u32 %v1170_v27, %v1167_v53  ;;  %v1176_v55 = vrot.slane %v1174_v41, 5 }
  0x89   : > { %v1683_v38 = vrot.slane %v5146_v23, 5  ;;  %v1163_v22 = vsel %vm5506_vm5, %v1158_v15, %v1162_v32  ;;  %v1686_v46 = vrot.slane %v249_v45, 5  ;;  %v1186_v51 = vrot.slane %v1184_v56, 5  ;;  %v5994_v23 = vld [vmem:[%s5204_s24 + $0xc8] sm:$0x1] }
  0x8a   : > { %v5971_v63 = vcombine.low %v1153_v21, %v1163_v22  ;;  %4732 = vmatprep.mubr.bf16.mxu0 %v5967_v7  ;;  %v1172_v17 = vrot.slane %v1171_v61, 4  ;;  %v1181_v62 = vor.u32 %v1180_v8, %v1176_v55  ;;  %v5986_v21 = vld [vmem:[%s5204_s24 + $0xc0] sm:$0xf]  ;;  %v2704_v29 = vrot.slane %v5989_v9, 5  ;;  %v5111_v61 = vld [vmem:[%s6930_s1 + $0x1a8] sm:$0xff]   ;;  %v5114_v22 = vld [vmem:[%s6930_s1 + $0x158] sm:$0xff]  }
  0x8b   : > { %v1684_v60 = vsel %vm5445_vm2, %v4291_v58, %v1683_v38  ;;  %v1685_v0 = vrot.slane %v1683_v38, 4  ;;  %v4334_v41 = vrot.slane %v5986_v21, 9  ;;  %v2707_v8 = vrot.slane %v5994_v23, 5  ;;  %v5108_v58 = vld [vmem:[%s6930_s1 + $0x170] sm:$0xff]  }
  0x8c   : > { %4684 = vmatprep.mubr.bf16.mxu1 %v5971_v63  ;;  %v1177_v2 = vsel %vm5506_vm5, %v1172_v17, %v1176_v55  ;;  %v1182_v32 = vrot.slane %v1181_v62, 4  ;;  %v2706_v10 = vrot.slane %v2704_v29, 4  ;;  %v5110_v55 = vld [vmem:[%s6930_s1 + $0x168] sm:$0xff]   ;;  %v7024_v38 = vld [vmem:[#allocation9_spill] sm:$0xff] }
  0x8d   : > { %v1687_v45 = vsel %vm5445_vm2, %v1685_v0, %v1686_v46  ;;  %v2705_v15 = vsel %vm5445_vm2, %v4334_v41, %v2704_v29  ;;  %v5115_v46 = vld [vmem:[%s6930_s1 + $0x198] sm:$0xff]   ;;  %v5116_v17 = vld [vmem:[%s6930_s1 + $0x150] sm:$0xff]   ;;  %v5119_v0 = vld [vmem:[%s6930_s1 + $0x188] sm:$0xff]  }
  0x8e   : > { %v1187_v20 = vsel %vm5506_vm5, %v1182_v32, %v1186_v51  ;;  %v5983_v53 = vcombine.low %v1684_v60, %v1687_v45  ;;  %v2708_v56 = vsel %vm5445_vm2, %v2706_v10, %v2707_v8  ;;  %v5117_v62 = vld [vmem:[%s6930_s1 + $0x190] sm:$0xff]   ;;  %v7025_v51 = vld [vmem:[#allocation12_spill] sm:$0xff]  ;;  %v5122_v32 = vld [vmem:[%s6930_s1 + $0x180] sm:$0xff]   ;;  %v2372_v10 = vshll.u32 %v5986_v21, 16 }
  0x8f   : > { %v5991_v27 = vcombine.low %v1177_v2, %v1187_v20  ;;  %v6007_v33 = vcombine.low %v2705_v15, %v2708_v56  ;;  %v5118_v60 = vld [vmem:[%s6930_s1 + $0x148] sm:$0xff]   ;;  %v5121_v2 = vld [vmem:[%s6930_s1 + $0x140] sm:$0xff]   ;;  %v5123_v41 = vld [vmem:[%s6930_s1 + $0x1f8] sm:$0xff]   ;;  %v2369_v15 = vshrl.u32 %v5986_v21, 16  ;;  %v2382_v56 = vshrl.u32 %v5989_v9, 16 }
  0x90   : > { %7020 = vst [vmem:[#allocation15_spill] sm:$0xff] %v5983_v53  ;;  %4733 = vmatmul.mubr.bf16.gmra.mxu0 %v5983_v53  ;;  %v7026_v45 = vld [vmem:[#allocation3_spill] sm:$0xff]  ;;  %v7027_v20 = vld [vmem:[#allocation4_spill] sm:$0xff]  ;;  %v5124_v29 = vld [vmem:[%s6930_s1 + $0x238] sm:$0xff]  }
  0x91   : > { %7021 = vst [vmem:[#allocation16_spill] sm:$0xff] %v5991_v27  ;;  %4685 = vmatmul.mubr.bf16.gmra.mxu1 %v5991_v27  ;;  %4800 = vmatprep.mubr.bf16.mxu0 %v5564_v24  ;;  %7022 = vst [vmem:[#allocation17_spill] sm:$0xff] %v6007_v33  ;;  %v5109_v24 = vld [vmem:[%s6930_s1 + $0x1b0] sm:$0xff]  }
  0x92   : > { %4752 = vmatprep.mubr.bf16.mxu1 %v5343_v18  ;;  %v7023_v18 = vld [vmem:[#allocation6_spill] sm:$0xff]  ;;  %v7028_v8 = vld [vmem:[#allocation5_spill] sm:$0xff] }
  0x98   : > { %4801 = vmatmul.mubr.bf16.vlgmr.msra.gmra.mxu0 %v5603_v4 }
  0x99   : > { %4753 = vmatmul.mubr.bf16.vlgmr.msra.gmra.mxu1 %v5377_v52  ;;  %4881 = vmatpush3.bf16.msra.mxu0 %v5853_v57  ;;  %v5113_v57 = vld [vmem:[%s6930_s1 + $0x1a0] sm:$0xff]  }
  0x9a   : > { %4833 = vmatpush3.bf16.msra.mxu1 %v5843_v31  ;;  %4756 = vmatprep.mubr.bf16.mxu1 %v7023_v18  ;;  %v5112_v31 = vld [vmem:[%s6930_s1 + $0x160] sm:$0xff]  }
  0x9b   : > { %4804 = vmatprep.mubr.bf16.mxu0 %v5636_v26  ;;  %4834 = vmatprep.subr.bf16.mxu1 %v5108_v58 }
  0x9c   : > { %4882 = vmatprep.subr.bf16.mxu0 %v5109_v24 }
  0x9d   : > { %4883 = vmatpush3.bf16.msra.mxu0 %v5109_v24  ;;  %v7029_v24 = vld [vmem:[#allocation7_spill] sm:$0xff] }
  0x9e   : > { %4835 = vmatpush3.bf16.msra.mxu1 %v5108_v58  ;;  %4884 = vmatprep.subr.bf16.mxu0 %v5111_v61  ;;  %v2378_v58 = vshll.u32 %v5989_v9, 16 }
  0x9f   : > { %4836 = vmatprep.subr.bf16.mxu1 %v5110_v55 }
  0xa0   : > { %4805 = vmatmul.mubr.bf16.gmra.mxu0 %v5671_v36 }
  0xa1   : > { %4757 = vmatmul.mubr.bf16.gmra.mxu1 %v7024_v38  ;;  %4808 = vmatprep.mubr.bf16.mxu0 %v5699_v59 }
  0xa2   : > { %4760 = vmatprep.mubr.bf16.mxu1 %v5479_v35  ;;  %4837 = vmatpush3.bf16.msra.mxu1 %v5110_v55  ;;  %v2374_v55 = vrot.slane %v2372_v10, 5 }
  0xa3   : > { %4885 = vmatpush3.bf16.msra.mxu0 %v5111_v61  ;;  %4838 = vmatprep.subr.bf16.mxu1 %v5112_v31  ;;  %v2371_v61 = vrot.slane %v2369_v15, 4  ;;  %v7032_v15 = vld [vmem:[#allocation13_spill] sm:$0xff] }
  0xa4   : > { %4886 = vmatprep.subr.bf16.mxu0 %v5113_v57 }
  0xa6   : > { %4839 = vmatpush3.bf16.msra.mxu1 %v5112_v31  ;;  %v2380_v31 = vrot.slane %v2378_v58, 5  ;;  %v6100_v58 = vcombine.low %v5986_v21, %v5989_v9  ;;  %v5129_v21 = vld [vmem:[%s6930_s1 + $0x1e0] sm:$0xff]  }
  0xa7   : > { %4887 = vmatpush3.bf16.msra.mxu0 %v5113_v57  ;;  %4840 = vmatprep.subr.bf16.mxu1 %v5114_v22  ;;  %v2384_v57 = vrot.slane %v2382_v56, 4  ;;  %v5130_v9 = vld [vmem:[%s6930_s1 + $0x220] sm:$0xff]  }
  0xa8   : > { %4809 = vmatmul.mubr.bf16.gmra.mxu0 %v5743_v1  ;;  %4888 = vmatprep.subr.bf16.mxu0 %v5115_v46 }
  0xa9   : > { %4761 = vmatmul.mubr.bf16.gmra.mxu1 %v7025_v51  ;;  %4812 = vmatprep.mubr.bf16.mxu0 %v5776_v6 }
  0xaa   : > { %4764 = vmatprep.mubr.bf16.mxu1 %v5517_v42  ;;  %4841 = vmatpush3.bf16.msra.mxu1 %v5114_v22  ;;  %v7030_v22 = vld [vmem:[#allocation10_spill] sm:$0xff] }
  0xab   : > { %4889 = vmatpush3.bf16.msra.mxu0 %v5115_v46  ;;  %4842 = vmatprep.subr.bf16.mxu1 %v5116_v17  ;;  %v2375_v46 = vor.u32 %v2374_v55, %v2371_v61  ;;  %v5125_v61 = vld [vmem:[%s6930_s1 + $0x1f0] sm:$0xff]  }
  0xac   : > { %4890 = vmatprep.subr.bf16.mxu0 %v5117_v62  ;;  %v5126_v55 = vld [vmem:[%s6930_s1 + $0x230] sm:$0xff]  }
  0xae   : > { %4843 = vmatpush3.bf16.msra.mxu1 %v5116_v17  ;;  %v2385_v17 = vor.u32 %v2384_v57, %v2380_v31 }
  0xaf   : > { %4891 = vmatpush3.bf16.msra.mxu0 %v5117_v62  ;;  %4844 = vmatprep.subr.bf16.mxu1 %v5118_v60  ;;  %v2388_v62 = vshll.u32 %v5994_v23, 16 }
  0xb0   : > { %4813 = vmatmul.mubr.bf16.gmra.mxu0 %v5811_v13  ;;  %4892 = vmatprep.subr.bf16.mxu0 %v5119_v0 }
  0xb1   : > { %4765 = vmatmul.mubr.bf16.gmra.mxu1 %v7026_v45  ;;  %4816 = vmatprep.mubr.bf16.mxu0 %v5855_v28 }
  0xb2   : > { %4768 = vmatprep.mubr.bf16.mxu1 %v7027_v20  ;;  %4845 = vmatpush3.bf16.msra.mxu1 %v5118_v60  ;;  %v7031_v60 = vld [vmem:[#allocation11_spill] sm:$0xff] }
  0xb3   : > { %4893 = vmatpush3.bf16.msra.mxu0 %v5119_v0  ;;  %4846 = vmatprep.subr.bf16.mxu1 %v5121_v2  ;;  %v2376_v0 = vrot.slane %v2375_v46, 4 }
  0xb4   : > { %4894 = vmatprep.subr.bf16.mxu0 %v5122_v32 }
  0xb5   : > { %v2381_v10 = vsel %vm5506_vm5, %v2376_v0, %v2380_v31 }
  0xb6   : > { %4847 = vmatpush3.bf16.msra.mxu1 %v5121_v2  ;;  %v2386_v2 = vrot.slane %v2385_v17, 4 }
  0xb7   : > { %4895 = vmatpush3.bf16.msra.mxu0 %v5122_v32  ;;  %4928 = vmatprep.subr.bf16.mxu1 %v5123_v41  ;;  %v2390_v32 = vrot.slane %v2388_v62, 5 }
  0xb8   : > { %4817 = vmatmul.mubr.bf16.gmra.mxu0 %v5881_v3  ;;  %4976 = vmatprep.subr.bf16.mxu0 %v5124_v29 }
  0xb9   : > { %4769 = vmatmul.mubr.bf16.gmra.mxu1 %v7028_v8  ;;  %4820 = vmatprep.mubr.bf16.mxu0 %v5903_v37  ;;  %v2391_v56 = vsel %vm5506_vm5, %v2386_v2, %v2390_v32 }
  0xba   : > { %4772 = vmatprep.mubr.bf16.mxu1 %v7029_v24  ;;  %v6096_v23 = vcombine.low %v2381_v10, %v2391_v56 }
  0xbc   : > { %7033 = vst [vmem:[#allocation6_spill] sm:$0xff] %v6096_v23 }
  0xc0   : > { %4821 = vmatmul.mubr.bf16.gmra.mxu0 %v5925_v25 }
  0xc1   : > { %4773 = vmatmul.mubr.bf16.gmra.mxu1 %v7030_v22  ;;  %4824 = vmatprep.mubr.bf16.mxu0 %v5949_v5 }
  0xc2   : > { %4776 = vmatprep.mubr.bf16.mxu1 %v7031_v60 }
  0xc8   : > { %4825 = vmatmul.mubr.bf16.gmra.mxu0 %v5971_v63 }
  0xc9   : > { %4777 = vmatmul.mubr.bf16.gmra.mxu1 %v7032_v15  ;;  %4828 = vmatprep.mubr.bf16.mxu0 %v5991_v27 }
  0xca   : > { %4780 = vmatprep.mubr.bf16.mxu1 %v5521_v14 }
  0xd0   : > { %4829 = vmatmul.mubr.bf16.gmra.mxu0 %v6096_v23 }
  0xd1   : > { %4781 = vmatmul.mubr.bf16.gmra.mxu1 %v6100_v58  ;;  %4896 = vmatprep.mubr.bf16.mxu0 %v5377_v52  ;;  %v5128_v52 = vld [vmem:[%s6930_s1 + $0x228] sm:$0xff]  }
  0xd2   : > { %4848 = vmatprep.mubr.bf16.mxu1 %v5550_v30  ;;  %v5127_v30 = vld [vmem:[%s6930_s1 + $0x1e8] sm:$0xff]  }
  0xd8   : > { %4897 = vmatmul.mubr.bf16.vlgmr.msra.gmra.mxu0 %v7023_v18  ;;  %v5131_v18 = vld [vmem:[%s6930_s1 + $0x1d8] sm:$0xff]  }
  0xd9   : > { %4849 = vmatmul.mubr.bf16.vlgmr.msra.gmra.mxu1 %v5600_v43  ;;  %4977 = vmatpush3.bf16.msra.mxu0 %v5124_v29  ;;  %v5139_v29 = vld [vmem:[%s6930_s1 + $0x200] sm:$0xff]  }
  0xda   : > { %4929 = vmatpush3.bf16.msra.mxu1 %v5123_v41  ;;  %4852 = vmatprep.mubr.bf16.mxu1 %v5628_v34  ;;  %v5135_v41 = vld [vmem:[%s6930_s1 + $0x1c8] sm:$0xff]  }
  0xdb   : > { %4900 = vmatprep.mubr.bf16.mxu0 %v7024_v38  ;;  %4930 = vmatprep.subr.bf16.mxu1 %v5125_v61  ;;  %v5133_v38 = vld [vmem:[%s6930_s1 + $0x1d0] sm:$0xff]  }
  0xdc   : > { %4978 = vmatprep.subr.bf16.mxu0 %v5126_v55 }
  0xdd   : > { %4979 = vmatpush3.bf16.msra.mxu0 %v5126_v55 }
  0xde   : > { %4931 = vmatpush3.bf16.msra.mxu1 %v5125_v61  ;;  %4980 = vmatprep.subr.bf16.mxu0 %v5128_v52 }
  0xdf   : > { %4932 = vmatprep.subr.bf16.mxu1 %v5127_v30 }
  0xe0   : > { %4901 = vmatmul.mubr.bf16.gmra.mxu0 %v5479_v35  ;;  %v5132_v35 = vld [vmem:[%s6930_s1 + $0x218] sm:$0xff]  }
  0xe1   : > { %4853 = vmatmul.mubr.bf16.gmra.mxu1 %v5662_v40  ;;  %4904 = vmatprep.mubr.bf16.mxu0 %v7025_v51  ;;  %v5134_v51 = vld [vmem:[%s6930_s1 + $0x210] sm:$0xff]  }
  0xe2   : > { %4856 = vmatprep.mubr.bf16.mxu1 %v5697_v48  ;;  %4933 = vmatpush3.bf16.msra.mxu1 %v5127_v30 }
  0xe3   : > { %4981 = vmatpush3.bf16.msra.mxu0 %v5128_v52  ;;  %4934 = vmatprep.subr.bf16.mxu1 %v5129_v21 }
  0xe4   : > { %4982 = vmatprep.subr.bf16.mxu0 %v5130_v9 }
  0xe6   : > { %4935 = vmatpush3.bf16.msra.mxu1 %v5129_v21 }
  0xe7   : > { %4983 = vmatpush3.bf16.msra.mxu0 %v5130_v9  ;;  %4936 = vmatprep.subr.bf16.mxu1 %v5131_v18 }
  0xe8   : > { %4905 = vmatmul.mubr.bf16.gmra.mxu0 %v5517_v42  ;;  %4984 = vmatprep.subr.bf16.mxu0 %v5132_v35  ;;  %v5136_v42 = vld [vmem:[%s6930_s1 + $0x208] sm:$0xff]  }
  0xe9   : > { %4857 = vmatmul.mubr.bf16.gmra.mxu1 %v5732_v12  ;;  %4908 = vmatprep.mubr.bf16.mxu0 %v7026_v45  ;;  %v5138_v45 = vld [vmem:[%s6930_s1 + $0x1c0] sm:$0xff]  }
  0xea   : > { %4860 = vmatprep.mubr.bf16.mxu1 %v5772_v49  ;;  %4937 = vmatpush3.bf16.msra.mxu1 %v5131_v18 }
  0xeb   : > { %4985 = vmatpush3.bf16.msra.mxu0 %v5132_v35  ;;  %4938 = vmatprep.subr.bf16.mxu1 %v5133_v38  ;;  %v6213_v35 = vld [vmem:[%s5204_s24 + $0xd0] sm:$0xf] }
  0xec   : > { %4986 = vmatprep.subr.bf16.mxu0 %v5134_v51  ;;  %v4610_v31 = vpop.f32.mrf.mxu0  ;;  %v6164_v57 = vpop.f32.mrf.mxu1 }
  0xee   : > { %4939 = vmatpush3.bf16.msra.mxu1 %v5133_v38  ;;  %v610_v46 = vpop.f32.mrf.mxu0 }
  0xef   : > { %4987 = vmatpush3.bf16.msra.mxu0 %v5134_v51  ;;  %4940 = vmatprep.subr.bf16.mxu1 %v5135_v41 }
  0xf0   : > { %4909 = vmatmul.mubr.bf16.gmra.mxu0 %v7027_v20  ;;  %4988 = vmatprep.subr.bf16.mxu0 %v5136_v42  ;;  %v6166_v20 = vpop.f32.mrf.mxu1  ;;  %v4611_v17 = vpop.f32.mrf.mxu0 }
  0xf1   : > { %4861 = vmatmul.mubr.bf16.gmra.mxu1 %v5806_v39  ;;  %4912 = vmatprep.mubr.bf16.mxu0 %v7028_v8 }
  0xf2   : > { %4864 = vmatprep.mubr.bf16.mxu1 %v5837_v44  ;;  %4941 = vmatpush3.bf16.msra.mxu1 %v5135_v41  ;;  %v6169_v62 = vpop.f32.mrf.mxu1  ;;  %v613_v8 = vpop.f32.mrf.mxu0 }
  0xf3   : > { %4989 = vmatpush3.bf16.msra.mxu0 %v5136_v42  ;;  %4942 = vmatprep.subr.bf16.mxu1 %v5138_v45 }
  0xf4   : > { %4990 = vmatprep.subr.bf16.mxu0 %v5139_v29  ;;  %v6173_v0 = vpop.f32.mrf.mxu1  ;;  %v4614_v2 = vpop.f32.mrf.mxu0 }
  0xf6   : > { %4943 = vmatpush3.bf16.msra.mxu1 %v5138_v45  ;;  %v6176_v32 = vpop.f32.mrf.mxu1  ;;  %v6178_v10 = vpop.f32.mrf.mxu0 }
  0xf7   : > { %4991 = vmatpush3.bf16.msra.mxu0 %v5139_v29 }
  0xf8   : > { %4913 = vmatmul.mubr.bf16.gmra.mxu0 %v7029_v24  ;;  %v6180_v56 = vpop.f32.mrf.mxu1  ;;  %v6183_v24 = vpop.f32.mrf.mxu0 }
  0xf9   : > { %4865 = vmatmul.mubr.bf16.gmra.mxu1 %v5869_v19  ;;  %4916 = vmatprep.mubr.bf16.mxu0 %v7030_v22 }
  0xfa   : > { %4868 = vmatprep.mubr.bf16.mxu1 %v5901_v47  ;;  %v6185_v61 = vpop.f32.mrf.mxu1  ;;  %v6189_v22 = vpop.f32.mrf.mxu0 }
  0xfc   : > { %v6191_v55 = vpop.f32.mrf.mxu1  ;;  %v6194_v52 = vpop.f32.mrf.mxu0 }
  0xfe   : > { %v6196_v30 = vpop.f32.mrf.mxu1 }
 0x100   : > { %4917 = vmatmul.mubr.bf16.gmra.mxu0 %v7031_v60  ;;  %v6198_v60 = vpop.f32.mrf.mxu0  ;;  %v6200_v21 = vpop.f32.mrf.mxu1 }
 0x101   : > { %4869 = vmatmul.mubr.bf16.gmra.mxu1 %v5923_v50  ;;  %4920 = vmatprep.mubr.bf16.mxu0 %v7032_v15  ;;  %7034 = vst [vmem:[#allocation9_spill] sm:$0xff] %v6200_v21  ;;  %v6210_v15 = vld [vmem:[%s5204_s24 + $0xcc] sm:$0xf] }
 0x102   : > { %4872 = vmatprep.mubr.bf16.mxu1 %v5947_v54  ;;  %v6203_v9 = vpop.f32.mrf.mxu0  ;;  %v6205_v18 = vpop.f32.mrf.mxu1  ;;  %v4344_v42 = vcombine.low %v6210_v15, %v6213_v35 }
 0x103   : > { %7035 = vst [vmem:[#allocation12_spill] sm:$0xff] %v6205_v18 }
 0x104   : > { %v6215_v38 = vpop.f32.mrf.mxu0  ;;  %v6217_v51 = vpop.f32.mrf.mxu1 }
 0x105   : > { %7036 = vst [vmem:[#allocation3_spill] sm:$0xff] %v6217_v51 }
 0x106   : > { %v6220_v41 = vpop.f32.mrf.mxu0 }
 0x108   : > { %4921 = vmatmul.mubr.bf16.gmra.mxu0 %v5521_v14  ;;  %v6222_v14 = vpop.f32.mrf.mxu1  ;;  %v6226_v45 = vpop.f32.mrf.mxu0 }
 0x109   : > { %4873 = vmatmul.mubr.bf16.gmra.mxu1 %v5967_v7  ;;  %4924 = vmatprep.mubr.bf16.mxu0 %v6100_v58  ;;  %7037 = vst [vmem:[#allocation4_spill] sm:$0xff] %v6222_v14 }
 0x10a   : > { %4876 = vmatprep.mubr.bf16.mxu1 %v5983_v53  ;;  %v6228_v58 = vpop.f32.mrf.mxu1  ;;  %v6230_v29 = vpop.f32.mrf.mxu0 }
 0x10b   : > { %7038 = vst [vmem:[#allocation5_spill] sm:$0xff] %v6228_v58 }
 0x10c   : > { %v6232_v18 = vpop.f32.mrf.mxu1  ;;  %v6236_v51 = vpop.f32.mrf.mxu0 }
 0x10d   : > { %7039 = vst [vmem:[#allocation7_spill] sm:$0xff] %v6232_v18 }
 0x10e   : > { %v6238_v11 = vpop.f32.mrf.mxu1  ;;  %v4706_v23 = vpop.f32.mrf.mxu0 }
 0x10f   : > { %7040 = vst [vmem:[#allocation10_spill] sm:$0xff] %v6238_v11 }
 0x110   : > { %4925 = vmatmul.mubr.bf16.gmra.mxu0 %v4344_v42  ;;  %v4658_v14 = vpop.f32.mrf.mxu1  ;;  %v1866_v58 = vpop.f32.mrf.mxu0 }
 0x111   : > { %4877 = vmatmul.mubr.bf16.gmra.mxu1 %v6007_v33  ;;  %4992 = vmatprep.mubr.bf16.mxu0 %v5600_v43  ;;  %v1495_v21 = vadd.f32 %v4658_v14, %v4610_v31 }
 0x112   : > { %4944 = vmatprep.mubr.bf16.mxu1 %v5603_v4  ;;  %v1366_v27 = vpop.f32.mrf.mxu1  ;;  %v4707_v33 = vpop.f32.mrf.mxu0 }
 0x113   : > { %v6241_v42 = vadd.f32 %v4706_v23, %v1495_v21  ;;  %v1493_v16 = vadd.f32 %v1366_v27, %v610_v46 }
 0x114   : > { %v4659_v18 = vpop.f32.mrf.mxu1  ;;  %v1869_v11 = vpop.f32.mrf.mxu0 }
 0x115   : > { %7041 = vst [vmem:[#allocation11_spill] sm:$0xff] %v6241_v42  ;;  %v6245_v43 = vadd.f32 %v1866_v58, %v1493_v16  ;;  %v1496_v53 = vadd.f32 %v4659_v18, %v4611_v17 }
 0x116   : > { %v1369_v4 = vpop.f32.mrf.mxu1  ;;  %v4710_v27 = vpop.f32.mrf.mxu0 }
 0x117   : > { %v6249_v31 = vadd.f32 %v4707_v33, %v1496_v53  ;;  %v1494_v23 = vadd.f32 %v1369_v4, %v613_v8 }
 0x118   : > { %4993 = vmatmul.mubr.bf16.vlgmr.msra.gmra.mxu0 %v5628_v34  ;;  %v4662_v21 = vpop.f32.mrf.mxu1  ;;  %v1882_v42 = vpop.f32.mrf.mxu0 }
 0x119   : > { %4945 = vmatmul.mubr.bf16.vlgmr.msra.gmra.mxu1 %v5636_v26  ;;  %4996 = vmatprep.mubr.bf16.mxu0 %v5662_v40  ;;  %v6251_v46 = vadd.f32 %v1869_v11, %v1494_v23  ;;  %v1499_v34 = vadd.f32 %v4662_v21, %v4614_v2 }
 0x11a   : > { %4948 = vmatprep.mubr.bf16.mxu1 %v5671_v36  ;;  %v1382_v14 = vpop.f32.mrf.mxu1  ;;  %v4711_v17 = vpop.f32.mrf.mxu0 }
 0x11b   : > { %v6253_v26 = vadd.f32 %v4710_v27, %v1499_v34  ;;  %v1497_v16 = vadd.f32 %v1382_v14, %v6178_v10 }
 0x11c   : > { %v4663_v40 = vpop.f32.mrf.mxu1  ;;  %v1885_v33 = vpop.f32.mrf.mxu0 }
 0x11d   : > { %v6258_v36 = vadd.f32 %v1882_v42, %v1497_v16  ;;  %v1500_v53 = vadd.f32 %v4663_v40, %v6183_v24 }
 0x11e   : > { %v1385_v11 = vpop.f32.mrf.mxu1 }
 0x11f   : > { %v6263_v8 = vadd.f32 %v4711_v17, %v1500_v53  ;;  %v1498_v2 = vadd.f32 %v1385_v11, %v6189_v22 }
 0x120   : > { %4997 = vmatmul.mubr.bf16.gmra.mxu0 %v5697_v48  ;;  %v4666_v10 = vpop.f32.mrf.mxu1  ;;  %v4714_v48 = vpop.f32.mrf.mxu0 }
 0x121   : > { %4949 = vmatmul.mubr.bf16.gmra.mxu1 %v5699_v59  ;;  %5000 = vmatprep.mubr.bf16.mxu0 %v5732_v12  ;;  %v6266_v18 = vadd.f32 %v1885_v33, %v1498_v2  ;;  %v1503_v59 = vadd.f32 %v4666_v10, %v6194_v52 }
 0x122   : > { %4952 = vmatprep.mubr.bf16.mxu1 %v5743_v1  ;;  %v1398_v58 = vpop.f32.mrf.mxu1  ;;  %v1898_v42 = vpop.f32.mrf.mxu0 }
 0x123   : > { %v6269_v4 = vadd.f32 %v4714_v48, %v1503_v59  ;;  %v1501_v12 = vadd.f32 %v1398_v58, %v6198_v60 }
 0x124   : > { %v4667_v24 = vpop.f32.mrf.mxu1  ;;  %v4715_v1 = vpop.f32.mrf.mxu0 }
 0x125   : > { %v6274_v23 = vadd.f32 %v1898_v42, %v1501_v12  ;;  %v1504_v22 = vadd.f32 %v4667_v24, %v6203_v9  ;;  %v3333_v12 = vshll.u32 %v6210_v15, 16  ;;  %v3339_v24 = vshll.u32 %v6213_v35, 16 }
 0x126   : > { %v1401_v21 = vpop.f32.mrf.mxu1  ;;  %v1901_v52 = vpop.f32.mrf.mxu0 }
 0x127   : > { %v6279_v27 = vadd.f32 %v4715_v1, %v1504_v22  ;;  %v1502_v60 = vadd.f32 %v1401_v21, %v6215_v38 }
 0x128   : > { %5001 = vmatmul.mubr.bf16.gmra.mxu0 %v5772_v49  ;;  %v4670_v34 = vpop.f32.mrf.mxu1  ;;  %v4718_v49 = vpop.f32.mrf.mxu0 }
 0x129   : > { %4953 = vmatmul.mubr.bf16.gmra.mxu1 %v5776_v6  ;;  %5004 = vmatprep.mubr.bf16.mxu0 %v5806_v39  ;;  %v6282_v14 = vadd.f32 %v1901_v52, %v1502_v60  ;;  %v1507_v6 = vadd.f32 %v4670_v34, %v6220_v41  ;;  %v3335_v34 = vrot.slane %v3333_v12, 5 }
 0x12a   : > { %4956 = vmatprep.mubr.bf16.mxu1 %v5811_v13  ;;  %v1414_v16 = vpop.f32.mrf.mxu1  ;;  %v1914_v40 = vpop.f32.mrf.mxu0 }
 0x12b   : > { %v6285_v17 = vadd.f32 %v4718_v49, %v1507_v6  ;;  %v1505_v39 = vadd.f32 %v1414_v16, %v6226_v45  ;;  %v3341_v49 = vrot.slane %v3339_v24, 5 }
 0x12c   : > { %v4671_v9 = vpop.f32.mrf.mxu1  ;;  %v4719_v13 = vpop.f32.mrf.mxu0 }
 0x12d   : > { %v6290_v53 = vadd.f32 %v1914_v40, %v1505_v39  ;;  %v1508_v38 = vadd.f32 %v4671_v9, %v6230_v29  ;;  %v255_v9 = vld [vmem:[%s5204_s24 + $0xd4] sm:$0x1]  ;;  %s4375_s24 = sshll.u32 %s5195_s18, 8 }
 0x12e   : > { %v1417_v11 = vpop.f32.mrf.mxu1  ;;  %v1917_v41 = vpop.f32.mrf.mxu0  ;;  %s6604_s27 = scalar_lea.vmem %s6931_s2, %s4375_s24 }
 0x12f   : > { %v6295_v33 = vadd.f32 %v4719_v13, %v1508_v38  ;;  %v1506_v45 = vadd.f32 %v1417_v11, %v6236_v51  ;;  %v3665_v38 = vrot.slane %v6213_v35, 5 }
 0x130   : > { %5005 = vmatmul.mubr.bf16.gmra.mxu0 %v5837_v44  ;;  %v4674_v2 = vpop.f32.mrf.mxu1  ;;  %v4722_v44 = vpop.f32.mrf.mxu0 }
 0x131   : > { %4957 = vmatmul.mubr.bf16.gmra.mxu1 %v5855_v28  ;;  %5008 = vmatprep.mubr.bf16.mxu0 %v5869_v19  ;;  %v6298_v10 = vadd.f32 %v1917_v41, %v1506_v45  ;;  %v1511_v28 = vadd.f32 %v4674_v2, %v6164_v57  ;;  %v3330_v57 = vshrl.u32 %v6210_v15, 16 }
 0x132   : > { %4960 = vmatprep.mubr.bf16.mxu1 %v5881_v3  ;;  %v1430_v48 = vpop.f32.mrf.mxu1  ;;  %v1930_v59 = vpop.f32.mrf.mxu0 }
 0x133   : > { %v6301_v58 = vadd.f32 %v4722_v44, %v1511_v28  ;;  %v1509_v19 = vadd.f32 %v1430_v48, %v6166_v20  ;;  %v3343_v20 = vshrl.u32 %v6213_v35, 16  ;;  %v3332_v60 = vrot.slane %v3330_v57, 4  ;;  %v7042_v57 = vld [vmem:[#allocation15_spill] sm:$0xff] }
 0x134   : > { %v4675_v29 = vpop.f32.mrf.mxu1  ;;  %v4723_v3 = vpop.f32.mrf.mxu0  ;;  %v3349_v44 = vshll.u32 %v255_v9, 16  ;;  %v4362_v35 = vrot.slane %v6210_v15, 9  ;;  %v7044_v15 = vld [vmem:[#allocation16_spill] sm:$0xff] }
 0x135   : > { %v6306_v42 = vadd.f32 %v1930_v59, %v1509_v19  ;;  %v1512_v51 = vadd.f32 %v4675_v29, %v6169_v62  ;;  %v3345_v6 = vrot.slane %v3343_v20, 4  ;;  %v3667_v59 = vrot.slane %v3665_v38, 4 }
 0x136   : > { %v1433_v1 = vpop.f32.mrf.mxu1 }
 0x137   : > { %v1510_v22 = vadd.f32 %v1433_v1, %v6173_v0  ;;  %v3346_v2 = vor.u32 %v3345_v6, %v3341_v49  ;;  %v7045_v1 = vld [vmem:[#allocation9_spill] sm:$0xff] }
 0x138   : > { %5009 = vmatmul.mubr.bf16.gmra.mxu0 %v5901_v47  ;;  %v1933_v47 = vpop.f32.mrf.mxu0 }
 0x139   : > { %4961 = vmatmul.mubr.bf16.gmra.mxu1 %v5903_v37  ;;  %5012 = vmatprep.mubr.bf16.mxu0 %v5923_v50  ;;  %v6315_v37 = vadd.f32 %v4723_v3, %v1512_v51  ;;  %v6318_v50 = vadd.f32 %v1933_v47, %v1510_v22  ;;  %v3347_v29 = vrot.slane %v3346_v2, 4  ;;  %v3351_v3 = vrot.slane %v3349_v44, 5  ;;  %v7051_v44 = vld [vmem:[#allocation4_spill] sm:$0xff] }
 0x13a   : > { %4964 = vmatprep.mubr.bf16.mxu1 %v5925_v25  ;;  %v4678_v62 = vpop.f32.mrf.mxu1  ;;  %v4726_v21 = vpop.f32.mrf.mxu0 }
 0x13b   : > { %v1515_v52 = vadd.f32 %v4678_v62, %v6176_v32  ;;  %v7046_v62 = vld [vmem:[#allocation17_spill] sm:$0xff]  ;;  %v3352_v6 = vsel %vm5506_vm5, %v3347_v29, %v3351_v3 }
 0x13c   : > { %v1446_v16 = vpop.f32.mrf.mxu1  ;;  %v1946_v40 = vpop.f32.mrf.mxu0 }
 0x13d   : > { %v6321_v39 = vadd.f32 %v4726_v21, %v1515_v52  ;;  %v1513_v25 = vadd.f32 %v1446_v16, %v6180_v56  ;;  %v3336_v56 = vor.u32 %v3335_v34, %v3332_v60  ;;  %v7047_v52 = vld [vmem:[#allocation6_spill] sm:$0xff] }
 0x13e   : > { %v4679_v0 = vpop.f32.mrf.mxu1  ;;  %v4727_v13 = vpop.f32.mrf.mxu0 }
 0x13f   : > { %v6328_v32 = vadd.f32 %v1946_v40, %v1513_v25  ;;  %v1516_v11 = vadd.f32 %v4679_v0, %v6185_v61  ;;  %v3668_v61 = vrot.slane %v255_v9, 5  ;;  %v7049_v40 = vld [vmem:[#allocation12_spill] sm:$0xff] }
 0x140   : > { %5013 = vmatmul.mubr.bf16.gmra.mxu0 %v5947_v54  ;;  %v1449_v41 = vpop.f32.mrf.mxu1  ;;  %v1949_v45 = vpop.f32.mrf.mxu0 }
 0x141   : > { %4965 = vmatmul.mubr.bf16.gmra.mxu1 %v5949_v5  ;;  %5016 = vmatprep.mubr.bf16.mxu0 %v5967_v7  ;;  %v6333_v54 = vadd.f32 %v4727_v13, %v1516_v11  ;;  %v1514_v28 = vadd.f32 %v1449_v41, %v6191_v55  ;;  %v3337_v7 = vrot.slane %v3336_v56, 4  ;;  %v3666_v55 = vsel %vm5445_vm2, %v4362_v35, %v3665_v38  ;;  %v7050_v11 = vld [vmem:[#allocation3_spill] sm:$0xff] }
 0x142   : > { %4968 = vmatprep.mubr.bf16.mxu1 %v5971_v63  ;;  %v3669_v21 = vsel %vm5445_vm2, %v3667_v59, %v3668_v61  ;;  %v7052_v61 = vld [vmem:[#allocation5_spill] sm:$0xff] }
 0x143   : > { %v6337_v5 = vadd.f32 %v1949_v45, %v1514_v28  ;;  %v3342_v34 = vsel %vm5506_vm5, %v3337_v7, %v3341_v49  ;;  %v4363_v13 = vcombine.low %v3666_v55, %v3669_v21  ;;  %v7054_v55 = vld [vmem:[#allocation10_spill] sm:$0xff] }
 0x144   : > { %v4730_v48 = vpop.f32.mrf.mxu0  ;;  %v4353_v45 = vcombine.low %v3342_v34, %v3352_v6 }
 0x145   : > { %v4682_v19 = vpop.f32.mrf.mxu1 }
 0x146   : > { %v1519_v63 = vadd.f32 %v4682_v19, %v6196_v30  ;;  %v1962_v51 = vpop.f32.mrf.mxu0 }
 0x147   : > { %v1462_v12 = vpop.f32.mrf.mxu1 }
 0x148   : > { %5017 = vmatmul.mubr.bf16.gmra.mxu0 %v7042_v57  ;;  %v6343_v20 = vadd.f32 %v4730_v48, %v1519_v63  ;;  %v1517_v47 = vadd.f32 %v1462_v12, %v7045_v1  ;;  %v4731_v22 = vpop.f32.mrf.mxu0  ;;  %v7053_v63 = vld [vmem:[#allocation7_spill] sm:$0xff] }
 0x149   : > { %4969 = vmatmul.mubr.bf16.gmra.mxu1 %v7044_v15  ;;  %5020 = vmatprep.mubr.bf16.mxu0 %v7046_v62  ;;  %v4683_v30 = vpop.f32.mrf.mxu1  ;;  %v7055_v62 = vld [vmem:[#allocation11_spill] sm:$0xff] }
 0x14a   : > { %4972 = vmatprep.mubr.bf16.mxu1 %v7047_v52  ;;  %v6355_v16 = vadd.f32 %v1962_v51, %v1517_v47  ;;  %v1520_v25 = vadd.f32 %v4683_v30, %v7049_v40  ;;  %v1965_v0 = vpop.f32.mrf.mxu0 }
 0x14b   : > { %v1465_v9 = vpop.f32.mrf.mxu1 }
 0x14c   : > { %v6358_v38 = vadd.f32 %v4731_v22, %v1520_v25  ;;  %v1518_v41 = vadd.f32 %v1465_v9, %v7050_v11 }
 0x14e   : > { %v6361_v56 = vadd.f32 %v1965_v0, %v1518_v41 }
 0x150   : > { %v4734_v2 = vpop.f32.mrf.mxu0  ;;  %5021 = vmatmul.mubr.bf16.gmra.mxu0 %v4363_v13 }
 0x151   : > { %v4686_v49 = vpop.f32.mrf.mxu1  ;;  %4973 = vmatmul.mubr.bf16.gmra.mxu1 %v4353_v45 }
 0x152   : > { %v1523_v28 = vadd.f32 %v4686_v49, %v7051_v44  ;;  %v1978_v35 = vpop.f32.mrf.mxu0 }
 0x153   : > { %v1478_v48 = vpop.f32.mrf.mxu1 }
 0x154   : > { %v6364_v59 = vadd.f32 %v4734_v2, %v1523_v28  ;;  %v1521_v19 = vadd.f32 %v1478_v48, %v7052_v61  ;;  %v4735_v7 = vpop.f32.mrf.mxu0 }
 0x155   : > { %v4687_v29 = vpop.f32.mrf.mxu1 }
 0x156   : > { %v6367_v3 = vadd.f32 %v1978_v35, %v1521_v19  ;;  %v1524_v51 = vadd.f32 %v4687_v29, %v7053_v63  ;;  %v1981_v57 = vpop.f32.mrf.mxu0 }
 0x157   : > { %v1481_v12 = vpop.f32.mrf.mxu1 }
 0x158   : > { %v6370_v24 = vadd.f32 %v4735_v7, %v1524_v51  ;;  %v1522_v15 = vadd.f32 %v1481_v12, %v7054_v55  ;;  %v4802_v1 = vpop.f32.mrf.mxu0 }
 0x159   : > { %v4754_v47 = vpop.f32.mrf.mxu1 }
 0x15a   : > { %v6373_v22 = vadd.f32 %v1981_v57, %v1522_v15  ;;  %v2306_v21 = vadd.f32 %v4754_v47, %v7055_v62  ;;  %v2510_v30 = vpop.f32.mrf.mxu0 }
 0x15b   : > { %v2177_v52 = vpop.f32.mrf.mxu1 }
 0x15c   : > { %v6376_v60 = vadd.f32 %v4802_v1, %v2306_v21  ;;  %v2304_v34 = vadd.f32 %v2177_v52, %v6245_v43  ;;  %v4803_v6 = vpop.f32.mrf.mxu0 }
 0x15d   : > { %v4755_v40 = vpop.f32.mrf.mxu1 }
 0x15e   : > { %v6379_v25 = vadd.f32 %v2510_v30, %v2304_v34  ;;  %v2307_v9 = vadd.f32 %v4755_v40, %v6249_v31  ;;  %v2513_v0 = vpop.f32.mrf.mxu0 }
 0x15f   : > { %v2180_v13 = vpop.f32.mrf.mxu1 }
 0x160   : > { %v6382_v11 = vadd.f32 %v4803_v6, %v2307_v9  ;;  %v2305_v41 = vadd.f32 %v2180_v13, %v6251_v46  ;;  %v4806_v45 = vpop.f32.mrf.mxu0 }
 0x161   : > { %v4758_v2 = vpop.f32.mrf.mxu1 }
 0x162   : > { %v6385_v49 = vadd.f32 %v2513_v0, %v2305_v41  ;;  %v2310_v44 = vadd.f32 %v4758_v2, %v6253_v26  ;;  %v2526_v28 = vpop.f32.mrf.mxu0 }
 0x163   : > { %v2193_v43 = vpop.f32.mrf.mxu1 }
 0x164   : > { %v6388_v35 = vadd.f32 %v4806_v45, %v2310_v44  ;;  %v2308_v48 = vadd.f32 %v2193_v43, %v6258_v36  ;;  %v4807_v61 = vpop.f32.mrf.mxu0 }
 0x165   : > { %v4759_v31 = vpop.f32.mrf.mxu1 }
 0x166   : > { %v6391_v19 = vadd.f32 %v2526_v28, %v2308_v48  ;;  %v2311_v7 = vadd.f32 %v4759_v31, %v6263_v8  ;;  %v2529_v29 = vpop.f32.mrf.mxu0 }
 0x167   : > { %v2196_v46 = vpop.f32.mrf.mxu1 }
 0x168   : > { %v6394_v63 = vadd.f32 %v4807_v61, %v2311_v7  ;;  %v2309_v51 = vadd.f32 %v2196_v46, %v6266_v18  ;;  %v4810_v57 = vpop.f32.mrf.mxu0 }
 0x169   : > { %v4762_v26 = vpop.f32.mrf.mxu1 }
 0x16a   : > { %v6397_v12 = vadd.f32 %v2529_v29, %v2309_v51  ;;  %v2314_v55 = vadd.f32 %v4762_v26, %v6269_v4  ;;  %v2542_v15 = vpop.f32.mrf.mxu0 }
 0x16b   : > { %v2209_v36 = vpop.f32.mrf.mxu1 }
 0x16c   : > { %v6400_v1 = vadd.f32 %v4810_v57, %v2314_v55  ;;  %v2312_v47 = vadd.f32 %v2209_v36, %v6274_v23  ;;  %v4811_v62 = vpop.f32.mrf.mxu0 }
 0x16d   : > { %v4763_v8 = vpop.f32.mrf.mxu1 }
 0x16e   : > { %v6403_v21 = vadd.f32 %v2542_v15, %v2312_v47  ;;  %v2315_v30 = vadd.f32 %v4763_v8, %v6279_v27  ;;  %v2545_v52 = vpop.f32.mrf.mxu0 }
 0x16f   : > { %v2212_v18 = vpop.f32.mrf.mxu1 }
 0x170   : > { %v6406_v34 = vadd.f32 %v4811_v62, %v2315_v30  ;;  %v2313_v6 = vadd.f32 %v2212_v18, %v6282_v14  ;;  %v4814_v40 = vpop.f32.mrf.mxu0 }
 0x171   : > { %v4766_v4 = vpop.f32.mrf.mxu1 }
 0x172   : > { %v6409_v9 = vadd.f32 %v2545_v52, %v2313_v6  ;;  %v2318_v0 = vadd.f32 %v4766_v4, %v6285_v17  ;;  %v2558_v13 = vpop.f32.mrf.mxu0 }
 0x173   : > { %v2225_v23 = vpop.f32.mrf.mxu1 }
 0x174   : > { %v6412_v41 = vadd.f32 %v4814_v40, %v2318_v0  ;;  %v2316_v45 = vadd.f32 %v2225_v23, %v6290_v53  ;;  %v4815_v2 = vpop.f32.mrf.mxu0 }
 0x175   : > { %v4767_v27 = vpop.f32.mrf.mxu1 }
 0x176   : > { %v6415_v44 = vadd.f32 %v2558_v13, %v2316_v45  ;;  %v2319_v28 = vadd.f32 %v4767_v27, %v6295_v33  ;;  %v2561_v43 = vpop.f32.mrf.mxu0 }
 0x177   : > { %v2228_v14 = vpop.f32.mrf.mxu1 }
 0x178   : > { %v6418_v48 = vadd.f32 %v4815_v2, %v2319_v28  ;;  %v2317_v61 = vadd.f32 %v2228_v14, %v6298_v10  ;;  %v4818_v31 = vpop.f32.mrf.mxu0 }
 0x179   : > { %v4770_v17 = vpop.f32.mrf.mxu1 }
 0x17a   : > { %v6421_v7 = vadd.f32 %v2561_v43, %v2317_v61  ;;  %v2322_v29 = vadd.f32 %v4770_v17, %v6301_v58  ;;  %v2574_v46 = vpop.f32.mrf.mxu0 }
 0x17b   : > { %v2241_v53 = vpop.f32.mrf.mxu1 }
 0x17c   : > { %v6424_v51 = vadd.f32 %v4818_v31, %v2322_v29  ;;  %v2320_v57 = vadd.f32 %v2241_v53, %v6306_v42  ;;  %v4819_v26 = vpop.f32.mrf.mxu0 }
 0x17d   : > { %v4771_v33 = vpop.f32.mrf.mxu1 }
 0x17e   : > { %v6427_v55 = vadd.f32 %v2574_v46, %v2320_v57  ;;  %v2323_v15 = vadd.f32 %v4771_v33, %v6315_v37  ;;  %v2577_v36 = vpop.f32.mrf.mxu0 }
 0x17f   : > { %v2244_v10 = vpop.f32.mrf.mxu1 }
 0x180   : > { %v6430_v47 = vadd.f32 %v4819_v26, %v2323_v15  ;;  %v2321_v62 = vadd.f32 %v2244_v10, %v6318_v50  ;;  %v4822_v8 = vpop.f32.mrf.mxu0 }
 0x181   : > { %v4774_v58 = vpop.f32.mrf.mxu1 }
 0x182   : > { %7056 = vst [vmem:[#allocation13_spill] sm:$0xff] %v6430_v47  ;;  %v6433_v30 = vadd.f32 %v2577_v36, %v2321_v62  ;;  %v2326_v52 = vadd.f32 %v4774_v58, %v6321_v39  ;;  %v2590_v18 = vpop.f32.mrf.mxu0 }
 0x183   : > { %v2257_v42 = vpop.f32.mrf.mxu1 }
 0x184   : > { %7057 = vst [vmem:[#allocation15_spill] sm:$0xff] %v6433_v30  ;;  %v6436_v6 = vadd.f32 %v4822_v8, %v2326_v52  ;;  %v2324_v40 = vadd.f32 %v2257_v42, %v6328_v32  ;;  %v4823_v4 = vpop.f32.mrf.mxu0 }
 0x185   : > { %v4775_v37 = vpop.f32.mrf.mxu1 }
 0x186   : > { %7058 = vst [vmem:[#allocation8_spill] sm:$0xff] %v6436_v6  ;;  %v6439_v0 = vadd.f32 %v2590_v18, %v2324_v40  ;;  %v2327_v13 = vadd.f32 %v4775_v37, %v6333_v54  ;;  %v2593_v23 = vpop.f32.mrf.mxu0 }
 0x187   : > { %v2260_v50 = vpop.f32.mrf.mxu1 }
 0x188   : > { %7059 = vst [vmem:[#allocation16_spill] sm:$0xff] %v6439_v0  ;;  %v6442_v45 = vadd.f32 %v4823_v4, %v2327_v13  ;;  %v2325_v2 = vadd.f32 %v2260_v50, %v6337_v5  ;;  %v4826_v27 = vpop.f32.mrf.mxu0 }
 0x189   : > { %v4778_v39 = vpop.f32.mrf.mxu1 }
 0x18a   : > { %7060 = vst [vmem:[#allocation9_spill] sm:$0xff] %v6442_v45  ;;  %v6445_v28 = vadd.f32 %v2593_v23, %v2325_v2  ;;  %v2330_v43 = vadd.f32 %v4778_v39, %v6343_v20  ;;  %v2606_v14 = vpop.f32.mrf.mxu0 }
 0x18b   : > { %v2273_v32 = vpop.f32.mrf.mxu1 }
 0x18c   : > { %7061 = vst [vmem:[#allocation17_spill] sm:$0xff] %v6445_v28  ;;  %v6448_v61 = vadd.f32 %v4826_v27, %v2330_v43  ;;  %v2328_v31 = vadd.f32 %v2273_v32, %v6355_v16  ;;  %v4827_v17 = vpop.f32.mrf.mxu0 }
 0x18d   : > { %v4779_v54 = vpop.f32.mrf.mxu1 }
 0x18e   : > { %7062 = vst [vmem:[#allocation6_spill] sm:$0xff] %v6448_v61  ;;  %v6451_v29 = vadd.f32 %v2606_v14, %v2328_v31  ;;  %v2331_v46 = vadd.f32 %v4779_v54, %v6358_v38  ;;  %v2609_v53 = vpop.f32.mrf.mxu0 }
 0x18f   : > { %v2276_v5 = vpop.f32.mrf.mxu1 }
 0x190   : > { %7063 = vst [vmem:[#allocation14_spill] sm:$0xff] %v6451_v29  ;;  %v6454_v57 = vadd.f32 %v4827_v17, %v2331_v46  ;;  %v2329_v26 = vadd.f32 %v2276_v5, %v6361_v56  ;;  %v4830_v33 = vpop.f32.mrf.mxu0 }
 0x191   : > { %v4782_v20 = vpop.f32.mrf.mxu1 }
 0x192   : > { %7064 = vst [vmem:[#allocation12_spill] sm:$0xff] %v6454_v57  ;;  %v6457_v15 = vadd.f32 %v2609_v53, %v2329_v26  ;;  %v2334_v36 = vadd.f32 %v4782_v20, %v6364_v59  ;;  %v2622_v10 = vpop.f32.mrf.mxu0 }
 0x193   : > { %v2289_v16 = vpop.f32.mrf.mxu1 }
 0x194   : > { %7065 = vst [vmem:[#allocation3_spill] sm:$0xff] %v6457_v15  ;;  %v6460_v62 = vadd.f32 %v4830_v33, %v2334_v36  ;;  %v2332_v8 = vadd.f32 %v2289_v16, %v6367_v3  ;;  %v4831_v58 = vpop.f32.mrf.mxu0 }
 0x195   : > { %v4783_v38 = vpop.f32.mrf.mxu1 }
 0x196   : > { %7066 = vst [vmem:[#allocation4_spill] sm:$0xff] %v6460_v62  ;;  %v6463_v52 = vadd.f32 %v2622_v10, %v2332_v8  ;;  %v2335_v18 = vadd.f32 %v4783_v38, %v6370_v24  ;;  %v2625_v42 = vpop.f32.mrf.mxu0 }
 0x197   : > { %v2292_v56 = vpop.f32.mrf.mxu1 }
 0x198   : > { %7067 = vst [vmem:[#allocation5_spill] sm:$0xff] %v6463_v52  ;;  %v6466_v40 = vadd.f32 %v4831_v58, %v2335_v18  ;;  %v2333_v4 = vadd.f32 %v2292_v56, %v6373_v22  ;;  %v6469_v37 = vpop.f32.mrf.mxu0 }
 0x199   : > { %v4850_v59 = vpop.f32.mrf.mxu1 }
 0x19a   : > { %7068 = vst [vmem:[#allocation7_spill] sm:$0xff] %v6466_v40  ;;  %v6471_v13 = vadd.f32 %v2625_v42, %v2333_v4  ;;  %v6473_v23 = vpop.f32.mrf.mxu0 }
 0x19b   : > { %v2827_v3 = vpop.f32.mrf.mxu1 }
 0x19c   : > { %7069 = vst [vmem:[#allocation10_spill] sm:$0xff] %v6471_v13  ;;  %v6475_v50 = vpop.f32.mrf.mxu0 }
 0x19d   : > { %v4851_v2 = vpop.f32.mrf.mxu1 }
 0x19e   : > { %v6477_v27 = vpop.f32.mrf.mxu0 }
 0x19f   : > { %v6479_v24 = vpop.f32.mrf.mxu1 }
 0x1a0   : > { %v6481_v39 = vpop.f32.mrf.mxu0 }
 0x1a1   : > { %v6483_v43 = vpop.f32.mrf.mxu1 }
 0x1a2   : > { %v6485_v22 = vpop.f32.mrf.mxu0 }
 0x1a3   : > { %v6487_v14 = vpop.f32.mrf.mxu1 }
 0x1a4   : > { %v6489_v32 = vpop.f32.mrf.mxu0 }
 0x1a5   : > { %v6491_v31 = vpop.f32.mrf.mxu1 }
 0x1a6   : > { %v6493_v17 = vpop.f32.mrf.mxu0 }
 0x1a7   : > { %v6495_v54 = vpop.f32.mrf.mxu1 }
 0x1a8   : > { %v6497_v46 = vpop.f32.mrf.mxu0 }
 0x1a9   : > { %v6499_v53 = vpop.f32.mrf.mxu1 }
 0x1aa   : > { %v6501_v5 = vpop.f32.mrf.mxu0 }
 0x1ab   : > { %v6503_v26 = vpop.f32.mrf.mxu1 }
 0x1ac   : > { %v6505_v33 = vpop.f32.mrf.mxu0 }
 0x1ad   : > { %v6507_v20 = vpop.f32.mrf.mxu1 }
 0x1ae   : > { %v6509_v36 = vpop.f32.mrf.mxu0 }
 0x1af   : > { %v6511_v10 = vpop.f32.mrf.mxu1 }
 0x1b0   : > { %v6513_v16 = vpop.f32.mrf.mxu0 }
 0x1b1   : > { %v6515_v8 = vpop.f32.mrf.mxu1 }
 0x1b2   : > { %v6517_v58 = vpop.f32.mrf.mxu0 }
 0x1b3   : > { %v6519_v38 = vpop.f32.mrf.mxu1 }
 0x1b4   : > { %v6521_v18 = vpop.f32.mrf.mxu0 }
 0x1b5   : > { %v6523_v42 = vpop.f32.mrf.mxu1 }
 0x1b6   : > { %v6525_v56 = vpop.f32.mrf.mxu0 }
 0x1b7   : > { %v6527_v4 = vpop.f32.mrf.mxu1 }
 0x1b8   : > { %v6529_v13 = vpop.f32.mrf.mxu0 }
 0x1b9   : > { %v6531_v40 = vpop.f32.mrf.mxu1 }
 0x1ba   : > { %v6533_v52 = vpop.f32.mrf.mxu0 }
 0x1bb   : > { %7070 = vst [vmem:[#allocation11_spill] sm:$0xff] %v6533_v52  ;;  %v6535_v62 = vpop.f32.mrf.mxu1 }
 0x1bc   : > { %v6537_v15 = vpop.f32.mrf.mxu0 }
 0x1bd   : > { %7071 = vst [vmem:[#allocation18_spill] sm:$0xff] %v6537_v15  ;;  %v6539_v57 = vpop.f32.mrf.mxu1 }
 0x1be   : > { %7072 = vst [vmem:[#allocation19_spill] sm:$0xff] %v6539_v57  ;;  %v6541_v29 = vpop.f32.mrf.mxu0 }
 0x1bf   : > { %7073 = vst [vmem:[#allocation20_spill] sm:$0xff] %v6541_v29  ;;  %v6543_v61 = vpop.f32.mrf.mxu1 }
 0x1c0   : > { %7074 = vst [vmem:[#allocation21_spill] sm:$0xff] %v6543_v61  ;;  %v6545_v28 = vpop.f32.mrf.mxu0 }
 0x1c1   : > { %7075 = vst [vmem:[#allocation22_spill] sm:$0xff] %v6545_v28  ;;  %v6547_v45 = vpop.f32.mrf.mxu1 }
 0x1c2   : > { %7076 = vst [vmem:[#allocation23_spill] sm:$0xff] %v6547_v45  ;;  %v6549_v0 = vpop.f32.mrf.mxu0 }
 0x1c3   : > { %7077 = vst [vmem:[#allocation24_spill] sm:$0xff] %v6549_v0  ;;  %v6551_v6 = vpop.f32.mrf.mxu1 }
 0x1c4   : > { %7078 = vst [vmem:[#allocation25_spill] sm:$0xff] %v6551_v6  ;;  %v6553_v30 = vpop.f32.mrf.mxu0 }
 0x1c5   : > { %7079 = vst [vmem:[#allocation26_spill] sm:$0xff] %v6553_v30  ;;  %v6555_v52 = vpop.f32.mrf.mxu1 }
 0x1c6   : > { %7080 = vst [vmem:[#allocation27_spill] sm:$0xff] %v6555_v52  ;;  %v6557_v47 = vpop.f32.mrf.mxu0 }
 0x1c7   : > { %7081 = vst [vmem:[#allocation28_spill] sm:$0xff] %v6557_v47  ;;  %v6559_v15 = vpop.f32.mrf.mxu1 }
 0x1c8   : > { %7082 = vst [vmem:[#allocation29_spill] sm:$0xff] %v6559_v15  ;;  %v6561_v57 = vpop.f32.mrf.mxu0 }
 0x1c9   : > { %7083 = vst [vmem:[#allocation30_spill] sm:$0xff] %v6561_v57  ;;  %v6563_v29 = vpop.f32.mrf.mxu1 }
 0x1ca   : > { %7084 = vst [vmem:[#allocation31_spill] sm:$0xff] %v6563_v29  ;;  %v6565_v61 = vpop.f32.mrf.mxu0 }
 0x1cb   : > { %7085 = vst [vmem:[#allocation32_spill] sm:$0xff] %v6565_v61  ;;  %v6567_v28 = vpop.f32.mrf.mxu1  ;;  %v2956_v61 = vadd.f32 %v4850_v59, %v6376_v60  ;;  %v2955_v60 = vadd.f32 %v6479_v24, %v6385_v49 }
 0x1cc   : > { %7086 = vst [vmem:[#allocation33_spill] sm:$0xff] %v6567_v28  ;;  %v6569_v45 = vpop.f32.mrf.mxu0 }
 0x1cd   : > { %7087 = vst [vmem:[#allocation34_spill] sm:$0xff] %v6569_v45  ;;  %v6571_v0 = vpop.f32.mrf.mxu1 }
 0x1ce   : > { %7088 = vst [vmem:[#allocation35_spill] sm:$0xff] %v6571_v0  ;;  %v6573_v30 = vpop.f32.mrf.mxu0  ;;  %v2954_v0 = vadd.f32 %v2827_v3, %v6379_v25 }
 0x1cf   : > { %7089 = vst [vmem:[#allocation36_spill] sm:$0xff] %v6573_v30  ;;  %v6575_v52 = vpop.f32.mrf.mxu1 }
 0x1d0   : > { %7090 = vst [vmem:[#allocation37_spill] sm:$0xff] %v6575_v52  ;;  %v6577_v47 = vpop.f32.mrf.mxu0 }
 0x1d1   : > { %7091 = vst [vmem:[#allocation38_spill] sm:$0xff] %v6577_v47  ;;  %v6579_v15 = vpop.f32.mrf.mxu1  ;;  %v3267_v47 = vadd.f32 %v6469_v37, %v2956_v61  ;;  %v2960_v61 = vadd.f32 %v6483_v43, %v6388_v35 }
 0x1d2   : > { %7092 = vst [vmem:[#allocation39_spill] sm:$0xff] %v6579_v15  ;;  %v6581_v57 = vpop.f32.mrf.mxu0  ;;  %v2957_v15 = vadd.f32 %v4851_v2, %v6382_v11 }
 0x1d3   : > { %7093 = vst [vmem:[#allocation40_spill] sm:$0xff] %v6581_v57  ;;  %v6583_v29 = vpop.f32.mrf.mxu1  ;;  %v3271_v35 = vadd.f32 %v6481_v39, %v2960_v61  ;;  %v2962_v61 = vadd.f32 %v6503_v26, %v6403_v21 }
 0x1d4   : > { %7094 = vst [vmem:[#allocation41_spill] sm:$0xff] %v6583_v29  ;;  %v6586_v28 = vpop.f32.mrf.mxu0  ;;  %v3265_v29 = vadd.f32 %v6473_v23, %v2954_v0  ;;  %v3268_v11 = vadd.f32 %v6475_v50, %v2957_v15 }
 0x1d5   : > { %7095 = vst [vmem:[#allocation42_spill] sm:$0xff] %v6586_v28  ;;  %v6588_v45 = vpop.f32.mrf.mxu1  ;;  %v3273_v26 = vadd.f32 %v6501_v5, %v2962_v61 }
 0x1d6   : > { %v6591_v6 = vpop.f32.mrf.mxu0 }
 0x1d7   : > { %v6593_v30 = vpop.f32.mrf.mxu1 }
 0x1d8   : > { %v4994_v57 = vpop.f32.mrf.mxu0 }
 0x1d9   : > { %v4946_v52 = vpop.f32.mrf.mxu1 }
 0x1da   : > { %v3600_v59 = vadd.f32 %v4946_v52, %v3267_v47  ;;  %v3788_v28 = vpop.f32.mrf.mxu0  ;;  %v3266_v47 = vadd.f32 %v6477_v27, %v2955_v60  ;;  %v2958_v52 = vadd.f32 %v6487_v14, %v6391_v19 }
 0x1db   : > { %v3471_v25 = vpop.f32.mrf.mxu1 }
 0x1dc   : > { %v6609_v37 = vadd.f32 %v4994_v57, %v3600_v59  ;;  %v3598_v0 = vadd.f32 %v3471_v25, %v3265_v29  ;;  %v4995_v23 = vpop.f32.mrf.mxu0  ;;  %v2961_v29 = vadd.f32 %v6491_v31, %v6394_v63  ;;  %v3269_v43 = vadd.f32 %v6485_v22, %v2958_v52 }
 0x1dd   : > { %v4947_v49 = vpop.f32.mrf.mxu1  ;;  %v2964_v59 = vadd.f32 %v6499_v53, %v6400_v1 }
 0x1de   : > { %4013 = vst [vmem:[%s6604_s27 + $0x10] sm:$0xff] %v6609_v37  ;;  %v6616_v3 = vadd.f32 %v3788_v28, %v3598_v0  ;;  %v3601_v2 = vadd.f32 %v4947_v49, %v3268_v11  ;;  %v3791_v15 = vpop.f32.mrf.mxu0  ;;  %v2959_v28 = vadd.f32 %v6495_v54, %v6397_v12  ;;  %v3272_v31 = vadd.f32 %v6489_v32, %v2961_v29 }
 0x1df   : > { %v3474_v50 = vpop.f32.mrf.mxu1  ;;  %v3275_v53 = vadd.f32 %v6497_v46, %v2964_v59  ;;  %v2965_v49 = vadd.f32 %v6507_v20, %v6406_v34 }
 0x1e0   : > { %4011 = vst [vmem:[%s6604_s27] sm:$0xff] %v6616_v3  ;;  %v6623_v57 = vadd.f32 %v4995_v23, %v3601_v2  ;;  %v3599_v27 = vadd.f32 %v3474_v50, %v3266_v47  ;;  %v4998_v24 = vpop.f32.mrf.mxu0  ;;  %v3270_v54 = vadd.f32 %v6493_v17, %v2959_v28  ;;  %v2963_v2 = vadd.f32 %v6511_v10, %v6409_v9 }
 0x1e1   : > { %v4950_v19 = vpop.f32.mrf.mxu1  ;;  %v3276_v20 = vadd.f32 %v6505_v33, %v2965_v49  ;;  %v2969_v28 = vadd.f32 %v6523_v42, %v6418_v48 }
 0x1e2   : > { %4014 = vst [vmem:[%s6604_s27 + $0x18] sm:$0xff] %v6623_v57  ;;  %v6630_v39 = vadd.f32 %v3791_v15, %v3599_v27  ;;  %v3604_v14 = vadd.f32 %v4950_v19, %v3271_v35  ;;  %v3804_v60 = vpop.f32.mrf.mxu0  ;;  %v2968_v35 = vadd.f32 %v6515_v8, %v6412_v41  ;;  %v3274_v10 = vadd.f32 %v6509_v36, %v2963_v2 }
 0x1e3   : > { %v3487_v63 = vpop.f32.mrf.mxu1  ;;  %v3280_v42 = vadd.f32 %v6521_v18, %v2969_v28  ;;  %v7105_v28 = vld [vmem:[#allocation16_spill] sm:$0xff] }
 0x1e4   : > { %4012 = vst [vmem:[%s6604_s27 + $0x8] sm:$0xff] %v6630_v39  ;;  %v6637_v22 = vadd.f32 %v4998_v24, %v3604_v14  ;;  %v3602_v25 = vadd.f32 %v3487_v63, %v3269_v43  ;;  %v4999_v11 = vpop.f32.mrf.mxu0  ;;  %v2966_v24 = vadd.f32 %v6519_v38, %v6415_v44  ;;  %v3279_v8 = vadd.f32 %v6513_v16, %v2968_v35 }
 0x1e5   : > { %v4951_v12 = vpop.f32.mrf.mxu1  ;;  %v2967_v63 = vadd.f32 %v6527_v4, %v6421_v7 }
 0x1e6   : > { %4017 = vst [vmem:[%s6604_s27 + $0x30] sm:$0xff] %v6637_v22  ;;  %v6644_v32 = vadd.f32 %v3804_v60, %v3602_v25  ;;  %v3605_v0 = vadd.f32 %v4951_v12, %v3272_v31  ;;  %v3807_v23 = vpop.f32.mrf.mxu0  ;;  %v3277_v38 = vadd.f32 %v6517_v58, %v2966_v24  ;;  %v2972_v25 = vadd.f32 %v6531_v40, %v6424_v51 }
 0x1e7   : > { %v3490_v1 = vpop.f32.mrf.mxu1  ;;  %v3278_v4 = vadd.f32 %v6525_v56, %v2967_v63 }
 0x1e8   : > { %4015 = vst [vmem:[%s6604_s27 + $0x20] sm:$0xff] %v6644_v32  ;;  %v6651_v17 = vadd.f32 %v4999_v11, %v3605_v0  ;;  %v3603_v47 = vadd.f32 %v3490_v1, %v3270_v54  ;;  %v5002_v52 = vpop.f32.mrf.mxu0  ;;  %v2970_v54 = vadd.f32 %v6535_v62, %v6427_v55  ;;  %v3283_v40 = vadd.f32 %v6529_v13, %v2972_v25  ;;  %v7097_v1 = vld [vmem:[#allocation19_spill] sm:$0xff] }
 0x1e9   : > { %v4954_v21 = vpop.f32.mrf.mxu1  ;;  %v7098_v62 = vld [vmem:[#allocation11_spill] sm:$0xff] }
 0x1ea   : > { %4018 = vst [vmem:[%s6604_s27 + $0x38] sm:$0xff] %v6651_v17  ;;  %v6658_v46 = vadd.f32 %v3807_v23, %v3603_v47  ;;  %v3608_v15 = vadd.f32 %v4954_v21, %v3275_v53  ;;  %v3820_v50 = vpop.f32.mrf.mxu0  ;;  %v7096_v23 = vld [vmem:[#allocation13_spill] sm:$0xff]  ;;  %v7099_v21 = vld [vmem:[#allocation15_spill] sm:$0xff] }
 0x1eb   : > { %v3503_v34 = vpop.f32.mrf.mxu1  ;;  %v2973_v53 = vadd.f32 %v7097_v1, %v7096_v23  ;;  %v7109_v25 = vld [vmem:[#allocation27_spill] sm:$0xff] }
 0x1ec   : > { %4016 = vst [vmem:[%s6604_s27 + $0x28] sm:$0xff] %v6658_v46  ;;  %v6665_v5 = vadd.f32 %v5002_v52, %v3608_v15  ;;  %v3606_v29 = vadd.f32 %v3503_v34, %v3273_v26  ;;  %v5003_v27 = vpop.f32.mrf.mxu0  ;;  %v3281_v52 = vadd.f32 %v7098_v62, %v2970_v54  ;;  %v7100_v26 = vld [vmem:[#allocation21_spill] sm:$0xff] }
 0x1ed   : > { %v4955_v9 = vpop.f32.mrf.mxu1  ;;  %v2971_v2 = vadd.f32 %v7100_v26, %v7099_v21  ;;  %v7115_v21 = vld [vmem:[#allocation31_spill] sm:$0xff] }
 0x1ee   : > { %4021 = vst [vmem:[%s6604_s27 + $0x50] sm:$0xff] %v6665_v5  ;;  %v6672_v33 = vadd.f32 %v3820_v50, %v3606_v29  ;;  %v3609_v19 = vadd.f32 %v4955_v9, %v3276_v20  ;;  %v3823_v43 = vpop.f32.mrf.mxu0  ;;  %v7101_v20 = vld [vmem:[#allocation18_spill] sm:$0xff]  ;;  %v7102_v29 = vld [vmem:[#allocation8_spill] sm:$0xff] }
 0x1ef   : > { %v3506_v41 = vpop.f32.mrf.mxu1  ;;  %v3284_v35 = vadd.f32 %v7101_v20, %v2973_v53  ;;  %v7116_v20 = vld [vmem:[#allocation28_spill] sm:$0xff] }
 0x1f0   : > { %4019 = vst [vmem:[%s6604_s27 + $0x40] sm:$0xff] %v6672_v33  ;;  %v6679_v36 = vadd.f32 %v5003_v27, %v3609_v19  ;;  %v3607_v14 = vadd.f32 %v3506_v41, %v3274_v10  ;;  %v5006_v60 = vpop.f32.mrf.mxu0  ;;  %v7103_v27 = vld [vmem:[#allocation23_spill] sm:$0xff]  ;;  %v7104_v41 = vld [vmem:[#allocation20_spill] sm:$0xff] }
 0x1f1   : > { %v4958_v44 = vpop.f32.mrf.mxu1  ;;  %v2976_v9 = vadd.f32 %v7103_v27, %v7102_v29  ;;  %v7117_v29 = vld [vmem:[#allocation14_spill] sm:$0xff]  ;;  %v7118_v27 = vld [vmem:[#allocation33_spill] sm:$0xff] }
 0x1f2   : > { %4022 = vst [vmem:[%s6604_s27 + $0x58] sm:$0xff] %v6679_v36  ;;  %v6686_v16 = vadd.f32 %v3823_v43, %v3607_v14  ;;  %v3612_v31 = vadd.f32 %v4958_v44, %v3279_v8  ;;  %v3836_v59 = vpop.f32.mrf.mxu0  ;;  %v3282_v8 = vadd.f32 %v7104_v41, %v2971_v2  ;;  %v7106_v14 = vld [vmem:[#allocation25_spill] sm:$0xff] }
 0x1f3   : > { %v3519_v48 = vpop.f32.mrf.mxu1 }
 0x1f4   : > { %4020 = vst [vmem:[%s6604_s27 + $0x48] sm:$0xff] %v6686_v16  ;;  %v6693_v58 = vadd.f32 %v5006_v60, %v3612_v31  ;;  %v3610_v11 = vadd.f32 %v3519_v48, %v3277_v38  ;;  %v5007_v12 = vpop.f32.mrf.mxu0  ;;  %v2974_v60 = vadd.f32 %v7106_v14, %v7105_v28  ;;  %v7120_v14 = vld [vmem:[#allocation12_spill] sm:$0xff] }
 0x1f5   : > { %v4959_v7 = vpop.f32.mrf.mxu1 }
 0x1f6   : > { %4025 = vst [vmem:[%s6604_s27 + $0x70] sm:$0xff] %v6693_v58  ;;  %v6700_v18 = vadd.f32 %v3836_v59, %v3610_v11  ;;  %v3613_v61 = vadd.f32 %v4959_v7, %v3280_v42  ;;  %v3839_v0 = vpop.f32.mrf.mxu0  ;;  %v7107_v59 = vld [vmem:[#allocation22_spill] sm:$0xff]  ;;  %v7108_v42 = vld [vmem:[#allocation9_spill] sm:$0xff] }
 0x1f7   : > { %v3522_v51 = vpop.f32.mrf.mxu1  ;;  %v3287_v48 = vadd.f32 %v7107_v59, %v2976_v9  ;;  %v2977_v11 = vadd.f32 %v7109_v25, %v7108_v42  ;;  %v2978_v9 = vadd.f32 %v7118_v27, %v7117_v29  ;;  %v7122_v42 = vld [vmem:[#allocation32_spill] sm:$0xff] }
 0x1f8   : > { %4023 = vst [vmem:[%s6604_s27 + $0x60] sm:$0xff] %v6700_v18  ;;  %v6707_v56 = vadd.f32 %v5007_v12, %v3613_v61  ;;  %v3611_v49 = vadd.f32 %v3522_v51, %v3278_v4  ;;  %v5010_v47 = vpop.f32.mrf.mxu0  ;;  %v7110_v61 = vld [vmem:[#allocation24_spill] sm:$0xff]  ;;  %v7111_v51 = vld [vmem:[#allocation17_spill] sm:$0xff] }
 0x1f9   : > { %v4962_v55 = vpop.f32.mrf.mxu1  ;;  %v3289_v25 = vadd.f32 %v7122_v42, %v2978_v9 }
 0x1fa   : > { %4026 = vst [vmem:[%s6604_s27 + $0x78] sm:$0xff] %v6707_v56  ;;  %v6714_v13 = vadd.f32 %v3839_v0, %v3611_v49  ;;  %v3616_v15 = vadd.f32 %v4962_v55, %v3283_v40  ;;  %v3852_v50 = vpop.f32.mrf.mxu0  ;;  %v3285_v0 = vadd.f32 %v7110_v61, %v2974_v60  ;;  %v7112_v40 = vld [vmem:[#allocation29_spill] sm:$0xff]  ;;  %v7113_v55 = vld [vmem:[#allocation26_spill] sm:$0xff]  ;;  %v7121_v60 = vld [vmem:[#allocation35_spill] sm:$0xff] }
 0x1fb   : > { %v3535_v34 = vpop.f32.mrf.mxu1  ;;  %v2975_v23 = vadd.f32 %v7112_v40, %v7111_v51  ;;  %v3288_v62 = vadd.f32 %v7113_v55, %v2977_v11  ;;  %v7123_v11 = vld [vmem:[#allocation3_spill] sm:$0xff]  ;;  %v7125_v40 = vld [vmem:[#allocation34_spill] sm:$0xff] }
 0x1fc   : > { %4024 = vst [vmem:[%s6604_s27 + $0x68] sm:$0xff] %v6714_v13  ;;  %v6721_v10 = vadd.f32 %v5010_v47, %v3616_v15  ;;  %v3614_v24 = vadd.f32 %v3535_v34, %v3281_v52  ;;  %v5011_v19 = vpop.f32.mrf.mxu0  ;;  %v7114_v52 = vld [vmem:[#allocation6_spill] sm:$0xff] }
 0x1fd   : > { %v4963_v43 = vpop.f32.mrf.mxu1  ;;  %v2980_v26 = vadd.f32 %v7115_v21, %v7114_v52 }
 0x1fe   : > { %4029 = vst [vmem:[%s6604_s27 + $0x90] sm:$0xff] %v6721_v10  ;;  %v6728_v44 = vadd.f32 %v3852_v50, %v3614_v24  ;;  %v3617_v38 = vadd.f32 %v4963_v43, %v3284_v35  ;;  %v3855_v63 = vpop.f32.mrf.mxu0  ;;  %v3286_v35 = vadd.f32 %v7116_v20, %v2975_v23 }
 0x1ff   : > { %v3538_v31 = vpop.f32.mrf.mxu1 }
 0x200   : > { %4027 = vst [vmem:[%s6604_s27 + $0x80] sm:$0xff] %v6728_v44  ;;  %v6735_v12 = vadd.f32 %v5011_v19, %v3617_v38  ;;  %v3615_v7 = vadd.f32 %v3538_v31, %v3282_v8  ;;  %v5014_v4 = vpop.f32.mrf.mxu0  ;;  %v7119_v8 = vld [vmem:[#allocation30_spill] sm:$0xff]  ;;  %v2981_v38 = vadd.f32 %v7121_v60, %v7120_v14 }
 0x201   : > { %v4966_v54 = vpop.f32.mrf.mxu1  ;;  %v3291_v28 = vadd.f32 %v7119_v8, %v2980_v26  ;;  %v7128_v26 = vld [vmem:[#allocation36_spill] sm:$0xff] }
 0x202   : > { %4030 = vst [vmem:[%s6604_s27 + $0x98] sm:$0xff] %v6735_v12  ;;  %v6742_v1 = vadd.f32 %v3855_v63, %v3615_v7  ;;  %v3620_v53 = vadd.f32 %v4966_v54, %v3287_v48  ;;  %v3868_v49 = vpop.f32.mrf.mxu0  ;;  %v7124_v7 = vld [vmem:[#allocation37_spill] sm:$0xff]  ;;  %v3292_v23 = vadd.f32 %v7125_v40, %v2981_v38 }
 0x203   : > { %v3551_v47 = vpop.f32.mrf.mxu1 }
 0x204   : > { %4028 = vst [vmem:[%s6604_s27 + $0x88] sm:$0xff] %v6742_v1  ;;  %v6749_v2 = vadd.f32 %v5014_v4, %v3620_v53  ;;  %v3618_v15 = vadd.f32 %v3551_v47, %v3285_v0  ;;  %v5015_v50 = vpop.f32.mrf.mxu0  ;;  %v2979_v4 = vadd.f32 %v7124_v7, %v7123_v11  ;;  %v7126_v53 = vld [vmem:[#allocation4_spill] sm:$0xff] }
 0x205   : > { %v4967_v34 = vpop.f32.mrf.mxu1 }
 0x206   : > { %4033 = vst [vmem:[%s6604_s27 + $0xb0] sm:$0xff] %v6749_v2  ;;  %v6756_v24 = vadd.f32 %v3868_v49, %v3618_v15  ;;  %v3621_v19 = vadd.f32 %v4967_v34, %v3288_v62  ;;  %v3871_v43 = vpop.f32.mrf.mxu0  ;;  %v7127_v49 = vld [vmem:[#allocation39_spill] sm:$0xff]  ;;  %v3290_v15 = vadd.f32 %v7128_v26, %v2979_v4  ;;  %v7130_v34 = vld [vmem:[#allocation41_spill] sm:$0xff]  ;;  %v7135_v4 = vld [vmem:[#allocation42_spill] sm:$0xff] }
 0x207   : > { %v3554_v41 = vpop.f32.mrf.mxu1  ;;  %v2984_v47 = vadd.f32 %v7127_v49, %v7126_v53 }
 0x208   : > { %4031 = vst [vmem:[%s6604_s27 + $0xa0] sm:$0xff] %v6756_v24  ;;  %v6763_v63 = vadd.f32 %v5015_v50, %v3621_v19  ;;  %v3619_v31 = vadd.f32 %v3554_v41, %v3286_v35  ;;  %v5018_v59 = vpop.f32.mrf.mxu0  ;;  %v7129_v50 = vld [vmem:[#allocation5_spill] sm:$0xff]  ;;  %v7131_v19 = vld [vmem:[#allocation38_spill] sm:$0xff]  ;;  %v7132_v41 = vld [vmem:[#allocation7_spill] sm:$0xff] }
 0x209   : > { %v4970_v48 = vpop.f32.mrf.mxu1  ;;  %v2982_v20 = vadd.f32 %v7130_v34, %v7129_v50  ;;  %v2985_v8 = vadd.f32 %v6588_v45, %v7132_v41 }
 0x20a   : > { %4034 = vst [vmem:[%s6604_s27 + $0xb8] sm:$0xff] %v6763_v63  ;;  %v6770_v54 = vadd.f32 %v3871_v43, %v3619_v31  ;;  %v3624_v61 = vadd.f32 %v4970_v48, %v3291_v28  ;;  %v3884_v0 = vpop.f32.mrf.mxu0  ;;  %v3295_v43 = vadd.f32 %v7131_v19, %v2984_v47  ;;  %v7133_v31 = vld [vmem:[#allocation40_spill] sm:$0xff]  ;;  %v7134_v48 = vld [vmem:[#allocation10_spill] sm:$0xff] }
 0x20b   : > { %v3567_v51 = vpop.f32.mrf.mxu1  ;;  %v2983_v42 = vadd.f32 %v6593_v30, %v7134_v48 }
 0x20c   : > { %4032 = vst [vmem:[%s6604_s27 + $0xa8] sm:$0xff] %v6770_v54  ;;  %v6777_v55 = vadd.f32 %v5018_v59, %v3624_v61  ;;  %v3622_v62 = vadd.f32 %v3567_v51, %v3289_v25  ;;  %v5019_v52 = vpop.f32.mrf.mxu0  ;;  %v3293_v59 = vadd.f32 %v7133_v31, %v2982_v20  ;;  %v3296_v61 = vadd.f32 %v7135_v4, %v2985_v8 }
 0x20d   : > { %v4971_v21 = vpop.f32.mrf.mxu1  ;;  %v3294_v30 = vadd.f32 %v6591_v6, %v2983_v42 }
 0x20e   : > { %4037 = vst [vmem:[%s6604_s27 + $0xd0] sm:$0xff] %v6777_v55  ;;  %v6784_v35 = vadd.f32 %v3884_v0, %v3622_v62  ;;  %v3625_v29 = vadd.f32 %v4971_v21, %v3292_v23  ;;  %v3887_v27 = vpop.f32.mrf.mxu0 }
 0x20f   : > { %v3570_v9 = vpop.f32.mrf.mxu1 }
 0x210   : > { %4035 = vst [vmem:[%s6604_s27 + $0xc0] sm:$0xff] %v6784_v35  ;;  %v6791_v28 = vadd.f32 %v5019_v52, %v3625_v29  ;;  %v3623_v14 = vadd.f32 %v3570_v9, %v3290_v15  ;;  %v5022_v60 = vpop.f32.mrf.mxu0 }
 0x211   : > { %v4974_v38 = vpop.f32.mrf.mxu1 }
 0x212   : > { %4038 = vst [vmem:[%s6604_s27 + $0xd8] sm:$0xff] %v6791_v28  ;;  %v6798_v25 = vadd.f32 %v3887_v27, %v3623_v14  ;;  %v3628_v11 = vadd.f32 %v4974_v38, %v3295_v43  ;;  %v3900_v45 = vpop.f32.mrf.mxu0 }
 0x213   : > { %v3583_v7 = vpop.f32.mrf.mxu1 }
 0x214   : > { %4036 = vst [vmem:[%s6604_s27 + $0xc8] sm:$0xff] %v6798_v25  ;;  %v6803_v0 = vadd.f32 %v5022_v60, %v3628_v11  ;;  %v3626_v51 = vadd.f32 %v3583_v7, %v3293_v59  ;;  %v5023_v23 = vpop.f32.mrf.mxu0 }
 0x215   : > { %v4975_v40 = vpop.f32.mrf.mxu1 }
 0x216   : > { %4041 = vst [vmem:[%s6604_s27 + $0xf0] sm:$0xff] %v6803_v0  ;;  %v6808_v53 = vadd.f32 %v3900_v45, %v3626_v51  ;;  %v3629_v49 = vadd.f32 %v4975_v40, %v3296_v61  ;;  %v3903_v21 = vpop.f32.mrf.mxu0 }
 0x217   : > { %v3586_v47 = vpop.f32.mrf.mxu1 }
 0x218   : > { %4039 = vst [vmem:[%s6604_s27 + $0xe0] sm:$0xff] %v6808_v53  ;;  %v6812_v62 = vadd.f32 %v5023_v23, %v3629_v49  ;;  %v3627_v52 = vadd.f32 %v3586_v47, %v3294_v30  ;;  %4046 = sbr.rel (%p4372_p4) target bundleno = 543 (0x21f), region = 32 }
 0x21a   : > { %4042 = vst [vmem:[%s6604_s27 + $0xf8] sm:$0xff] %v6812_v62  ;;  %v6816_v26 = vadd.f32 %v3903_v21, %v3627_v52 }
 0x21c   : > { %4040 = vst [vmem:[%s6604_s27 + $0xe8] sm:$0xff] %v6816_v26 }
 0x21d   : > { %v5156_v6 = vmov 0.0  }
 0x21e   : > { %4047 = vst [vmem:[%s6932_s3] sm:$0x3] %v5156_v6 }
 0x21f PF: > { %v4048_v15 = vadd.f32 %v6630_v39, %v6616_v3  ;;  %v4085_v20 = vmul.f32 %v6616_v3, %v6616_v3  ;;  %v4086_v29 = vmul.f32 %v6630_v39, %v6630_v39  ;;  %v4087_v9 = vmul.f32 %v6609_v37, %v6609_v37 }
 0x220   : > { %v4088_v43 = vmul.f32 %v6623_v57, %v6623_v57  ;;  %v4089_v14 = vmul.f32 %v6644_v32, %v6644_v32  ;;  %v4090_v39 = vmul.f32 %v6658_v46, %v6658_v46  ;;  %v4091_v31 = vmul.f32 %v6637_v22, %v6637_v22 }
 0x221   : > { %v4049_v50 = vadd.f32 %v4048_v15, %v6609_v37  ;;  %v4117_v41 = vadd.f32 %v4086_v29, %v4085_v20  ;;  %v4092_v48 = vmul.f32 %v6651_v17, %v6651_v17  ;;  %v4093_v11 = vmul.f32 %v6672_v33, %v6672_v33 }
 0x222   : > { %v4094_v7 = vmul.f32 %v6686_v16, %v6686_v16  ;;  %v4095_v61 = vmul.f32 %v6665_v5, %v6665_v5  ;;  %v4096_v40 = vmul.f32 %v6679_v36, %v6679_v36  ;;  %v4097_v30 = vmul.f32 %v6700_v18, %v6700_v18 }
 0x223   : > { %v4050_v34 = vadd.f32 %v4049_v50, %v6623_v57  ;;  %v4118_v3 = vadd.f32 %v4117_v41, %v4087_v9  ;;  %v4098_v47 = vmul.f32 %v6714_v13, %v6714_v13  ;;  %v4099_v21 = vmul.f32 %v6693_v58, %v6693_v58 }
 0x224   : > { %v4100_v15 = vmul.f32 %v6707_v56, %v6707_v56  ;;  %v4102_v29 = vmul.f32 %v6742_v1, %v6742_v1  ;;  %v4103_v9 = vmul.f32 %v6721_v10, %v6721_v10  ;;  %vm4155_vm6 = vcmask 1040384  }
 0x225   : > { %v4051_v27 = vadd.f32 %v4050_v34, %v6644_v32  ;;  %v4119_v38 = vadd.f32 %v4118_v3, %v4088_v43  ;;  %v4101_v34 = vmul.f32 %v6728_v44, %v6728_v44  ;;  %v4104_v43 = vmul.f32 %v6735_v12, %v6735_v12 }
 0x226   : > { %v4106_v3 = vmul.f32 %v6770_v54, %v6770_v54 }
 0x227   : > { %v4052_v19 = vadd.f32 %v4051_v27, %v6658_v46  ;;  %v4120_v59 = vadd.f32 %v4119_v38, %v4089_v14 }
 0x229   : > { %v4053_v8 = vadd.f32 %v4052_v19, %v6637_v22  ;;  %v4121_v42 = vadd.f32 %v4120_v59, %v4090_v39  ;;  %v4107_v39 = vmul.f32 %v6749_v2, %v6749_v2  ;;  %v4109_v59 = vmul.f32 %v6784_v35, %v6784_v35 }
 0x22b   : > { %v4054_v60 = vadd.f32 %v4053_v8, %v6651_v17  ;;  %v4122_v45 = vadd.f32 %v4121_v42, %v4091_v31  ;;  %v4105_v8 = vmul.f32 %v6756_v24, %v6756_v24 }
 0x22d   : > { %v4055_v37 = vadd.f32 %v4054_v60, %v6672_v33  ;;  %v4123_v4 = vadd.f32 %v4122_v45, %v4092_v48  ;;  %v4110_v48 = vmul.f32 %v6798_v25, %v6798_v25  ;;  %v4112_v45 = vmul.f32 %v6791_v28, %v6791_v28 }
 0x22f   : > { %v4056_v57 = vadd.f32 %v4055_v37, %v6686_v16  ;;  %v4124_v51 = vadd.f32 %v4123_v4, %v4093_v11  ;;  %v4108_v37 = vmul.f32 %v6763_v63, %v6763_v63 }
 0x231   : > { %v4057_v32 = vadd.f32 %v4056_v57, %v6665_v5  ;;  %v4125_v23 = vadd.f32 %v4124_v51, %v4094_v7  ;;  %v4113_v7 = vmul.f32 %v6808_v53, %v6808_v53  ;;  %v4115_v51 = vmul.f32 %v6803_v0, %v6803_v0 }
 0x233   : > { %v4058_v46 = vadd.f32 %v4057_v32, %v6679_v36  ;;  %v4126_v49 = vadd.f32 %v4125_v23, %v4095_v61  ;;  %v4111_v32 = vmul.f32 %v6777_v55, %v6777_v55 }
 0x235   : > { %v4059_v22 = vadd.f32 %v4058_v46, %v6700_v18  ;;  %v4127_v52 = vadd.f32 %v4126_v49, %v4096_v40 }
 0x237   : > { %v4060_v17 = vadd.f32 %v4059_v22, %v6714_v13  ;;  %v4128_v6 = vadd.f32 %v4127_v52, %v4097_v30  ;;  %v4114_v22 = vmul.f32 %v6816_v26, %v6816_v26 }
 0x239   : > { %v4061_v33 = vadd.f32 %v4060_v17, %v6693_v58  ;;  %v4129_v50 = vadd.f32 %v4128_v6, %v4098_v47 }
 0x23b   : > { %v4062_v16 = vadd.f32 %v4061_v33, %v6707_v56  ;;  %v4130_v20 = vadd.f32 %v4129_v50, %v4099_v21 }
 0x23d   : > { %v4063_v5 = vadd.f32 %v4062_v16, %v6728_v44  ;;  %v4131_v27 = vadd.f32 %v4130_v20, %v4100_v15 }
 0x23f   : > { %v4064_v36 = vadd.f32 %v4063_v5, %v6742_v1  ;;  %v4132_v19 = vadd.f32 %v4131_v27, %v4101_v34 }
 0x241   : > { %v4065_v18 = vadd.f32 %v4064_v36, %v6721_v10  ;;  %v4133_v41 = vadd.f32 %v4132_v19, %v4102_v29 }
 0x243   : > { %v4066_v13 = vadd.f32 %v4065_v18, %v6735_v12  ;;  %v4134_v14 = vadd.f32 %v4133_v41, %v4103_v9 }
 0x245   : > { %v4067_v58 = vadd.f32 %v4066_v13, %v6756_v24  ;;  %v4135_v60 = vadd.f32 %v4134_v14, %v4104_v43 }
 0x247   : > { %v4068_v56 = vadd.f32 %v4067_v58, %v6770_v54  ;;  %v4136_v38 = vadd.f32 %v4135_v60, %v4105_v8 }
 0x249   : > { %v4069_v44 = vadd.f32 %v4068_v56, %v6749_v2  ;;  %v4137_v31 = vadd.f32 %v4136_v38, %v4106_v3 }
 0x24b   : > { %v4070_v1 = vadd.f32 %v4069_v44, %v6763_v63  ;;  %v4138_v57 = vadd.f32 %v4137_v31, %v4107_v39 }
 0x24d   : > { %v4071_v10 = vadd.f32 %v4070_v1, %v6784_v35  ;;  %v4139_v42 = vadd.f32 %v4138_v57, %v4108_v37 }
 0x24f   : > { %v4072_v12 = vadd.f32 %v4071_v10, %v6798_v25  ;;  %v4140_v11 = vadd.f32 %v4139_v42, %v4109_v59 }
 0x251   : > { %v4073_v24 = vadd.f32 %v4072_v12, %v6777_v55  ;;  %v4141_v46 = vadd.f32 %v4140_v11, %v4110_v48 }
 0x253   : > { %v4074_v54 = vadd.f32 %v4073_v24, %v6791_v28  ;;  %v4142_v4 = vadd.f32 %v4141_v46, %v4111_v32  ;;  %v4116_v28 = vmul.f32 %v6812_v62, %v6812_v62 }
 0x255   : > { %v4075_v2 = vadd.f32 %v4074_v54, %v6808_v53  ;;  %v4143_v61 = vadd.f32 %v4142_v4, %v4112_v45 }
 0x257   : > { %v4076_v63 = vadd.f32 %v4075_v2, %v6816_v26  ;;  %v4144_v17 = vadd.f32 %v4143_v61, %v4113_v7 }
 0x259   : > { %v4077_v35 = vadd.f32 %v4076_v63, %v6803_v0  ;;  %v4145_v23 = vadd.f32 %v4144_v17, %v4114_v22  ;;  %v4154_v0 = vld [vmem:[%s6932_s3] sm:$0x3] }
 0x25b   : > { %v4078_v25 = vadd.f32 %v4077_v35, %v6812_v62  ;;  %v4146_v30 = vadd.f32 %v4145_v23, %v4115_v51 }
 0x25d   : > { %v4079_v55 = vrot.slane %v4078_v25, 4  ;;  %v4147_v53 = vadd.f32 %v4146_v30, %v4116_v28 }
 0x25f   : > { %v4080_v40 = vadd.f32 %v4079_v55, %v4078_v25  ;;  %v4148_v16 = vrot.slane %v4147_v53, 4 }
 0x261   : > { %v4081_v33 = vrot.slane %v4080_v40, 2  ;;  %v4149_v47 = vadd.f32 %v4148_v16, %v4147_v53 }
 0x263   : > { %v4082_v49 = vadd.f32 %v4081_v33, %v4080_v40  ;;  %v4150_v5 = vrot.slane %v4149_v47, 2 }
 0x265   : > { %v4083_v52 = vrot.slane %v4082_v49, 1  ;;  %v4151_v26 = vadd.f32 %v4150_v5, %v4149_v47 }
 0x267   : > { %v4084_v21 = vadd.f32 %v4083_v52, %v4082_v49  ;;  %v4152_v6 = vrot.slane %v4151_v26, 1 }
 0x269   : > { %v4153_v36 = vadd.f32 %v4152_v6, %v4151_v26 }
 0x26b   : > { %v4156_v15 = vsel %vm4155_vm6, %v4084_v21, %v4153_v36 }
 0x26c   : > { %v4157_v62 = vadd.f32 %v4156_v15, %v4154_v0 }
 0x26e   : > { %4158 = vst [vmem:[%s6932_s3] sm:$0x3] %v4157_v62 }
 0x26f PF: > { %s14_s12 = sadd.s32 1, %s5154_s12  }
 0x270   : > { %p11_p5 = scmp.ge.s32.totalorder %s14_s12, 4  }
 0x272   :  { %13 = sbr.rel (!%p11_p5) target bundleno = 1 (0x1), region = 70 }

// kernel: decoder_block_forward.6
= control target key start
LH: loop header
LB: loop body
LE: loop exit
PB: predicated region body
PF: predicated region fallthrough
CT: control target
= control target key end

     0   :  { %s9915_s18 = smov 0   ;;  %s13255_s0 = inlined_call_operand.vmem [shape: bf16[2,18,18,128], index: 0, kind: input, shape index: {}]   ;;  %s13256_s1 = inlined_call_operand.vmem [shape: bf16[2,18,18,128], index: 1, kind: input, shape index: {}]   ;;  %s13257_s2 = inlined_call_operand.vmem [shape: bf16[9,128,128], index: 2, kind: input, shape index: {}]   ;;  %s13258_s3 = inlined_call_operand.vmem [shape: bf16[9,128,128], index: 3, kind: input, shape index: {}]   ;;  %s13259_s4 = inlined_call_operand.vmem [shape: f32[2,256,128], index: 4, kind: output, shape index: {0}]   ;;  %s13260_s5 = inlined_call_operand.vmem [shape: f32[2,128], index: 5, kind: output, shape index: {1}]  }
   0x1 LB: > { %s9921_s19 = sadd.s32 4294967295, %s9882_s18   ;;  %p8081_p0 = scmp.ge.s32.totalorder %s9882_s18, 1  ;;  %s9882_s18 = sphi %s9915_s18, %s16_s18  }
   0x2   : > { %p195_p1 = scmp.lt.s32.totalorder %s9882_s18, 3 }
   0x4   : > { %p196_p2 = pnand %p8081_p0, %p195_p1 }
   0x6   : > { %199 = sbr.rel (%p196_p2) target bundleno = 911 (0x38f), region = 36 }
   0xb   : > { %v9684_v0 = vld [vmem:[%s13257_s2 + $0x38] sm:$0xff]   ;;  %p228_p3 = scmp.lt.s32.totalorder %s9921_s19, 1  ;;  %v9686_v2 = vld [vmem:[%s13257_s2 + $0x30] sm:$0xff]   ;;  %v9688_v4 = vld [vmem:[%s13257_s2 + $0x28] sm:$0xff]   ;;  %vm875_vm0 = vsmask.f32 3328 }
   0xc   : > { %v9685_v1 = vld [vmem:[%s13257_s2 + $0x78] sm:$0xff]   ;;  %8810 = vmatprep.subr.bf16.mxu0 %v9684_v0  ;;  %v9687_v3 = vld [vmem:[%s13257_s2 + $0x70] sm:$0xff]   ;;  %v9689_v5 = vld [vmem:[%s13257_s2 + $0x68] sm:$0xff]   ;;  %vm876_vm1 = vsmask.f32 7440  ;;  %v13446_v39 = vmov 0 }
   0xd   : > { %8858 = vmatprep.subr.bf16.mxu1 %v9685_v1  ;;  %8811 = vmatpush3.bf16.msra.mxu0 %v9684_v0  ;;  %s9945_s7 = scalar_select %p228_p3, %s9921_s19, 1  ;;  %v9690_v6 = vld [vmem:[%s13257_s2 + $0x20] sm:$0xff]   ;;  %v9692_v8 = vld [vmem:[%s13257_s2 + $0x18] sm:$0xff]   ;;  %v9694_v10 = vld [vmem:[%s13257_s2 + $0x10] sm:$0xff]   ;;  %vm1647_vm3 = vcmask 1042432   ;;  %vm1648_vm4 = vcmask 1046532  }
   0xe   : > { %8859 = vmatpush3.bf16.msra.mxu1 %v9685_v1  ;;  %8812 = vmatprep.subr.bf16.mxu0 %v9686_v2  ;;  %v9691_v7 = vld [vmem:[%s13257_s2 + $0x60] sm:$0xff]   ;;  %v9693_v9 = vld [vmem:[%s13257_s2 + $0x58] sm:$0xff]   ;;  %v9695_v14 = vld [vmem:[%s13257_s2 + $0x50] sm:$0xff]   ;;  %p8374_p4 = scmp.ne.s32.totalorder %s9921_s19, 0 }
   0xf   : > { %8860 = vmatprep.subr.bf16.mxu1 %v9687_v3  ;;  %s9674_s12 = smul.u32 216, %s9945_s7  ;;  %v9696_v27 = vld [vmem:[%s13257_s2 + $0x8] sm:$0xff]   ;;  %v9698_v38 = vld [vmem:[%s13257_s2] sm:$0xff]   ;;  %vm10019_vm2 = vmor %vm875_vm0, %vm876_vm1 }
  0x10   : > { %v9697_v33 = vld [vmem:[%s13257_s2 + $0x48] sm:$0xff]   ;;  %v13447_v39 = vsel %vm10019_vm2, 4294967295, %v13446_v39  ;;  %v9699_v44 = vld [vmem:[%s13257_s2 + $0x40] sm:$0xff]   ;;  %vm10453_vm5 = vmor %vm1647_vm3, %vm1648_vm4 }
  0x11   : > { %8813 = vmatpush3.bf16.msra.mxu0 %v9686_v2  ;;  %s9965_s21 = scalar_lea.vmem %s13255_s0, %s9674_s12  ;;  %13448 = vst [vmem:[#allocation3_spill] sm:$0xff] %v13447_v39  ;;  %s10960_s27 = scalar_lea.vmem %s13256_s1, %s9674_s12 }
  0x12   : > { %8861 = vmatpush3.bf16.msra.mxu1 %v9687_v3  ;;  %8814 = vmatprep.subr.bf16.mxu0 %v9688_v4  ;;  %v9971_v11 = vld [vmem:[%s9965_s21] sm:$0xf]  ;;  %v9974_v12 = vld [vmem:[%s9965_s21 + $0x4] sm:$0xf]  ;;  %v9977_v13 = vld [vmem:[%s9965_s21 + $0x8] sm:$0x1] }
  0x13   : > { %8862 = vmatprep.subr.bf16.mxu1 %v9689_v5  ;;  %v8086_v15 = vcombine.low %v9971_v11, %v9974_v12  ;;  %v879_v16 = vshrl.u32 %v9971_v11, 16  ;;  %v882_v17 = vshll.u32 %v9971_v11, 16  ;;  %v892_v18 = vshrl.u32 %v9974_v12, 16  ;;  %v9988_v19 = vld [vmem:[%s9965_s21 + $0xc] sm:$0xf] }
  0x14   : > { %v888_v24 = vshll.u32 %v9974_v12, 16  ;;  %v9994_v26 = vld [vmem:[%s9965_s21 + $0x10] sm:$0xf]  ;;  %v898_v28 = vshll.u32 %v9977_v13, 16  ;;  %v903_v31 = vshrl.u32 %v9988_v19, 16  ;;  %v906_v36 = vshll.u32 %v9988_v19, 16 }
  0x15   : > { %8815 = vmatpush3.bf16.msra.mxu0 %v9688_v4  ;;  %8826 = vmatprep.mubr.bf16.mxu0 %v8086_v15  ;;  %v881_v22 = vrot.slane %v879_v16, 4  ;;  %v884_v23 = vrot.slane %v882_v17, 5  ;;  %v894_v25 = vrot.slane %v892_v18, 4  ;;  %v10003_v30 = vcombine.low %v9988_v19, %v9994_v26  ;;  %v10007_v32 = vld [vmem:[%s9965_s21 + $0x14] sm:$0x1]  ;;  %v9703_v17 = vld [vmem:[%s13257_s2 + $0xf8] sm:$0xff]  }
  0x16   : > { %8863 = vmatpush3.bf16.msra.mxu1 %v9689_v5  ;;  %8816 = vmatprep.subr.bf16.mxu0 %v9690_v6  ;;  %v890_v35 = vrot.slane %v888_v24, 5  ;;  %v916_v37 = vshrl.u32 %v9994_v26, 16  ;;  %v900_v40 = vrot.slane %v898_v28, 5  ;;  %v13261_v42 = vrot.slane %v9994_v26, 5  ;;  %v10038_v57 = vld [vmem:[%s9965_s21 + $0x18] sm:$0xf] }
  0x17   : > { %8864 = vmatprep.subr.bf16.mxu1 %v9691_v7  ;;  %v885_v34 = vor.u32 %v884_v23, %v881_v22  ;;  %v905_v43 = vrot.slane %v903_v31, 4  ;;  %v908_v47 = vrot.slane %v906_v36, 5  ;;  %v912_v48 = vshll.u32 %v9994_v26, 16  ;;  %v10041_v58 = vld [vmem:[%s9965_s21 + $0x1c] sm:$0xf] }
  0x18   : > { %v895_v46 = vor.u32 %v894_v25, %v890_v35  ;;  %v10031_v49 = vrot.slane %v13261_v42, 4  ;;  %v918_v50 = vrot.slane %v916_v37, 4  ;;  %v922_v51 = vshll.u32 %v10007_v32, 16  ;;  %v10050_v63 = vld [vmem:[%s9965_s21 + $0x20] sm:$0x1] }
  0x19   : > { %8817 = vmatpush3.bf16.msra.mxu0 %v9690_v6  ;;  %v886_v45 = vrot.slane %v885_v34, 4  ;;  %v909_v55 = vor.u32 %v908_v47, %v905_v43  ;;  %v914_v56 = vrot.slane %v912_v48, 5  ;;  %v10045_v60 = vcombine.low %v10038_v57, %v10041_v58  ;;  %v10056_v4 = vld [vmem:[%s9965_s21 + $0x24] sm:$0xf]  ;;  %v10059_v5 = vld [vmem:[%s9965_s21 + $0x28] sm:$0xf] }
  0x1a   : > { %8865 = vmatpush3.bf16.msra.mxu1 %v9691_v7  ;;  %8818 = vmatprep.subr.bf16.mxu0 %v9692_v8  ;;  %v896_v54 = vrot.slane %v895_v46, 4  ;;  %v924_v59 = vrot.slane %v922_v51, 5  ;;  %v927_v61 = vshrl.u32 %v10038_v57, 16  ;;  %v930_v62 = vshll.u32 %v10038_v57, 16  ;;  %v9702_v7 = vld [vmem:[%s13257_s2 + $0xb8] sm:$0xff]   ;;  %v9707_v43 = vld [vmem:[%s13257_s2 + $0xf0] sm:$0xff]  }
  0x1b   : > { %8866 = vmatprep.subr.bf16.mxu1 %v9693_v9  ;;  %v891_v53 = vsel %vm10019_vm2, %v886_v45, %v890_v35  ;;  %v910_v1 = vrot.slane %v909_v55, 4  ;;  %v919_v2 = vor.u32 %v918_v50, %v914_v56  ;;  %v940_v3 = vshrl.u32 %v10041_v58, 16  ;;  %v10092_v45 = vld [vmem:[%s9965_s21 + $0x30] sm:$0xf]  ;;  %v10097_v50 = vld [vmem:[%s9965_s21 + $0x34] sm:$0xf] }
  0x1c   : > { %v901_v0 = vsel %vm10019_vm2, %v896_v54, %v900_v40  ;;  %v946_v22 = vshll.u32 %v10050_v63, 16  ;;  %v10076_v25 = vcombine.low %v10056_v4, %v10059_v5  ;;  %v964_v34 = vshrl.u32 %v10059_v5, 16  ;;  %v10218_v29 = vld [vmem:[%s9965_s21 + $0x64] sm:$0xf]  ;;  %v10249_v21 = vld [vmem:[%s9965_s21 + $0x6c] sm:$0xf] }
  0x1d   : > { %8819 = vmatpush3.bf16.msra.mxu0 %v9692_v8  ;;  %v8110_v6 = vcombine.low %v891_v53, %v901_v0  ;;  %v929_v8 = vrot.slane %v927_v61, 4  ;;  %v915_v15 = vsel %vm10019_vm2, %v910_v1, %v914_v56  ;;  %v920_v16 = vrot.slane %v919_v2, 4  ;;  %v10108_v56 = vld [vmem:[%s9965_s21 + $0x38] sm:$0x1]  ;;  %v10116_v2 = vld [vmem:[%s9965_s21 + $0x40] sm:$0xf] }
  0x1e   : > { %8867 = vmatpush3.bf16.msra.mxu1 %v9693_v9  ;;  %8820 = vmatprep.subr.bf16.mxu0 %v9694_v10  ;;  %v932_v9 = vrot.slane %v930_v62, 5  ;;  %v942_v18 = vrot.slane %v940_v3, 4  ;;  %v948_v31 = vrot.slane %v946_v22, 5  ;;  %v960_v46 = vshll.u32 %v10059_v5, 16  ;;  %v9710_v3 = vld [vmem:[%s13257_s2 + $0xa8] sm:$0xff]  }
  0x1f   : > { %8868 = vmatprep.subr.bf16.mxu1 %v9695_v14  ;;  %8874 = vmatprep.mubr.bf16.mxu1 %v8110_v6  ;;  %v925_v28 = vsel %vm10019_vm2, %v920_v16, %v924_v59  ;;  %v966_v47 = vrot.slane %v964_v34, 4  ;;  %v10104_v54 = vcombine.low %v10092_v45, %v10097_v50  ;;  %v975_v55 = vshrl.u32 %v10092_v45, 16  ;;  %v10111_v59 = vld [vmem:[%s9965_s21 + $0x3c] sm:$0xf] }
  0x20   : > { %v933_v23 = vor.u32 %v932_v9, %v929_v8  ;;  %v10083_v35 = vcombine.low %v915_v15, %v925_v28  ;;  %v962_v62 = vrot.slane %v960_v46, 5  ;;  %v978_v1 = vshll.u32 %v10092_v45, 16  ;;  %v10143_v46 = vld [vmem:[%s9965_s21 + $0x44] sm:$0x1] }
  0x21   : > { %8821 = vmatpush3.bf16.msra.mxu0 %v9694_v10  ;;  %v936_v10 = vshll.u32 %v10041_v58, 16  ;;  %13450 = vst [vmem:[#allocation5_spill] sm:$0xff] %v10104_v54  ;;  %v988_v8 = vshrl.u32 %v10097_v50, 16  ;;  %v984_v9 = vshll.u32 %v10097_v50, 16  ;;  %v999_v34 = vshrl.u32 %v10111_v59, 16 }
  0x22   : > { %8869 = vmatpush3.bf16.msra.mxu1 %v9695_v14  ;;  %8822 = vmatprep.subr.bf16.mxu0 %v9696_v27  ;;  %v10066_v14 = vld [vmem:[%s9965_s21 + $0x2c] sm:$0x1]  ;;  %13449 = vst [vmem:[#allocation4_spill] sm:$0xff] %v10083_v35  ;;  %v934_v36 = vrot.slane %v933_v23, 4  ;;  %v1080_v20 = vshll.u32 %v10218_v29, 16 }
  0x23   : > { %8870 = vmatprep.subr.bf16.mxu1 %v9697_v33  ;;  %v938_v24 = vrot.slane %v936_v10, 5  ;;  %v970_v48 = vshll.u32 %v10066_v14, 16  ;;  %v9711_v10 = vld [vmem:[%s13257_s2 + $0xe8] sm:$0xff]   ;;  %v986_v22 = vrot.slane %v984_v9, 5  ;;  %v990_v23 = vrot.slane %v988_v8, 4  ;;  %v9718_v8 = vld [vmem:[%s13257_s2 + $0x98] sm:$0xff]  }
  0x25   : > { %8823 = vmatpush3.bf16.msra.mxu0 %v9696_v27  ;;  %v951_v27 = vshrl.u32 %v10056_v4, 16  ;;  %v943_v37 = vor.u32 %v942_v18, %v938_v24  ;;  %v939_v51 = vsel %vm10019_vm2, %v934_v36, %v938_v24  ;;  %v972_v0 = vrot.slane %v970_v48, 5 }
  0x26   : > { %8871 = vmatpush3.bf16.msra.mxu1 %v9697_v33  ;;  %8824 = vmatprep.subr.bf16.mxu0 %v9698_v38  ;;  %v954_v33 = vshll.u32 %v10056_v4, 16  ;;  %v967_v18 = vor.u32 %v966_v47, %v962_v62  ;;  %v994_v24 = vshll.u32 %v10108_v56, 16  ;;  %v991_v36 = vor.u32 %v990_v23, %v986_v22  ;;  %v9714_v47 = vld [vmem:[%s13257_s2 + $0xa0] sm:$0xff]  }
  0x27   : > { %8872 = vmatprep.subr.bf16.mxu1 %v9699_v44  ;;  %v953_v40 = vrot.slane %v951_v27, 4  ;;  %v944_v53 = vrot.slane %v943_v37, 4  ;;  %v10134_v27 = vcombine.low %v10111_v59, %v10116_v2 }
  0x28   : > { %v996_v37 = vrot.slane %v994_v24, 5 }
  0x29   : > { %8825 = vmatpush3.bf16.msra.mxu0 %v9698_v38  ;;  %v9706_v38 = vld [vmem:[%s13257_s2 + $0xb0] sm:$0xff]   ;;  %v949_v6 = vsel %vm10019_vm2, %v944_v53, %v948_v31  ;;  %13452 = vst [vmem:[#allocation7_spill] sm:$0xff] %v10134_v27  ;;  %v968_v31 = vrot.slane %v967_v18, 4  ;;  %v10152_v53 = vld [vmem:[%s9965_s21 + $0x48] sm:$0xf] }
  0x2a   : > { %8873 = vmatpush3.bf16.msra.mxu1 %v9699_v44  ;;  %8906 = vmatprep.subr.bf16.mxu0 %v9702_v7  ;;  %v956_v44 = vrot.slane %v954_v33, 5  ;;  %v10129_v15 = vcombine.low %v939_v51, %v949_v6  ;;  %v1001_v51 = vrot.slane %v999_v34, 4 }
  0x2b   : > { %8954 = vmatprep.subr.bf16.mxu1 %v9703_v17 }
  0x2c   : > { %8827 = vmatmul.mubr.bf16.vlgmr.msra.gmra.mxu0 %v10003_v30  ;;  %v957_v61 = vor.u32 %v956_v44, %v953_v40  ;;  %13451 = vst [vmem:[#allocation6_spill] sm:$0xff] %v10129_v15  ;;  %v1002_v40 = vshll.u32 %v10111_v59, 16  ;;  %v1012_v44 = vshrl.u32 %v10116_v2, 16 }
  0x2d   : > { %8875 = vmatmul.mubr.bf16.vlgmr.msra.gmra.mxu1 %v10083_v35  ;;  %8907 = vmatpush3.bf16.msra.mxu0 %v9702_v7  ;;  %v977_v7 = vrot.slane %v975_v55, 4  ;;  %v9715_v55 = vld [vmem:[%s13257_s2 + $0xe0] sm:$0xff]  }
  0x2e   : > { %8955 = vmatpush3.bf16.msra.mxu1 %v9703_v17  ;;  %8830 = vmatprep.mubr.bf16.mxu0 %v10045_v60  ;;  %v958_v16 = vrot.slane %v957_v61, 4  ;;  %v980_v17 = vrot.slane %v978_v1, 5  ;;  %v1004_v1 = vrot.slane %v1002_v40, 5  ;;  %v1014_v6 = vrot.slane %v1012_v44, 4  ;;  %v10189_v40 = vld [vmem:[%s9965_s21 + $0x54] sm:$0xf] }
  0x2f   : > { %8908 = vmatprep.subr.bf16.mxu0 %v9706_v38  ;;  %8956 = vmatprep.subr.bf16.mxu1 %v9707_v43 }
  0x30   : > { %8878 = vmatprep.mubr.bf16.mxu1 %v10129_v15  ;;  %v963_v28 = vsel %vm10019_vm2, %v958_v16, %v962_v62  ;;  %v981_v33 = vor.u32 %v980_v17, %v977_v7  ;;  %v992_v62 = vrot.slane %v991_v36, 4  ;;  %v1018_v16 = vshll.u32 %v10143_v46, 16  ;;  %v10175_v17 = vld [vmem:[%s9965_s21 + $0x50] sm:$0x1] }
  0x31   : > { %8909 = vmatpush3.bf16.msra.mxu0 %v9706_v38  ;;  %v973_v38 = vsel %vm10019_vm2, %v968_v31, %v972_v0  ;;  %v10161_v0 = vld [vmem:[%s9965_s21 + $0x4c] sm:$0xf]  ;;  %v1005_v24 = vor.u32 %v1004_v1, %v1001_v51  ;;  %v10193_v51 = vld [vmem:[%s9965_s21 + $0x58] sm:$0xf]  ;;  %v1098_v15 = vshll.u32 %v10249_v21, 16 }
  0x32   : > { %8957 = vmatpush3.bf16.msra.mxu1 %v9707_v43  ;;  %8910 = vmatprep.subr.bf16.mxu0 %v9710_v3  ;;  %v982_v48 = vrot.slane %v981_v33, 4  ;;  %v1008_v43 = vshll.u32 %v10116_v2, 16  ;;  %v10158_v61 = vcombine.low %v963_v28, %v973_v38  ;;  %v10172_v18 = vcombine.low %v10152_v53, %v10161_v0 }
  0x33   : > { %8958 = vmatprep.subr.bf16.mxu1 %v9711_v10  ;;  %v997_v23 = vsel %vm10019_vm2, %v992_v62, %v996_v37  ;;  %v1026_v28 = vshll.u32 %v10152_v53, 16  ;;  %v1020_v34 = vrot.slane %v1018_v16, 5  ;;  %v1036_v36 = vshrl.u32 %v10161_v0, 16 }
  0x34   : > { %8831 = vmatmul.mubr.bf16.gmra.mxu0 %v10076_v25  ;;  %13453 = vst [vmem:[#allocation8_spill] sm:$0xff] %v10158_v61  ;;  %v987_v7 = vsel %vm10019_vm2, %v982_v48, %v986_v22  ;;  %v1010_v9 = vrot.slane %v1008_v43, 5  ;;  %13454 = vst [vmem:[#allocation9_spill] sm:$0xff] %v10172_v18  ;;  %v1023_v22 = vshrl.u32 %v10152_v53, 16  ;;  %v1006_v37 = vrot.slane %v1005_v24, 4 }
  0x35   : > { %8834 = vmatprep.mubr.bf16.mxu0 %v10104_v54  ;;  %8911 = vmatpush3.bf16.msra.mxu0 %v9710_v3  ;;  %v9719_v3 = vld [vmem:[%s13257_s2 + $0xd8] sm:$0xff]   ;;  %v10185_v31 = vcombine.low %v987_v7, %v997_v23  ;;  %v1028_v38 = vrot.slane %v1026_v28, 5  ;;  %v1032_v48 = vshll.u32 %v10161_v0, 16  ;;  %v1038_v62 = vrot.slane %v1036_v36, 4  ;;  %v10211_v28 = vld [vmem:[%s9965_s21 + $0x60] sm:$0xf] }
  0x36   : > { %8879 = vmatmul.mubr.bf16.gmra.mxu1 %v10158_v61  ;;  %8912 = vmatprep.subr.bf16.mxu0 %v9714_v47  ;;  %v1015_v33 = vor.u32 %v1014_v6, %v1010_v9  ;;  %v1025_v44 = vrot.slane %v1023_v22, 4  ;;  %v10199_v1 = vcombine.low %v10189_v40, %v10193_v51  ;;  %v9722_v6 = vld [vmem:[%s13257_s2 + $0x90] sm:$0xff]   ;;  %v1011_v7 = vsel %vm10019_vm2, %v1006_v37, %v1010_v9  ;;  %v10208_v22 = vld [vmem:[%s9965_s21 + $0x5c] sm:$0x1] }
  0x37   : > { %13455 = vst [vmem:[#allocation10_spill] sm:$0xff] %v10185_v31  ;;  %8959 = vmatpush3.bf16.msra.mxu1 %v9711_v10  ;;  %8882 = vmatprep.mubr.bf16.mxu1 %v10185_v31  ;;  %v1042_v10 = vshll.u32 %v10175_v17, 16  ;;  %v1034_v23 = vrot.slane %v1032_v48, 5  ;;  %v1047_v24 = vshrl.u32 %v10189_v40, 16  ;;  %v1050_v36 = vshll.u32 %v10189_v40, 16  ;;  %v9723_v9 = vld [vmem:[%s13257_s2 + $0xd0] sm:$0xff]  }
  0x38   : > { %8960 = vmatprep.subr.bf16.mxu1 %v9715_v55  ;;  %v1016_v43 = vrot.slane %v1015_v33, 4  ;;  %13456 = vst [vmem:[#allocation11_spill] sm:$0xff] %v10199_v1  ;;  %v1029_v16 = vor.u32 %v1028_v38, %v1025_v44  ;;  %v1060_v52 = vshrl.u32 %v10193_v51, 16  ;;  %v1074_v41 = vshll.u32 %v10211_v28, 16  ;;  %v10265_v61 = vld [vmem:[%s9965_s21 + $0x74] sm:$0x1] }
  0x39   : > { %8913 = vmatpush3.bf16.msra.mxu0 %v9714_v47  ;;  %v1044_v47 = vrot.slane %v1042_v10, 5  ;;  %v1039_v38 = vor.u32 %v1038_v62, %v1034_v23  ;;  %v1049_v48 = vrot.slane %v1047_v24, 4  ;;  %v1066_v10 = vshll.u32 %v10208_v22, 16 }
  0x3a   : > { %8914 = vmatprep.subr.bf16.mxu0 %v9718_v8  ;;  %v1021_v33 = vsel %vm10019_vm2, %v1016_v43, %v1020_v34  ;;  %v1030_v44 = vrot.slane %v1029_v16, 4  ;;  %v1052_v34 = vrot.slane %v1050_v36, 5  ;;  %v1062_v43 = vrot.slane %v1060_v52, 4  ;;  %v9726_v52 = vld [vmem:[%s13257_s2 + $0x88] sm:$0xff]  }
  0x3b   : > { %8961 = vmatpush3.bf16.msra.mxu1 %v9715_v55  ;;  %v10224_v37 = vcombine.low %v1011_v7, %v1021_v33  ;;  %v1056_v55 = vshll.u32 %v10193_v51, 16  ;;  %v1040_v16 = vrot.slane %v1039_v38, 4  ;;  %v10234_v62 = vcombine.low %v10211_v28, %v10218_v29 }
  0x3c   : > { %8835 = vmatmul.mubr.bf16.gmra.mxu0 %v10134_v27  ;;  %8962 = vmatprep.subr.bf16.mxu1 %v9719_v3  ;;  %v1035_v7 = vsel %vm10019_vm2, %v1030_v44, %v1034_v23  ;;  %v1071_v24 = vshrl.u32 %v10211_v28, 16  ;;  %v1053_v33 = vor.u32 %v1052_v34, %v1049_v48  ;;  %v1068_v36 = vrot.slane %v1066_v10, 5  ;;  %v10242_v23 = vld [vmem:[%s9965_s21 + $0x68] sm:$0x1] }
  0x3d   : > { %13457 = vst [vmem:[#allocation12_spill] sm:$0xff] %v10224_v37  ;;  %8838 = vmatprep.mubr.bf16.mxu0 %v10172_v18  ;;  %8915 = vmatpush3.bf16.msra.mxu0 %v9718_v8  ;;  %13458 = vst [vmem:[#allocation13_spill] sm:$0xff] %v10234_v62  ;;  %v1058_v8 = vrot.slane %v1056_v55, 5  ;;  %v1045_v44 = vsel %vm10019_vm2, %v1040_v16, %v1044_v47  ;;  %v1084_v38 = vshrl.u32 %v10218_v29, 16  ;;  %v9727_v48 = vld [vmem:[%s13257_s2 + $0xc8] sm:$0xff]   ;;  %v1076_v10 = vrot.slane %v1074_v41, 5 }
  0x3e   : > { %8883 = vmatmul.mubr.bf16.gmra.mxu1 %v10224_v37  ;;  %8916 = vmatprep.subr.bf16.mxu0 %v9722_v6  ;;  %v1073_v42 = vrot.slane %v1071_v24, 4  ;;  %v10254_v34 = vcombine.low %v1035_v7, %v1045_v44  ;;  %v1054_v55 = vrot.slane %v1053_v33, 4  ;;  %v10257_v47 = vld [vmem:[%s9965_s21 + $0x70] sm:$0xf]  ;;  %v1082_v16 = vrot.slane %v1080_v20, 5 }
  0x3f   : > { %8963 = vmatpush3.bf16.msra.mxu1 %v9719_v3  ;;  %v1063_v3 = vor.u32 %v1062_v43, %v1058_v8  ;;  %v1086_v24 = vrot.slane %v1084_v38, 4  ;;  %v1090_v37 = vshll.u32 %v10242_v23, 16  ;;  %v10262_v31 = vcombine.low %v10249_v21, %v10257_v47  ;;  %v9730_v43 = vld [vmem:[%s13257_s2 + $0x80] sm:$0xff]   ;;  %v10275_v33 = vld [vmem:[%s9965_s21 + $0x78] sm:$0xf] }
  0x40   : > { %8964 = vmatprep.subr.bf16.mxu1 %v9723_v9  ;;  %13459 = vst [vmem:[#allocation14_spill] sm:$0xff] %v10254_v34  ;;  %8886 = vmatprep.mubr.bf16.mxu1 %v10254_v34  ;;  %v1059_v41 = vsel %vm10019_vm2, %v1054_v55, %v1058_v8  ;;  %v1095_v7 = vshrl.u32 %v10249_v21, 16  ;;  %13461 = vst [vmem:[#allocation16_spill] sm:$0xff] %v10275_v33  ;;  %v1108_v35 = vshrl.u32 %v10257_v47, 16  ;;  %v9731_v8 = vld [vmem:[%s13257_s2 + $0xc0] sm:$0xff]  }
  0x41   : > { %8917 = vmatpush3.bf16.msra.mxu0 %v9722_v6  ;;  %13460 = vst [vmem:[#allocation15_spill] sm:$0xff] %v10262_v31  ;;  %v1064_v20 = vrot.slane %v1063_v3, 4  ;;  %v1077_v6 = vor.u32 %v1076_v10, %v1073_v42  ;;  %v1087_v44 = vor.u32 %v1086_v24, %v1082_v16  ;;  %v1092_v38 = vrot.slane %v1090_v37, 5 }
  0x42   : > { %8918 = vmatprep.subr.bf16.mxu0 %v9726_v52  ;;  %v1097_v55 = vrot.slane %v1095_v7, 4  ;;  %v1104_v3 = vshll.u32 %v10257_v47, 16  ;;  %v1100_v24 = vrot.slane %v1098_v15, 5  ;;  %v1110_v34 = vrot.slane %v1108_v35, 4  ;;  %v10305_v35 = vld [vmem:[%s9965_s21 + $0x80] sm:$0x1] }
  0x43   : > { %8965 = vmatpush3.bf16.msra.mxu1 %v9723_v9  ;;  %v1069_v42 = vsel %vm10019_vm2, %v1064_v20, %v1068_v36  ;;  %v1078_v9 = vrot.slane %v1077_v6, 4  ;;  %v1088_v10 = vrot.slane %v1087_v44, 4  ;;  %v10295_v36 = vld [vmem:[%s13257_s2 + $0x138] sm:$0xff]   ;;  %13465 = vst [vmem:[#allocation20_spill] sm:$0xff] %v10305_v35  ;;  %v1119_v44 = vshrl.u32 %v10275_v33, 16 }
  0x44   : > { %8839 = vmatmul.mubr.bf16.gmra.mxu0 %v10199_v1  ;;  %8966 = vmatprep.subr.bf16.mxu1 %v9727_v48  ;;  %v10287_v37 = vcombine.low %v1059_v41, %v1069_v42  ;;  %v10290_v1 = vld [vmem:[%s9965_s21 + $0x7c] sm:$0xf]  ;;  %v1106_v6 = vrot.slane %v1104_v3, 5  ;;  %v1101_v7 = vor.u32 %v1100_v24, %v1097_v55  ;;  %v10313_v42 = vld [vmem:[%s9965_s21 + $0x84] sm:$0xf] }
  0x45   : > { %8842 = vmatprep.mubr.bf16.mxu0 %v10234_v62  ;;  %8919 = vmatpush3.bf16.msra.mxu0 %v9726_v52  ;;  %13463 = vst [vmem:[#allocation18_spill] sm:$0xff] %v10290_v1  ;;  %v1083_v20 = vsel %vm10019_vm2, %v1078_v9, %v1082_v16  ;;  %v1114_v52 = vshll.u32 %v10265_v61, 16  ;;  %v10302_v15 = vcombine.low %v10275_v33, %v10290_v1  ;;  %v1122_v16 = vshll.u32 %v10275_v33, 16  ;;  %v10318_v9 = vld [vmem:[%s13257_s2 + $0x178] sm:$0xff]  }
  0x46   : > { %13462 = vst [vmem:[#allocation17_spill] sm:$0xff] %v10287_v37  ;;  %8920 = vmatprep.subr.bf16.mxu0 %v9730_v43  ;;  %8887 = vmatmul.mubr.bf16.gmra.mxu1 %v10287_v37  ;;  %v1093_v41 = vsel %vm10019_vm2, %v1088_v10, %v1092_v38  ;;  %13466 = vst [vmem:[#allocation21_spill] sm:$0xff] %v10313_v42  ;;  %v1132_v62 = vshrl.u32 %v10290_v1, 16  ;;  %v10324_v38 = vld [vmem:[%s9965_s21 + $0x88] sm:$0xf]  ;;  %v1102_v55 = vrot.slane %v1101_v7, 4 }
  0x47   : > { %13464 = vst [vmem:[#allocation19_spill] sm:$0xff] %v10302_v15  ;;  %8967 = vmatpush3.bf16.msra.mxu1 %v9727_v48  ;;  %v10320_v3 = vcombine.low %v1083_v20, %v1093_v41  ;;  %v1111_v48 = vor.u32 %v1110_v34, %v1106_v6  ;;  %v1116_v37 = vrot.slane %v1114_v52, 5  ;;  %13468 = vst [vmem:[#allocation23_spill] sm:$0xff] %v10324_v38  ;;  %v1121_v10 = vrot.slane %v1119_v44, 4 }
  0x48   : > { %8968 = vmatprep.subr.bf16.mxu1 %v9731_v8  ;;  %v1124_v24 = vrot.slane %v1122_v16, 5  ;;  %v1128_v18 = vshll.u32 %v10290_v1, 16  ;;  %v1134_v20 = vrot.slane %v1132_v62, 4  ;;  %v1138_v34 = vshll.u32 %v10305_v35, 16  ;;  %v10339_v16 = vld [vmem:[%s9965_s21 + $0x8c] sm:$0x1] }
  0x49   : > { %13467 = vst [vmem:[#allocation22_spill] sm:$0xff] %v10320_v3  ;;  %8921 = vmatpush3.bf16.msra.mxu0 %v9730_v43  ;;  %8890 = vmatprep.mubr.bf16.mxu1 %v10320_v3  ;;  %v1112_v33 = vrot.slane %v1111_v48, 4  ;;  %v10332_v52 = vcombine.low %v10313_v42, %v10324_v38  ;;  %v1107_v43 = vsel %vm10019_vm2, %v1102_v55, %v1106_v6  ;;  %v1143_v44 = vshrl.u32 %v10313_v42, 16  ;;  %v10348_v55 = vld [vmem:[%s9965_s21 + $0x90] sm:$0xf] }
  0x4a   : > { %9002 = vmatprep.subr.bf16.mxu0 %v10295_v36  ;;  %v1125_v41 = vor.u32 %v1124_v24, %v1121_v10  ;;  %v1130_v7 = vrot.slane %v1128_v18, 5  ;;  %13470 = vst [vmem:[#allocation25_spill] sm:$0xff] %v10339_v16  ;;  %v1146_v48 = vshll.u32 %v10313_v42, 16  ;;  %v1156_v6 = vshrl.u32 %v10324_v38, 16  ;;  %13471 = vst [vmem:[#allocation26_spill] sm:$0xff] %v10348_v55 }
  0x4b   : > { %13469 = vst [vmem:[#allocation24_spill] sm:$0xff] %v10332_v52  ;;  %8969 = vmatpush3.bf16.msra.mxu1 %v9731_v8  ;;  %v1117_v62 = vsel %vm10019_vm2, %v1112_v33, %v1116_v37  ;;  %v1140_v8 = vrot.slane %v1138_v34, 5  ;;  %v1145_v3 = vrot.slane %v1143_v44, 4  ;;  %v1152_v33 = vshll.u32 %v10324_v38, 16  ;;  %v10369_v44 = vld [vmem:[%s9965_s21 + $0x9c] sm:$0xf] }
  0x4c   : > { %8843 = vmatmul.mubr.bf16.gmra.mxu0 %v10262_v31  ;;  %9050 = vmatprep.subr.bf16.mxu1 %v10318_v9  ;;  %v10350_v18 = vcombine.low %v1107_v43, %v1117_v62  ;;  %v1126_v10 = vrot.slane %v1125_v41, 4  ;;  %v1135_v24 = vor.u32 %v1134_v20, %v1130_v7  ;;  %v10353_v31 = vld [vmem:[%s9965_s21 + $0x94] sm:$0xf]  ;;  %v1148_v35 = vrot.slane %v1146_v48, 5  ;;  %13476 = vst [vmem:[#allocation31_spill] sm:$0xff] %v10369_v44 }
  0x4d   : > { %8846 = vmatprep.mubr.bf16.mxu0 %v10302_v15  ;;  %13473 = vst [vmem:[#allocation28_spill] sm:$0xff] %v10353_v31  ;;  %v1158_v37 = vrot.slane %v1156_v6, 4  ;;  %v1162_v34 = vshll.u32 %v10339_v16, 16  ;;  %v10358_v15 = vld [vmem:[%s9965_s21 + $0x98] sm:$0x1]  ;;  %v10365_v20 = vcombine.low %v10348_v55, %v10353_v31  ;;  %v1167_v41 = vshrl.u32 %v10348_v55, 16 }
  0x4e   : > { %13472 = vst [vmem:[#allocation27_spill] sm:$0xff] %v10350_v18  ;;  %13474 = vst [vmem:[#allocation29_spill] sm:$0xff] %v10358_v15  ;;  %8891 = vmatmul.mubr.bf16.gmra.mxu1 %v10350_v18  ;;  %v1131_v43 = vsel %vm10019_vm2, %v1126_v10, %v1130_v7  ;;  %v1136_v62 = vrot.slane %v1135_v24, 4  ;;  %v1149_v48 = vor.u32 %v1148_v35, %v1145_v3  ;;  %v1154_v6 = vrot.slane %v1152_v33, 5  ;;  %v10373_v38 = vld [vmem:[%s9965_s21 + $0xa0] sm:$0xf] }
  0x4f   : > { %13475 = vst [vmem:[#allocation30_spill] sm:$0xff] %v10365_v20  ;;  %v1164_v42 = vrot.slane %v1162_v34, 5  ;;  %v1170_v16 = vshll.u32 %v10348_v55, 16  ;;  %v1180_v10 = vshrl.u32 %v10353_v31, 16  ;;  %v1169_v24 = vrot.slane %v1167_v41, 4 }
  0x50   : > { %v1141_v7 = vsel %vm10019_vm2, %v1136_v62, %v1140_v8  ;;  %v1176_v18 = vshll.u32 %v10353_v31, 16  ;;  %v1150_v27 = vrot.slane %v1149_v48, 4  ;;  %v1159_v54 = vor.u32 %v1158_v37, %v1154_v6  ;;  %v10388_v62 = vld [vmem:[%s9965_s21 + $0xa4] sm:$0x1]  ;;  %v10396_v41 = vld [vmem:[%s9965_s21 + $0xa8] sm:$0xf] }
  0x51   : > { %v10379_v1 = vcombine.low %v1131_v43, %v1141_v7  ;;  %v1172_v35 = vrot.slane %v1170_v16, 5  ;;  %v1182_v33 = vrot.slane %v1180_v10, 4  ;;  %v1186_v34 = vshll.u32 %v10358_v15, 16  ;;  %13479 = vst [vmem:[#allocation34_spill] sm:$0xff] %v10388_v62  ;;  %v10409_v15 = vld [vmem:[%s9965_s21 + $0xb0] sm:$0x1] }
  0x52   : > { %v1178_v3 = vrot.slane %v1176_v18, 5  ;;  %v10385_v8 = vcombine.low %v10369_v44, %v10373_v38  ;;  %v1155_v16 = vsel %vm10019_vm2, %v1150_v27, %v1154_v6  ;;  %v1160_v37 = vrot.slane %v1159_v54, 4  ;;  %13481 = vst [vmem:[#allocation36_spill] sm:$0xff] %v10409_v15 }
  0x53   : > { %13477 = vst [vmem:[#allocation32_spill] sm:$0xff] %v10379_v1  ;;  %8894 = vmatprep.mubr.bf16.mxu1 %v10379_v1  ;;  %v1173_v18 = vor.u32 %v1172_v35, %v1169_v24  ;;  %v1191_v43 = vshrl.u32 %v10369_v44, 16  ;;  %v1188_v7 = vrot.slane %v1186_v34, 5  ;;  %v1194_v10 = vshll.u32 %v10369_v44, 16  ;;  %v10401_v1 = vld [vmem:[%s9965_s21 + $0xac] sm:$0xf] }
  0x54   : > { %8847 = vmatmul.mubr.bf16.gmra.mxu0 %v10332_v52  ;;  %13478 = vst [vmem:[#allocation33_spill] sm:$0xff] %v10385_v8  ;;  %v1183_v48 = vor.u32 %v1182_v33, %v1178_v3  ;;  %v1204_v52 = vshrl.u32 %v10373_v38, 16  ;;  %v1165_v54 = vsel %vm10019_vm2, %v1160_v37, %v1164_v42  ;;  %v1200_v24 = vshll.u32 %v10373_v38, 16  ;;  %v10419_v37 = vld [vmem:[%s9965_s21 + $0xb4] sm:$0xf] }
  0x55   : > { %8850 = vmatprep.mubr.bf16.mxu0 %v10365_v20  ;;  %v1174_v27 = vrot.slane %v1173_v18, 4  ;;  %v1193_v6 = vrot.slane %v1191_v43, 4  ;;  %v10406_v35 = vcombine.low %v1155_v16, %v1165_v54  ;;  %v1196_v33 = vrot.slane %v1194_v10, 5  ;;  %13483 = vst [vmem:[#allocation38_spill] sm:$0xff] %v10419_v37  ;;  %v10427_v43 = vld [vmem:[%s9965_s21 + $0xb8] sm:$0xf] }
  0x56   : > { %v1184_v20 = vrot.slane %v1183_v48, 4  ;;  %v1206_v34 = vrot.slane %v1204_v52, 4  ;;  %v1202_v55 = vrot.slane %v1200_v24, 5  ;;  %v1210_v31 = vshll.u32 %v10388_v62, 16 }
  0x57   : > { %13480 = vst [vmem:[#allocation35_spill] sm:$0xff] %v10406_v35  ;;  %v1179_v44 = vsel %vm10019_vm2, %v1174_v27, %v1178_v3  ;;  %v10416_v42 = vcombine.low %v10396_v41, %v10401_v1  ;;  %8895 = vmatmul.mubr.bf16.gmra.mxu1 %v10406_v35  ;;  %v1197_v16 = vor.u32 %v1196_v33, %v1193_v6  ;;  %v1215_v18 = vshrl.u32 %v10396_v41, 16 }
  0x58   : > { %v1189_v52 = vsel %vm10019_vm2, %v1184_v20, %v1188_v7  ;;  %v1218_v3 = vshll.u32 %v10396_v41, 16  ;;  %v1207_v10 = vor.u32 %v1206_v34, %v1202_v55  ;;  %v1212_v54 = vrot.slane %v1210_v31, 5  ;;  %v10435_v7 = vld [vmem:[%s9965_s21 + $0xbc] sm:$0x1] }
  0x59   : > { %13482 = vst [vmem:[#allocation37_spill] sm:$0xff] %v10416_v42  ;;  %v10429_v48 = vcombine.low %v1179_v44, %v1189_v52  ;;  %v1228_v27 = vshrl.u32 %v10401_v1, 16  ;;  %v1198_v24 = vrot.slane %v1197_v16, 4  ;;  %v1217_v35 = vrot.slane %v1215_v18, 4  ;;  %13485 = vst [vmem:[#allocation40_spill] sm:$0xff] %v10435_v7 }
  0x5a   : > { %v1220_v62 = vrot.slane %v1218_v3, 5  ;;  %v1224_v20 = vshll.u32 %v10401_v1, 16  ;;  %v1208_v6 = vrot.slane %v1207_v10, 4  ;;  %v1234_v33 = vshll.u32 %v10409_v15, 16 }
  0x5b   : > { %13484 = vst [vmem:[#allocation39_spill] sm:$0xff] %v10429_v48  ;;  %8898 = vmatprep.mubr.bf16.mxu1 %v10429_v48  ;;  %v1230_v44 = vrot.slane %v1228_v27, 4  ;;  %v10442_v31 = vcombine.low %v10419_v37, %v10427_v43  ;;  %v1203_v34 = vsel %vm10019_vm2, %v1198_v24, %v1202_v55  ;;  %v1239_v18 = vshrl.u32 %v10419_v37, 16 }
  0x5c   : > { %8851 = vmatmul.mubr.bf16.gmra.mxu0 %v10385_v8  ;;  %v1221_v52 = vor.u32 %v1220_v62, %v1217_v35  ;;  %v1226_v16 = vrot.slane %v1224_v20, 5  ;;  %v1213_v3 = vsel %vm10019_vm2, %v1208_v6, %v1212_v54  ;;  %v1236_v10 = vrot.slane %v1234_v33, 5 }
  0x5d   : > { %8854 = vmatprep.mubr.bf16.mxu0 %v10416_v42  ;;  %v1242_v48 = vshll.u32 %v10419_v37, 16  ;;  %v1252_v27 = vshrl.u32 %v10427_v43, 16  ;;  %v13486_v42 = vmov 0  ;;  %v10457_v8 = vcombine.low %v1203_v34, %v1213_v3 }
  0x5e   : > { %v13487_v42 = vsel %vm10453_vm5, 4294967295, %v13486_v42  ;;  %v1222_v55 = vrot.slane %v1221_v52, 4  ;;  %v1231_v62 = vor.u32 %v1230_v44, %v1226_v16  ;;  %v1241_v35 = vrot.slane %v1239_v18, 4 }
  0x5f   : > { %13488 = vst [vmem:[#allocation41_spill] sm:$0xff] %v13487_v42  ;;  %13489 = vst [vmem:[#allocation42_spill] sm:$0xff] %v10457_v8  ;;  %v1244_v24 = vrot.slane %v1242_v48, 5  ;;  %v1248_v20 = vshll.u32 %v10427_v43, 16  ;;  %v1254_v54 = vrot.slane %v1252_v27, 4  ;;  %v1258_v6 = vshll.u32 %v10435_v7, 16  ;;  %8899 = vmatmul.mubr.bf16.gmra.mxu1 %v10457_v8 }
  0x60   : > { %v1227_v33 = vsel %vm10019_vm2, %v1222_v55, %v1226_v16  ;;  %v1232_v37 = vrot.slane %v1231_v62, 4  ;;  %v13490_v15 = vrot.slane %v9974_v12, 5  ;;  %v13491_v34 = vrot.slane %v9971_v11, 9 }
  0x61   : > { %v1245_v18 = vor.u32 %v1244_v24, %v1241_v35  ;;  %v1250_v3 = vrot.slane %v1248_v20, 5  ;;  %v1260_v27 = vrot.slane %v1258_v6, 5  ;;  %v13493_v7 = vrot.slane %v9994_v26, 5 }
  0x62   : > { %v1653_v44 = vsel %vm10453_vm5, %v13491_v34, %v13490_v15  ;;  %v13492_v48 = vmov %v13490_v15  ;;  %v13494_v8 = vrot.slane %v9988_v19, 9  ;;  %v1237_v55 = vsel %vm10019_vm2, %v1232_v37, %v1236_v10 }
  0x63   : > { %v1654_v52 = vrot.slane %v13492_v48, 4  ;;  %v13495_v11 = vrot.slane %v9977_v13, 5  ;;  %v13496_v15 = vrot.slane %v10007_v32, 5  ;;  %v8136_v19 = vrot.slane %v10038_v57, 9 }
  0x64   : > { %v1660_v16 = vsel %vm10453_vm5, %v13494_v8, %v13493_v7  ;;  %8855 = vmatmul.mubr.bf16.gmra.mxu0 %v10442_v31  ;;  %v10491_v62 = vcombine.low %v1227_v33, %v1237_v55  ;;  %v1246_v8 = vrot.slane %v1245_v18, 4  ;;  %v1255_v7 = vor.u32 %v1254_v54, %v1250_v3 }
  0x65   : > { %v1656_v12 = vsel %vm10453_vm5, %v1654_v52, %v13495_v11  ;;  %v1663_v26 = vsel %vm10453_vm5, %v10031_v49, %v13496_v15  ;;  %v1666_v13 = vrot.slane %v10041_v58, 5  ;;  %v1669_v35 = vrot.slane %v10050_v63, 5 }
  0x66   : > { %v8150_v37 = vcombine.low %v1653_v44, %v1656_v12  ;;  %v10493_v10 = vcombine.low %v1660_v16, %v1663_v26  ;;  %v8137_v24 = vrot.slane %v10056_v4, 9  ;;  %8902 = vmatprep.mubr.bf16.mxu1 %v10491_v62  ;;  %v1251_v32 = vsel %vm10019_vm2, %v1246_v8, %v1250_v3  ;;  %v9736_v12 = vld [vmem:[%s13257_s2 + $0x128] sm:$0xff]  }
  0x67   : > { %v1256_v49 = vrot.slane %v1255_v7, 4  ;;  %v1673_v57 = vrot.slane %v10059_v5, 5  ;;  %v1676_v20 = vrot.slane %v10066_v14, 5  ;;  %v1667_v54 = vsel %vm10453_vm5, %v8136_v19, %v1666_v13 }
  0x68   : > { %8922 = vmatprep.mubr.bf16.mxu0 %v8150_v37  ;;  %v1668_v6 = vrot.slane %v1666_v13, 4  ;;  %v8138_v58 = vrot.slane %v10092_v45, 9  ;;  %v1680_v63 = vrot.slane %v10097_v50, 5  ;;  %v1683_v44 = vrot.slane %v10108_v56, 5  ;;  %v9734_v45 = vld [vmem:[%s13257_s2 + $0x130] sm:$0xff]  }
  0x69   : > { %v1261_v4 = vsel %vm10019_vm2, %v1256_v49, %v1260_v27  ;;  %v1674_v33 = vsel %vm10453_vm5, %v8137_v24, %v1673_v57  ;;  %v1675_v34 = vrot.slane %v1673_v57, 4  ;;  %v8139_v56 = vrot.slane %v10111_v59, 9 }
  0x6a   : > { %v10512_v5 = vcombine.low %v1251_v32, %v1261_v4  ;;  %v1670_v14 = vsel %vm10453_vm5, %v1668_v6, %v1669_v35  ;;  %v1681_v50 = vsel %vm10453_vm5, %v8138_v58, %v1680_v63  ;;  %v1682_v48 = vrot.slane %v1680_v63, 4  ;;  %v9740_v4 = vld [vmem:[%s13257_s2 + $0x118] sm:$0xff]  }
  0x6b   : > { %v10521_v52 = vcombine.low %v1667_v54, %v1670_v14  ;;  %v1677_v18 = vsel %vm10453_vm5, %v1675_v34, %v1676_v20  ;;  %v1687_v3 = vrot.slane %v10116_v2, 5  ;;  %v1690_v55 = vrot.slane %v10143_v46, 5  ;;  %v9739_v54 = vld [vmem:[%s13257_s2 + $0x160] sm:$0xff]   ;;  %v9741_v14 = vld [vmem:[%s13257_s2 + $0x158] sm:$0xff]  }
  0x6c   : > { %8903 = vmatmul.mubr.bf16.gmra.mxu1 %v10512_v5  ;;  %8923 = vmatmul.mubr.bf16.vlgmr.msra.gmra.mxu0 %v10493_v10  ;;  %v10529_v27 = vcombine.low %v1674_v33, %v1677_v18  ;;  %v1684_v16 = vsel %vm10453_vm5, %v1682_v48, %v1683_v44  ;;  %v1694_v15 = vrot.slane %v10161_v0, 5  ;;  %v8141_v46 = vrot.slane %v10189_v40, 9  ;;  %v9735_v0 = vld [vmem:[%s13257_s2 + $0x170] sm:$0xff]   ;;  %v13499_v34 = vld [vmem:[#allocation7_spill] sm:$0xff] }
  0x6d   : > { %8970 = vmatprep.mubr.bf16.mxu1 %v10003_v30  ;;  %9003 = vmatpush3.bf16.msra.mxu0 %v10295_v36  ;;  %v10536_v11 = vcombine.low %v1681_v50, %v1684_v16  ;;  %v1688_v59 = vsel %vm10453_vm5, %v8139_v56, %v1687_v3  ;;  %v1689_v2 = vrot.slane %v1687_v3, 4  ;;  %v1701_v30 = vrot.slane %v10193_v51, 5  ;;  %v13498_v33 = vld [vmem:[#allocation5_spill] sm:$0xff]  ;;  %v13501_v48 = vld [vmem:[#allocation23_spill] sm:$0xff]  ;;  %v13502_v3 = vld [vmem:[#allocation16_spill] sm:$0xff] }
  0x6e   : > { %8926 = vmatprep.mubr.bf16.mxu0 %v10521_v52  ;;  %9004 = vmatprep.subr.bf16.mxu0 %v9734_v45  ;;  %v1704_v36 = vrot.slane %v10208_v22, 5  ;;  %v8140_v40 = vrot.slane %v10152_v53, 9  ;;  %v8143_v51 = vrot.slane %v10249_v21, 9  ;;  %v1715_v22 = vrot.slane %v10257_v47, 5  ;;  %v9738_v21 = vld [vmem:[%s13257_s2 + $0x120] sm:$0xff]  }
  0x6f   : > { %v1691_v26 = vsel %vm10453_vm5, %v1689_v2, %v1690_v55  ;;  %v1702_v8 = vsel %vm10453_vm5, %v8141_v46, %v1701_v30  ;;  %v1703_v7 = vrot.slane %v1701_v30, 4  ;;  %v1696_v37 = vrot.slane %v1694_v15, 4  ;;  %v9743_v55 = vld [vmem:[%s13257_s2 + $0x150] sm:$0xff]   ;;  %v13504_v30 = vld [vmem:[#allocation20_spill] sm:$0xff] }
  0x70   : > { %v10550_v19 = vcombine.low %v1688_v59, %v1691_v26  ;;  %v1697_v13 = vrot.slane %v10175_v17, 5  ;;  %v1716_v32 = vsel %vm10453_vm5, %v8143_v51, %v1715_v22  ;;  %v1717_v49 = vrot.slane %v1715_v22, 4  ;;  %v13503_v59 = vld [vmem:[#allocation28_spill] sm:$0xff]  ;;  %v13505_v26 = vld [vmem:[#allocation21_spill] sm:$0xff]  ;;  %v13507_v51 = vld [vmem:[#allocation26_spill] sm:$0xff] }
  0x71   : > { %9005 = vmatpush3.bf16.msra.mxu0 %v9734_v45  ;;  %v1705_v35 = vsel %vm10453_vm5, %v1703_v7, %v1704_v36  ;;  %v1718_v57 = vrot.slane %v10265_v61, 5  ;;  %v9737_v61 = vld [vmem:[%s13257_s2 + $0x168] sm:$0xff]   ;;  %v1708_v17 = vrot.slane %v10218_v29, 5  ;;  %v8142_v6 = vrot.slane %v10211_v28, 9  ;;  %v9742_v28 = vld [vmem:[%s13257_s2 + $0x110] sm:$0xff]   ;;  %v13500_v45 = vld [vmem:[#allocation18_spill] sm:$0xff] }
  0x72   : > { %9006 = vmatprep.subr.bf16.mxu0 %v9736_v12  ;;  %v10563_v24 = vcombine.low %v1702_v8, %v1705_v35  ;;  %v1698_v20 = vsel %vm10453_vm5, %v1696_v37, %v1697_v13  ;;  %v1711_v63 = vrot.slane %v10242_v23, 5  ;;  %v1722_v50 = vrot.slane %v13500_v45, 5  ;;  %v13506_v7 = vld [vmem:[#allocation25_spill] sm:$0xff] }
  0x73   : > { %v1719_v53 = vsel %vm10453_vm5, %v1717_v49, %v1718_v57  ;;  %v1710_v29 = vrot.slane %v1708_v17, 4  ;;  %v1709_v23 = vsel %vm10453_vm5, %v8142_v6, %v1708_v17  ;;  %v1729_v18 = vrot.slane %v13501_v48, 5  ;;  %v13508_v37 = vld [vmem:[#allocation9_spill] sm:$0xff]  ;;  %v13511_v57 = vld [vmem:[#allocation11_spill] sm:$0xff] }
  0x74   : > { %8971 = vmatmul.mubr.bf16.vlgmr.msra.gmra.mxu1 %v10045_v60  ;;  %8927 = vmatmul.mubr.bf16.gmra.mxu0 %v10529_v27  ;;  %v10582_v47 = vcombine.low %v1716_v32, %v1719_v53  ;;  %v8144_v16 = vrot.slane %v13502_v3, 9  ;;  %v1736_v2 = vrot.slane %v13503_v59, 5  ;;  %v1724_v46 = vrot.slane %v1722_v50, 4  ;;  %v13509_v13 = vld [vmem:[#allocation29_spill] sm:$0xff]  ;;  %v13510_v32 = vld [vmem:[#allocation31_spill] sm:$0xff] }
  0x75   : > { %9051 = vmatpush3.bf16.msra.mxu1 %v10318_v9  ;;  %8974 = vmatprep.mubr.bf16.mxu1 %v10076_v25  ;;  %v1695_v9 = vsel %vm10453_vm5, %v8140_v40, %v1694_v15  ;;  %v1712_v44 = vsel %vm10453_vm5, %v1710_v29, %v1711_v63  ;;  %v9744_v15 = vld [vmem:[%s13257_s2 + $0x108] sm:$0xff]   ;;  %v1725_v36 = vrot.slane %v13504_v30, 5  ;;  %v8145_v8 = vrot.slane %v13505_v26, 9  ;;  %v9747_v17 = vld [vmem:[%s13257_s2 + $0x100] sm:$0xff]  }
  0x76   : > { %9052 = vmatprep.subr.bf16.mxu1 %v9735_v0  ;;  %8930 = vmatprep.mubr.bf16.mxu0 %v10536_v11  ;;  %13497 = vst [vmem:[#allocation43_spill] sm:$0xff] %v10582_v47  ;;  %v10592_v58 = vcombine.low %v1695_v9, %v1698_v20  ;;  %v10614_v56 = vcombine.low %v1709_v23, %v1712_v44  ;;  %v1731_v40 = vrot.slane %v1729_v18, 4  ;;  %v8146_v22 = vrot.slane %v13507_v51, 9  ;;  %v9749_v23 = vld [vmem:[%s13257_s2 + $0x1b8] sm:$0xff]   ;;  %v13516_v48 = vld [vmem:[#allocation15_spill] sm:$0xff] }
  0x77   : > { %9007 = vmatpush3.bf16.msra.mxu0 %v9736_v12  ;;  %v1743_v12 = vrot.slane %v10373_v38, 5  ;;  %v1739_v35 = vrot.slane %v13509_v13, 5  ;;  %v8147_v49 = vrot.slane %v13510_v32, 9  ;;  %v1723_v9 = vsel %vm10453_vm5, %v8144_v16, %v1722_v50  ;;  %v13526_v38 = vld [vmem:[#allocation33_spill] sm:$0xff] }
  0x78   : > { %9008 = vmatprep.subr.bf16.mxu0 %v9738_v21  ;;  %v1726_v20 = vsel %vm10453_vm5, %v1724_v46, %v1725_v36  ;;  %v1750_v29 = vrot.slane %v10401_v1, 5  ;;  %v8148_v1 = vrot.slane %v10396_v41, 9  ;;  %v1757_v50 = vrot.slane %v10427_v43, 5  ;;  %v13520_v46 = vld [vmem:[#allocation38_spill] sm:$0xff]  ;;  %v13521_v36 = vld [vmem:[#allocation40_spill] sm:$0xff] }
  0x79   : > { %9053 = vmatpush3.bf16.msra.mxu1 %v9735_v0  ;;  %v1732_v0 = vrot.slane %v13506_v7, 5  ;;  %v1745_v53 = vrot.slane %v1743_v12, 4  ;;  %v10649_v63 = vcombine.low %v1723_v9, %v1726_v20  ;;  %v1730_v3 = vsel %vm10453_vm5, %v8145_v8, %v1729_v18  ;;  %v13522_v8 = vld [vmem:[#allocation24_spill] sm:$0xff]  ;;  %v9751_v20 = vld [vmem:[%s13257_s2 + $0x1b0] sm:$0xff]  }
  0x7a   : > { %9054 = vmatprep.subr.bf16.mxu1 %v9737_v61  ;;  %v1752_v44 = vrot.slane %v1750_v29, 4  ;;  %v1737_v41 = vsel %vm10453_vm5, %v8146_v22, %v1736_v2  ;;  %v8149_v30 = vrot.slane %v13520_v46, 9  ;;  %v1760_v26 = vrot.slane %v13521_v36, 5  ;;  %v13536_v46 = vld [vmem:[#allocation22_spill] sm:$0xff]  ;;  %v9763_v36 = vld [vmem:[%s13257_s2 + $0x180] sm:$0xff]  }
  0x7b   : > { %9009 = vmatpush3.bf16.msra.mxu0 %v9738_v21  ;;  %v1738_v21 = vrot.slane %v1736_v2, 4  ;;  %13513 = vst [vmem:[#allocation5_spill] sm:$0xff] %v10649_v63  ;;  %v1733_v16 = vsel %vm10453_vm5, %v1731_v40, %v1732_v0  ;;  %v1759_v2 = vrot.slane %v1757_v50, 4  ;;  %v1744_v7 = vsel %vm10453_vm5, %v8147_v49, %v1743_v12 }
  0x7c   : > { %8975 = vmatmul.mubr.bf16.gmra.mxu1 %v13498_v33  ;;  %8931 = vmatmul.mubr.bf16.gmra.mxu0 %v10550_v19  ;;  %v10675_v59 = vcombine.low %v1730_v3, %v1733_v16  ;;  %v1751_v40 = vsel %vm10453_vm5, %v8148_v1, %v1750_v29  ;;  %v1758_v12 = vsel %vm10453_vm5, %v8149_v30, %v1757_v50  ;;  %v9753_v29 = vld [vmem:[%s13257_s2 + $0x1a8] sm:$0xff]   ;;  %v9755_v1 = vld [vmem:[%s13257_s2 + $0x1a0] sm:$0xff]   ;;  %v13534_v50 = vld [vmem:[#allocation14_spill] sm:$0xff] }
  0x7d   : > { %8978 = vmatprep.mubr.bf16.mxu1 %v13499_v34  ;;  %9055 = vmatpush3.bf16.msra.mxu1 %v9737_v61  ;;  %v9745_v61 = vld [vmem:[%s13257_s2 + $0x148] sm:$0xff]   ;;  %v1740_v43 = vsel %vm10453_vm5, %v1738_v21, %v1739_v35  ;;  %v13525_v35 = vld [vmem:[#allocation30_spill] sm:$0xff]  ;;  %v1761_v32 = vsel %vm10453_vm5, %v1759_v2, %v1760_v26  ;;  %v13528_v21 = vld [vmem:[#allocation37_spill] sm:$0xff] }
  0x7e   : > { %8934 = vmatprep.mubr.bf16.mxu0 %v10592_v58  ;;  %9056 = vmatprep.subr.bf16.mxu1 %v9739_v54  ;;  %13517 = vst [vmem:[#allocation7_spill] sm:$0xff] %v10675_v59  ;;  %v10677_v18 = vcombine.low %v1737_v41, %v1740_v43  ;;  %v10707_v49 = vcombine.low %v1758_v12, %v1761_v32  ;;  %v9758_v3 = vld [vmem:[%s13257_s2 + $0x1d8] sm:$0xff]   ;;  %v9759_v16 = vld [vmem:[%s13257_s2 + $0x190] sm:$0xff]   ;;  %v9761_v43 = vld [vmem:[%s13257_s2 + $0x188] sm:$0xff]  }
  0x7f   : > { %9010 = vmatprep.subr.bf16.mxu0 %v9740_v4  ;;  %v9760_v41 = vld [vmem:[%s13257_s2 + $0x1d0] sm:$0xff]   ;;  %v13537_v30 = vld [vmem:[#allocation27_spill] sm:$0xff]  ;;  %v9762_v2 = vld [vmem:[%s13257_s2 + $0x1c8] sm:$0xff]  }
  0x80   : > { %9011 = vmatpush3.bf16.msra.mxu0 %v9740_v4  ;;  %v9748_v4 = vld [vmem:[%s13257_s2 + $0x140] sm:$0xff]   ;;  %13518 = vst [vmem:[#allocation18_spill] sm:$0xff] %v10677_v18  ;;  %13527 = vst [vmem:[#allocation28_spill] sm:$0xff] %v10707_v49 }
  0x81   : > { %9057 = vmatpush3.bf16.msra.mxu1 %v9739_v54  ;;  %9012 = vmatprep.subr.bf16.mxu0 %v9742_v28  ;;  %v13512_v54 = vld [vmem:[#allocation34_spill] sm:$0xff]  ;;  %v9764_v26 = vld [vmem:[%s13257_s2 + $0x1c0] sm:$0xff]  }
  0x82   : > { %9058 = vmatprep.subr.bf16.mxu1 %v9741_v14  ;;  %v1746_v6 = vrot.slane %v13512_v54, 5  ;;  %v13530_v54 = vld [vmem:[#allocation6_spill] sm:$0xff]  ;;  %v13539_v32 = vld [vmem:[#allocation35_spill] sm:$0xff] }
  0x84   : > { %8979 = vmatmul.mubr.bf16.gmra.mxu1 %v13508_v37  ;;  %8935 = vmatmul.mubr.bf16.gmra.mxu0 %v10563_v24  ;;  %v1747_v0 = vsel %vm10453_vm5, %v1745_v53, %v1746_v6  ;;  %v10712_v53 = vld [vmem:[%s9965_s21 + $0xc0] sm:$0xf]  ;;  %v13531_v6 = vld [vmem:[#allocation8_spill] sm:$0xff] }
  0x85   : > { %8982 = vmatprep.mubr.bf16.mxu1 %v13511_v57  ;;  %8938 = vmatprep.mubr.bf16.mxu0 %v10614_v56  ;;  %v10695_v22 = vcombine.low %v1744_v7, %v1747_v0  ;;  %v9765_v7 = vld [vmem:[%s13257_s2 + $0x238] sm:$0xff]   ;;  %v13538_v0 = vld [vmem:[#allocation32_spill] sm:$0xff] }
  0x86   : > { %9059 = vmatpush3.bf16.msra.mxu1 %v9741_v14  ;;  %9013 = vmatpush3.bf16.msra.mxu0 %v9742_v28  ;;  %v13514_v28 = vld [vmem:[#allocation13_spill] sm:$0xff]  ;;  %v13515_v14 = vld [vmem:[#allocation36_spill] sm:$0xff] }
  0x87   : > { %9060 = vmatprep.subr.bf16.mxu1 %v9743_v55  ;;  %9014 = vmatprep.subr.bf16.mxu0 %v9744_v15  ;;  %v1753_v45 = vrot.slane %v13515_v14, 5  ;;  %13523 = vst [vmem:[#allocation23_spill] sm:$0xff] %v10695_v22  ;;  %v9756_v14 = vld [vmem:[%s13257_s2 + $0x1e0] sm:$0xff]  }
  0x89   : > { %v1754_v51 = vsel %vm10453_vm5, %v1752_v44, %v1753_v45  ;;  %v13533_v44 = vld [vmem:[#allocation12_spill] sm:$0xff]  ;;  %v9757_v45 = vld [vmem:[%s13257_s2 + $0x198] sm:$0xff]  }
  0x8a   : > { %9061 = vmatpush3.bf16.msra.mxu1 %v9743_v55  ;;  %9015 = vmatpush3.bf16.msra.mxu0 %v9744_v15  ;;  %v9750_v55 = vld [vmem:[%s13257_s2 + $0x1f8] sm:$0xff]   ;;  %v13519_v15 = vld [vmem:[#allocation19_spill] sm:$0xff]  ;;  %v10697_v13 = vcombine.low %v1751_v40, %v1754_v51  ;;  %v2443_v40 = vshrl.u32 %v10712_v53, 16  ;;  %v2446_v51 = vshll.u32 %v10712_v53, 16 }
  0x8b   : > { %9062 = vmatprep.subr.bf16.mxu1 %v9745_v61  ;;  %9016 = vmatprep.subr.bf16.mxu0 %v9747_v17 }
  0x8c   : > { %8983 = vmatmul.mubr.bf16.gmra.mxu1 %v13514_v28  ;;  %8939 = vmatmul.mubr.bf16.gmra.mxu0 %v10582_v47  ;;  %13524 = vst [vmem:[#allocation16_spill] sm:$0xff] %v10697_v13 }
  0x8d   : > { %8986 = vmatprep.mubr.bf16.mxu1 %v13516_v48  ;;  %8942 = vmatprep.mubr.bf16.mxu0 %v10649_v63 }
  0x8e   : > { %9063 = vmatpush3.bf16.msra.mxu1 %v9745_v61  ;;  %9017 = vmatpush3.bf16.msra.mxu0 %v9747_v17  ;;  %v10716_v61 = vld [vmem:[%s9965_s21 + $0xc4] sm:$0xf]  ;;  %v13529_v17 = vld [vmem:[#allocation4_spill] sm:$0xff] }
  0x8f   : > { %9064 = vmatprep.subr.bf16.mxu1 %v9748_v4  ;;  %9098 = vmatprep.subr.bf16.mxu0 %v9749_v23  ;;  %v10721_v9 = vcombine.low %v10712_v53, %v10716_v61  ;;  %v2456_v12 = vshrl.u32 %v10716_v61, 16 }
  0x92   : > { %9065 = vmatpush3.bf16.msra.mxu1 %v9748_v4  ;;  %v9752_v4 = vld [vmem:[%s13257_s2 + $0x1f0] sm:$0xff]  }
  0x93   : > { %9146 = vmatprep.subr.bf16.mxu1 %v9750_v55 }
  0x94   : > { %8987 = vmatmul.mubr.bf16.gmra.mxu1 %v13519_v15  ;;  %8943 = vmatmul.mubr.bf16.gmra.mxu0 %v10675_v59 }
  0x95   : > { %8990 = vmatprep.mubr.bf16.mxu1 %v13522_v8  ;;  %8946 = vmatprep.mubr.bf16.mxu0 %v10677_v18 }
  0x9c   : > { %8991 = vmatmul.mubr.bf16.gmra.mxu1 %v13525_v35  ;;  %8947 = vmatmul.mubr.bf16.gmra.mxu0 %v10695_v22 }
  0x9d   : > { %8994 = vmatprep.mubr.bf16.mxu1 %v13526_v38  ;;  %8950 = vmatprep.mubr.bf16.mxu0 %v10697_v13 }
  0xa4   : > { %8995 = vmatmul.mubr.bf16.gmra.mxu1 %v13528_v21  ;;  %8951 = vmatmul.mubr.bf16.gmra.mxu0 %v10707_v49 }
  0xa5   : > { %8998 = vmatprep.mubr.bf16.mxu1 %v10442_v31  ;;  %9018 = vmatprep.mubr.bf16.mxu0 %v13529_v17  ;;  %v2452_v17 = vshll.u32 %v10716_v61, 16 }
  0xac   : > { %8999 = vmatmul.mubr.bf16.gmra.mxu1 %v10721_v9  ;;  %9019 = vmatmul.mubr.bf16.vlgmr.msra.gmra.mxu0 %v13530_v54 }
  0xad   : > { %9066 = vmatprep.mubr.bf16.mxu1 %v10493_v10  ;;  %9099 = vmatpush3.bf16.msra.mxu0 %v9749_v23  ;;  %v13532_v10 = vld [vmem:[#allocation10_spill] sm:$0xff]  ;;  %v9754_v23 = vld [vmem:[%s13257_s2 + $0x1e8] sm:$0xff]  }
  0xae   : > { %9022 = vmatprep.mubr.bf16.mxu0 %v13531_v6  ;;  %9100 = vmatprep.subr.bf16.mxu0 %v9751_v20 }
  0xb1   : > { %9101 = vmatpush3.bf16.msra.mxu0 %v9751_v20  ;;  %v9766_v20 = vld [vmem:[%s13258_s3 + $0x38] sm:$0xff]  }
  0xb2   : > { %9102 = vmatprep.subr.bf16.mxu0 %v9753_v29 }
  0xb4   : > { %9067 = vmatmul.mubr.bf16.vlgmr.msra.gmra.mxu1 %v10521_v52  ;;  %9023 = vmatmul.mubr.bf16.gmra.mxu0 %v13532_v10 }
  0xb5   : > { %9147 = vmatpush3.bf16.msra.mxu1 %v9750_v55  ;;  %9070 = vmatprep.mubr.bf16.mxu1 %v10529_v27  ;;  %v13535_v55 = vld [vmem:[#allocation17_spill] sm:$0xff] }
  0xb6   : > { %9148 = vmatprep.subr.bf16.mxu1 %v9752_v4  ;;  %9026 = vmatprep.mubr.bf16.mxu0 %v13533_v44 }
  0xb7   : > { %9103 = vmatpush3.bf16.msra.mxu0 %v9753_v29  ;;  %v2445_v29 = vrot.slane %v2443_v40, 4 }
  0xb8   : > { %9104 = vmatprep.subr.bf16.mxu0 %v9755_v1 }
  0xb9   : > { %9149 = vmatpush3.bf16.msra.mxu1 %v9752_v4  ;;  %v2448_v4 = vrot.slane %v2446_v51, 5 }
  0xba   : > { %9150 = vmatprep.subr.bf16.mxu1 %v9754_v23 }
  0xbb   : > { %9105 = vmatpush3.bf16.msra.mxu0 %v9755_v1  ;;  %v2454_v1 = vrot.slane %v2452_v17, 5 }
  0xbc   : > { %9071 = vmatmul.mubr.bf16.gmra.mxu1 %v10536_v11  ;;  %9027 = vmatmul.mubr.bf16.gmra.mxu0 %v13534_v50 }
  0xbd   : > { %9074 = vmatprep.mubr.bf16.mxu1 %v10550_v19  ;;  %9151 = vmatpush3.bf16.msra.mxu1 %v9754_v23  ;;  %v2458_v23 = vrot.slane %v2456_v12, 4  ;;  %v2778_v12 = vrot.slane %v10716_v61, 5 }
  0xbe   : > { %9030 = vmatprep.mubr.bf16.mxu0 %v13535_v55  ;;  %9152 = vmatprep.subr.bf16.mxu1 %v9756_v14 }
  0xbf   : > { %9106 = vmatprep.subr.bf16.mxu0 %v9757_v45 }
  0xc0   : > { %9107 = vmatpush3.bf16.msra.mxu0 %v9757_v45  ;;  %v13540_v45 = vld [vmem:[#allocation39_spill] sm:$0xff] }
  0xc1   : > { %9153 = vmatpush3.bf16.msra.mxu1 %v9756_v14  ;;  %9108 = vmatprep.subr.bf16.mxu0 %v9759_v16  ;;  %v326_v14 = vld [vmem:[%s9965_s21 + $0xc8] sm:$0x1] }
  0xc2   : > { %9154 = vmatprep.subr.bf16.mxu1 %v9758_v3 }
  0xc4   : > { %9075 = vmatmul.mubr.bf16.gmra.mxu1 %v10592_v58  ;;  %9031 = vmatmul.mubr.bf16.gmra.mxu0 %v13536_v46 }
  0xc5   : > { %9078 = vmatprep.mubr.bf16.mxu1 %v10563_v24  ;;  %9034 = vmatprep.mubr.bf16.mxu0 %v13537_v30 }
  0xc6   : > { %9155 = vmatpush3.bf16.msra.mxu1 %v9758_v3  ;;  %9109 = vmatpush3.bf16.msra.mxu0 %v9759_v16  ;;  %v13541_v3 = vld [vmem:[#allocation42_spill] sm:$0xff]  ;;  %v2449_v16 = vor.u32 %v2448_v4, %v2445_v29  ;;  %v8192_v29 = vrot.slane %v10712_v53, 9  ;;  %v2780_v4 = vrot.slane %v2778_v12, 4  ;;  %v9767_v53 = vld [vmem:[%s13257_s2 + $0x230] sm:$0xff]  }
  0xc7   : > { %9156 = vmatprep.subr.bf16.mxu1 %v9760_v41  ;;  %9110 = vmatprep.subr.bf16.mxu0 %v9761_v43 }
  0xca   : > { %9157 = vmatpush3.bf16.msra.mxu1 %v9760_v41  ;;  %9111 = vmatpush3.bf16.msra.mxu0 %v9761_v43  ;;  %v2459_v41 = vor.u32 %v2458_v23, %v2454_v1  ;;  %v2462_v43 = vshll.u32 %v326_v14, 16  ;;  %v2781_v23 = vrot.slane %v326_v14, 5 }
  0xcb   : > { %9158 = vmatprep.subr.bf16.mxu1 %v9762_v2  ;;  %9112 = vmatprep.subr.bf16.mxu0 %v9763_v36 }
  0xcc   : > { %9079 = vmatmul.mubr.bf16.gmra.mxu1 %v10614_v56  ;;  %9035 = vmatmul.mubr.bf16.gmra.mxu0 %v13538_v0  ;;  %v2464_v40 = vrot.slane %v2462_v43, 5 }
  0xcd   : > { %9082 = vmatprep.mubr.bf16.mxu1 %v10582_v47  ;;  %9038 = vmatprep.mubr.bf16.mxu0 %v13539_v32  ;;  %v11116_v47 = vld [vmem:[%s10960_s27 + $0x84] sm:$0xf] }
  0xce   : > { %9159 = vmatpush3.bf16.msra.mxu1 %v9762_v2  ;;  %9113 = vmatpush3.bf16.msra.mxu0 %v9763_v36  ;;  %v2450_v2 = vrot.slane %v2449_v16, 4  ;;  %v2460_v36 = vrot.slane %v2459_v41, 4  ;;  %v2782_v16 = vsel %vm10453_vm5, %v2780_v4, %v2781_v23  ;;  %v9771_v4 = vld [vmem:[%s13257_s2 + $0x220] sm:$0xff]   ;;  %13577 = vst [vmem:[#allocation47_spill] sm:$0xff] %v11116_v47 }
  0xcf   : > { %9160 = vmatprep.subr.bf16.mxu1 %v9764_v26  ;;  %9194 = vmatprep.subr.bf16.mxu0 %v9765_v7 }
  0xd0   : > { %v2465_v51 = vsel %vm10019_vm2, %v2460_v36, %v2464_v40 }
  0xd2   : > { %9161 = vmatpush3.bf16.msra.mxu1 %v9764_v26  ;;  %v2455_v26 = vsel %vm10019_vm2, %v2450_v2, %v2454_v1  ;;  %v2779_v1 = vsel %vm10453_vm5, %v8192_v29, %v2778_v12 }
  0xd3   : > { %9242 = vmatprep.subr.bf16.mxu1 %v9766_v20  ;;  %v10809_v17 = vcombine.low %v2455_v26, %v2465_v51  ;;  %v10820_v61 = vcombine.low %v2779_v1, %v2782_v16 }
  0xd4   : > { %9083 = vmatmul.mubr.bf16.gmra.mxu1 %v10649_v63  ;;  %9039 = vmatmul.mubr.bf16.gmra.mxu0 %v13540_v45 }
  0xd5   : > { %9086 = vmatprep.mubr.bf16.mxu1 %v10675_v59  ;;  %9042 = vmatprep.mubr.bf16.mxu0 %v13541_v3  ;;  %13542 = vst [vmem:[#allocation20_spill] sm:$0xff] %v10820_v61 }
  0xdc   : > { %9087 = vmatmul.mubr.bf16.gmra.mxu1 %v10677_v18  ;;  %9043 = vmatmul.mubr.bf16.gmra.mxu0 %v10491_v62 }
  0xdd   : > { %9090 = vmatprep.mubr.bf16.mxu1 %v10695_v22  ;;  %9046 = vmatprep.mubr.bf16.mxu0 %v10512_v5  ;;  %v10988_v22 = vld [vmem:[%s10960_s27 + $0x18] sm:$0xf] }
  0xe4   : > { %9091 = vmatmul.mubr.bf16.gmra.mxu1 %v10697_v13  ;;  %9047 = vmatmul.mubr.bf16.gmra.mxu0 %v10809_v17  ;;  %v10934_v13 = vld [vmem:[%s9965_s21 + $0xd4] sm:$0x1] }
  0xe5   : > { %9094 = vmatprep.mubr.bf16.mxu1 %v10707_v49  ;;  %9114 = vmatprep.mubr.bf16.mxu0 %v10045_v60  ;;  %v9769_v60 = vld [vmem:[%s13257_s2 + $0x228] sm:$0xff]  }
  0xec   : > { %9095 = vmatmul.mubr.bf16.gmra.mxu1 %v10820_v61  ;;  %v8828_v14 = vpop.f32.mrf.mxu0  ;;  %9115 = vmatmul.mubr.bf16.vlgmr.msra.gmra.mxu0 %v10076_v25 }
  0xed   : > { %9162 = vmatprep.mubr.bf16.mxu1 %v13530_v54  ;;  %v8876_v41 = vpop.f32.mrf.mxu1  ;;  %9195 = vmatpush3.bf16.msra.mxu0 %v9765_v7  ;;  %v9768_v7 = vld [vmem:[%s13258_s3 + $0x30] sm:$0xff]  }
  0xee   : > { %v10828_v43 = vadd.f32 %v8876_v41, %v8828_v14  ;;  %v684_v2 = vpop.f32.mrf.mxu0  ;;  %9118 = vmatprep.mubr.bf16.mxu0 %v13498_v33  ;;  %9196 = vmatprep.subr.bf16.mxu0 %v9767_v53 }
  0xef   : > { %v1440_v36 = vpop.f32.mrf.mxu1 }
  0xf0   : > { %v10834_v40 = vadd.f32 %v1440_v36, %v684_v2  ;;  %v8829_v26 = vpop.f32.mrf.mxu0  ;;  %v9773_v2 = vld [vmem:[%s13257_s2 + $0x218] sm:$0xff]  }
  0xf1   : > { %v8877_v51 = vpop.f32.mrf.mxu1  ;;  %9197 = vmatpush3.bf16.msra.mxu0 %v9767_v53 }
  0xf2   : > { %v10836_v25 = vadd.f32 %v8877_v51, %v8829_v26  ;;  %v687_v54 = vpop.f32.mrf.mxu0  ;;  %9198 = vmatprep.subr.bf16.mxu0 %v9769_v60  ;;  %v9775_v51 = vld [vmem:[%s13257_s2 + $0x210] sm:$0xff]  }
  0xf3   : > { %v1443_v33 = vpop.f32.mrf.mxu1 }
  0xf4   : > { %9163 = vmatmul.mubr.bf16.vlgmr.msra.gmra.mxu1 %v13531_v6  ;;  %v10842_v12 = vadd.f32 %v1443_v33, %v687_v54  ;;  %v8832_v29 = vpop.f32.mrf.mxu0  ;;  %9119 = vmatmul.mubr.bf16.gmra.mxu0 %v13499_v34  ;;  %v9770_v6 = vld [vmem:[%s13258_s3 + $0x28] sm:$0xff]  }
  0xf5   : > { %9243 = vmatpush3.bf16.msra.mxu1 %v9766_v20  ;;  %9166 = vmatprep.mubr.bf16.mxu1 %v13532_v10 }
  0xf6   : > { %v8880_v23 = vpop.f32.mrf.mxu1  ;;  %v700_v1 = vpop.f32.mrf.mxu0  ;;  %9244 = vmatprep.subr.bf16.mxu1 %v9768_v7  ;;  %9122 = vmatprep.mubr.bf16.mxu0 %v13508_v37  ;;  %v9772_v37 = vld [vmem:[%s13258_s3 + $0x20] sm:$0xff]  }
  0xf7   : > { %v10853_v16 = vadd.f32 %v8880_v23, %v8832_v29  ;;  %9199 = vmatpush3.bf16.msra.mxu0 %v9769_v60 }
  0xf8   : > { %v1456_v34 = vpop.f32.mrf.mxu1  ;;  %v8833_v53 = vpop.f32.mrf.mxu0  ;;  %9200 = vmatprep.subr.bf16.mxu0 %v9771_v4 }
  0xf9   : > { %v10855_v14 = vadd.f32 %v1456_v34, %v700_v1  ;;  %9245 = vmatpush3.bf16.msra.mxu1 %v9768_v7  ;;  %v9776_v1 = vld [vmem:[%s13258_s3 + $0x10] sm:$0xff]  }
  0xfa   : > { %v8881_v20 = vpop.f32.mrf.mxu1  ;;  %v703_v10 = vpop.f32.mrf.mxu0  ;;  %9246 = vmatprep.subr.bf16.mxu1 %v9770_v6 }
  0xfb   : > { %v10860_v41 = vadd.f32 %v8881_v20, %v8833_v53  ;;  %9201 = vmatpush3.bf16.msra.mxu0 %v9771_v4 }
  0xfc   : > { %9167 = vmatmul.mubr.bf16.gmra.mxu1 %v13533_v44  ;;  %v1459_v60 = vpop.f32.mrf.mxu1  ;;  %v8836_v36 = vpop.f32.mrf.mxu0  ;;  %9123 = vmatmul.mubr.bf16.gmra.mxu0 %v13511_v57  ;;  %v9774_v44 = vld [vmem:[%s13258_s3 + $0x18] sm:$0xff]  }
  0xfd   : > { %v10867_v26 = vadd.f32 %v1459_v60, %v703_v10  ;;  %9170 = vmatprep.mubr.bf16.mxu1 %v13534_v50  ;;  %9247 = vmatpush3.bf16.msra.mxu1 %v9770_v6  ;;  %v9777_v6 = vld [vmem:[%s13257_s2 + $0x208] sm:$0xff]  }
  0xfe   : > { %v8884_v54 = vpop.f32.mrf.mxu1  ;;  %v716_v7 = vpop.f32.mrf.mxu0  ;;  %9126 = vmatprep.mubr.bf16.mxu0 %v13514_v28  ;;  %9248 = vmatprep.subr.bf16.mxu1 %v9772_v37 }
  0xff   : > { %v10877_v33 = vadd.f32 %v8884_v54, %v8836_v36  ;;  %9202 = vmatprep.subr.bf16.mxu0 %v9773_v2 }
 0x100   : > { %v1472_v57 = vpop.f32.mrf.mxu1  ;;  %v8837_v29 = vpop.f32.mrf.mxu0  ;;  %9203 = vmatpush3.bf16.msra.mxu0 %v9773_v2  ;;  %v10902_v2 = vld [vmem:[%s9965_s21 + $0xd0] sm:$0xf] }
 0x101   : > { %v10879_v50 = vadd.f32 %v1472_v57, %v716_v7  ;;  %9249 = vmatpush3.bf16.msra.mxu1 %v9772_v37  ;;  %9204 = vmatprep.subr.bf16.mxu0 %v9775_v51  ;;  %v10896_v37 = vld [vmem:[%s9965_s21 + $0xcc] sm:$0xf]  ;;  %v3413_v57 = vshll.u32 %v10902_v2, 16 }
 0x102   : > { %v8885_v4 = vpop.f32.mrf.mxu1  ;;  %v719_v23 = vpop.f32.mrf.mxu0  ;;  %9250 = vmatprep.subr.bf16.mxu1 %v9774_v44  ;;  %v3404_v54 = vshrl.u32 %v10896_v37, 16  ;;  %v3407_v7 = vshll.u32 %v10896_v37, 16 }
 0x103   : > { %v10881_v28 = vadd.f32 %v8885_v4, %v8837_v29  ;;  %v9781_v4 = vld [vmem:[%s13258_s3] sm:$0xff]   ;;  %v10929_v61 = vrot.slane %v3413_v57, 5 }
 0x104   : > { %9171 = vmatmul.mubr.bf16.gmra.mxu1 %v13535_v55  ;;  %v1475_v34 = vpop.f32.mrf.mxu1  ;;  %v8840_v53 = vpop.f32.mrf.mxu0  ;;  %9127 = vmatmul.mubr.bf16.gmra.mxu0 %v13516_v48  ;;  %v9778_v55 = vld [vmem:[%s13258_s3 + $0x8] sm:$0xff]   ;;  %v9780_v48 = vld [vmem:[%s13257_s2 + $0x200] sm:$0xff]  }
 0x105   : > { %v10891_v20 = vadd.f32 %v1475_v34, %v719_v23  ;;  %9174 = vmatprep.mubr.bf16.mxu1 %v13536_v46  ;;  %9130 = vmatprep.mubr.bf16.mxu0 %v13519_v15  ;;  %v10921_v23 = vld [vmem:[%s13258_s3 + $0x78] sm:$0xff]  }
 0x106   : > { %v732_v10 = vpop.f32.mrf.mxu0  ;;  %9251 = vmatpush3.bf16.msra.mxu1 %v9774_v44  ;;  %9205 = vmatpush3.bf16.msra.mxu0 %v9775_v51  ;;  %v8888_v46 = vpop.f32.mrf.mxu1  ;;  %v3417_v44 = vshrl.u32 %v10902_v2, 16 }
 0x107   : > { %9252 = vmatprep.subr.bf16.mxu1 %v9776_v1  ;;  %9206 = vmatprep.subr.bf16.mxu0 %v9777_v6  ;;  %v10907_v15 = vadd.f32 %v8888_v46, %v8840_v53  ;;  %v3406_v46 = vrot.slane %v3404_v54, 4 }
 0x108   : > { %v8841_v60 = vpop.f32.mrf.mxu0  ;;  %v1488_v36 = vpop.f32.mrf.mxu1  ;;  %v3419_v49 = vrot.slane %v3417_v44, 4 }
 0x109   : > { %13543 = vst [vmem:[#allocation21_spill] sm:$0xff] %v10907_v15  ;;  %v10913_v29 = vadd.f32 %v1488_v36, %v732_v10  ;;  %v3409_v36 = vrot.slane %v3407_v7, 5  ;;  %v3423_v7 = vshll.u32 %v10934_v13, 16 }
 0x10a   : > { %v735_v51 = vpop.f32.mrf.mxu0  ;;  %9253 = vmatpush3.bf16.msra.mxu1 %v9776_v1  ;;  %9207 = vmatpush3.bf16.msra.mxu0 %v9777_v6  ;;  %v8889_v1 = vpop.f32.mrf.mxu1 }
 0x10b   : > { %13544 = vst [vmem:[#allocation25_spill] sm:$0xff] %v10913_v29  ;;  %9254 = vmatprep.subr.bf16.mxu1 %v9778_v55  ;;  %9208 = vmatprep.subr.bf16.mxu0 %v9780_v48  ;;  %v10925_v34 = vadd.f32 %v8889_v1, %v8841_v60 }
 0x10c   : > { %9175 = vmatmul.mubr.bf16.gmra.mxu1 %v13537_v30  ;;  %v8844_v6 = vpop.f32.mrf.mxu0  ;;  %9131 = vmatmul.mubr.bf16.gmra.mxu0 %v13522_v8  ;;  %v1491_v53 = vpop.f32.mrf.mxu1  ;;  %v10940_v8 = vld [vmem:[%s13258_s3 + $0xb8] sm:$0xff]  }
 0x10d   : > { %13545 = vst [vmem:[#allocation26_spill] sm:$0xff] %v10925_v34  ;;  %9178 = vmatprep.mubr.bf16.mxu1 %v13538_v0  ;;  %9134 = vmatprep.mubr.bf16.mxu0 %v13525_v35  ;;  %v10931_v30 = vadd.f32 %v1491_v53, %v735_v51  ;;  %v3420_v51 = vor.u32 %v3419_v49, %v10929_v61  ;;  %v3425_v53 = vrot.slane %v3423_v7, 5  ;;  %v11073_v34 = vld [vmem:[%s10960_s27 + $0x64] sm:$0xf] }
 0x10e   : > { %v748_v10 = vpop.f32.mrf.mxu0  ;;  %9255 = vmatpush3.bf16.msra.mxu1 %v9778_v55  ;;  %9209 = vmatpush3.bf16.msra.mxu0 %v9780_v48  ;;  %v8892_v35 = vpop.f32.mrf.mxu1  ;;  %v3410_v48 = vor.u32 %v3409_v36, %v3406_v46  ;;  %v10968_v46 = vld [vmem:[%s10960_s27 + $0x4] sm:$0xf]  ;;  %v10971_v36 = vld [vmem:[%s10960_s27 + $0xc] sm:$0xf]  ;;  %13566 = vst [vmem:[#allocation14_spill] sm:$0xff] %v11073_v34 }
 0x10f   : > { %13546 = vst [vmem:[#allocation9_spill] sm:$0xff] %v10931_v30  ;;  %9256 = vmatprep.subr.bf16.mxu1 %v9781_v4  ;;  %9290 = vmatprep.subr.bf16.mxu0 %v10921_v23  ;;  %v10942_v55 = vadd.f32 %v8892_v35, %v8844_v6  ;;  %v11059_v35 = vld [vmem:[%s10960_s27 + $0x58] sm:$0xf]  ;;  %v11086_v30 = vld [vmem:[%s10960_s27 + $0x6c] sm:$0xf] }
 0x110   : > { %v8845_v0 = vpop.f32.mrf.mxu0  ;;  %v1504_v60 = vpop.f32.mrf.mxu1  ;;  %13562 = vst [vmem:[#allocation6_spill] sm:$0xff] %v11059_v35  ;;  %13569 = vst [vmem:[#allocation27_spill] sm:$0xff] %v11086_v30 }
 0x111   : > { %13547 = vst [vmem:[#allocation29_spill] sm:$0xff] %v10942_v55  ;;  %v10946_v44 = vadd.f32 %v1504_v60, %v748_v10  ;;  %v10991_v60 = vld [vmem:[%s10960_s27 + $0x1c] sm:$0xf] }
 0x112   : > { %v751_v54 = vpop.f32.mrf.mxu0  ;;  %9257 = vmatpush3.bf16.msra.mxu1 %v9781_v4  ;;  %v8893_v57 = vpop.f32.mrf.mxu1  ;;  %v3411_v4 = vrot.slane %v3410_v48, 4  ;;  %v10977_v48 = vld [vmem:[%s10960_s27 + $0x10] sm:$0xf] }
 0x113   : > { %13548 = vst [vmem:[#allocation31_spill] sm:$0xff] %v10946_v44  ;;  %9338 = vmatprep.subr.bf16.mxu1 %v10940_v8  ;;  %v10951_v6 = vadd.f32 %v8893_v57, %v8845_v0  ;;  %v10998_v44 = vld [vmem:[%s10960_s27 + $0x24] sm:$0xf]  ;;  %v11030_v0 = vld [vmem:[%s10960_s27 + $0x40] sm:$0xf] }
 0x114   : > { %9179 = vmatmul.mubr.bf16.gmra.mxu1 %v13539_v32  ;;  %v8848_v1 = vpop.f32.mrf.mxu0  ;;  %9135 = vmatmul.mubr.bf16.gmra.mxu0 %v13526_v38  ;;  %v1507_v49 = vpop.f32.mrf.mxu1  ;;  %v3421_v38 = vrot.slane %v3420_v51, 4  ;;  %v3416_v57 = vsel %vm10019_vm2, %v3411_v4, %v10929_v61  ;;  %v11001_v61 = vld [vmem:[%s10960_s27 + $0x28] sm:$0xf]  ;;  %13555 = vst [vmem:[#allocation38_spill] sm:$0xff] %v11030_v0 }
 0x115   : > { %13549 = vst [vmem:[#allocation11_spill] sm:$0xff] %v10951_v6  ;;  %9182 = vmatprep.mubr.bf16.mxu1 %v13540_v45  ;;  %9138 = vmatprep.mubr.bf16.mxu0 %v13528_v21  ;;  %v10962_v10 = vadd.f32 %v1507_v49, %v751_v54  ;;  %v10965_v21 = vld [vmem:[%s10960_s27] sm:$0xf]  ;;  %v11065_v55 = vcombine.low %v10998_v44, %v11001_v61 }
 0x116   : > { %v764_v32 = vpop.f32.mrf.mxu0  ;;  %v3426_v49 = vsel %vm10019_vm2, %v3421_v38, %v3425_v53  ;;  %v11021_v53 = vld [vmem:[%s10960_s27 + $0x34] sm:$0xf] }
 0x117   : > { %13550 = vst [vmem:[#allocation34_spill] sm:$0xff] %v10962_v10  ;;  %v8896_v51 = vpop.f32.mrf.mxu1  ;;  %13564 = vst [vmem:[#allocation10_spill] sm:$0xff] %v11065_v55 }
 0x118   : > { %v8849_v45 = vpop.f32.mrf.mxu0  ;;  %v10993_v10 = vadd.f32 %v8896_v51, %v8848_v1  ;;  %v11018_v1 = vld [vmem:[%s10960_s27 + $0x30] sm:$0xf]  ;;  %v11024_v51 = vld [vmem:[%s10960_s27 + $0x3c] sm:$0xf] }
 0x119   : > { %v1520_v4 = vpop.f32.mrf.mxu1  ;;  %13553 = vst [vmem:[#allocation15_spill] sm:$0xff] %v11018_v1  ;;  %13554 = vst [vmem:[#allocation19_spill] sm:$0xff] %v11024_v51  ;;  %v11077_v63 = vcombine.low %v11018_v1, %v11021_v53 }
 0x11a   : > { %v767_v7 = vpop.f32.mrf.mxu0  ;;  %13551 = vst [vmem:[#allocation13_spill] sm:$0xff] %v10993_v10  ;;  %v11009_v54 = vadd.f32 %v1520_v4, %v764_v32  ;;  %v11043_v10 = vld [vmem:[%s10960_s27 + $0x4c] sm:$0xf] }
 0x11b   : > { %v8897_v6 = vpop.f32.mrf.mxu1  ;;  %13558 = vst [vmem:[#allocation30_spill] sm:$0xff] %v11043_v10  ;;  %13567 = vst [vmem:[#allocation17_spill] sm:$0xff] %v11077_v63 }
 0x11c   : > { %9183 = vmatmul.mubr.bf16.gmra.mxu1 %v13541_v3  ;;  %v8852_v38 = vpop.f32.mrf.mxu0  ;;  %9139 = vmatmul.mubr.bf16.gmra.mxu0 %v10442_v31  ;;  %13552 = vst [vmem:[#allocation36_spill] sm:$0xff] %v11009_v54  ;;  %v8202_v3 = vcombine.low %v10896_v37, %v10902_v2  ;;  %v11015_v31 = vcombine.low %v3416_v57, %v3426_v49  ;;  %v11056_v54 = vld [vmem:[%s10960_s27 + $0x54] sm:$0xf] }
 0x11d   : > { %9186 = vmatprep.mubr.bf16.mxu1 %v10491_v62  ;;  %9142 = vmatprep.mubr.bf16.mxu0 %v10721_v9  ;;  %v11033_v49 = vadd.f32 %v8897_v6, %v8849_v45  ;;  %v11040_v62 = vld [vmem:[%s10960_s27 + $0x48] sm:$0xf]  ;;  %v1523_v9 = vpop.f32.mrf.mxu1  ;;  %v11047_v57 = vcombine.low %v10971_v36, %v10977_v48  ;;  %v11051_v6 = vcombine.low %v10988_v22, %v10991_v60  ;;  %v11070_v45 = vld [vmem:[%s10960_s27 + $0x60] sm:$0xf] }
 0x11e   : > { %v780_v32 = vpop.f32.mrf.mxu0  ;;  %13557 = vst [vmem:[#allocation24_spill] sm:$0xff] %v11040_v62  ;;  %13561 = vst [vmem:[#allocation4_spill] sm:$0xff] %v11056_v54 }
 0x11f   : > { %13556 = vst [vmem:[#allocation40_spill] sm:$0xff] %v11033_v49  ;;  %13559 = vst [vmem:[#allocation33_spill] sm:$0xff] %v11047_v57  ;;  %v11061_v49 = vadd.f32 %v1523_v9, %v767_v7  ;;  %v8900_v4 = vpop.f32.mrf.mxu1  ;;  %v11081_v7 = vcombine.low %v11024_v51, %v11030_v0  ;;  %v11097_v0 = vld [vmem:[%s10960_s27 + $0x78] sm:$0xf]  ;;  %v11113_v51 = vld [vmem:[%s10960_s27 + $0x7c] sm:$0xf] }
 0x120   : > { %v8853_v18 = vpop.f32.mrf.mxu0  ;;  %13560 = vst [vmem:[#allocation37_spill] sm:$0xff] %v11051_v6  ;;  %13565 = vst [vmem:[#allocation12_spill] sm:$0xff] %v11070_v45  ;;  %v11091_v15 = vadd.f32 %v8900_v4, %v8852_v38  ;;  %v11106_v38 = vcombine.low %v11056_v54, %v11059_v35  ;;  %v11110_v4 = vcombine.low %v11070_v45, %v11073_v34  ;;  %v11156_v45 = vld [vmem:[%s10960_s27 + $0xa0] sm:$0xf] }
 0x121   : > { %13563 = vst [vmem:[#allocation8_spill] sm:$0xff] %v11061_v49  ;;  %13568 = vst [vmem:[#allocation22_spill] sm:$0xff] %v11081_v7  ;;  %v11089_v49 = vld [vmem:[%s10960_s27 + $0x70] sm:$0xf]  ;;  %v1536_v9 = vpop.f32.mrf.mxu1  ;;  %v11102_v7 = vcombine.low %v11040_v62, %v11043_v10  ;;  %v11143_v34 = vcombine.low %v11097_v0, %v11113_v51 }
 0x122   : > { %v783_v29 = vpop.f32.mrf.mxu0  ;;  %13570 = vst [vmem:[#allocation32_spill] sm:$0xff] %v11089_v49  ;;  %13571 = vst [vmem:[#allocation35_spill] sm:$0xff] %v11091_v15  ;;  %v11139_v1 = vcombine.low %v11086_v30, %v11089_v49  ;;  %v8220_v49 = vrot.slane %v10896_v37, 9  ;;  %v9788_v30 = vld [vmem:[%s13258_s3 + $0x70] sm:$0xff]  }
 0x123   : > { %13572 = vst [vmem:[#allocation39_spill] sm:$0xff] %v11097_v0  ;;  %13573 = vst [vmem:[#allocation42_spill] sm:$0xff] %v11102_v7  ;;  %v8901_v15 = vpop.f32.mrf.mxu1  ;;  %v4662_v0 = vshll.u32 %v10968_v46, 16 }
 0x124   : > { %9187 = vmatmul.mubr.bf16.gmra.mxu1 %v10512_v5  ;;  %v8856_v59 = vpop.f32.mrf.mxu0  ;;  %9143 = vmatmul.mubr.bf16.gmra.mxu0 %v8202_v3  ;;  %13574 = vst [vmem:[#allocation44_spill] sm:$0xff] %v11106_v38  ;;  %13575 = vst [vmem:[#allocation45_spill] sm:$0xff] %v11110_v4  ;;  %v11119_v5 = vld [vmem:[%s10960_s27 + $0x88] sm:$0xf]  ;;  %v11121_v3 = vadd.f32 %v1536_v9, %v780_v32  ;;  %v11150_v32 = vld [vmem:[%s10960_s27 + $0x94] sm:$0xf] }
 0x125   : > { %13576 = vst [vmem:[#allocation46_spill] sm:$0xff] %v11113_v51  ;;  %13578 = vst [vmem:[#allocation48_spill] sm:$0xff] %v11119_v5  ;;  %9190 = vmatprep.mubr.bf16.mxu1 %v10809_v17  ;;  %9210 = vmatprep.mubr.bf16.mxu0 %v10521_v52  ;;  %v11132_v17 = vld [vmem:[%s10960_s27 + $0x90] sm:$0xf]  ;;  %v3739_v52 = vrot.slane %v10902_v2, 5  ;;  %v11147_v35 = vcombine.low %v11116_v47, %v11119_v5  ;;  %v4686_v5 = vshll.u32 %v10977_v48, 16 }
 0x126   : > { %13579 = vst [vmem:[#allocation49_spill] sm:$0xff] %v11121_v3  ;;  %v796_v54 = vpop.f32.mrf.mxu0  ;;  %13580 = vst [vmem:[#allocation50_spill] sm:$0xff] %v11132_v17  ;;  %v11135_v3 = vadd.f32 %v8901_v15, %v8853_v18  ;;  %v11153_v9 = vld [vmem:[%s10960_s27 + $0x9c] sm:$0xf]  ;;  %v1539_v18 = vpop.f32.mrf.mxu1  ;;  %v11174_v37 = vcombine.low %v11132_v17, %v11150_v32  ;;  %v13593_v15 = vshrl.u32 %v10968_v46, 16 }
 0x127   : > { %13582 = vst [vmem:[#allocation52_spill] sm:$0xff] %v11139_v1  ;;  %13583 = vst [vmem:[#allocation53_spill] sm:$0xff] %v11143_v34  ;;  %v11162_v51 = vadd.f32 %v1539_v18, %v783_v29  ;;  %v13590_v1 = vshll.u32 %v10965_v21, 16  ;;  %v11178_v29 = vcombine.low %v11153_v9, %v11156_v45  ;;  %v3741_v18 = vrot.slane %v3739_v52, 4 }
 0x128   : > { %13581 = vst [vmem:[#allocation51_spill] sm:$0xff] %v11135_v3  ;;  %13584 = vst [vmem:[#allocation54_spill] sm:$0xff] %v11147_v35  ;;  %v8857_v2 = vpop.f32.mrf.mxu0  ;;  %v13589_v35 = vshrl.u32 %v10965_v21, 16  ;;  %v11194_v3 = vrot.slane %v4662_v0, 5  ;;  %v11211_v0 = vld [vmem:[%s10960_s27 + $0xac] sm:$0xf] }
 0x129   : > { %13585 = vst [vmem:[#allocation55_spill] sm:$0xff] %v11150_v32  ;;  %13586 = vst [vmem:[#allocation56_spill] sm:$0xff] %v11153_v9  ;;  %v4658_v62 = vrot.slane %v13590_v1, 5  ;;  %v4668_v1 = vrot.slane %v13593_v15, 4 }
 0x12a   : > { %13587 = vst [vmem:[#allocation57_spill] sm:$0xff] %v11156_v45  ;;  %13588 = vst [vmem:[#allocation58_spill] sm:$0xff] %v11162_v51  ;;  %v4655_v34 = vrot.slane %v13589_v35, 4  ;;  %v799_v10 = vpop.f32.mrf.mxu0  ;;  %v3742_v35 = vrot.slane %v10934_v13, 5  ;;  %v11192_v13 = vld [vmem:[%s10960_s27 + $0x8] sm:$0x1] }
 0x12b   : > { %13591 = vst [vmem:[#allocation59_spill] sm:$0xff] %v11174_v37  ;;  %13592 = vst [vmem:[#allocation60_spill] sm:$0xff] %v11178_v29  ;;  %v11189_v29 = vsel %vm10453_vm5, %v8220_v49, %v3739_v52  ;;  %v11208_v52 = vld [vmem:[%s10960_s27 + $0xa8] sm:$0xf]  ;;  %v4672_v9 = vshll.u32 %v11192_v13, 16 }
 0x12c   : > { %v8904_v47 = vpop.f32.mrf.mxu1  ;;  %9191 = vmatmul.mubr.bf16.gmra.mxu1 %v11015_v31  ;;  %v8924_v51 = vpop.f32.mrf.mxu0  ;;  %9211 = vmatmul.mubr.bf16.vlgmr.msra.gmra.mxu0 %v10529_v27  ;;  %v13595_v31 = vcombine.low %v10965_v21, %v10968_v46  ;;  %13596 = vst [vmem:[#allocation62_spill] sm:$0xff] %v11208_v52  ;;  %13597 = vst [vmem:[#allocation63_spill] sm:$0xff] %v11211_v0  ;;  %v4659_v17 = vor.u32 %v4658_v62, %v4655_v34  ;;  %v13599_v34 = vshll.u32 %v10971_v36, 16 }
 0x12d   : > { %v11199_v32 = vadd.f32 %v8904_v47, %v8856_v59  ;;  %v2069_v27 = vadd.f32 %v8924_v51, %v10828_v43  ;;  %9291 = vmatpush3.bf16.msra.mxu0 %v10921_v23  ;;  %9214 = vmatprep.mubr.bf16.mxu0 %v10536_v11  ;;  %v9792_v47 = vld [vmem:[%s13258_s3 + $0x68] sm:$0xff]   ;;  %v11219_v59 = vsel %vm10453_vm5, %v3741_v18, %v3742_v35  ;;  %v5423_v43 = vrot.slane %v10968_v46, 5  ;;  %v11237_v35 = vld [vmem:[%s10960_s27 + $0x14] sm:$0x1] }
 0x12e   : > { %9258 = vmatprep.mubr.bf16.mxu1 %v13595_v31  ;;  %v1552_v15 = vpop.f32.mrf.mxu1  ;;  %v1940_v37 = vpop.f32.mrf.mxu0  ;;  %9292 = vmatprep.subr.bf16.mxu0 %v9788_v30  ;;  %v13598_v23 = vshrl.u32 %v10971_v36, 16  ;;  %v4682_v62 = vrot.slane %v13599_v34, 5  ;;  %v11233_v18 = vcombine.low %v11208_v52, %v11211_v0  ;;  %v4669_v46 = vor.u32 %v4668_v1, %v11194_v3 }
 0x12f   : > { %13594 = vst [vmem:[#allocation61_spill] sm:$0xff] %v11199_v32  ;;  %v11226_v31 = vadd.f32 %v1552_v15, %v796_v54  ;;  %v2067_v11 = vadd.f32 %v1940_v37, %v10834_v40  ;;  %v13602_v54 = vshrl.u32 %v10977_v48, 16  ;;  %v11248_v49 = vrot.slane %v4659_v17, 4 }
 0x130   : > { %v4679_v51 = vrot.slane %v13598_v23, 4  ;;  %v8905_v32 = vpop.f32.mrf.mxu1  ;;  %v8925_v4 = vpop.f32.mrf.mxu0  ;;  %13601 = vst [vmem:[#allocation65_spill] sm:$0xff] %v11233_v18  ;;  %v11239_v23 = vrot.slane %v4686_v5, 5  ;;  %v9789_v5 = vld [vmem:[%s13258_s3 + $0xb0] sm:$0xff]   ;;  %v8278_v1 = vrot.slane %v10965_v21, 9  ;;  %v4696_v17 = vshll.u32 %v11237_v35, 16 }
 0x131   : > { %13600 = vst [vmem:[#allocation64_spill] sm:$0xff] %v11226_v31  ;;  %v4692_v15 = vrot.slane %v13602_v54, 4  ;;  %v11243_v40 = vadd.f32 %v8905_v32, %v8857_v2  ;;  %v2070_v37 = vadd.f32 %v8925_v4, %v10836_v25  ;;  %9293 = vmatpush3.bf16.msra.mxu0 %v9788_v30  ;;  %v5425_v54 = vrot.slane %v5423_v43, 4  ;;  %v9796_v21 = vld [vmem:[%s13258_s3 + $0x60] sm:$0xff]  }
 0x132   : > { %v1555_v45 = vpop.f32.mrf.mxu1  ;;  %v1943_v0 = vpop.f32.mrf.mxu0  ;;  %9294 = vmatprep.subr.bf16.mxu0 %v9792_v47  ;;  %v5426_v32 = vrot.slane %v11192_v13, 5  ;;  %v4683_v2 = vor.u32 %v4682_v62, %v4679_v51  ;;  %v11258_v4 = vrot.slane %v4672_v9, 5  ;;  %v11266_v13 = vrot.slane %v4669_v46, 4  ;;  %v13694_v52 = vld [vmem:[#allocation60_spill] sm:$0xff] }
 0x133   : > { %13603 = vst [vmem:[#allocation66_spill] sm:$0xff] %v11243_v40  ;;  %v11255_v25 = vadd.f32 %v1555_v45, %v799_v10  ;;  %v2068_v30 = vadd.f32 %v1943_v0, %v10842_v12  ;;  %v4693_v12 = vor.u32 %v4692_v15, %v11239_v23  ;;  %v5430_v10 = vrot.slane %v10977_v48, 5  ;;  %v9793_v0 = vld [vmem:[%s13258_s3 + $0xa8] sm:$0xff]  }
 0x134   : > { %v8972_v34 = vpop.f32.mrf.mxu1  ;;  %9259 = vmatmul.mubr.bf16.vlgmr.msra.gmra.mxu1 %v11047_v57  ;;  %v8928_v40 = vpop.f32.mrf.mxu0  ;;  %9215 = vmatmul.mubr.bf16.gmra.mxu0 %v10550_v19  ;;  %v4710_v45 = vshll.u32 %v10991_v60, 16  ;;  %v13606_v51 = vshrl.u32 %v10988_v22, 16  ;;  %v13607_v46 = vshll.u32 %v10988_v22, 16 }
 0x135   : > { %13604 = vst [vmem:[#allocation67_spill] sm:$0xff] %v11255_v25  ;;  %v11271_v9 = vadd.f32 %v8972_v34, %v2069_v27  ;;  %9339 = vmatpush3.bf16.msra.mxu1 %v10940_v8  ;;  %9262 = vmatprep.mubr.bf16.mxu1 %v11051_v6  ;;  %v2073_v19 = vadd.f32 %v8928_v40, %v10853_v16  ;;  %v11285_v8 = vld [vmem:[%s10960_s27 + $0xb4] sm:$0xf]  ;;  %v4099_v27 = vld [vmem:[%s10960_s27 + $0xb8] sm:$0xf]  ;;  %v4684_v34 = vrot.slane %v4683_v2, 4 }
 0x136   : > { %v4703_v62 = vrot.slane %v13606_v51, 4  ;;  %v4706_v48 = vrot.slane %v13607_v46, 5  ;;  %v2251_v15 = vpop.f32.mrf.mxu1  ;;  %v1956_v57 = vpop.f32.mrf.mxu0  ;;  %9340 = vmatprep.subr.bf16.mxu1 %v9789_v5  ;;  %9218 = vmatprep.mubr.bf16.mxu0 %v10592_v58  ;;  %v11290_v16 = vsel %vm10453_vm5, %v8278_v1, %v5423_v43  ;;  %v11294_v40 = vsel %vm10453_vm5, %v5425_v54, %v5426_v32 }
 0x137   : > { %13605 = vst [vmem:[#allocation68_spill] sm:$0xff] %v11271_v9  ;;  %v8279_v51 = vrot.slane %v10971_v36, 9  ;;  %v11297_v46 = vadd.f32 %v2251_v15, %v2067_v11  ;;  %v2071_v6 = vadd.f32 %v1956_v57, %v10855_v14  ;;  %9295 = vmatpush3.bf16.msra.mxu0 %v9792_v47  ;;  %v4698_v58 = vrot.slane %v4696_v17, 5  ;;  %v11312_v57 = vld [vmem:[%s10960_s27 + $0x20] sm:$0x1] }
 0x138   : > { %v5433_v9 = vrot.slane %v11237_v35, 5  ;;  %v8973_v25 = vpop.f32.mrf.mxu1  ;;  %v8929_v31 = vpop.f32.mrf.mxu0  ;;  %9296 = vmatprep.subr.bf16.mxu0 %v9796_v21  ;;  %v4694_v43 = vrot.slane %v4693_v12, 4  ;;  %v5432_v1 = vrot.slane %v5430_v10, 4  ;;  %v11301_v18 = vrot.slane %v4710_v45, 5  ;;  %v9797_v17 = vld [vmem:[%s13258_s3 + $0xa0] sm:$0xff]   ;;  %v9800_v45 = vld [vmem:[%s13258_s3 + $0x58] sm:$0xff]  }
 0x139   : > { %v13608_v54 = vshrl.u32 %v10991_v60, 16  ;;  %v11305_v36 = vadd.f32 %v8973_v25, %v2070_v37  ;;  %9341 = vmatpush3.bf16.msra.mxu1 %v9789_v5  ;;  %v2074_v11 = vadd.f32 %v8929_v31, %v10860_v41  ;;  %v11309_v14 = vcombine.low %v11285_v8, %v4099_v27 }
 0x13a   : > { %v4707_v47 = vor.u32 %v4706_v48, %v4703_v62  ;;  %v2254_v35 = vpop.f32.mrf.mxu1  ;;  %v1959_v2 = vpop.f32.mrf.mxu0  ;;  %9342 = vmatprep.subr.bf16.mxu1 %v9793_v0  ;;  %v4665_v41 = vsel %vm10019_vm2, %v11248_v49, %v11194_v3  ;;  %v4675_v31 = vsel %vm10019_vm2, %v11266_v13, %v11258_v4  ;;  %v4689_v3 = vsel %vm10019_vm2, %v4684_v34, %v11239_v23 }
 0x13b   : > { %v4716_v32 = vrot.slane %v13608_v54, 4  ;;  %13609 = vst [vmem:[#allocation69_spill] sm:$0xff] %v11309_v14  ;;  %v11328_v5 = vadd.f32 %v2254_v35, %v2068_v30  ;;  %v2072_v25 = vadd.f32 %v1959_v2, %v10867_v26  ;;  %9297 = vmatpush3.bf16.msra.mxu0 %v9796_v21  ;;  %v5431_v49 = vsel %vm10453_vm5, %v8279_v51, %v5430_v10 }
 0x13c   : > { %v8976_v4 = vpop.f32.mrf.mxu1  ;;  %9263 = vmatmul.mubr.bf16.gmra.mxu1 %v11065_v55  ;;  %v8932_v13 = vpop.f32.mrf.mxu0  ;;  %9219 = vmatmul.mubr.bf16.gmra.mxu0 %v10563_v24  ;;  %v4699_v26 = vsel %vm10019_vm2, %v4694_v43, %v4698_v58  ;;  %v5434_v30 = vsel %vm10453_vm5, %v5432_v1, %v5433_v9  ;;  %v4720_v62 = vshll.u32 %v11312_v57, 16  ;;  %v9804_v24 = vld [vmem:[%s13258_s3 + $0x50] sm:$0xff]   ;;  %v11354_v48 = vrot.slane %v4707_v47, 4  ;;  %v11491_v55 = vld [vmem:[%s10960_s27 + $0x44] sm:$0x1] }
 0x13d   : > { %v4717_v21 = vor.u32 %v4716_v32, %v11301_v18  ;;  %v11347_v23 = vadd.f32 %v8976_v4, %v2073_v19  ;;  %9266 = vmatprep.mubr.bf16.mxu1 %v11077_v63  ;;  %v2077_v10 = vadd.f32 %v8932_v13, %v10877_v33  ;;  %9343 = vmatpush3.bf16.msra.mxu1 %v9793_v0  ;;  %v5437_v15 = vrot.slane %v10991_v60, 5  ;;  %v9801_v19 = vld [vmem:[%s13258_s3 + $0x98] sm:$0xff]  }
 0x13e   : > { %v2267_v9 = vpop.f32.mrf.mxu1  ;;  %v1972_v27 = vpop.f32.mrf.mxu0  ;;  %9222 = vmatprep.mubr.bf16.mxu0 %v10614_v56  ;;  %9344 = vmatprep.subr.bf16.mxu1 %v9797_v17  ;;  %v11361_v34 = vcombine.low %v4665_v41, %v4675_v31  ;;  %v13610_v33 = vshrl.u32 %v10998_v44, 16  ;;  %v13611_v51 = vshll.u32 %v10998_v44, 16  ;;  %v4734_v43 = vshll.u32 %v11001_v61, 16 }
 0x13f   : > { %v11368_v60 = vadd.f32 %v2267_v9, %v2071_v6  ;;  %v2075_v1 = vadd.f32 %v1972_v27, %v10879_v50  ;;  %9298 = vmatprep.subr.bf16.mxu0 %v9800_v45  ;;  %v11371_v56 = vcombine.low %v4689_v3, %v4699_v26  ;;  %v8280_v54 = vrot.slane %v10988_v22, 9  ;;  %v11385_v3 = vld [vmem:[%s10960_s27 + $0x2c] sm:$0x1]  ;;  %v13614_v27 = vld [vmem:[#allocation22_spill] sm:$0xff] }
 0x140   : > { %v4727_v0 = vrot.slane %v13610_v33, 4  ;;  %v4730_v58 = vrot.slane %v13611_v51, 5  ;;  %v8977_v32 = vpop.f32.mrf.mxu1  ;;  %v8933_v47 = vpop.f32.mrf.mxu0  ;;  %9299 = vmatpush3.bf16.msra.mxu0 %v9800_v45  ;;  %v11374_v35 = vcombine.low %v5431_v49, %v5434_v30  ;;  %v4718_v2 = vrot.slane %v4717_v21, 4  ;;  %v9808_v21 = vld [vmem:[%s13258_s3 + $0x48] sm:$0xff]   ;;  %v13615_v33 = vld [vmem:[#allocation43_spill] sm:$0xff] }
 0x141   : > { %v4722_v41 = vrot.slane %v4720_v62, 5  ;;  %v5440_v31 = vrot.slane %v11312_v57, 5  ;;  %v11377_v4 = vadd.f32 %v8977_v32, %v2074_v11  ;;  %v2078_v6 = vadd.f32 %v8933_v47, %v10881_v28  ;;  %9345 = vmatpush3.bf16.msra.mxu1 %v9797_v17  ;;  %9300 = vmatprep.subr.bf16.mxu0 %v9804_v24  ;;  %v13616_v51 = vld [vmem:[#allocation15_spill] sm:$0xff] }
 0x142   : > { %13612 = vst [vmem:[#allocation70_spill] sm:$0xff] %v11374_v35  ;;  %v4713_v22 = vsel %vm10019_vm2, %v11354_v48, %v11301_v18  ;;  %v5439_v50 = vrot.slane %v5437_v15, 4  ;;  %v2270_v45 = vpop.f32.mrf.mxu1  ;;  %v1975_v49 = vpop.f32.mrf.mxu0  ;;  %9346 = vmatprep.subr.bf16.mxu1 %v9801_v19  ;;  %v4731_v13 = vor.u32 %v4730_v58, %v4727_v0  ;;  %v11387_v26 = vrot.slane %v4734_v43, 5  ;;  %v9805_v18 = vld [vmem:[%s13258_s3 + $0x90] sm:$0xff]  }
 0x143   : > { %v13613_v11 = vshrl.u32 %v11001_v61, 16  ;;  %v4758_v28 = vshll.u32 %v11021_v53, 16  ;;  %v11394_v17 = vadd.f32 %v2270_v45, %v2072_v25  ;;  %v2076_v30 = vadd.f32 %v1975_v49, %v10891_v20  ;;  %v13621_v45 = vld [vmem:[#allocation5_spill] sm:$0xff] }
 0x144   : > { %v5438_v62 = vsel %vm10453_vm5, %v8280_v54, %v5437_v15  ;;  %v5444_v48 = vrot.slane %v11001_v61, 5  ;;  %v8980_v9 = vpop.f32.mrf.mxu1  ;;  %9267 = vmatmul.mubr.bf16.gmra.mxu1 %v13614_v27  ;;  %v8936_v25 = vpop.f32.mrf.mxu0  ;;  %9223 = vmatmul.mubr.bf16.gmra.mxu0 %v13615_v33  ;;  %v4723_v20 = vsel %vm10019_vm2, %v4718_v2, %v4722_v41  ;;  %v4744_v0 = vshll.u32 %v11385_v3, 16  ;;  %v13620_v61 = vld [vmem:[#allocation21_spill] sm:$0xff] }
 0x145   : > { %v11391_v57 = vrot.slane %v13613_v11, 4  ;;  %v13617_v58 = vshrl.u32 %v13616_v51, 16  ;;  %v13618_v32 = vshll.u32 %v13616_v51, 16  ;;  %v11415_v15 = vadd.f32 %v8980_v9, %v2077_v10  ;;  %9270 = vmatprep.mubr.bf16.mxu1 %v11102_v7  ;;  %9226 = vmatprep.mubr.bf16.mxu0 %v13621_v45  ;;  %v13629_v7 = vld [vmem:[#allocation38_spill] sm:$0xff] }
 0x146   : > { %v2081_v54 = vadd.f32 %v8936_v25, %v13620_v61  ;;  %v5441_v49 = vsel %vm10453_vm5, %v5439_v50, %v5440_v31  ;;  %v8281_v2 = vrot.slane %v10998_v44, 9  ;;  %v2283_v41 = vpop.f32.mrf.mxu1  ;;  %v1988_v11 = vpop.f32.mrf.mxu0  ;;  %9347 = vmatpush3.bf16.msra.mxu1 %v9801_v19  ;;  %9301 = vmatpush3.bf16.msra.mxu0 %v9804_v24  ;;  %v11423_v33 = vrot.slane %v4731_v13, 4  ;;  %v13624_v31 = vld [vmem:[#allocation25_spill] sm:$0xff]  ;;  %v9809_v44 = vld [vmem:[%s13258_s3 + $0x88] sm:$0xff]   ;;  %v9812_v24 = vld [vmem:[%s13258_s3 + $0x40] sm:$0xff]  }
 0x147   : > { %v4751_v43 = vrot.slane %v13617_v58, 4  ;;  %v4754_v47 = vrot.slane %v13618_v32, 5  ;;  %13619 = vst [vmem:[#allocation43_spill] sm:$0xff] %v11415_v15  ;;  %v4741_v10 = vor.u32 %v11391_v57, %v11387_v26  ;;  %v11427_v9 = vrot.slane %v4758_v28, 5  ;;  %9348 = vmatprep.subr.bf16.mxu1 %v9805_v18  ;;  %9302 = vmatprep.subr.bf16.mxu0 %v9808_v21  ;;  %v11442_v57 = vld [vmem:[%s10960_s27 + $0x38] sm:$0x1] }
 0x148   : > { %v13622_v25 = vshrl.u32 %v11021_v53, 16  ;;  %v11431_v32 = vadd.f32 %v2283_v41, %v2075_v1  ;;  %v2079_v50 = vadd.f32 %v1988_v11, %v13624_v31  ;;  %v5446_v19 = vrot.slane %v5444_v48, 4  ;;  %v8981_v28 = vpop.f32.mrf.mxu1  ;;  %v8937_v1 = vpop.f32.mrf.mxu0  ;;  %v13628_v31 = vld [vmem:[#allocation26_spill] sm:$0xff] }
 0x149   : > { %v5447_v13 = vrot.slane %v11385_v3, 5  ;;  %v11444_v61 = vcombine.low %v4713_v22, %v4723_v20  ;;  %v11446_v45 = vcombine.low %v5438_v62, %v5441_v49  ;;  %v11448_v41 = vrot.slane %v4744_v0, 5  ;;  %v13637_v22 = vld [vmem:[#allocation45_spill] sm:$0xff] }
 0x14a   : > { %v4764_v58 = vrot.slane %v13622_v25, 4  ;;  %13623 = vst [vmem:[#allocation15_spill] sm:$0xff] %v11431_v32  ;;  %v4755_v11 = vor.u32 %v4754_v47, %v4751_v43  ;;  %v11450_v25 = vadd.f32 %v8981_v28, %v2078_v6  ;;  %v2082_v12 = vadd.f32 %v8937_v1, %v13628_v31  ;;  %v2286_v27 = vpop.f32.mrf.mxu1  ;;  %v1991_v63 = vpop.f32.mrf.mxu0  ;;  %9349 = vmatpush3.bf16.msra.mxu1 %v9805_v18  ;;  %v9813_v18 = vld [vmem:[%s13258_s3 + $0x80] sm:$0xff]  }
 0x14b   : > { %13625 = vst [vmem:[#allocation21_spill] sm:$0xff] %v11444_v61  ;;  %13626 = vst [vmem:[#allocation5_spill] sm:$0xff] %v11446_v45  ;;  %v5445_v37 = vsel %vm10453_vm5, %v8281_v2, %v5444_v48  ;;  %v4782_v3 = vshll.u32 %v13629_v7, 16  ;;  %9303 = vmatpush3.bf16.msra.mxu0 %v9808_v21  ;;  %v4768_v6 = vshll.u32 %v11442_v57, 16  ;;  %v5451_v20 = vrot.slane %v11021_v53, 5  ;;  %v13631_v48 = vld [vmem:[#allocation9_spill] sm:$0xff]  ;;  %9350 = vmatprep.subr.bf16.mxu1 %v9809_v44 }
 0x14c   : > { %13627 = vst [vmem:[#allocation25_spill] sm:$0xff] %v11450_v25  ;;  %v4765_v62 = vor.u32 %v4764_v58, %v11427_v9  ;;  %v11463_v0 = vadd.f32 %v2286_v27, %v2076_v30  ;;  %v2080_v43 = vadd.f32 %v1991_v63, %v13631_v48  ;;  %9304 = vmatprep.subr.bf16.mxu0 %v9812_v24  ;;  %v11472_v21 = vld [vmem:[%s13258_s3 + $0xf8] sm:$0xff]   ;;  %v4742_v47 = vrot.slane %v4741_v10, 4  ;;  %v8984_v30 = vpop.f32.mrf.mxu1  ;;  %v8940_v63 = vpop.f32.mrf.mxu0  ;;  %v13632_v27 = vld [vmem:[#allocation7_spill] sm:$0xff] }
 0x14d   : > { %v5448_v53 = vsel %vm10453_vm5, %v5446_v19, %v5447_v13  ;;  %9271 = vmatmul.mubr.bf16.gmra.mxu1 %v11106_v38  ;;  %9227 = vmatmul.mubr.bf16.gmra.mxu0 %v13632_v27  ;;  %v11478_v49 = vrot.slane %v4755_v11, 4  ;;  %v8282_v2 = vrot.slane %v13616_v51, 9  ;;  %v13633_v58 = vld [vmem:[#allocation19_spill] sm:$0xff]  ;;  %v11485_v10 = vadd.f32 %v8984_v30, %v2081_v54  ;;  %v13638_v19 = vld [vmem:[#allocation29_spill] sm:$0xff]  ;;  %v13639_v38 = vld [vmem:[#allocation18_spill] sm:$0xff] }
 0x14e   : > { %13630 = vst [vmem:[#allocation26_spill] sm:$0xff] %v11463_v0  ;;  %v13634_v28 = vshrl.u32 %v13633_v58, 16  ;;  %v13635_v31 = vshll.u32 %v13633_v58, 16  ;;  %9274 = vmatprep.mubr.bf16.mxu1 %v13637_v22  ;;  %v2085_v13 = vadd.f32 %v8940_v63, %v13638_v19  ;;  %9230 = vmatprep.mubr.bf16.mxu0 %v13639_v38  ;;  %v11493_v11 = vrot.slane %v4782_v3, 5  ;;  %v2299_v0 = vpop.f32.mrf.mxu1  ;;  %v13642_v63 = vld [vmem:[#allocation31_spill] sm:$0xff]  ;;  %v11505_v3 = vld [vmem:[%s13258_s3 + $0x138] sm:$0xff]  }
 0x14f   : > { %13636 = vst [vmem:[#allocation38_spill] sm:$0xff] %v11485_v10  ;;  %v13640_v51 = vshrl.u32 %v13629_v7, 16  ;;  %9351 = vmatpush3.bf16.msra.mxu1 %v9809_v44  ;;  %9305 = vmatpush3.bf16.msra.mxu0 %v9812_v24  ;;  %v4770_v54 = vrot.slane %v4768_v6, 5  ;;  %v5453_v30 = vrot.slane %v5451_v20, 4  ;;  %v5454_v22 = vrot.slane %v11442_v57, 5  ;;  %v13643_v24 = vld [vmem:[#allocation30_spill] sm:$0xff] }
 0x150   : > { %v4775_v1 = vrot.slane %v13634_v28, 4  ;;  %v4778_v48 = vrot.slane %v13635_v31, 5  ;;  %v2004_v28 = vpop.f32.mrf.mxu0  ;;  %v4766_v31 = vrot.slane %v4765_v62, 4  ;;  %v11498_v10 = vadd.f32 %v2299_v0, %v2079_v50  ;;  %9352 = vmatprep.subr.bf16.mxu1 %v9813_v18  ;;  %9386 = vmatprep.subr.bf16.mxu0 %v11472_v21  ;;  %v8985_v6 = vpop.f32.mrf.mxu1 }
 0x151   : > { %v4788_v27 = vrot.slane %v13640_v51, 4  ;;  %v2083_v38 = vadd.f32 %v2004_v28, %v13642_v63  ;;  %v4747_v44 = vsel %vm10019_vm2, %v4742_v47, %v11448_v41  ;;  %v4806_v62 = vshll.u32 %v13643_v24, 16  ;;  %v13646_v63 = vld [vmem:[#allocation11_spill] sm:$0xff] }
 0x152   : > { %13641 = vst [vmem:[#allocation9_spill] sm:$0xff] %v11498_v10  ;;  %v8941_v57 = vpop.f32.mrf.mxu0  ;;  %v11511_v50 = vcombine.low %v5445_v37, %v5448_v53  ;;  %v5452_v0 = vsel %vm10453_vm5, %v8282_v2, %v5451_v20  ;;  %v4779_v19 = vor.u32 %v4778_v48, %v4775_v1  ;;  %v4792_v51 = vshll.u32 %v11491_v55, 16  ;;  %v2302_v25 = vpop.f32.mrf.mxu1 }
 0x153   : > { %v11516_v28 = vadd.f32 %v8985_v6, %v2082_v12  ;;  %v2086_v10 = vadd.f32 %v8941_v57, %v13646_v63  ;;  %v4761_v41 = vsel %vm10019_vm2, %v11478_v49, %v11427_v9  ;;  %v4789_v47 = vor.u32 %v4788_v27, %v11493_v11  ;;  %9353 = vmatpush3.bf16.msra.mxu1 %v9813_v18  ;;  %v13647_v12 = vld [vmem:[#allocation24_spill] sm:$0xff]  ;;  %v13651_v9 = vld [vmem:[#allocation34_spill] sm:$0xff]  ;;  %v13654_v63 = vld [vmem:[#allocation23_spill] sm:$0xff] }
 0x154   : > { %13644 = vst [vmem:[#allocation7_spill] sm:$0xff] %v11511_v50  ;;  %v2007_v37 = vpop.f32.mrf.mxu0  ;;  %v4771_v20 = vsel %vm10019_vm2, %v4766_v31, %v4770_v54  ;;  %v5455_v53 = vsel %vm10453_vm5, %v5453_v30, %v5454_v22  ;;  %v13648_v2 = vshrl.u32 %v13647_v12, 16  ;;  %v13649_v48 = vshll.u32 %v13647_v12, 16  ;;  %9434 = vmatprep.subr.bf16.mxu1 %v11505_v3  ;;  %v8988_v54 = vpop.f32.mrf.mxu1  ;;  %v13653_v22 = vld [vmem:[#allocation52_spill] sm:$0xff] }
 0x155   : > { %13645 = vst [vmem:[#allocation19_spill] sm:$0xff] %v11516_v28  ;;  %v11532_v57 = vadd.f32 %v2302_v25, %v2080_v43  ;;  %v2084_v49 = vadd.f32 %v2007_v37, %v13651_v9  ;;  %v11536_v18 = vrot.slane %v4806_v62, 5  ;;  %v13652_v27 = vshrl.u32 %v13643_v24, 16  ;;  %9275 = vmatmul.mubr.bf16.gmra.mxu1 %v13653_v22  ;;  %9231 = vmatmul.mubr.bf16.gmra.mxu0 %v13654_v63  ;;  %v13659_v22 = vld [vmem:[#allocation13_spill] sm:$0xff]  ;;  %v13660_v63 = vld [vmem:[#allocation16_spill] sm:$0xff] }
 0x156   : > { %v4799_v1 = vrot.slane %v13648_v2, 4  ;;  %v4802_v6 = vrot.slane %v13649_v48, 5  ;;  %v8944_v30 = vpop.f32.mrf.mxu0  ;;  %v13655_v25 = vsel %vm10019_vm2, %v11423_v33, %v11387_v26  ;;  %v4780_v37 = vrot.slane %v4779_v19, 4  ;;  %v11551_v48 = vld [vmem:[%s10960_s27 + $0x50] sm:$0x1]  ;;  %9234 = vmatprep.mubr.bf16.mxu0 %v13660_v63  ;;  %v2315_v26 = vpop.f32.mrf.mxu1 }
 0x157   : > { %13650 = vst [vmem:[#allocation29_spill] sm:$0xff] %v11532_v57  ;;  %v4812_v31 = vrot.slane %v13652_v27, 4  ;;  %v11547_v43 = vcombine.low %v13655_v25, %v4747_v44  ;;  %v4794_v2 = vrot.slane %v4792_v51, 5  ;;  %v8283_v62 = vrot.slane %v13633_v58, 9  ;;  %v13658_v27 = vld [vmem:[#allocation53_spill] sm:$0xff] }
 0x158   : > { %v11553_v9 = vadd.f32 %v8988_v54, %v2085_v13  ;;  %9278 = vmatprep.mubr.bf16.mxu1 %v13658_v27  ;;  %v2089_v57 = vadd.f32 %v8944_v30, %v13659_v22  ;;  %v4790_v28 = vrot.slane %v4789_v47, 4  ;;  %v5458_v32 = vrot.slane %v13629_v7, 5  ;;  %v2020_v33 = vpop.f32.mrf.mxu0  ;;  %v13664_v54 = vld [vmem:[#allocation36_spill] sm:$0xff]  ;;  %v8989_v47 = vpop.f32.mrf.mxu1 }
 0x159   : > { %13656 = vst [vmem:[#allocation18_spill] sm:$0xff] %v11547_v43  ;;  %v11559_v44 = vcombine.low %v4761_v41, %v4771_v20  ;;  %v11561_v19 = vcombine.low %v5452_v0, %v5455_v53  ;;  %v5461_v58 = vrot.slane %v11491_v55, 5  ;;  %v4803_v51 = vor.u32 %v4802_v6, %v4799_v1  ;;  %v13665_v41 = vld [vmem:[#allocation6_spill] sm:$0xff]  ;;  %v13667_v53 = vld [vmem:[#allocation40_spill] sm:$0xff] }
 0x15a   : > { %13657 = vst [vmem:[#allocation31_spill] sm:$0xff] %v11553_v9  ;;  %v11564_v13 = vadd.f32 %v2315_v26, %v2083_v38  ;;  %v2087_v25 = vadd.f32 %v2020_v33, %v13664_v54  ;;  %v4813_v22 = vor.u32 %v4812_v31, %v11536_v18  ;;  %v4816_v30 = vshll.u32 %v11551_v48, 16  ;;  %v8945_v63 = vpop.f32.mrf.mxu0  ;;  %v2318_v26 = vpop.f32.mrf.mxu1 }
 0x15b   : > { %13661 = vst [vmem:[#allocation30_spill] sm:$0xff] %v11559_v44  ;;  %13662 = vst [vmem:[#allocation11_spill] sm:$0xff] %v11561_v19  ;;  %v4785_v7 = vsel %vm10019_vm2, %v4780_v37, %v11493_v11  ;;  %v5459_v0 = vsel %vm10453_vm5, %v8283_v62, %v5458_v32  ;;  %v5465_v55 = vrot.slane %v13643_v24, 5  ;;  %v4830_v38 = vshll.u32 %v13665_v41, 16  ;;  %v13668_v37 = vld [vmem:[#allocation4_spill] sm:$0xff] }
 0x15c   : > { %13663 = vst [vmem:[#allocation24_spill] sm:$0xff] %v11564_v13  ;;  %v11576_v20 = vadd.f32 %v8989_v47, %v2086_v10  ;;  %v2090_v1 = vadd.f32 %v8945_v63, %v13667_v53  ;;  %v4795_v6 = vsel %vm10019_vm2, %v4790_v28, %v4794_v2  ;;  %v5460_v31 = vrot.slane %v5458_v32, 4  ;;  %v2023_v33 = vpop.f32.mrf.mxu0  ;;  %v13672_v10 = vld [vmem:[#allocation8_spill] sm:$0xff]  ;;  %v8992_v28 = vpop.f32.mrf.mxu1  ;;  %v13673_v32 = vld [vmem:[#allocation54_spill] sm:$0xff] }
 0x15d   : > { %v4804_v54 = vrot.slane %v4803_v51, 4  ;;  %v8284_v11 = vrot.slane %v13647_v12, 9  ;;  %v13669_v27 = vshrl.u32 %v13668_v37, 16  ;;  %v13670_v24 = vshll.u32 %v13668_v37, 16  ;;  %9279 = vmatmul.mubr.bf16.gmra.mxu1 %v13673_v32  ;;  %v13674_v51 = vld [vmem:[#allocation28_spill] sm:$0xff] }
 0x15e   : > { %13666 = vst [vmem:[#allocation34_spill] sm:$0xff] %v11576_v20  ;;  %v11586_v9 = vadd.f32 %v2318_v26, %v2084_v49  ;;  %v2088_v47 = vadd.f32 %v2023_v33, %v13672_v10  ;;  %v4814_v63 = vrot.slane %v4813_v22, 4  ;;  %v4818_v53 = vrot.slane %v4816_v30, 5  ;;  %v8948_v2 = vpop.f32.mrf.mxu0  ;;  %9235 = vmatmul.mubr.bf16.gmra.mxu0 %v13674_v51  ;;  %v13677_v33 = vld [vmem:[#allocation59_spill] sm:$0xff]  ;;  %v13679_v10 = vld [vmem:[#allocation20_spill] sm:$0xff] }
 0x15f   : > { %v4823_v62 = vrot.slane %v13669_v27, 4  ;;  %v4826_v13 = vrot.slane %v13670_v24, 5  ;;  %v5467_v12 = vrot.slane %v5465_v55, 4  ;;  %v5468_v20 = vrot.slane %v11551_v48, 5  ;;  %9282 = vmatprep.mubr.bf16.mxu1 %v13677_v33  ;;  %v13678_v22 = vld [vmem:[#allocation35_spill] sm:$0xff]  ;;  %9238 = vmatprep.mubr.bf16.mxu0 %v13679_v10  ;;  %v2331_v48 = vpop.f32.mrf.mxu1  ;;  %v13683_v10 = vld [vmem:[#allocation14_spill] sm:$0xff] }
 0x160   : > { %13671 = vst [vmem:[#allocation23_spill] sm:$0xff] %v11586_v9  ;;  %v11592_v27 = vrot.slane %v4830_v38, 5  ;;  %v13675_v24 = vshrl.u32 %v13665_v41, 16  ;;  %v11596_v26 = vadd.f32 %v8992_v28, %v2089_v57  ;;  %v2093_v30 = vadd.f32 %v8948_v2, %v13678_v22  ;;  %v11605_v51 = vld [vmem:[%s10960_s27 + $0x5c] sm:$0x1]  ;;  %v2036_v38 = vpop.f32.mrf.mxu0  ;;  %v13682_v22 = vld [vmem:[#allocation49_spill] sm:$0xff] }
 0x161   : > { %v11602_v9 = vcombine.low %v4785_v7, %v4795_v6  ;;  %v5462_v15 = vsel %vm10453_vm5, %v5460_v31, %v5461_v58  ;;  %v4809_v57 = vsel %vm10019_vm2, %v4804_v54, %v11536_v18  ;;  %v5466_v28 = vsel %vm10453_vm5, %v8284_v11, %v5465_v55  ;;  %v8993_v33 = vpop.f32.mrf.mxu1  ;;  %v13685_v31 = vld [vmem:[#allocation51_spill] sm:$0xff]  ;;  %v13686_v11 = vld [vmem:[#allocation12_spill] sm:$0xff] }
 0x162   : > { %v4836_v49 = vrot.slane %v13675_v24, 4  ;;  %13676 = vst [vmem:[#allocation13_spill] sm:$0xff] %v11596_v26  ;;  %v4827_v2 = vor.u32 %v4826_v13, %v4823_v62  ;;  %v11614_v24 = vadd.f32 %v2331_v48, %v2087_v25  ;;  %v2091_v7 = vadd.f32 %v2036_v38, %v13682_v22  ;;  %v8949_v26 = vpop.f32.mrf.mxu0 }
 0x163   : > { %13680 = vst [vmem:[#allocation16_spill] sm:$0xff] %v11602_v9  ;;  %v4819_v6 = vsel %vm10019_vm2, %v4814_v63, %v4818_v53  ;;  %v4854_v32 = vshll.u32 %v13683_v10, 16  ;;  %v5469_v58 = vsel %vm10453_vm5, %v5467_v12, %v5468_v20  ;;  %v4840_v55 = vshll.u32 %v11605_v51, 16  ;;  %v2334_v38 = vpop.f32.mrf.mxu1 }
 0x164   : > { %13681 = vst [vmem:[#allocation36_spill] sm:$0xff] %v11614_v24  ;;  %v4837_v18 = vor.u32 %v4836_v49, %v11592_v27  ;;  %v5472_v13 = vrot.slane %v13665_v41, 5  ;;  %v11625_v25 = vadd.f32 %v8993_v33, %v2090_v1  ;;  %v2094_v54 = vadd.f32 %v8949_v26, %v13685_v31  ;;  %v2039_v22 = vpop.f32.mrf.mxu0  ;;  %v13692_v1 = vld [vmem:[#allocation58_spill] sm:$0xff]  ;;  %v11641_v26 = vld [vmem:[%s10960_s27 + $0x68] sm:$0x1] }
 0x165   : > { %v13687_v62 = vshrl.u32 %v13686_v11, 16  ;;  %v13688_v53 = vshll.u32 %v13686_v11, 16  ;;  %v11632_v20 = vcombine.low %v5459_v0, %v5462_v15  ;;  %v11634_v12 = vcombine.low %v4809_v57, %v4819_v6  ;;  %9283 = vmatmul.mubr.bf16.gmra.mxu1 %v13694_v52 }
 0x166   : > { %13684 = vst [vmem:[#allocation6_spill] sm:$0xff] %v11625_v25  ;;  %v4828_v49 = vrot.slane %v4827_v2, 4  ;;  %v8285_v24 = vrot.slane %v13668_v37, 9  ;;  %v11637_v41 = vadd.f32 %v2334_v38, %v2088_v47  ;;  %v2092_v33 = vadd.f32 %v2039_v22, %v13692_v1  ;;  %v8996_v25 = vpop.f32.mrf.mxu1  ;;  %v8952_v15 = vpop.f32.mrf.mxu0  ;;  %v13699_v38 = vld [vmem:[#allocation61_spill] sm:$0xff] }
 0x167   : > { %v4847_v63 = vrot.slane %v13687_v62, 4  ;;  %v4850_v48 = vrot.slane %v13688_v53, 5  ;;  %13689 = vst [vmem:[#allocation40_spill] sm:$0xff] %v11632_v20  ;;  %13690 = vst [vmem:[#allocation4_spill] sm:$0xff] %v11634_v12  ;;  %v11643_v31 = vrot.slane %v4854_v32, 5  ;;  %v13693_v62 = vshrl.u32 %v13683_v10, 16 }
 0x168   : > { %13691 = vst [vmem:[#allocation8_spill] sm:$0xff] %v11637_v41  ;;  %v13695_v0 = vcombine.low %v11189_v29, %v11219_v59  ;;  %v11651_v37 = vcombine.low %v5466_v28, %v5469_v58  ;;  %v4838_v47 = vrot.slane %v4837_v18, 4  ;;  %v4842_v57 = vrot.slane %v4840_v55, 5  ;;  %v13698_v32 = vld [vmem:[#allocation65_spill] sm:$0xff]  ;;  %v2347_v52 = vpop.f32.mrf.mxu1  ;;  %v2052_v41 = vpop.f32.mrf.mxu0  ;;  %v13702_v18 = vld [vmem:[#allocation64_spill] sm:$0xff] }
 0x169   : > { %v4860_v53 = vrot.slane %v13693_v62, 4  ;;  %v5475_v2 = vrot.slane %v11605_v51, 5  ;;  %v11654_v6 = vadd.f32 %v8996_v25, %v2093_v30  ;;  %9286 = vmatprep.mubr.bf16.mxu1 %v13698_v32  ;;  %v2097_v22 = vadd.f32 %v8952_v15, %v13699_v38  ;;  %v13700_v51 = vld [vmem:[#allocation32_spill] sm:$0xff] }
 0x16a   : > { %9239 = vmatmul.mubr.bf16.gmra.mxu0 %v13695_v0  ;;  %13696 = vst [vmem:[#allocation28_spill] sm:$0xff] %v11651_v37  ;;  %v5474_v1 = vrot.slane %v5472_v13, 4  ;;  %v4851_v62 = vor.u32 %v4850_v48, %v4847_v63  ;;  %v4833_v29 = vsel %vm10019_vm2, %v4828_v49, %v11592_v27  ;;  %v5473_v59 = vsel %vm10453_vm5, %v8285_v24, %v5472_v13  ;;  %v8997_v63 = vpop.f32.mrf.mxu1  ;;  %v8953_v48 = vpop.f32.mrf.mxu0  ;;  %v13703_v24 = vld [vmem:[#allocation27_spill] sm:$0xff] }
 0x16b   : > { %13697 = vst [vmem:[#allocation35_spill] sm:$0xff] %v11654_v6  ;;  %9306 = vmatprep.mubr.bf16.mxu0 %v11361_v34  ;;  %v4864_v30 = vshll.u32 %v11641_v26, 16  ;;  %v4878_v28 = vshll.u32 %v13700_v51, 16  ;;  %v11666_v58 = vadd.f32 %v2347_v52, %v2091_v7  ;;  %v2095_v55 = vadd.f32 %v2052_v41, %v13702_v18  ;;  %v13707_v41 = vld [vmem:[#allocation66_spill] sm:$0xff] }
 0x16c   : > { %v4861_v34 = vor.u32 %v4860_v53, %v11643_v31  ;;  %v5479_v25 = vrot.slane %v13683_v10, 5  ;;  %v4843_v27 = vsel %vm10019_vm2, %v4838_v47, %v4842_v57  ;;  %v8286_v49 = vrot.slane %v13686_v11, 9  ;;  %v2350_v18 = vpop.f32.mrf.mxu1  ;;  %v2055_v32 = vpop.f32.mrf.mxu0  ;;  %v9816_v11 = vld [vmem:[%s13258_s3 + $0xf0] sm:$0xff]  }
 0x16d   : > { %13701 = vst [vmem:[#allocation20_spill] sm:$0xff] %v11666_v58  ;;  %v13704_v13 = vshrl.u32 %v13703_v24, 16  ;;  %v13705_v0 = vshll.u32 %v13703_v24, 16  ;;  %v11678_v7 = vadd.f32 %v8997_v63, %v2094_v54  ;;  %v2098_v53 = vadd.f32 %v8953_v48, %v13707_v41  ;;  %v13709_v48 = vld [vmem:[#allocation67_spill] sm:$0xff]  ;;  %9287 = vmatmul.mubr.bf16.gmra.mxu1 %v11309_v14 }
 0x16e   : > { %v5476_v10 = vsel %vm10453_vm5, %v5474_v1, %v5475_v2  ;;  %v4852_v38 = vrot.slane %v4851_v62, 4  ;;  %v4866_v47 = vrot.slane %v4864_v30, 5  ;;  %v5482_v57 = vrot.slane %v11641_v26, 5  ;;  %v11695_v62 = vld [vmem:[%s10960_s27 + $0x74] sm:$0x1]  ;;  %v9000_v6 = vpop.f32.mrf.mxu1  ;;  %v9020_v30 = vpop.f32.mrf.mxu0 }
 0x16f   : > { %v4871_v15 = vrot.slane %v13704_v13, 4  ;;  %v4874_v52 = vrot.slane %v13705_v0, 5  ;;  %13706 = vst [vmem:[#allocation49_spill] sm:$0xff] %v11678_v7  ;;  %v11687_v13 = vrot.slane %v4878_v28, 5  ;;  %v13708_v54 = vshrl.u32 %v13700_v51, 16  ;;  %v13710_v7 = vld [vmem:[#allocation63_spill] sm:$0xff] }
 0x170   : > { %v11691_v0 = vadd.f32 %v2350_v18, %v2092_v33  ;;  %v2096_v41 = vadd.f32 %v2055_v32, %v13709_v48  ;;  %v4862_v2 = vrot.slane %v4861_v34, 4  ;;  %v5481_v1 = vrot.slane %v5479_v25, 4  ;;  %v13714_v34 = vld [vmem:[#allocation68_spill] sm:$0xff] }
 0x171   : > { %v4884_v63 = vrot.slane %v13708_v54, 4  ;;  %v11700_v26 = vcombine.low %v4833_v29, %v4843_v27  ;;  %v11702_v28 = vcombine.low %v5473_v59, %v5476_v10  ;;  %v4875_v33 = vor.u32 %v4874_v52, %v4871_v15  ;;  %v2363_v27 = vpop.f32.mrf.mxu1  ;;  %v2584_v59 = vpop.f32.mrf.mxu0 }
 0x172   : > { %9307 = vmatmul.mubr.bf16.vlgmr.msra.gmra.mxu0 %v11371_v56  ;;  %v11704_v18 = vadd.f32 %v9000_v6, %v2097_v22  ;;  %v13713_v32 = vcombine.low %v11290_v16, %v11294_v40  ;;  %v2713_v54 = vadd.f32 %v9020_v30, %v13714_v34  ;;  %v4857_v48 = vsel %vm10019_vm2, %v4852_v38, %v11643_v31  ;;  %v9818_v16 = vld [vmem:[%s13258_s3 + $0xe8] sm:$0xff]   ;;  %v13715_v22 = vld [vmem:[#allocation46_spill] sm:$0xff] }
 0x173   : > { %13711 = vst [vmem:[#allocation14_spill] sm:$0xff] %v11700_v26  ;;  %13712 = vst [vmem:[#allocation51_spill] sm:$0xff] %v11702_v28  ;;  %9387 = vmatpush3.bf16.msra.mxu0 %v11472_v21  ;;  %v5486_v29 = vrot.slane %v13700_v51, 5  ;;  %9310 = vmatprep.mubr.bf16.mxu0 %v11444_v61  ;;  %v5480_v40 = vsel %vm10453_vm5, %v8286_v49, %v5479_v25  ;;  %v4885_v21 = vor.u32 %v4884_v63, %v11687_v13  ;;  %v9001_v38 = vpop.f32.mrf.mxu1  ;;  %v9021_v30 = vpop.f32.mrf.mxu0  ;;  %v13716_v49 = vld [vmem:[#allocation39_spill] sm:$0xff] }
 0x174   : > { %9354 = vmatprep.mubr.bf16.mxu1 %v13713_v32  ;;  %9388 = vmatprep.subr.bf16.mxu0 %v9816_v11  ;;  %v4888_v6 = vshll.u32 %v11695_v62, 16  ;;  %v4902_v31 = vshll.u32 %v13715_v22, 16  ;;  %v11724_v15 = vadd.f32 %v2363_v27, %v2095_v55  ;;  %v2711_v51 = vadd.f32 %v2584_v59, %v11297_v46 }
 0x175   : > { %v4867_v52 = vsel %vm10019_vm2, %v4862_v2, %v4866_v47  ;;  %v5483_v10 = vsel %vm10453_vm5, %v5481_v1, %v5482_v57  ;;  %v11731_v32 = vrot.slane %v4875_v33, 4  ;;  %v8287_v25 = vrot.slane %v13703_v24, 9  ;;  %v2366_v2 = vpop.f32.mrf.mxu1  ;;  %v2587_v1 = vpop.f32.mrf.mxu0  ;;  %v9817_v24 = vld [vmem:[%s13258_s3 + $0x130] sm:$0xff]   ;;  %9355 = vmatmul.mubr.bf16.vlgmr.msra.gmra.mxu1 %v11374_v35 }
 0x176   : > { %v13717_v63 = vshrl.u32 %v13716_v49, 16  ;;  %v13718_v55 = vshll.u32 %v13716_v49, 16  ;;  %v11738_v58 = vadd.f32 %v9001_v38, %v2098_v53  ;;  %v2714_v46 = vadd.f32 %v9021_v30, %v11305_v36  ;;  %9435 = vmatpush3.bf16.msra.mxu1 %v11505_v3  ;;  %9358 = vmatprep.mubr.bf16.mxu1 %v11446_v45 }
 0x177   : > { %9389 = vmatpush3.bf16.msra.mxu0 %v9816_v11  ;;  %v5488_v47 = vrot.slane %v5486_v29, 4  ;;  %v5489_v57 = vrot.slane %v11695_v62, 5  ;;  %v4886_v33 = vrot.slane %v4885_v21, 4  ;;  %v4890_v59 = vrot.slane %v4888_v6, 5  ;;  %v9024_v21 = vpop.f32.mrf.mxu0  ;;  %v9820_v6 = vld [vmem:[%s13258_s3 + $0xe0] sm:$0xff]   ;;  %9436 = vmatprep.subr.bf16.mxu1 %v9817_v24 }
 0x178   : > { %v4895_v34 = vrot.slane %v13717_v63, 4  ;;  %v4898_v27 = vrot.slane %v13718_v55, 5  ;;  %9390 = vmatprep.subr.bf16.mxu0 %v9818_v16  ;;  %v11745_v49 = vrot.slane %v4902_v31, 5  ;;  %v13719_v53 = vshrl.u32 %v13715_v22, 16  ;;  %v11757_v63 = vld [vmem:[%s10960_s27 + $0x80] sm:$0x1]  ;;  %v9068_v55 = vpop.f32.mrf.mxu1 }
 0x179   : > { %v11749_v38 = vadd.f32 %v2366_v2, %v2096_v41  ;;  %v2712_v11 = vadd.f32 %v2587_v1, %v11328_v5  ;;  %v11752_v62 = vcombine.low %v4857_v48, %v4867_v52  ;;  %v11754_v30 = vcombine.low %v5480_v40, %v5483_v10  ;;  %v11771_v40 = vld [vmem:[%s10960_s27 + $0x88] sm:$0xf]  ;;  %v13722_v2 = vld [vmem:[#allocation47_spill] sm:$0xff]  ;;  %v9866_v31 = vld [vmem:[%s10960_s27 + $0x78] sm:$0xf] }
 0x17a   : > { %v4908_v36 = vrot.slane %v13719_v53, 4  ;;  %9311 = vmatmul.mubr.bf16.gmra.mxu0 %v11547_v43  ;;  %v4881_v5 = vsel %vm10019_vm2, %v11731_v32, %v11687_v13  ;;  %v5487_v41 = vsel %vm10453_vm5, %v8287_v25, %v5486_v29  ;;  %v4899_v48 = vor.u32 %v4898_v27, %v4895_v34  ;;  %v2901_v29 = vpop.f32.mrf.mxu1  ;;  %v2600_v32 = vpop.f32.mrf.mxu0  ;;  %v9865_v34 = vld [vmem:[%s10960_s27 + $0x7c] sm:$0xf]  ;;  %9437 = vmatpush3.bf16.msra.mxu1 %v9817_v24 }
 0x17b   : > { %13720 = vst [vmem:[#allocation12_spill] sm:$0xff] %v11752_v62  ;;  %13721 = vst [vmem:[#allocation58_spill] sm:$0xff] %v11754_v30  ;;  %v4926_v22 = vshll.u32 %v11771_v40, 16  ;;  %v11775_v52 = vadd.f32 %v9068_v55, %v2713_v54  ;;  %v2717_v10 = vadd.f32 %v9024_v21, %v11347_v23  ;;  %v5490_v13 = vsel %vm10453_vm5, %v5488_v47, %v5489_v57  ;;  %v9819_v54 = vld [vmem:[%s13258_s3 + $0x128] sm:$0xff]  }
 0x17c   : > { %9314 = vmatprep.mubr.bf16.mxu0 %v11559_v44  ;;  %v4891_v3 = vsel %vm10019_vm2, %v4886_v33, %v4890_v59  ;;  %v4909_v25 = vor.u32 %v4908_v36, %v11745_v49  ;;  %v4912_v23 = vshll.u32 %v11757_v63, 16  ;;  %v5493_v27 = vrot.slane %v9865_v34, 5  ;;  %9391 = vmatpush3.bf16.msra.mxu0 %v9818_v16  ;;  %v9069_v33 = vpop.f32.mrf.mxu1  ;;  %v9025_v59 = vpop.f32.mrf.mxu0 }
 0x17d   : > { %v11791_v47 = vadd.f32 %v2901_v29, %v2711_v51  ;;  %v2715_v57 = vadd.f32 %v2600_v32, %v11368_v60  ;;  %v13723_v1 = vshrl.u32 %v13722_v2, 16  ;;  %v13724_v55 = vshll.u32 %v13722_v2, 16  ;;  %9392 = vmatprep.subr.bf16.mxu0 %v9820_v6  ;;  %v13726_v29 = vld [vmem:[#allocation48_spill] sm:$0xff]  ;;  %9438 = vmatprep.subr.bf16.mxu1 %v9819_v54 }
 0x17e   : > { %v11798_v36 = vcombine.low %v5487_v41, %v5490_v13  ;;  %v8288_v34 = vrot.slane %v9866_v31, 9  ;;  %v11801_v51 = vrot.slane %v4926_v22, 5  ;;  %v13727_v60 = vshrl.u32 %v13726_v29, 16  ;;  %v11811_v2 = vld [vmem:[%s10960_s27 + $0x8c] sm:$0x1]  ;;  %v2904_v13 = vpop.f32.mrf.mxu1  ;;  %v2603_v31 = vpop.f32.mrf.mxu0  ;;  %v9821_v22 = vld [vmem:[%s13258_s3 + $0x120] sm:$0xff]   ;;  %9359 = vmatmul.mubr.bf16.gmra.mxu1 %v11511_v50 }
 0x17f   : > { %v4919_v53 = vrot.slane %v13723_v1, 4  ;;  %v4922_v21 = vrot.slane %v13724_v55, 5  ;;  %v11805_v16 = vadd.f32 %v9069_v33, %v2714_v46  ;;  %v2718_v1 = vadd.f32 %v9025_v59, %v11377_v4  ;;  %v11814_v55 = vld [vmem:[%s10960_s27 + $0x94] sm:$0xf]  ;;  %v9822_v29 = vld [vmem:[%s13258_s3 + $0xd8] sm:$0xff]   ;;  %9362 = vmatprep.mubr.bf16.mxu1 %v11561_v19  ;;  %9439 = vmatpush3.bf16.msra.mxu1 %v9819_v54  ;;  %v13734_v50 = vld [vmem:[#allocation55_spill] sm:$0xff] }
 0x180   : > { %13725 = vst [vmem:[#allocation61_spill] sm:$0xff] %v11798_v36  ;;  %v4932_v32 = vrot.slane %v13727_v60, 4  ;;  %v11808_v45 = vrot.slane %v4899_v48, 4  ;;  %v4950_v41 = vshll.u32 %v11814_v55, 16  ;;  %v11820_v46 = vcombine.low %v4881_v5, %v4891_v3  ;;  %9393 = vmatpush3.bf16.msra.mxu0 %v9820_v6  ;;  %v9072_v14 = vpop.f32.mrf.mxu1  ;;  %v9028_v5 = vpop.f32.mrf.mxu0  ;;  %9440 = vmatprep.subr.bf16.mxu1 %v9821_v22  ;;  %v9823_v54 = vld [vmem:[%s13258_s3 + $0x118] sm:$0xff]  }
 0x181   : > { %v4910_v24 = vrot.slane %v4909_v25, 4  ;;  %v4914_v33 = vrot.slane %v4912_v23, 5  ;;  %v5496_v4 = vrot.slane %v11757_v63, 5  ;;  %v11823_v48 = vadd.f32 %v2904_v13, %v2712_v11  ;;  %v13729_v63 = vld [vmem:[#allocation50_spill] sm:$0xff]  ;;  %9394 = vmatprep.subr.bf16.mxu0 %v9822_v29 }
 0x182   : > { %13728 = vst [vmem:[#allocation32_spill] sm:$0xff] %v11820_v46  ;;  %v2716_v59 = vadd.f32 %v2603_v31, %v11394_v17  ;;  %v5495_v60 = vrot.slane %v5493_v27, 4  ;;  %v4923_v35 = vor.u32 %v4922_v21, %v4919_v53  ;;  %9315 = vmatmul.mubr.bf16.gmra.mxu0 %v11602_v9  ;;  %v4933_v3 = vor.u32 %v4932_v32, %v11801_v51  ;;  %v13733_v53 = vld [vmem:[#allocation43_spill] sm:$0xff]  ;;  %v11844_v32 = vld [vmem:[%s13258_s3 + $0xd0] sm:$0xff]  }
 0x183   : > { %v4936_v11 = vshll.u32 %v11811_v2, 16  ;;  %v13730_v25 = vshrl.u32 %v13729_v63, 16  ;;  %v13731_v6 = vshll.u32 %v13729_v63, 16  ;;  %v11837_v13 = vadd.f32 %v9072_v14, %v2717_v10  ;;  %v2917_v14 = vpop.f32.mrf.mxu1  ;;  %v2616_v10 = vpop.f32.mrf.mxu0  ;;  %9318 = vmatprep.mubr.bf16.mxu0 %v11634_v12  ;;  %9441 = vmatpush3.bf16.msra.mxu1 %v9821_v22 }
 0x184   : > { %v2721_v21 = vadd.f32 %v9028_v5, %v13733_v53  ;;  %v11846_v31 = vrot.slane %v4950_v41, 5  ;;  %v4905_v41 = vsel %vm10019_vm2, %v11808_v45, %v11745_v49  ;;  %v5494_v5 = vsel %vm10453_vm5, %v8288_v34, %v5493_v27  ;;  %9395 = vmatpush3.bf16.msra.mxu0 %v9822_v29  ;;  %9442 = vmatprep.subr.bf16.mxu1 %v9823_v54 }
 0x185   : > { %v4943_v17 = vrot.slane %v13730_v25, 4  ;;  %v4946_v23 = vrot.slane %v13731_v6, 5  ;;  %13732 = vst [vmem:[#allocation64_spill] sm:$0xff] %v11837_v13  ;;  %v13735_v25 = vshrl.u32 %v13734_v50, 16  ;;  %v4915_v50 = vsel %vm10019_vm2, %v4910_v24, %v4914_v33  ;;  %v11864_v6 = vld [vmem:[%s10960_s27 + $0x98] sm:$0x1]  ;;  %v9073_v44 = vpop.f32.mrf.mxu1  ;;  %v9029_v45 = vpop.f32.mrf.mxu0  ;;  %9396 = vmatprep.subr.bf16.mxu0 %v11844_v32 }
 0x186   : > { %v11866_v53 = vadd.f32 %v2917_v14, %v2715_v57  ;;  %v5497_v19 = vsel %vm10453_vm5, %v5495_v60, %v5496_v4  ;;  %v11871_v12 = vrot.slane %v4923_v35, 4  ;;  %v4934_v49 = vrot.slane %v4933_v3, 4  ;;  %v9868_v33 = vld [vmem:[%s10960_s27 + $0x84] sm:$0xf]  ;;  %v13738_v57 = vld [vmem:[#allocation25_spill] sm:$0xff]  ;;  %9363 = vmatmul.mubr.bf16.gmra.mxu1 %v11632_v20 }
 0x187   : > { %v4956_v9 = vrot.slane %v13735_v25, 4  ;;  %v13736_v25 = vld [vmem:[#allocation15_spill] sm:$0xff]  ;;  %v4938_v24 = vrot.slane %v4936_v11, 5  ;;  %v8289_v27 = vrot.slane %v9868_v33, 9  ;;  %v4947_v34 = vor.u32 %v4946_v23, %v4943_v17  ;;  %v2920_v60 = vpop.f32.mrf.mxu1  ;;  %v13742_v17 = vld [vmem:[#allocation26_spill] sm:$0xff]  ;;  %9366 = vmatprep.mubr.bf16.mxu1 %v11651_v37  ;;  %9443 = vmatpush3.bf16.msra.mxu1 %v9823_v54 }
 0x188   : > { %v2719_v63 = vadd.f32 %v2616_v10, %v13736_v25  ;;  %v11874_v13 = vadd.f32 %v9073_v44, %v2718_v1  ;;  %v2722_v14 = vadd.f32 %v9029_v45, %v13738_v57  ;;  %v4960_v35 = vshll.u32 %v11864_v6, 16  ;;  %v2619_v10 = vpop.f32.mrf.mxu0  ;;  %v11886_v44 = vld [vmem:[%s10960_s27 + $0xa0] sm:$0xf]  ;;  %v11914_v25 = vld [vmem:[%s10960_s27 + $0xac] sm:$0xf]  ;;  %v13744_v57 = vld [vmem:[#allocation38_spill] sm:$0xff]  ;;  %9397 = vmatpush3.bf16.msra.mxu0 %v11844_v32 }
 0x189   : > { %v4957_v4 = vor.u32 %v4956_v9, %v11846_v31  ;;  %v11880_v29 = vcombine.low %v4905_v41, %v4915_v50  ;;  %v11882_v3 = vcombine.low %v5494_v5, %v5497_v19  ;;  %v5500_v11 = vrot.slane %v11771_v40, 5  ;;  %v9825_v19 = vld [vmem:[%s13258_s3 + $0x110] sm:$0xff]   ;;  %v9826_v40 = vld [vmem:[%s13258_s3 + $0xc8] sm:$0xff]   ;;  %v9076_v50 = vpop.f32.mrf.mxu1  ;;  %v11941_v54 = vld [vmem:[%s10960_s27 + $0xa4] sm:$0x1] }
 0x18a   : > { %13737 = vst [vmem:[#allocation27_spill] sm:$0xff] %v11874_v13  ;;  %v4974_v1 = vshll.u32 %v11886_v44, 16  ;;  %v11889_v22 = vadd.f32 %v2920_v60, %v2716_v59  ;;  %v2720_v9 = vadd.f32 %v2619_v10, %v13742_v17  ;;  %v4929_v23 = vsel %vm10019_vm2, %v11871_v12, %v11801_v51  ;;  %v9032_v59 = vpop.f32.mrf.mxu0  ;;  %9319 = vmatmul.mubr.bf16.gmra.mxu0 %v11700_v26  ;;  %v13745_v10 = vld [vmem:[#allocation56_spill] sm:$0xff] }
 0x18b   : > { %13739 = vst [vmem:[#allocation66_spill] sm:$0xff] %v11880_v29  ;;  %13740 = vst [vmem:[#allocation67_spill] sm:$0xff] %v11882_v3  ;;  %v4939_v5 = vsel %vm10019_vm2, %v4934_v49, %v4938_v24  ;;  %v11909_v12 = vsel %vm10453_vm5, %v8289_v27, %v5500_v11  ;;  %v11911_v51 = vrot.slane %v4947_v34, 4  ;;  %v4998_v45 = vshll.u32 %v11914_v25, 16  ;;  %9322 = vmatprep.mubr.bf16.mxu0 %v11752_v62  ;;  %v2933_v27 = vpop.f32.mrf.mxu1  ;;  %v9827_v32 = vld [vmem:[%s13258_s3 + $0x108] sm:$0xff]  }
 0x18c   : > { %13741 = vst [vmem:[#allocation63_spill] sm:$0xff] %v11889_v22  ;;  %v11917_v33 = vadd.f32 %v9076_v50, %v2721_v21  ;;  %v2725_v60 = vadd.f32 %v9032_v59, %v13744_v57  ;;  %v11922_v49 = vrot.slane %v4957_v4, 4  ;;  %v11924_v24 = vrot.slane %v4960_v35, 5  ;;  %v2632_v34 = vpop.f32.mrf.mxu0  ;;  %v13748_v59 = vld [vmem:[#allocation57_spill] sm:$0xff]  ;;  %9444 = vmatprep.subr.bf16.mxu1 %v9825_v19  ;;  %9398 = vmatprep.subr.bf16.mxu0 %v9826_v40 }
 0x18d   : > { %v13746_v17 = vshrl.u32 %v13745_v10, 16  ;;  %v13747_v50 = vshll.u32 %v13745_v10, 16  ;;  %v11931_v37 = vrot.slane %v4974_v1, 5  ;;  %v13749_v57 = vshrl.u32 %v13748_v59, 16  ;;  %v13751_v35 = vld [vmem:[#allocation9_spill] sm:$0xff]  ;;  %v13752_v10 = vld [vmem:[#allocation62_spill] sm:$0xff]  ;;  %9445 = vmatpush3.bf16.msra.mxu1 %v9825_v19  ;;  %9399 = vmatpush3.bf16.msra.mxu0 %v9826_v40 }
 0x18e   : > { %13743 = vst [vmem:[#allocation68_spill] sm:$0xff] %v11917_v33  ;;  %v11937_v4 = vadd.f32 %v2933_v27, %v2719_v63  ;;  %v2723_v62 = vadd.f32 %v2632_v34, %v13751_v35  ;;  %v13753_v1 = vshrl.u32 %v13752_v10, 16  ;;  %v9828_v63 = vld [vmem:[%s13258_s3 + $0xc0] sm:$0xff]   ;;  %v9077_v27 = vpop.f32.mrf.mxu1  ;;  %v9033_v34 = vpop.f32.mrf.mxu0  ;;  %v5502_v35 = vrot.slane %v5500_v11, 4  ;;  %v13760_v19 = vld [vmem:[#allocation29_spill] sm:$0xff]  ;;  %9446 = vmatprep.subr.bf16.mxu1 %v9827_v32  ;;  %9367 = vmatmul.mubr.bf16.gmra.mxu1 %v11702_v28 }
 0x18f   : > { %v4967_v21 = vrot.slane %v13746_v17, 4  ;;  %v4970_v41 = vrot.slane %v13747_v50, 5  ;;  %v11935_v20 = vrot.slane %v13749_v57, 4  ;;  %v13754_v50 = vshll.u32 %v13752_v10, 16  ;;  %9400 = vmatprep.subr.bf16.mxu0 %v9828_v63  ;;  %9370 = vmatprep.mubr.bf16.mxu1 %v11754_v30 }
 0x190   : > { %13750 = vst [vmem:[#allocation46_spill] sm:$0xff] %v11937_v4  ;;  %v4991_v17 = vrot.slane %v13753_v1, 4  ;;  %v11953_v57 = vcombine.low %v4929_v23, %v4939_v5  ;;  %v11955_v26 = vrot.slane %v4998_v45, 5  ;;  %v13756_v4 = vshrl.u32 %v13710_v7, 16  ;;  %v13758_v1 = vld [vmem:[#allocation19_spill] sm:$0xff]  ;;  %v2936_v11 = vpop.f32.mrf.mxu1  ;;  %v2635_v5 = vpop.f32.mrf.mxu0 }
 0x191   : > { %v4994_v59 = vrot.slane %v13754_v50, 5  ;;  %v11959_v22 = vadd.f32 %v9077_v27, %v2722_v14  ;;  %v2726_v10 = vadd.f32 %v9033_v34, %v13758_v1  ;;  %v4953_v50 = vsel %vm10019_vm2, %v11911_v51, %v11846_v31  ;;  %v11968_v23 = vld [vmem:[%s10960_s27 + $0xb0] sm:$0x1]  ;;  %v11978_v31 = vld [vmem:[%s10960_s27 + $0xb8] sm:$0xf]  ;;  %9447 = vmatpush3.bf16.msra.mxu1 %v9827_v32  ;;  %9401 = vmatpush3.bf16.msra.mxu0 %v9828_v63 }
 0x192   : > { %13755 = vst [vmem:[#allocation39_spill] sm:$0xff] %v11953_v57  ;;  %v5004_v33 = vrot.slane %v13756_v4, 4  ;;  %v4963_v7 = vsel %vm10019_vm2, %v11922_v49, %v11924_v24  ;;  %v4971_v14 = vor.u32 %v4970_v41, %v4967_v21  ;;  %v4981_v45 = vor.u32 %v11935_v20, %v11931_v37  ;;  %v9829_v41 = vld [vmem:[%s13258_s3 + $0x100] sm:$0xff]   ;;  %v11990_v20 = vld [vmem:[%s13258_s3 + $0x178] sm:$0xff]   ;;  %v9080_v40 = vpop.f32.mrf.mxu1  ;;  %v9036_v49 = vpop.f32.mrf.mxu0  ;;  %9323 = vmatmul.mubr.bf16.gmra.mxu0 %v11820_v46  ;;  %v9872_v21 = vld [vmem:[%s10960_s27 + $0x90] sm:$0xf] }
 0x193   : > { %13757 = vst [vmem:[#allocation47_spill] sm:$0xff] %v11959_v22  ;;  %v4984_v4 = vshll.u32 %v11941_v54, 16  ;;  %v5026_v51 = vshrl.u32 %v11978_v31, 16  ;;  %v11981_v27 = vadd.f32 %v2936_v11, %v2720_v9  ;;  %v2724_v34 = vadd.f32 %v2635_v5, %v13760_v19  ;;  %v13763_v19 = vld [vmem:[#allocation31_spill] sm:$0xff]  ;;  %9326 = vmatprep.mubr.bf16.mxu0 %v11880_v29  ;;  %9448 = vmatprep.subr.bf16.mxu1 %v9829_v41 }
 0x194   : > { %v4995_v1 = vor.u32 %v4994_v59, %v4991_v17  ;;  %v13761_v9 = vrot.slane %v11811_v2, 5  ;;  %v8290_v17 = vrot.slane %v9872_v21, 9  ;;  %v5005_v59 = vor.u32 %v5004_v33, %v11955_v26  ;;  %v2949_v46 = vpop.f32.mrf.mxu1  ;;  %9482 = vmatprep.subr.bf16.mxu0 %v11990_v20 }
 0x195   : > { %13759 = vst [vmem:[#allocation48_spill] sm:$0xff] %v11981_v27  ;;  %v5008_v11 = vshll.u32 %v11968_v23, 16  ;;  %v12001_v5 = vadd.f32 %v9080_v40, %v2725_v60  ;;  %v2729_v13 = vadd.f32 %v9036_v49, %v13763_v19  ;;  %v5510_v28 = vrot.slane %v11864_v6, 5  ;;  %v13767_v49 = vld [vmem:[#allocation24_spill] sm:$0xff]  ;;  %v12019_v6 = vld [vmem:[%s13258_s3 + $0x1b8] sm:$0xff]   ;;  %9449 = vmatpush3.bf16.msra.mxu1 %v9829_v41  ;;  %v13774_v41 = vld [vmem:[#allocation13_spill] sm:$0xff] }
 0x196   : > { %v5504_v24 = vsel %vm10453_vm5, %v5502_v35, %v13761_v9  ;;  %v5022_v2 = vshll.u32 %v11978_v31, 16  ;;  %v2648_v35 = vpop.f32.mrf.mxu0  ;;  %v12008_v9 = vcombine.low %v4953_v50, %v4963_v7  ;;  %v13765_v33 = vrot.slane %v11814_v55, 5  ;;  %v9081_v50 = vpop.f32.mrf.mxu1  ;;  %9530 = vmatprep.subr.bf16.mxu1 %v12019_v6  ;;  %9371 = vmatmul.mubr.bf16.gmra.mxu1 %v11798_v36 }
 0x197   : > { %13762 = vst [vmem:[#allocation50_spill] sm:$0xff] %v12001_v5  ;;  %v4972_v27 = vrot.slane %v4971_v14, 4  ;;  %v4986_v60 = vrot.slane %v4984_v4, 5  ;;  %v12012_v40 = vadd.f32 %v2949_v46, %v2723_v62  ;;  %v2727_v19 = vadd.f32 %v2648_v35, %v13767_v49  ;;  %9374 = vmatprep.mubr.bf16.mxu1 %v11882_v3 }
 0x198   : > { %13764 = vst [vmem:[#allocation43_spill] sm:$0xff] %v12008_v9  ;;  %v5509_v21 = vrot.slane %v13765_v33, 4  ;;  %v4982_v30 = vrot.slane %v4981_v45, 4  ;;  %v4996_v29 = vrot.slane %v4995_v1, 4  ;;  %v9037_v7 = vpop.f32.mrf.mxu0  ;;  %v5006_v14 = vrot.slane %v5005_v59, 4  ;;  %v13770_v1 = vld [vmem:[#allocation34_spill] sm:$0xff] }
 0x199   : > { %13766 = vst [vmem:[#allocation55_spill] sm:$0xff] %v12012_v40  ;;  %v5010_v32 = vrot.slane %v5008_v11, 5  ;;  %v13768_v62 = vshrl.u32 %v11285_v8, 16  ;;  %v13769_v63 = vshll.u32 %v11285_v8, 16  ;;  %v12025_v4 = vadd.f32 %v9081_v50, %v2726_v10  ;;  %v2952_v40 = vpop.f32.mrf.mxu1  ;;  %v12041_v50 = vld [vmem:[%s10960_s27 + $0xbc] sm:$0x1] }
 0x19a   : > { %v2730_v35 = vadd.f32 %v9037_v7, %v13770_v1  ;;  %v12028_v33 = vrot.slane %v5022_v2, 5  ;;  %v5028_v49 = vrot.slane %v5026_v51, 4  ;;  %v2651_v5 = vpop.f32.mrf.mxu0  ;;  %v12031_v22 = vcombine.low %v11909_v12, %v5504_v24  ;;  %v13773_v51 = vld [vmem:[#allocation23_spill] sm:$0xff]  ;;  %9327 = vmatmul.mubr.bf16.gmra.mxu0 %v11953_v57 }
 0x19b   : > { %v5015_v46 = vrot.slane %v13768_v62, 4  ;;  %v5018_v45 = vrot.slane %v13769_v63, 5  ;;  %v13772_v59 = vrot.slane %v11814_v55, 5  ;;  %v5511_v8 = vsel %vm10453_vm5, %v5509_v21, %v5510_v28  ;;  %v9084_v24 = vpop.f32.mrf.mxu1  ;;  %9330 = vmatprep.mubr.bf16.mxu0 %v12008_v9  ;;  %v13776_v62 = vld [vmem:[#allocation36_spill] sm:$0xff] }
 0x19c   : > { %13771 = vst [vmem:[#allocation15_spill] sm:$0xff] %v12031_v22  ;;  %v5514_v10 = vrot.slane %v11886_v44, 5  ;;  %v12043_v2 = vadd.f32 %v2952_v40, %v2724_v34  ;;  %v2728_v7 = vadd.f32 %v2651_v5, %v13773_v51  ;;  %v4977_v12 = vsel %vm10019_vm2, %v4972_v27, %v11931_v37  ;;  %v9040_v28 = vpop.f32.mrf.mxu0  ;;  %v9873_v40 = vld [vmem:[%s10960_s27 + $0x9c] sm:$0xf] }
 0x19d   : > { %v5508_v11 = vsel %vm10453_vm5, %v8290_v17, %v13772_v59  ;;  %v4987_v55 = vsel %vm10019_vm2, %v4982_v30, %v4986_v60  ;;  %v5001_v44 = vsel %vm10019_vm2, %v4996_v29, %v11955_v26  ;;  %v5011_v34 = vsel %vm10019_vm2, %v5006_v14, %v5010_v32  ;;  %v2965_v26 = vpop.f32.mrf.mxu1 }
 0x19e   : > { %v5521_v37 = vrot.slane %v11914_v25, 5  ;;  %v5019_v27 = vor.u32 %v5018_v45, %v5015_v46  ;;  %v12060_v30 = vadd.f32 %v9084_v24, %v2729_v13  ;;  %v2733_v17 = vadd.f32 %v9040_v28, %v13774_v41  ;;  %v2664_v29 = vpop.f32.mrf.mxu0  ;;  %v9874_v45 = vld [vmem:[%s10960_s27 + $0xa8] sm:$0xf]  ;;  %v13779_v41 = vld [vmem:[#allocation6_spill] sm:$0xff]  ;;  %9375 = vmatmul.mubr.bf16.gmra.mxu1 %v12031_v22 }
 0x19f   : > { %v5029_v5 = vor.u32 %v5028_v49, %v12028_v33  ;;  %v5032_v21 = vshll.u32 %v12041_v50, 16  ;;  %v12067_v60 = vcombine.low %v5508_v11, %v5511_v8  ;;  %v8291_v25 = vrot.slane %v9873_v40, 9  ;;  %v9085_v49 = vpop.f32.mrf.mxu1  ;;  %v13817_v22 = vld [vmem:[#allocation66_spill] sm:$0xff] }
 0x1a0   : > { %v5516_v14 = vrot.slane %v5514_v10, 4  ;;  %v5517_v13 = vrot.slane %v11941_v54, 5  ;;  %v12071_v32 = vadd.f32 %v2965_v26, %v2727_v19  ;;  %v2731_v46 = vadd.f32 %v2664_v29, %v13776_v62  ;;  %v9041_v59 = vpop.f32.mrf.mxu0 }
 0x1a1   : > { %13775 = vst [vmem:[#allocation25_spill] sm:$0xff] %v12067_v60  ;;  %v12074_v63 = vcombine.low %v4977_v12, %v4987_v55  ;;  %v8292_v1 = vrot.slane %v9874_v45, 9  ;;  %v12077_v51 = vcombine.low %v5001_v44, %v5011_v34  ;;  %v5523_v24 = vrot.slane %v5521_v37, 4  ;;  %v2968_v40 = vpop.f32.mrf.mxu1  ;;  %v13780_v55 = vld [vmem:[#allocation8_spill] sm:$0xff]  ;;  %9378 = vmatprep.mubr.bf16.mxu1 %v12067_v60 }
 0x1a2   : > { %v5524_v11 = vrot.slane %v11968_v23, 5  ;;  %v5020_v8 = vrot.slane %v5019_v27, 4  ;;  %v12080_v28 = vadd.f32 %v9085_v49, %v2730_v35  ;;  %v2734_v54 = vadd.f32 %v9041_v59, %v13779_v41  ;;  %v2667_v29 = vpop.f32.mrf.mxu0  ;;  %v13782_v49 = vld [vmem:[#allocation20_spill] sm:$0xff]  ;;  %v9875_v41 = vld [vmem:[%s10960_s27 + $0xb4] sm:$0xf] }
 0x1a3   : > { %13777 = vst [vmem:[#allocation26_spill] sm:$0xff] %v12074_v63  ;;  %13778 = vst [vmem:[#allocation38_spill] sm:$0xff] %v12077_v51  ;;  %v5030_v19 = vrot.slane %v5029_v5, 4  ;;  %v5034_v26 = vrot.slane %v5032_v21, 5  ;;  %v12083_v12 = vadd.f32 %v2968_v40, %v2728_v7  ;;  %v2732_v62 = vadd.f32 %v2667_v29, %v13780_v55  ;;  %v9088_v23 = vpop.f32.mrf.mxu1  ;;  %9331 = vmatmul.mubr.bf16.gmra.mxu0 %v12074_v63  ;;  %v13781_v21 = vld [vmem:[#allocation35_spill] sm:$0xff] }
 0x1a4   : > { %v5515_v44 = vsel %vm10453_vm5, %v8291_v25, %v5514_v10  ;;  %v5518_v34 = vsel %vm10453_vm5, %v5516_v14, %v5517_v13  ;;  %v9044_v35 = vpop.f32.mrf.mxu0  ;;  %v5522_v27 = vsel %vm10453_vm5, %v8292_v1, %v5521_v37  ;;  %v5525_v7 = vsel %vm10453_vm5, %v5523_v24, %v5524_v11  ;;  %9334 = vmatprep.mubr.bf16.mxu0 %v12077_v51 }
 0x1a5   : > { %v5025_v5 = vsel %vm10019_vm2, %v5020_v8, %v12028_v33  ;;  %v12099_v10 = vadd.f32 %v9088_v23, %v2733_v17  ;;  %v2737_v25 = vadd.f32 %v9044_v35, %v13781_v21  ;;  %v5035_v14 = vsel %vm10019_vm2, %v5030_v19, %v5034_v26  ;;  %v2981_v13 = vpop.f32.mrf.mxu1  ;;  %v13786_v19 = vld [vmem:[#allocation49_spill] sm:$0xff] }
 0x1a6   : > { %v5528_v37 = vrot.slane %v11978_v31, 5  ;;  %v2680_v45 = vpop.f32.mrf.mxu0  ;;  %v12107_v1 = vadd.f32 %v2981_v13, %v2731_v46  ;;  %v12110_v17 = vcombine.low %v5515_v44, %v5518_v34  ;;  %v12112_v11 = vcombine.low %v5522_v27, %v5525_v7 }
 0x1a7   : > { %v2735_v33 = vadd.f32 %v2680_v45, %v13782_v49  ;;  %v9089_v59 = vpop.f32.mrf.mxu1  ;;  %v12114_v8 = vcombine.low %v5025_v5, %v5035_v14  ;;  %v8293_v40 = vrot.slane %v9875_v41, 9  ;;  %v5531_v46 = vrot.slane %v12041_v50, 5  ;;  %v13787_v5 = vld [vmem:[#allocation33_spill] sm:$0xff] }
 0x1a8   : > { %13783 = vst [vmem:[#allocation56_spill] sm:$0xff] %v12110_v17  ;;  %v9045_v24 = vpop.f32.mrf.mxu0  ;;  %13784 = vst [vmem:[#allocation57_spill] sm:$0xff] %v12112_v11  ;;  %v12117_v29 = vadd.f32 %v9089_v59, %v2734_v54  ;;  %v5530_v26 = vrot.slane %v5528_v37, 4  ;;  %9379 = vmatmul.mubr.bf16.gmra.mxu1 %v12110_v17  ;;  %v9832_v41 = vld [vmem:[%s13258_s3 + $0x170] sm:$0xff]  }
 0x1a9   : > { %13785 = vst [vmem:[#allocation9_spill] sm:$0xff] %v12114_v8  ;;  %v2738_v31 = vadd.f32 %v9045_v24, %v13786_v19  ;;  %v2984_v55 = vpop.f32.mrf.mxu1  ;;  %v5529_v54 = vsel %vm10453_vm5, %v8293_v40, %v5528_v37  ;;  %9382 = vmatprep.mubr.bf16.mxu1 %v12112_v11  ;;  %v13809_v11 = vld [vmem:[#allocation55_spill] sm:$0xff] }
 0x1aa   : > { %v2683_v23 = vpop.f32.mrf.mxu0  ;;  %v12121_v35 = vadd.f32 %v2984_v55, %v2732_v62  ;;  %v5532_v62 = vsel %vm10453_vm5, %v5530_v26, %v5531_v46  ;;  %v13789_v26 = vld [vmem:[#allocation37_spill] sm:$0xff] }
 0x1ab   : > { %v2736_v44 = vadd.f32 %v2683_v23, %v11691_v0  ;;  %v9092_v34 = vpop.f32.mrf.mxu1  ;;  %9335 = vmatmul.mubr.bf16.gmra.mxu0 %v12114_v8  ;;  %v12138_v49 = vcombine.low %v5529_v54, %v5532_v62  ;;  %v13790_v23 = vld [vmem:[#allocation10_spill] sm:$0xff]  ;;  %v9833_v62 = vld [vmem:[%s13258_s3 + $0x1b0] sm:$0xff]  }
 0x1ac   : > { %v9048_v27 = vpop.f32.mrf.mxu0  ;;  %v12128_v7 = vadd.f32 %v9092_v34, %v2737_v25  ;;  %9402 = vmatprep.mubr.bf16.mxu0 %v13787_v5 }
 0x1ad   : > { %v2741_v50 = vadd.f32 %v9048_v27, %v11704_v18  ;;  %v2997_v0 = vpop.f32.mrf.mxu1  ;;  %13788 = vst [vmem:[#allocation62_spill] sm:$0xff] %v12138_v49 }
 0x1ae   : > { %v2696_v21 = vpop.f32.mrf.mxu0  ;;  %v12135_v14 = vadd.f32 %v2997_v0, %v2735_v33 }
 0x1af   : > { %v2739_v13 = vadd.f32 %v2696_v21, %v11724_v15  ;;  %v9093_v45 = vpop.f32.mrf.mxu1 }
 0x1b0   : > { %v9049_v25 = vpop.f32.mrf.mxu0  ;;  %v12140_v37 = vadd.f32 %v9093_v45, %v2738_v31  ;;  %9383 = vmatmul.mubr.bf16.gmra.mxu1 %v12138_v49  ;;  %v13803_v49 = vld [vmem:[#allocation48_spill] sm:$0xff] }
 0x1b1   : > { %v2742_v59 = vadd.f32 %v9049_v25, %v11738_v58  ;;  %v3000_v18 = vpop.f32.mrf.mxu1  ;;  %9450 = vmatprep.mubr.bf16.mxu1 %v11371_v56  ;;  %v13792_v25 = vld [vmem:[#allocation64_spill] sm:$0xff] }
 0x1b2   : > { %v2699_v24 = vpop.f32.mrf.mxu0  ;;  %v12146_v40 = vadd.f32 %v3000_v18, %v2736_v44 }
 0x1b3   : > { %v2740_v33 = vadd.f32 %v2699_v24, %v11749_v38  ;;  %v9096_v19 = vpop.f32.mrf.mxu1  ;;  %9403 = vmatmul.mubr.bf16.vlgmr.msra.gmra.mxu0 %v13789_v26  ;;  %v9834_v38 = vld [vmem:[%s13258_s3 + $0x168] sm:$0xff]   ;;  %v13793_v24 = vld [vmem:[#allocation22_spill] sm:$0xff] }
 0x1b4   : > { %v9116_v15 = vpop.f32.mrf.mxu0  ;;  %v12151_v31 = vadd.f32 %v9096_v19, %v2741_v50  ;;  %9483 = vmatpush3.bf16.msra.mxu0 %v11990_v20  ;;  %9406 = vmatprep.mubr.bf16.mxu0 %v13790_v23 }
 0x1b5   : > { %v3341_v58 = vadd.f32 %v9116_v15, %v11775_v52  ;;  %v3013_v46 = vpop.f32.mrf.mxu1  ;;  %9484 = vmatprep.subr.bf16.mxu0 %v9832_v41 }
 0x1b6   : > { %v3212_v55 = vpop.f32.mrf.mxu0  ;;  %v12160_v44 = vadd.f32 %v3013_v46, %v2739_v13  ;;  %v13791_v13 = vld [vmem:[#allocation17_spill] sm:$0xff]  ;;  %v13794_v46 = vld [vmem:[#allocation27_spill] sm:$0xff] }
 0x1b7   : > { %v3339_v34 = vadd.f32 %v3212_v55, %v11791_v47  ;;  %v9097_v27 = vpop.f32.mrf.mxu1 }
 0x1b8   : > { %v9117_v54 = vpop.f32.mrf.mxu0  ;;  %v12163_v56 = vadd.f32 %v9097_v27, %v2742_v59  ;;  %9485 = vmatpush3.bf16.msra.mxu0 %v9832_v41  ;;  %9451 = vmatmul.mubr.bf16.vlgmr.msra.gmra.mxu1 %v11444_v61  ;;  %v9835_v41 = vld [vmem:[%s13258_s3 + $0x1a8] sm:$0xff]  }
 0x1b9   : > { %v3342_v52 = vadd.f32 %v9117_v54, %v11805_v16  ;;  %v3016_v20 = vpop.f32.mrf.mxu1  ;;  %9486 = vmatprep.subr.bf16.mxu0 %v9834_v38  ;;  %v9836_v16 = vld [vmem:[%s13258_s3 + $0x160] sm:$0xff]   ;;  %9531 = vmatpush3.bf16.msra.mxu1 %v12019_v6 }
 0x1ba   : > { %v3215_v50 = vpop.f32.mrf.mxu0  ;;  %v12169_v5 = vadd.f32 %v3016_v20, %v2740_v33  ;;  %9454 = vmatprep.mubr.bf16.mxu1 %v11547_v43  ;;  %9532 = vmatprep.subr.bf16.mxu1 %v9833_v62  ;;  %v9837_v20 = vld [vmem:[%s13258_s3 + $0x1a0] sm:$0xff]  }
 0x1bb   : > { %v3340_v0 = vadd.f32 %v3215_v50, %v11823_v48  ;;  %v9164_v21 = vpop.f32.mrf.mxu1  ;;  %9407 = vmatmul.mubr.bf16.gmra.mxu0 %v13791_v13  ;;  %v13795_v50 = vld [vmem:[#allocation63_spill] sm:$0xff] }
 0x1bc   : > { %v9120_v47 = vpop.f32.mrf.mxu0  ;;  %v12177_v45 = vadd.f32 %v9164_v21, %v3341_v58  ;;  %9410 = vmatprep.mubr.bf16.mxu0 %v13793_v24  ;;  %9487 = vmatpush3.bf16.msra.mxu0 %v9834_v38  ;;  %v9838_v38 = vld [vmem:[%s13258_s3 + $0x158] sm:$0xff]  }
 0x1bd   : > { %v3345_v59 = vadd.f32 %v9120_v47, %v13792_v25  ;;  %v3545_v18 = vpop.f32.mrf.mxu1  ;;  %9488 = vmatprep.subr.bf16.mxu0 %v9836_v16  ;;  %9533 = vmatpush3.bf16.msra.mxu1 %v9833_v62  ;;  %v13796_v62 = vld [vmem:[#allocation30_spill] sm:$0xff] }
 0x1be   : > { %v3228_v48 = vpop.f32.mrf.mxu0  ;;  %v12186_v33 = vadd.f32 %v3545_v18, %v3339_v34  ;;  %9534 = vmatprep.subr.bf16.mxu1 %v9835_v41  ;;  %v13797_v47 = vld [vmem:[#allocation42_spill] sm:$0xff]  ;;  %v13798_v18 = vld [vmem:[#allocation16_spill] sm:$0xff] }
 0x1bf   : > { %v3343_v19 = vadd.f32 %v3228_v48, %v11866_v53  ;;  %v9165_v15 = vpop.f32.mrf.mxu1  ;;  %v13799_v48 = vld [vmem:[#allocation68_spill] sm:$0xff] }
 0x1c0   : > { %v9121_v6 = vpop.f32.mrf.mxu0  ;;  %v12189_v58 = vadd.f32 %v9165_v15, %v3342_v52  ;;  %9489 = vmatpush3.bf16.msra.mxu0 %v9836_v16  ;;  %9455 = vmatmul.mubr.bf16.gmra.mxu1 %v13796_v62  ;;  %v9840_v16 = vld [vmem:[%s13258_s3 + $0x150] sm:$0xff]  }
 0x1c1   : > { %v3346_v55 = vadd.f32 %v9121_v6, %v13794_v46  ;;  %v3548_v27 = vpop.f32.mrf.mxu1  ;;  %9458 = vmatprep.mubr.bf16.mxu1 %v13798_v18  ;;  %9535 = vmatpush3.bf16.msra.mxu1 %v9835_v41  ;;  %v13800_v46 = vld [vmem:[#allocation44_spill] sm:$0xff] }
 0x1c2   : > { %v3231_v54 = vpop.f32.mrf.mxu0  ;;  %v12195_v34 = vadd.f32 %v3548_v27, %v3340_v0  ;;  %9536 = vmatprep.subr.bf16.mxu1 %v9837_v20  ;;  %v9839_v27 = vld [vmem:[%s13258_s3 + $0x198] sm:$0xff]   ;;  %9490 = vmatprep.subr.bf16.mxu0 %v9838_v38 }
 0x1c3   : > { %v3344_v53 = vadd.f32 %v3231_v54, %v13795_v50  ;;  %v9168_v52 = vpop.f32.mrf.mxu1  ;;  %9411 = vmatmul.mubr.bf16.gmra.mxu0 %v13797_v47  ;;  %v13801_v54 = vld [vmem:[#allocation46_spill] sm:$0xff] }
 0x1c4   : > { %v9124_v21 = vpop.f32.mrf.mxu0  ;;  %v12203_v25 = vadd.f32 %v9168_v52, %v3345_v59  ;;  %9414 = vmatprep.mubr.bf16.mxu0 %v13800_v46  ;;  %9491 = vmatpush3.bf16.msra.mxu0 %v9838_v38 }
 0x1c5   : > { %v3349_v0 = vadd.f32 %v9124_v21, %v13799_v48  ;;  %v3561_v15 = vpop.f32.mrf.mxu1  ;;  %v13802_v48 = vld [vmem:[#allocation47_spill] sm:$0xff]  ;;  %9537 = vmatpush3.bf16.msra.mxu1 %v9837_v20  ;;  %9492 = vmatprep.subr.bf16.mxu0 %v9840_v16 }
 0x1c6   : > { %v3244_v6 = vpop.f32.mrf.mxu0  ;;  %v12214_v59 = vadd.f32 %v3561_v15, %v3343_v19  ;;  %9538 = vmatprep.subr.bf16.mxu1 %v9839_v27  ;;  %v9841_v15 = vld [vmem:[%s13258_s3 + $0x190] sm:$0xff]  }
 0x1c7   : > { %v3347_v50 = vadd.f32 %v3244_v6, %v13801_v54  ;;  %v9169_v52 = vpop.f32.mrf.mxu1  ;;  %v13804_v6 = vld [vmem:[#allocation4_spill] sm:$0xff]  ;;  %v13805_v54 = vld [vmem:[#allocation45_spill] sm:$0xff] }
 0x1c8   : > { %v9125_v41 = vpop.f32.mrf.mxu0  ;;  %v12217_v21 = vadd.f32 %v9169_v52, %v3346_v55  ;;  %v9842_v55 = vld [vmem:[%s13258_s3 + $0x148] sm:$0xff]   ;;  %9459 = vmatmul.mubr.bf16.gmra.mxu1 %v13804_v6  ;;  %9493 = vmatpush3.bf16.msra.mxu0 %v9840_v16 }
 0x1c9   : > { %v3350_v18 = vadd.f32 %v9125_v41, %v13802_v48  ;;  %v3564_v62 = vpop.f32.mrf.mxu1  ;;  %9539 = vmatpush3.bf16.msra.mxu1 %v9839_v27  ;;  %9494 = vmatprep.subr.bf16.mxu0 %v9842_v55 }
 0x1ca   : > { %v3247_v43 = vpop.f32.mrf.mxu0  ;;  %v12220_v61 = vadd.f32 %v3564_v62, %v3344_v53  ;;  %v13806_v53 = vld [vmem:[#allocation14_spill] sm:$0xff]  ;;  %9540 = vmatprep.subr.bf16.mxu1 %v9841_v15 }
 0x1cb   : > { %v3348_v19 = vadd.f32 %v3247_v43, %v13803_v49  ;;  %v9172_v38 = vpop.f32.mrf.mxu1  ;;  %9415 = vmatmul.mubr.bf16.gmra.mxu0 %v13805_v54  ;;  %9462 = vmatprep.mubr.bf16.mxu1 %v13806_v53  ;;  %v13807_v62 = vld [vmem:[#allocation50_spill] sm:$0xff]  ;;  %v13808_v49 = vld [vmem:[#allocation52_spill] sm:$0xff] }
 0x1cc   : > { %v9128_v20 = vpop.f32.mrf.mxu0  ;;  %v12231_v52 = vadd.f32 %v9172_v38, %v3349_v0  ;;  %9418 = vmatprep.mubr.bf16.mxu0 %v13808_v49  ;;  %v9843_v0 = vld [vmem:[%s13258_s3 + $0x188] sm:$0xff]   ;;  %v9845_v38 = vld [vmem:[%s13258_s3 + $0x140] sm:$0xff]   ;;  %9495 = vmatpush3.bf16.msra.mxu0 %v9842_v55  ;;  %v13811_v55 = vld [vmem:[#allocation53_spill] sm:$0xff] }
 0x1cd   : > { %v3353_v43 = vadd.f32 %v9128_v20, %v13807_v62  ;;  %v3577_v41 = vpop.f32.mrf.mxu1  ;;  %9541 = vmatpush3.bf16.msra.mxu1 %v9841_v15  ;;  %9496 = vmatprep.subr.bf16.mxu0 %v9845_v38 }
 0x1ce   : > { %v3260_v48 = vpop.f32.mrf.mxu0  ;;  %v12236_v42 = vadd.f32 %v3577_v41, %v3347_v50  ;;  %9542 = vmatprep.subr.bf16.mxu1 %v9843_v0 }
 0x1cf   : > { %v3351_v17 = vadd.f32 %v3260_v48, %v13809_v11  ;;  %v9173_v20 = vpop.f32.mrf.mxu1  ;;  %v9846_v48 = vld [vmem:[%s13258_s3 + $0x180] sm:$0xff]  }
 0x1d0   : > { %v9129_v62 = vpop.f32.mrf.mxu0  ;;  %v12245_v53 = vadd.f32 %v9173_v20, %v3350_v18  ;;  %v12257_v18 = vld [vmem:[%s13258_s3 + $0x1f8] sm:$0xff]   ;;  %v13810_v20 = vld [vmem:[#allocation12_spill] sm:$0xff]  ;;  %9497 = vmatpush3.bf16.msra.mxu0 %v9845_v38 }
 0x1d1   : > { %v3354_v16 = vadd.f32 %v9129_v62, %v12025_v4  ;;  %v3580_v27 = vpop.f32.mrf.mxu1  ;;  %9463 = vmatmul.mubr.bf16.gmra.mxu1 %v13810_v20  ;;  %9578 = vmatprep.subr.bf16.mxu0 %v12257_v18 }
 0x1d2   : > { %v3263_v50 = vpop.f32.mrf.mxu0  ;;  %v12248_v11 = vadd.f32 %v3580_v27, %v3348_v19  ;;  %v13813_v27 = vld [vmem:[#allocation54_spill] sm:$0xff]  ;;  %9543 = vmatpush3.bf16.msra.mxu1 %v9843_v0  ;;  %v12279_v0 = vld [vmem:[%s10960_s27 + $0xc0] sm:$0xf] }
 0x1d3   : > { %v3352_v41 = vadd.f32 %v3263_v50, %v12043_v2  ;;  %v9176_v4 = vpop.f32.mrf.mxu1  ;;  %9419 = vmatmul.mubr.bf16.gmra.mxu0 %v13811_v55  ;;  %v13812_v2 = vld [vmem:[#allocation32_spill] sm:$0xff]  ;;  %9544 = vmatprep.subr.bf16.mxu1 %v9846_v48 }
 0x1d4   : > { %v9132_v15 = vpop.f32.mrf.mxu0  ;;  %v12261_v19 = vadd.f32 %v9176_v4, %v3353_v43  ;;  %9466 = vmatprep.mubr.bf16.mxu1 %v13812_v2  ;;  %9422 = vmatprep.mubr.bf16.mxu0 %v13813_v27  ;;  %v12273_v43 = vld [vmem:[%s13258_s3 + $0x238] sm:$0xff]  }
 0x1d5   : > { %v3357_v62 = vadd.f32 %v9132_v15, %v12060_v30  ;;  %v3593_v50 = vpop.f32.mrf.mxu1 }
 0x1d6   : > { %v3276_v6 = vpop.f32.mrf.mxu0  ;;  %v12266_v60 = vadd.f32 %v3593_v50, %v3351_v17  ;;  %v12282_v50 = vld [vmem:[%s10960_s27 + $0xc4] sm:$0xf]  ;;  %9545 = vmatpush3.bf16.msra.mxu1 %v9846_v48  ;;  %v13820_v48 = vld [vmem:[#allocation60_spill] sm:$0xff] }
 0x1d7   : > { %v3355_v20 = vadd.f32 %v3276_v6, %v12071_v32  ;;  %v9177_v30 = vpop.f32.mrf.mxu1  ;;  %9626 = vmatprep.subr.bf16.mxu1 %v12273_v43 }
 0x1d8   : > { %13814 = vst [vmem:[#allocation19_spill] sm:$0xff] %v12266_v60  ;;  %v9133_v4 = vpop.f32.mrf.mxu0  ;;  %v12275_v15 = vadd.f32 %v9177_v30, %v3354_v16  ;;  %v13818_v30 = vld [vmem:[#allocation59_spill] sm:$0xff]  ;;  %v12306_v60 = vld [vmem:[%s10960_s27 + $0xc8] sm:$0x1] }
 0x1d9   : > { %v3358_v2 = vadd.f32 %v9133_v4, %v12080_v28  ;;  %v3596_v17 = vpop.f32.mrf.mxu1  ;;  %9467 = vmatmul.mubr.bf16.gmra.mxu1 %v13817_v22  ;;  %v6214_v28 = vshrl.u32 %v12279_v0, 16  ;;  %v6217_v4 = vshll.u32 %v12279_v0, 16 }
 0x1da   : > { %13815 = vst [vmem:[#allocation29_spill] sm:$0xff] %v12275_v15  ;;  %v3279_v38 = vpop.f32.mrf.mxu0  ;;  %v12284_v32 = vadd.f32 %v3596_v17, %v3352_v41  ;;  %9470 = vmatprep.mubr.bf16.mxu1 %v11953_v57  ;;  %v6223_v17 = vshll.u32 %v12282_v50, 16 }
 0x1db   : > { %v3356_v6 = vadd.f32 %v3279_v38, %v12083_v12  ;;  %v9180_v27 = vpop.f32.mrf.mxu1  ;;  %9423 = vmatmul.mubr.bf16.gmra.mxu0 %v13818_v30  ;;  %v6227_v12 = vshrl.u32 %v12282_v50, 16 }
 0x1dc   : > { %13816 = vst [vmem:[#allocation31_spill] sm:$0xff] %v12284_v32  ;;  %v9136_v16 = vpop.f32.mrf.mxu0  ;;  %v12292_v55 = vadd.f32 %v9180_v27, %v3357_v62  ;;  %9426 = vmatprep.mubr.bf16.mxu0 %v13820_v48  ;;  %v6216_v27 = vrot.slane %v6214_v28, 4  ;;  %v13822_v28 = vld [vmem:[#allocation69_spill] sm:$0xff] }
 0x1dd   : > { %v3361_v41 = vadd.f32 %v9136_v16, %v12099_v10  ;;  %v3609_v38 = vpop.f32.mrf.mxu1  ;;  %v6225_v16 = vrot.slane %v6223_v17, 5  ;;  %v6229_v48 = vrot.slane %v6227_v12, 4 }
 0x1de   : > { %13819 = vst [vmem:[#allocation24_spill] sm:$0xff] %v12292_v55  ;;  %v3292_v22 = vpop.f32.mrf.mxu0  ;;  %v12299_v30 = vadd.f32 %v3609_v38, %v3355_v20  ;;  %v6219_v55 = vrot.slane %v6217_v4, 5 }
 0x1df   : > { %v3359_v3 = vadd.f32 %v3292_v22, %v12107_v1  ;;  %v9181_v49 = vpop.f32.mrf.mxu1  ;;  %v13821_v1 = vld [vmem:[#allocation65_spill] sm:$0xff]  ;;  %v6230_v4 = vor.u32 %v6229_v48, %v6225_v16 }
 0x1e0   : > { %v9137_v62 = vpop.f32.mrf.mxu0  ;;  %v12302_v57 = vadd.f32 %v9181_v49, %v3358_v2  ;;  %v6220_v49 = vor.u32 %v6219_v55, %v6216_v27  ;;  %v12324_v55 = vcombine.low %v12279_v0, %v12282_v50 }
 0x1e1   : > { %v3362_v10 = vadd.f32 %v9137_v62, %v12117_v29  ;;  %v3612_v32 = vpop.f32.mrf.mxu1  ;;  %9471 = vmatmul.mubr.bf16.gmra.mxu1 %v12008_v9  ;;  %v6231_v48 = vrot.slane %v6230_v4, 4  ;;  %v13823_v4 = vld [vmem:[#allocation70_spill] sm:$0xff] }
 0x1e2   : > { %v3295_v15 = vpop.f32.mrf.mxu0  ;;  %v12308_v36 = vadd.f32 %v3612_v32, %v3356_v6  ;;  %9474 = vmatprep.mubr.bf16.mxu1 %v12074_v63  ;;  %v6233_v32 = vshll.u32 %v12306_v60, 16 }
 0x1e3   : > { %v3360_v20 = vadd.f32 %v3295_v15, %v12121_v35  ;;  %v9184_v38 = vpop.f32.mrf.mxu1  ;;  %9427 = vmatmul.mubr.bf16.gmra.mxu0 %v13821_v1 }
 0x1e4   : > { %v9140_v22 = vpop.f32.mrf.mxu0  ;;  %v12313_v2 = vadd.f32 %v9184_v38, %v3361_v41  ;;  %9430 = vmatprep.mubr.bf16.mxu0 %v13822_v28  ;;  %v6221_v41 = vrot.slane %v6220_v49, 4  ;;  %v6235_v38 = vrot.slane %v6233_v32, 5 }
 0x1e5   : > { %v3365_v29 = vadd.f32 %v9140_v22, %v12128_v7  ;;  %v3625_v6 = vpop.f32.mrf.mxu1 }
 0x1e6   : > { %v3308_v35 = vpop.f32.mrf.mxu0  ;;  %v12319_v15 = vadd.f32 %v3625_v6, %v3359_v3 }
 0x1e7   : > { %v3363_v12 = vadd.f32 %v3308_v35, %v12135_v14  ;;  %v9185_v17 = vpop.f32.mrf.mxu1 }
 0x1e8   : > { %v9141_v62 = vpop.f32.mrf.mxu0  ;;  %v12326_v27 = vadd.f32 %v9185_v17, %v3362_v10  ;;  %v6226_v10 = vsel %vm10019_vm2, %v6221_v41, %v6225_v16 }
 0x1e9   : > { %v3366_v7 = vadd.f32 %v9141_v62, %v12140_v37  ;;  %v3628_v22 = vpop.f32.mrf.mxu1  ;;  %9475 = vmatmul.mubr.bf16.gmra.mxu1 %v12077_v51  ;;  %v13845_v51 = vld [vmem:[#allocation60_spill] sm:$0xff] }
 0x1ea   : > { %v3311_v63 = vpop.f32.mrf.mxu0  ;;  %v12329_v9 = vadd.f32 %v3628_v22, %v3360_v20  ;;  %9478 = vmatprep.mubr.bf16.mxu1 %v12114_v8  ;;  %v6236_v20 = vsel %vm10019_vm2, %v6231_v48, %v6235_v38  ;;  %v9849_v48 = vld [vmem:[%s13258_s3 + $0x1f0] sm:$0xff]  }
 0x1eb   : > { %v3364_v3 = vadd.f32 %v3311_v63, %v12146_v40  ;;  %v9188_v14 = vpop.f32.mrf.mxu1  ;;  %9431 = vmatmul.mubr.bf16.gmra.mxu0 %v12324_v55  ;;  %v12346_v62 = vcombine.low %v6226_v10, %v6236_v20 }
 0x1ec   : > { %v9144_v6 = vpop.f32.mrf.mxu0  ;;  %v12336_v49 = vadd.f32 %v9188_v14, %v3365_v29  ;;  %9498 = vmatprep.mubr.bf16.mxu0 %v13823_v4 }
 0x1ed   : > { %v3369_v37 = vadd.f32 %v9144_v6, %v12151_v31  ;;  %v3641_v63 = vpop.f32.mrf.mxu1  ;;  %13824 = vst [vmem:[#allocation34_spill] sm:$0xff] %v12346_v62  ;;  %v13825_v6 = vld [vmem:[#allocation5_spill] sm:$0xff] }
 0x1ee   : > { %v3324_v40 = vpop.f32.mrf.mxu0  ;;  %v12343_v32 = vadd.f32 %v3641_v63, %v3363_v12 }
 0x1ef   : > { %v3367_v35 = vadd.f32 %v3324_v40, %v12160_v44  ;;  %v9189_v17 = vpop.f32.mrf.mxu1 }
 0x1f0   : > { %v9145_v16 = vpop.f32.mrf.mxu0  ;;  %v12348_v29 = vadd.f32 %v9189_v17, %v3366_v7 }
 0x1f1   : > { %v3370_v41 = vadd.f32 %v9145_v16, %v12163_v56  ;;  %v3644_v31 = vpop.f32.mrf.mxu1  ;;  %9479 = vmatmul.mubr.bf16.gmra.mxu1 %v12346_v62  ;;  %v9850_v16 = vld [vmem:[%s13258_s3 + $0x230] sm:$0xff]  }
 0x1f2   : > { %v3327_v22 = vpop.f32.mrf.mxu0  ;;  %v12354_v38 = vadd.f32 %v3644_v31, %v3364_v3  ;;  %9546 = vmatprep.mubr.bf16.mxu1 %v13789_v26  ;;  %v13826_v3 = vld [vmem:[#allocation7_spill] sm:$0xff] }
 0x1f3   : > { %v3368_v12 = vadd.f32 %v3327_v22, %v12169_v5  ;;  %v9192_v14 = vpop.f32.mrf.mxu1  ;;  %9499 = vmatmul.mubr.bf16.vlgmr.msra.gmra.mxu0 %v13825_v6  ;;  %v9851_v5 = vld [vmem:[%s13258_s3 + $0x1e8] sm:$0xff]  }
 0x1f4   : > { %v9212_v44 = vpop.f32.mrf.mxu0  ;;  %v12359_v7 = vadd.f32 %v9192_v14, %v3369_v37  ;;  %9579 = vmatpush3.bf16.msra.mxu0 %v12257_v18  ;;  %9502 = vmatprep.mubr.bf16.mxu0 %v13826_v3 }
 0x1f5   : > { %v3991_v56 = vadd.f32 %v9212_v44, %v12177_v45  ;;  %v3657_v10 = vpop.f32.mrf.mxu1  ;;  %9580 = vmatprep.subr.bf16.mxu0 %v9849_v48  ;;  %v13828_v44 = vld [vmem:[#allocation40_spill] sm:$0xff] }
 0x1f6   : > { %v3862_v20 = vpop.f32.mrf.mxu0  ;;  %v12368_v4 = vadd.f32 %v3657_v10, %v3367_v35 }
 0x1f7   : > { %v3989_v37 = vadd.f32 %v3862_v20, %v12186_v33  ;;  %v9193_v63 = vpop.f32.mrf.mxu1 }
 0x1f8   : > { %v9213_v40 = vpop.f32.mrf.mxu0  ;;  %v12371_v26 = vadd.f32 %v9193_v63, %v3370_v41  ;;  %9581 = vmatpush3.bf16.msra.mxu0 %v9849_v48  ;;  %v13827_v41 = vld [vmem:[#allocation11_spill] sm:$0xff] }
 0x1f9   : > { %v3992_v45 = vadd.f32 %v9213_v40, %v12189_v58  ;;  %v3660_v18 = vpop.f32.mrf.mxu1  ;;  %9582 = vmatprep.subr.bf16.mxu0 %v9851_v5  ;;  %9547 = vmatmul.mubr.bf16.vlgmr.msra.gmra.mxu1 %v13790_v23  ;;  %v9853_v58 = vld [vmem:[%s13258_s3 + $0x1e0] sm:$0xff]   ;;  %v9852_v23 = vld [vmem:[%s13258_s3 + $0x228] sm:$0xff]  }
 0x1fa   : > { %v3865_v17 = vpop.f32.mrf.mxu0  ;;  %v12377_v31 = vadd.f32 %v3660_v18, %v3368_v12  ;;  %9627 = vmatpush3.bf16.msra.mxu1 %v12273_v43  ;;  %9550 = vmatprep.mubr.bf16.mxu1 %v13791_v13  ;;  %v9854_v18 = vld [vmem:[%s13258_s3 + $0x220] sm:$0xff]  }
 0x1fb   : > { %v3990_v35 = vadd.f32 %v3865_v17, %v12195_v34  ;;  %v9260_v22 = vpop.f32.mrf.mxu1  ;;  %9503 = vmatmul.mubr.bf16.gmra.mxu0 %v13827_v41  ;;  %9628 = vmatprep.subr.bf16.mxu1 %v9850_v16  ;;  %v13829_v17 = vld [vmem:[#allocation28_spill] sm:$0xff] }
 0x1fc   : > { %v9216_v33 = vpop.f32.mrf.mxu0  ;;  %v12385_v48 = vadd.f32 %v9260_v22, %v3991_v56  ;;  %9506 = vmatprep.mubr.bf16.mxu0 %v13828_v44  ;;  %9583 = vmatpush3.bf16.msra.mxu0 %v9851_v5  ;;  %v9855_v5 = vld [vmem:[%s13258_s3 + $0x1d8] sm:$0xff]  }
 0x1fd   : > { %v3995_v12 = vadd.f32 %v9216_v33, %v12203_v25  ;;  %v4461_v14 = vpop.f32.mrf.mxu1  ;;  %9584 = vmatprep.subr.bf16.mxu0 %v9853_v58 }
 0x1fe   : > { %v3878_v34 = vpop.f32.mrf.mxu0  ;;  %v12394_v10 = vadd.f32 %v4461_v14, %v3989_v37  ;;  %9629 = vmatpush3.bf16.msra.mxu1 %v9850_v16 }
 0x1ff   : > { %v3993_v56 = vadd.f32 %v3878_v34, %v12214_v59  ;;  %v9261_v20 = vpop.f32.mrf.mxu1  ;;  %9630 = vmatprep.subr.bf16.mxu1 %v9852_v23 }
 0x200   : > { %v9217_v43 = vpop.f32.mrf.mxu0  ;;  %v12397_v13 = vadd.f32 %v9261_v20, %v3992_v45  ;;  %9585 = vmatpush3.bf16.msra.mxu0 %v9853_v58  ;;  %v13830_v58 = vld [vmem:[#allocation51_spill] sm:$0xff] }
 0x201   : > { %v3996_v25 = vadd.f32 %v9217_v43, %v12217_v21  ;;  %v4464_v63 = vpop.f32.mrf.mxu1  ;;  %9551 = vmatmul.mubr.bf16.gmra.mxu1 %v13793_v24  ;;  %v9856_v24 = vld [vmem:[%s13258_s3 + $0x218] sm:$0xff]   ;;  %9586 = vmatprep.subr.bf16.mxu0 %v9855_v5 }
 0x202   : > { %v3881_v40 = vpop.f32.mrf.mxu0  ;;  %v12403_v37 = vadd.f32 %v4464_v63, %v3990_v35  ;;  %9554 = vmatprep.mubr.bf16.mxu1 %v13797_v47  ;;  %9631 = vmatpush3.bf16.msra.mxu1 %v9852_v23 }
 0x203   : > { %v3994_v59 = vadd.f32 %v3881_v40, %v12220_v61  ;;  %v9264_v45 = vpop.f32.mrf.mxu1  ;;  %9507 = vmatmul.mubr.bf16.gmra.mxu0 %v13829_v17  ;;  %v9857_v61 = vld [vmem:[%s13258_s3 + $0x1d0] sm:$0xff]   ;;  %9632 = vmatprep.subr.bf16.mxu1 %v9854_v18 }
 0x204   : > { %v9220_v21 = vpop.f32.mrf.mxu0  ;;  %v12411_v16 = vadd.f32 %v9264_v45, %v3995_v12  ;;  %9510 = vmatprep.mubr.bf16.mxu0 %v13830_v58  ;;  %9587 = vmatpush3.bf16.msra.mxu0 %v9855_v5 }
 0x205   : > { %v3999_v35 = vadd.f32 %v9220_v21, %v12231_v52  ;;  %v4477_v22 = vpop.f32.mrf.mxu1  ;;  %9588 = vmatprep.subr.bf16.mxu0 %v9857_v61 }
 0x206   : > { %v3894_v33 = vpop.f32.mrf.mxu0  ;;  %v12422_v12 = vadd.f32 %v4477_v22, %v3993_v56  ;;  %9633 = vmatpush3.bf16.msra.mxu1 %v9854_v18  ;;  %v13831_v18 = vld [vmem:[#allocation58_spill] sm:$0xff] }
 0x207   : > { %v3997_v47 = vadd.f32 %v3894_v33, %v12236_v42  ;;  %v9265_v52 = vpop.f32.mrf.mxu1  ;;  %9634 = vmatprep.subr.bf16.mxu1 %v9856_v24  ;;  %v9858_v42 = vld [vmem:[%s13258_s3 + $0x210] sm:$0xff]   ;;  %v13833_v33 = vld [vmem:[#allocation19_spill] sm:$0xff] }
 0x208   : > { %v9221_v14 = vpop.f32.mrf.mxu0  ;;  %v12425_v34 = vadd.f32 %v9265_v52, %v3996_v25  ;;  %v9859_v25 = vld [vmem:[%s13258_s3 + $0x1c8] sm:$0xff]   ;;  %9589 = vmatpush3.bf16.msra.mxu0 %v9857_v61 }
 0x209   : > { %v4000_v23 = vadd.f32 %v9221_v14, %v12245_v53  ;;  %v4480_v20 = vpop.f32.mrf.mxu1  ;;  %9555 = vmatmul.mubr.bf16.gmra.mxu1 %v13800_v46  ;;  %9590 = vmatprep.subr.bf16.mxu0 %v9859_v25  ;;  %v9860_v46 = vld [vmem:[%s13258_s3 + $0x208] sm:$0xff]  }
 0x20a   : > { %v3897_v43 = vpop.f32.mrf.mxu0  ;;  %v12428_v63 = vadd.f32 %v4480_v20, %v3994_v59  ;;  %9558 = vmatprep.mubr.bf16.mxu1 %v13805_v54  ;;  %v13832_v59 = vld [vmem:[#allocation61_spill] sm:$0xff]  ;;  %9635 = vmatpush3.bf16.msra.mxu1 %v9856_v24  ;;  %v9862_v54 = vld [vmem:[%s13258_s3 + $0x1c0] sm:$0xff]  }
 0x20b   : > { %v3998_v56 = vadd.f32 %v3897_v43, %v12248_v11  ;;  %v9268_v40 = vpop.f32.mrf.mxu1  ;;  %9511 = vmatmul.mubr.bf16.gmra.mxu0 %v13831_v18  ;;  %9636 = vmatprep.subr.bf16.mxu1 %v9858_v42  ;;  %v13834_v24 = vld [vmem:[#allocation29_spill] sm:$0xff] }
 0x20c   : > { %v9224_v53 = vpop.f32.mrf.mxu0  ;;  %v12439_v5 = vadd.f32 %v9268_v40, %v3999_v35  ;;  %9514 = vmatprep.mubr.bf16.mxu0 %v13832_v59  ;;  %9591 = vmatpush3.bf16.msra.mxu0 %v9859_v25  ;;  %v13835_v40 = vld [vmem:[#allocation31_spill] sm:$0xff] }
 0x20d   : > { %v4003_v11 = vadd.f32 %v9224_v53, %v12261_v19  ;;  %v4493_v45 = vpop.f32.mrf.mxu1  ;;  %9592 = vmatprep.subr.bf16.mxu0 %v9862_v54 }
 0x20e   : > { %v3910_v21 = vpop.f32.mrf.mxu0  ;;  %v12444_v22 = vadd.f32 %v4493_v45, %v3997_v47  ;;  %9637 = vmatpush3.bf16.msra.mxu1 %v9858_v42  ;;  %v9863_v45 = vld [vmem:[%s13258_s3 + $0x200] sm:$0xff]   ;;  %v13838_v42 = vld [vmem:[#allocation53_spill] sm:$0xff] }
 0x20f   : > { %v4001_v52 = vadd.f32 %v3910_v21, %v13833_v33  ;;  %v9269_v19 = vpop.f32.mrf.mxu1  ;;  %9638 = vmatprep.subr.bf16.mxu1 %v9860_v46  ;;  %v13836_v33 = vld [vmem:[#allocation52_spill] sm:$0xff] }
 0x210   : > { %v9225_v35 = vpop.f32.mrf.mxu0  ;;  %v12453_v14 = vadd.f32 %v9269_v19, %v4000_v23  ;;  %v13837_v19 = vld [vmem:[#allocation67_spill] sm:$0xff]  ;;  %9593 = vmatpush3.bf16.msra.mxu0 %v9862_v54  ;;  %v13841_v54 = vld [vmem:[#allocation54_spill] sm:$0xff] }
 0x211   : > { %v4004_v61 = vadd.f32 %v9225_v35, %v13834_v24  ;;  %v4496_v47 = vpop.f32.mrf.mxu1  ;;  %9559 = vmatmul.mubr.bf16.gmra.mxu1 %v13836_v33  ;;  %v13840_v24 = vld [vmem:[#allocation15_spill] sm:$0xff] }
 0x212   : > { %v3913_v20 = vpop.f32.mrf.mxu0  ;;  %v12456_v43 = vadd.f32 %v4496_v47, %v3998_v56  ;;  %9562 = vmatprep.mubr.bf16.mxu1 %v13838_v42  ;;  %v13839_v56 = vld [vmem:[#allocation24_spill] sm:$0xff]  ;;  %9639 = vmatpush3.bf16.msra.mxu1 %v9860_v46 }
 0x213   : > { %v4002_v53 = vadd.f32 %v3913_v20, %v13835_v40  ;;  %v9272_v21 = vpop.f32.mrf.mxu1  ;;  %9515 = vmatmul.mubr.bf16.gmra.mxu0 %v13837_v19  ;;  %9640 = vmatprep.subr.bf16.mxu1 %v9863_v45 }
 0x214   : > { %v9228_v23 = vpop.f32.mrf.mxu0  ;;  %v12464_v35 = vadd.f32 %v9272_v21, %v4003_v11  ;;  %9518 = vmatprep.mubr.bf16.mxu0 %v13840_v24 }
 0x215   : > { %v4007_v25 = vadd.f32 %v9228_v23, %v13839_v56  ;;  %v4509_v47 = vpop.f32.mrf.mxu1 }
 0x216   : > { %v3926_v20 = vpop.f32.mrf.mxu0  ;;  %v12469_v40 = vadd.f32 %v4509_v47, %v4001_v52  ;;  %9641 = vmatpush3.bf16.msra.mxu1 %v9863_v45  ;;  %v13842_v47 = vld [vmem:[#allocation25_spill] sm:$0xff] }
 0x217   : > { %v4005_v62 = vadd.f32 %v3926_v20, %v12299_v30  ;;  %v9273_v33 = vpop.f32.mrf.mxu1  ;;  %v13843_v20 = vld [vmem:[#allocation59_spill] sm:$0xff] }
 0x218   : > { %v9229_v39 = vpop.f32.mrf.mxu0  ;;  %v12472_v8 = vadd.f32 %v9273_v33, %v4004_v61 }
 0x219   : > { %v4008_v11 = vadd.f32 %v9229_v39, %v12302_v57  ;;  %v4512_v21 = vpop.f32.mrf.mxu1  ;;  %9563 = vmatmul.mubr.bf16.gmra.mxu1 %v13841_v54  ;;  %v13844_v39 = vld [vmem:[#allocation56_spill] sm:$0xff]  ;;  %v6549_v57 = vrot.slane %v12282_v50, 5  ;;  %v8336_v54 = vrot.slane %v12279_v0, 9 }
 0x21a   : > { %v3929_v42 = vpop.f32.mrf.mxu0  ;;  %v12475_v23 = vadd.f32 %v4512_v21, %v4002_v53  ;;  %9566 = vmatprep.mubr.bf16.mxu1 %v13843_v20 }
 0x21b   : > { %v4006_v56 = vadd.f32 %v3929_v42, %v12308_v36  ;;  %v9276_v46 = vpop.f32.mrf.mxu1  ;;  %9519 = vmatmul.mubr.bf16.gmra.mxu0 %v13842_v47  ;;  %v6551_v20 = vrot.slane %v6549_v57, 4 }
 0x21c   : > { %v9232_v52 = vpop.f32.mrf.mxu0  ;;  %v12480_v30 = vadd.f32 %v9276_v46, %v4007_v25  ;;  %9522 = vmatprep.mubr.bf16.mxu0 %v13844_v39 }
 0x21d   : > { %v4011_v61 = vadd.f32 %v9232_v52, %v12313_v2  ;;  %v4525_v53 = vpop.f32.mrf.mxu1  ;;  %v6552_v2 = vrot.slane %v12306_v60, 5 }
 0x21e   : > { %v3942_v45 = vpop.f32.mrf.mxu0  ;;  %v12486_v33 = vadd.f32 %v4525_v53, %v4005_v62 }
 0x21f   : > { %v4009_v36 = vadd.f32 %v3942_v45, %v12319_v15  ;;  %v9277_v21 = vpop.f32.mrf.mxu1  ;;  %v13846_v45 = vld [vmem:[#allocation57_spill] sm:$0xff] }
 0x220   : > { %v9233_v42 = vpop.f32.mrf.mxu0  ;;  %v12490_v25 = vadd.f32 %v9277_v21, %v4008_v11  ;;  %v6550_v11 = vsel %vm10453_vm5, %v8336_v54, %v6549_v57 }
 0x221   : > { %v4012_v46 = vadd.f32 %v9233_v42, %v12326_v27  ;;  %v4528_v52 = vpop.f32.mrf.mxu1  ;;  %9567 = vmatmul.mubr.bf16.gmra.mxu1 %v13845_v51  ;;  %v13848_v27 = vld [vmem:[#allocation62_spill] sm:$0xff] }
 0x222   : > { %v3945_v39 = vpop.f32.mrf.mxu0  ;;  %v12494_v50 = vadd.f32 %v4528_v52, %v4006_v56  ;;  %9570 = vmatprep.mubr.bf16.mxu1 %v13821_v1 }
 0x223   : > { %v4010_v62 = vadd.f32 %v3945_v39, %v12329_v9  ;;  %v9280_v53 = vpop.f32.mrf.mxu1  ;;  %9523 = vmatmul.mubr.bf16.gmra.mxu0 %v13846_v45  ;;  %v6553_v9 = vsel %vm10453_vm5, %v6551_v20, %v6552_v2 }
 0x224   : > { %v9236_v15 = vpop.f32.mrf.mxu0  ;;  %v12501_v21 = vadd.f32 %v9280_v53, %v4011_v61  ;;  %9526 = vmatprep.mubr.bf16.mxu0 %v13848_v27  ;;  %v12511_v61 = vcombine.low %v6550_v11, %v6553_v9  ;;  %v12526_v11 = vld [vmem:[%s10960_s27 + $0xcc] sm:$0xf] }
 0x225   : > { %v4015_v60 = vadd.f32 %v9236_v15, %v12336_v49  ;;  %v4541_v56 = vpop.f32.mrf.mxu1 }
 0x226   : > { %v3958_v39 = vpop.f32.mrf.mxu0  ;;  %v12508_v51 = vadd.f32 %v4541_v56, %v4009_v36 }
 0x227   : > { %v4013_v42 = vadd.f32 %v3958_v39, %v12343_v32  ;;  %v9281_v52 = vpop.f32.mrf.mxu1 }
 0x228   : > { %v9237_v57 = vpop.f32.mrf.mxu0  ;;  %v12513_v1 = vadd.f32 %v9281_v52, %v4012_v46 }
 0x229   : > { %v4016_v49 = vadd.f32 %v9237_v57, %v12348_v29  ;;  %v4544_v54 = vpop.f32.mrf.mxu1  ;;  %9571 = vmatmul.mubr.bf16.gmra.mxu1 %v13822_v28  ;;  %v12529_v29 = vld [vmem:[%s10960_s27 + $0xd0] sm:$0xf] }
 0x22a   : > { %v3961_v53 = vpop.f32.mrf.mxu0  ;;  %v12516_v15 = vadd.f32 %v4544_v54, %v4010_v62  ;;  %9574 = vmatprep.mubr.bf16.mxu1 %v12324_v55  ;;  %v13849_v62 = vld [vmem:[#allocation21_spill] sm:$0xff] }
 0x22b   : > { %v4014_v20 = vadd.f32 %v3961_v53, %v12354_v38  ;;  %v9284_v36 = vpop.f32.mrf.mxu1  ;;  %9527 = vmatmul.mubr.bf16.gmra.mxu0 %v12511_v61 }
 0x22c   : > { %v9240_v32 = vpop.f32.mrf.mxu0  ;;  %v12521_v2 = vadd.f32 %v9284_v36, %v4015_v60  ;;  %9594 = vmatprep.mubr.bf16.mxu0 %v13849_v62  ;;  %v8346_v60 = vcombine.low %v12526_v11, %v12529_v29  ;;  %v13850_v62 = vld [vmem:[#allocation18_spill] sm:$0xff] }
 0x22d   : > { %v4019_v46 = vadd.f32 %v9240_v32, %v12359_v7  ;;  %v4557_v9 = vpop.f32.mrf.mxu1 }
 0x22e   : > { %v3974_v38 = vpop.f32.mrf.mxu0  ;;  %v12532_v56 = vadd.f32 %v4557_v9, %v4013_v42  ;;  %v13851_v9 = vld [vmem:[#allocation30_spill] sm:$0xff] }
 0x22f   : > { %v4017_v28 = vadd.f32 %v3974_v38, %v12368_v4  ;;  %v9285_v39 = vpop.f32.mrf.mxu1 }
 0x230   : > { %v9241_v52 = vpop.f32.mrf.mxu0  ;;  %v12537_v55 = vadd.f32 %v9285_v39, %v4016_v49 }
 0x231   : > { %v4020_v7 = vadd.f32 %v9241_v52, %v12371_v26  ;;  %v4560_v57 = vpop.f32.mrf.mxu1  ;;  %9575 = vmatmul.mubr.bf16.gmra.mxu1 %v8346_v60 }
 0x232   : > { %v3977_v54 = vpop.f32.mrf.mxu0  ;;  %v12540_v53 = vadd.f32 %v4560_v57, %v4014_v20  ;;  %9642 = vmatprep.mubr.bf16.mxu1 %v13825_v6 }
 0x233   : > { %v4018_v36 = vadd.f32 %v3977_v54, %v12377_v31  ;;  %v9288_v32 = vpop.f32.mrf.mxu1  ;;  %9595 = vmatmul.mubr.bf16.vlgmr.msra.gmra.mxu0 %v13850_v62 }
 0x234   : > { %v9308_v42 = vpop.f32.mrf.mxu0  ;;  %v12544_v4 = vadd.f32 %v9288_v32, %v4019_v46  ;;  %9598 = vmatprep.mubr.bf16.mxu0 %v13851_v9 }
 0x235   : > { %v5343_v49 = vadd.f32 %v9308_v42, %v12385_v48  ;;  %v4573_v26 = vpop.f32.mrf.mxu1 }
 0x236   : > { %v5214_v38 = vpop.f32.mrf.mxu0  ;;  %v12549_v39 = vadd.f32 %v4573_v26, %v4017_v28  ;;  %v13852_v28 = vld [vmem:[#allocation16_spill] sm:$0xff] }
 0x237   : > { %v5341_v20 = vadd.f32 %v5214_v38, %v12394_v10  ;;  %v9289_v31 = vpop.f32.mrf.mxu1 }
 0x238   : > { %v9309_v52 = vpop.f32.mrf.mxu0  ;;  %v12552_v60 = vadd.f32 %v9289_v31, %v4020_v7  ;;  %v13853_v7 = vld [vmem:[#allocation4_spill] sm:$0xff] }
 0x239   : > { %v5344_v57 = vadd.f32 %v9309_v52, %v12397_v13  ;;  %v4576_v46 = vpop.f32.mrf.mxu1  ;;  %9643 = vmatmul.mubr.bf16.vlgmr.msra.gmra.mxu1 %v13826_v3 }
 0x23a   : > { %v5217_v54 = vpop.f32.mrf.mxu0  ;;  %v12555_v32 = vadd.f32 %v4576_v46, %v4018_v36  ;;  %9646 = vmatprep.mubr.bf16.mxu1 %v13827_v41 }
 0x23b   : > { %v5342_v6 = vadd.f32 %v5217_v54, %v12403_v37  ;;  %v9356_v48 = vpop.f32.mrf.mxu1  ;;  %9599 = vmatmul.mubr.bf16.gmra.mxu0 %v13852_v28 }
 0x23c   : > { %v9312_v42 = vpop.f32.mrf.mxu0  ;;  %v12560_v62 = vadd.f32 %v9356_v48, %v5343_v49  ;;  %9602 = vmatprep.mubr.bf16.mxu0 %v13853_v7 }
 0x23d   : > { %v5347_v10 = vadd.f32 %v9312_v42, %v12411_v16  ;;  %v5711_v13 = vpop.f32.mrf.mxu1 }
 0x23e   : > { %v5230_v9 = vpop.f32.mrf.mxu0  ;;  %v12565_v36 = vadd.f32 %v5711_v13, %v5341_v20  ;;  %v13854_v20 = vld [vmem:[#allocation14_spill] sm:$0xff] }
 0x23f   : > { %v5345_v37 = vadd.f32 %v5230_v9, %v12422_v12  ;;  %v9357_v26 = vpop.f32.mrf.mxu1 }
 0x240   : > { %v9313_v38 = vpop.f32.mrf.mxu0  ;;  %v12568_v3 = vadd.f32 %v9357_v26, %v5344_v57  ;;  %v13855_v57 = vld [vmem:[#allocation12_spill] sm:$0xff] }
 0x241   : > { %v5348_v31 = vadd.f32 %v9313_v38, %v12425_v34  ;;  %v5714_v49 = vpop.f32.mrf.mxu1  ;;  %9647 = vmatmul.mubr.bf16.gmra.mxu1 %v13828_v44 }
 0x242   : > { %v5233_v52 = vpop.f32.mrf.mxu0  ;;  %v12571_v46 = vadd.f32 %v5714_v49, %v5342_v6  ;;  %9650 = vmatprep.mubr.bf16.mxu1 %v13829_v17 }
 0x243   : > { %v5346_v41 = vadd.f32 %v5233_v52, %v12428_v63  ;;  %v9360_v16 = vpop.f32.mrf.mxu1  ;;  %9603 = vmatmul.mubr.bf16.gmra.mxu0 %v13854_v20 }
 0x244   : > { %v9316_v54 = vpop.f32.mrf.mxu0  ;;  %v12576_v48 = vadd.f32 %v9360_v16, %v5347_v10  ;;  %9606 = vmatprep.mubr.bf16.mxu0 %v13855_v57 }
 0x245   : > { %v5351_v12 = vadd.f32 %v9316_v54, %v12439_v5  ;;  %v5727_v34 = vpop.f32.mrf.mxu1 }
 0x246   : > { %v5246_v42 = vpop.f32.mrf.mxu0  ;;  %v12581_v6 = vadd.f32 %v5727_v34, %v5345_v37  ;;  %v13856_v37 = vld [vmem:[#allocation32_spill] sm:$0xff] }
 0x247   : > { %v5349_v63 = vadd.f32 %v5246_v42, %v12444_v22  ;;  %v9361_v28 = vpop.f32.mrf.mxu1  ;;  %v7178_v42 = vshll.u32 %v12526_v11, 16 }
 0x248   : > { %v9317_v7 = vpop.f32.mrf.mxu0  ;;  %v12584_v44 = vadd.f32 %v9361_v28, %v5348_v31  ;;  %v13857_v31 = vld [vmem:[#allocation66_spill] sm:$0xff]  ;;  %v13858_v28 = vld [vmem:[#allocation39_spill] sm:$0xff] }
 0x249   : > { %v5352_v13 = vadd.f32 %v9317_v7, %v12453_v14  ;;  %v5730_v10 = vpop.f32.mrf.mxu1  ;;  %9651 = vmatmul.mubr.bf16.gmra.mxu1 %v13830_v58  ;;  %v7188_v7 = vshrl.u32 %v12529_v29, 16 }
 0x24a   : > { %v5249_v9 = vpop.f32.mrf.mxu0  ;;  %v12587_v26 = vadd.f32 %v5730_v10, %v5346_v41  ;;  %9654 = vmatprep.mubr.bf16.mxu1 %v13831_v18  ;;  %v13859_v10 = vld [vmem:[#allocation43_spill] sm:$0xff] }
 0x24b   : > { %v5350_v17 = vadd.f32 %v5249_v9, %v12456_v43  ;;  %v9364_v5 = vpop.f32.mrf.mxu1  ;;  %9607 = vmatmul.mubr.bf16.gmra.mxu0 %v13856_v37 }
 0x24c   : > { %v9320_v38 = vpop.f32.mrf.mxu0  ;;  %v12592_v49 = vadd.f32 %v9364_v5, %v5351_v12  ;;  %9610 = vmatprep.mubr.bf16.mxu0 %v13857_v31 }
 0x24d   : > { %v5355_v22 = vadd.f32 %v9320_v38, %v12464_v35  ;;  %v5743_v14 = vpop.f32.mrf.mxu1  ;;  %v7175_v35 = vshrl.u32 %v12526_v11, 16 }
 0x24e   : > { %v5262_v52 = vpop.f32.mrf.mxu0  ;;  %v12597_v41 = vadd.f32 %v5743_v14, %v5349_v63 }
 0x24f   : > { %v5353_v43 = vadd.f32 %v5262_v52, %v12469_v40  ;;  %v9365_v16 = vpop.f32.mrf.mxu1  ;;  %v7177_v31 = vrot.slane %v7175_v35, 4  ;;  %v7190_v52 = vrot.slane %v7188_v7, 4  ;;  %v13860_v35 = vld [vmem:[#allocation26_spill] sm:$0xff] }
 0x250   : > { %v9321_v54 = vpop.f32.mrf.mxu0  ;;  %v12600_v58 = vadd.f32 %v9365_v16, %v5352_v13 }
 0x251   : > { %v5356_v20 = vadd.f32 %v9321_v54, %v12472_v8  ;;  %v5746_v12 = vpop.f32.mrf.mxu1  ;;  %9655 = vmatmul.mubr.bf16.gmra.mxu1 %v13832_v59 }
 0x252   : > { %v5265_v57 = vpop.f32.mrf.mxu0  ;;  %v12603_v34 = vadd.f32 %v5746_v12, %v5350_v17  ;;  %9658 = vmatprep.mubr.bf16.mxu1 %v13837_v19  ;;  %v12624_v12 = vld [vmem:[%s10960_s27 + $0xd4] sm:$0x1]  ;;  %s8377_s27 = sshll.u32 %s9945_s7, 8 }
 0x253   : > { %v5354_v18 = vadd.f32 %v5265_v57, %v12475_v23  ;;  %v9368_v63 = vpop.f32.mrf.mxu1  ;;  %9611 = vmatmul.mubr.bf16.gmra.mxu0 %v13858_v28  ;;  %v7184_v23 = vshll.u32 %v12529_v29, 16  ;;  %s12933_s12 = scalar_lea.vmem %s13259_s4, %s8377_s27 }
 0x254   : > { %v9324_v40 = vpop.f32.mrf.mxu0  ;;  %v12611_v13 = vadd.f32 %v9368_v63, %v5355_v22  ;;  %9614 = vmatprep.mubr.bf16.mxu0 %v13859_v10  ;;  %v7180_v22 = vrot.slane %v7178_v42, 5 }
 0x255   : > { %v5359_v8 = vadd.f32 %v9324_v40, %v12480_v30  ;;  %v5759_v9 = vpop.f32.mrf.mxu1  ;;  %v7186_v30 = vrot.slane %v7184_v23, 5  ;;  %v13861_v40 = vld [vmem:[#allocation38_spill] sm:$0xff] }
 0x256   : > { %v5278_v17 = vpop.f32.mrf.mxu0  ;;  %v12617_v5 = vadd.f32 %v5759_v9, %v5353_v43 }
 0x257   : > { %v5357_v59 = vadd.f32 %v5278_v17, %v12486_v33  ;;  %v9369_v38 = vpop.f32.mrf.mxu1  ;;  %v7191_v28 = vor.u32 %v7190_v52, %v7186_v30 }
 0x258   : > { %v9325_v37 = vpop.f32.mrf.mxu0  ;;  %v12620_v14 = vadd.f32 %v9369_v38, %v5356_v20  ;;  %v7181_v20 = vor.u32 %v7180_v22, %v7177_v31 }
 0x259   : > { %v5360_v19 = vadd.f32 %v9325_v37, %v12490_v25  ;;  %v5762_v16 = vpop.f32.mrf.mxu1  ;;  %9659 = vmatmul.mubr.bf16.gmra.mxu1 %v13840_v24  ;;  %v7192_v38 = vrot.slane %v7191_v28, 4 }
 0x25a   : > { %v5281_v54 = vpop.f32.mrf.mxu0  ;;  %v12626_v57 = vadd.f32 %v5762_v16, %v5354_v18  ;;  %9662 = vmatprep.mubr.bf16.mxu1 %v13842_v47  ;;  %v7194_v18 = vshll.u32 %v12624_v12, 16  ;;  %v7182_v17 = vrot.slane %v7181_v20, 4 }
 0x25b   : > { %v5358_v43 = vadd.f32 %v5281_v54, %v12494_v50  ;;  %v9372_v63 = vpop.f32.mrf.mxu1  ;;  %9615 = vmatmul.mubr.bf16.gmra.mxu0 %v13860_v35  ;;  %v13865_v35 = vld [vmem:[#allocation34_spill] sm:$0xff] }
 0x25c   : > { %v9328_v33 = vpop.f32.mrf.mxu0  ;;  %v12631_v42 = vadd.f32 %v9372_v63, %v5359_v8  ;;  %9618 = vmatprep.mubr.bf16.mxu0 %v13861_v40 }
 0x25d   : > { %v5363_v25 = vadd.f32 %v9328_v33, %v12501_v21  ;;  %v5775_v7 = vpop.f32.mrf.mxu1  ;;  %v7196_v21 = vrot.slane %v7194_v18, 5 }
 0x25e   : > { %v5294_v50 = vpop.f32.mrf.mxu0  ;;  %v12637_v10 = vadd.f32 %v5775_v7, %v5357_v59  ;;  %v13862_v59 = vld [vmem:[#allocation56_spill] sm:$0xff] }
 0x25f   : > { %v5361_v24 = vadd.f32 %v5294_v50, %v12508_v51  ;;  %v9373_v23 = vpop.f32.mrf.mxu1  ;;  %v13863_v51 = vld [vmem:[#allocation9_spill] sm:$0xff] }
 0x260   : > { %v9329_v9 = vpop.f32.mrf.mxu0  ;;  %v12640_v8 = vadd.f32 %v9373_v23, %v5360_v19  ;;  %v7187_v19 = vsel %vm10019_vm2, %v7182_v17, %v7186_v30 }
 0x261   : > { %v5364_v47 = vadd.f32 %v9329_v9, %v12513_v1  ;;  %v5778_v37 = vpop.f32.mrf.mxu1  ;;  %9663 = vmatmul.mubr.bf16.gmra.mxu1 %v13862_v59  ;;  %v7513_v9 = vrot.slane %v12624_v12, 5 }
 0x262   : > { %v5297_v31 = vpop.f32.mrf.mxu0  ;;  %v12643_v22 = vadd.f32 %v5778_v37, %v5358_v43  ;;  %9666 = vmatprep.mubr.bf16.mxu1 %v13846_v45  ;;  %v7510_v43 = vrot.slane %v12529_v29, 5  ;;  %v8364_v45 = vrot.slane %v12526_v11, 9 }
 0x263   : > { %v5362_v52 = vadd.f32 %v5297_v31, %v12516_v15  ;;  %v9376_v16 = vpop.f32.mrf.mxu1  ;;  %9619 = vmatmul.mubr.bf16.gmra.mxu0 %v13863_v51  ;;  %v7197_v15 = vsel %vm10019_vm2, %v7192_v38, %v7196_v21 }
 0x264   : > { %v9332_v54 = vpop.f32.mrf.mxu0  ;;  %v12650_v33 = vadd.f32 %v9376_v16, %v5363_v25  ;;  %9622 = vmatprep.mubr.bf16.mxu0 %v13865_v35  ;;  %v8355_v7 = vcombine.low %v7187_v19, %v7197_v15  ;;  %v7512_v23 = vrot.slane %v7510_v43, 4 }
 0x265   : > { %v5367_v1 = vadd.f32 %v9332_v54, %v12521_v2  ;;  %v5791_v20 = vpop.f32.mrf.mxu1 }
 0x266   : > { %v5310_v40 = vpop.f32.mrf.mxu0  ;;  %v12658_v28 = vadd.f32 %v5791_v20, %v5361_v24  ;;  %v7514_v12 = vsel %vm10453_vm5, %v7512_v23, %v7513_v9 }
 0x267   : > { %v5365_v18 = vadd.f32 %v5310_v40, %v12532_v56  ;;  %v9377_v30 = vpop.f32.mrf.mxu1 }
 0x268   : > { %v9333_v25 = vpop.f32.mrf.mxu0  ;;  %v12662_v50 = vadd.f32 %v9377_v30, %v5364_v47 }
 0x269   : > { %v5368_v2 = vadd.f32 %v9333_v25, %v12537_v55  ;;  %v5794_v17 = vpop.f32.mrf.mxu1  ;;  %9667 = vmatmul.mubr.bf16.gmra.mxu1 %v13848_v27  ;;  %v7511_v55 = vsel %vm10453_vm5, %v8364_v45, %v7510_v43 }
 0x26a   : > { %v5313_v29 = vpop.f32.mrf.mxu0  ;;  %v12666_v38 = vadd.f32 %v5794_v17, %v5362_v52  ;;  %9670 = vmatprep.mubr.bf16.mxu1 %v12511_v61  ;;  %v8365_v16 = vcombine.low %v7511_v55, %v7514_v12 }
 0x26b   : > { %v5366_v24 = vadd.f32 %v5313_v29, %v12540_v53  ;;  %v9380_v21 = vpop.f32.mrf.mxu1  ;;  %9623 = vmatmul.mubr.bf16.gmra.mxu0 %v8355_v7 }
 0x26c   : > { %v9336_v56 = vpop.f32.mrf.mxu0  ;;  %v12670_v37 = vadd.f32 %v9380_v21, %v5367_v1 }
 0x26d   : > { %v5371_v11 = vadd.f32 %v9336_v56, %v12544_v4  ;;  %v5807_v47 = vpop.f32.mrf.mxu1 }
 0x26e   : > { %v5326_v31 = vpop.f32.mrf.mxu0  ;;  %v12678_v53 = vadd.f32 %v5807_v47, %v5365_v18 }
 0x26f   : > { %v5369_v27 = vadd.f32 %v5326_v31, %v12549_v39  ;;  %v9381_v52 = vpop.f32.mrf.mxu1 }
 0x270   : > { %v9337_v59 = vpop.f32.mrf.mxu0  ;;  %v12681_v54 = vadd.f32 %v9381_v52, %v5368_v2 }
 0x271   : > { %v5372_v61 = vadd.f32 %v9337_v59, %v12552_v60  ;;  %v5810_v4 = vpop.f32.mrf.mxu1  ;;  %9671 = vmatmul.mubr.bf16.gmra.mxu1 %v8365_v16 }
 0x272   : > { %v5329_v51 = vpop.f32.mrf.mxu0  ;;  %v12684_v63 = vadd.f32 %v5810_v4, %v5366_v24 }
 0x273   : > { %v5370_v0 = vadd.f32 %v5329_v51, %v12555_v32  ;;  %v9384_v19 = vpop.f32.mrf.mxu1 }
 0x274   : > { %v9404_v1 = vpop.f32.mrf.mxu0  ;;  %v12687_v35 = vadd.f32 %v9384_v19, %v5371_v11 }
 0x275   : > { %v6151_v39 = vadd.f32 %v9404_v1, %v12560_v62  ;;  %v5823_v15 = vpop.f32.mrf.mxu1 }
 0x276   : > { %v6022_v43 = vpop.f32.mrf.mxu0  ;;  %v12690_v20 = vadd.f32 %v5823_v15, %v5369_v27 }
 0x277   : > { %v6149_v40 = vadd.f32 %v6022_v43, %v12565_v36  ;;  %v9385_v60 = vpop.f32.mrf.mxu1 }
 0x278   : > { %v9405_v18 = vpop.f32.mrf.mxu0  ;;  %v12693_v30 = vadd.f32 %v9385_v60, %v5372_v61 }
 0x279   : > { %v6152_v25 = vadd.f32 %v9405_v18, %v12568_v3  ;;  %v5826_v32 = vpop.f32.mrf.mxu1 }
 0x27a   : > { %v6025_v7 = vpop.f32.mrf.mxu0  ;;  %v12696_v45 = vadd.f32 %v5826_v32, %v5370_v0 }
 0x27b   : > { %v6150_v2 = vadd.f32 %v6025_v7, %v12571_v46  ;;  %v9452_v23 = vpop.f32.mrf.mxu1 }
 0x27c   : > { %v9408_v62 = vpop.f32.mrf.mxu0  ;;  %v12699_v9 = vadd.f32 %v9452_v23, %v6151_v39 }
 0x27d   : > { %v6155_v17 = vadd.f32 %v9408_v62, %v12576_v48  ;;  %v6355_v29 = vpop.f32.mrf.mxu1 }
 0x27e   : > { %v6038_v36 = vpop.f32.mrf.mxu0  ;;  %v12702_v24 = vadd.f32 %v6355_v29, %v6149_v40 }
 0x27f   : > { %v6153_v21 = vadd.f32 %v6038_v36, %v12581_v6  ;;  %v9453_v56 = vpop.f32.mrf.mxu1 }
 0x280   : > { %v9409_v3 = vpop.f32.mrf.mxu0  ;;  %v12705_v11 = vadd.f32 %v9453_v56, %v6152_v25 }
 0x281   : > { %v6156_v55 = vadd.f32 %v9409_v3, %v12584_v44  ;;  %v6358_v12 = vpop.f32.mrf.mxu1 }
 0x282   : > { %v6041_v46 = vpop.f32.mrf.mxu0  ;;  %v12708_v47 = vadd.f32 %v6358_v12, %v6150_v2 }
 0x283   : > { %v6154_v31 = vadd.f32 %v6041_v46, %v12587_v26  ;;  %v9456_v27 = vpop.f32.mrf.mxu1 }
 0x284   : > { %v9412_v48 = vpop.f32.mrf.mxu0  ;;  %v12711_v52 = vadd.f32 %v9456_v27, %v6155_v17 }
 0x285   : > { %v6159_v16 = vadd.f32 %v9412_v48, %v12592_v49  ;;  %v6371_v59 = vpop.f32.mrf.mxu1 }
 0x286   : > { %v6054_v6 = vpop.f32.mrf.mxu0  ;;  %v12714_v61 = vadd.f32 %v6371_v59, %v6153_v21 }
 0x287   : > { %v6157_v4 = vadd.f32 %v6054_v6, %v12597_v41  ;;  %v9457_v51 = vpop.f32.mrf.mxu1 }
 0x288   : > { %v9413_v44 = vpop.f32.mrf.mxu0  ;;  %v12717_v0 = vadd.f32 %v9457_v51, %v6156_v55 }
 0x289   : > { %v6160_v19 = vadd.f32 %v9413_v44, %v12600_v58  ;;  %v6374_v1 = vpop.f32.mrf.mxu1 }
 0x28a   : > { %v6057_v26 = vpop.f32.mrf.mxu0  ;;  %v12720_v39 = vadd.f32 %v6374_v1, %v6154_v31 }
 0x28b   : > { %v6158_v15 = vadd.f32 %v6057_v26, %v12603_v34  ;;  %v9460_v43 = vpop.f32.mrf.mxu1 }
 0x28c   : > { %v9416_v49 = vpop.f32.mrf.mxu0  ;;  %v12723_v40 = vadd.f32 %v9460_v43, %v6159_v16 }
 0x28d   : > { %v6163_v60 = vadd.f32 %v9416_v49, %v12611_v13  ;;  %v6387_v18 = vpop.f32.mrf.mxu1 }
 0x28e   : > { %v6070_v41 = vpop.f32.mrf.mxu0  ;;  %v12726_v25 = vadd.f32 %v6387_v18, %v6157_v4 }
 0x28f   : > { %v6161_v32 = vadd.f32 %v6070_v41, %v12617_v5  ;;  %v9461_v7 = vpop.f32.mrf.mxu1 }
 0x290   : > { %v9417_v58 = vpop.f32.mrf.mxu0  ;;  %v12729_v2 = vadd.f32 %v9461_v7, %v6160_v19 }
 0x291   : > { %v6164_v23 = vadd.f32 %v9417_v58, %v12620_v14  ;;  %v6390_v62 = vpop.f32.mrf.mxu1 }
 0x292   : > { %v6073_v34 = vpop.f32.mrf.mxu0  ;;  %v12732_v17 = vadd.f32 %v6390_v62, %v6158_v15 }
 0x293   : > { %v6162_v29 = vadd.f32 %v6073_v34, %v12626_v57  ;;  %v9464_v36 = vpop.f32.mrf.mxu1 }
 0x294   : > { %v9420_v13 = vpop.f32.mrf.mxu0  ;;  %v12735_v21 = vadd.f32 %v9464_v36, %v6163_v60 }
 0x295   : > { %v6167_v56 = vadd.f32 %v9420_v13, %v12631_v42  ;;  %v6403_v3 = vpop.f32.mrf.mxu1 }
 0x296   : > { %v6086_v5 = vpop.f32.mrf.mxu0  ;;  %v12738_v55 = vadd.f32 %v6403_v3, %v6161_v32 }
 0x297   : > { %v6165_v12 = vadd.f32 %v6086_v5, %v12637_v10  ;;  %v9465_v46 = vpop.f32.mrf.mxu1 }
 0x298   : > { %v9421_v14 = vpop.f32.mrf.mxu0  ;;  %v12741_v31 = vadd.f32 %v9465_v46, %v6164_v23 }
 0x299   : > { %v6168_v27 = vadd.f32 %v9421_v14, %v12640_v8  ;;  %v6406_v48 = vpop.f32.mrf.mxu1 }
 0x29a   : > { %v6089_v57 = vpop.f32.mrf.mxu0  ;;  %v12744_v16 = vadd.f32 %v6406_v48, %v6162_v29 }
 0x29b   : > { %v6166_v59 = vadd.f32 %v6089_v57, %v12643_v22  ;;  %v9468_v6 = vpop.f32.mrf.mxu1 }
 0x29c   : > { %v9424_v42 = vpop.f32.mrf.mxu0  ;;  %v12747_v4 = vadd.f32 %v9468_v6, %v6167_v56 }
 0x29d   : > { %v6171_v51 = vadd.f32 %v9424_v42, %v12650_v33  ;;  %v6419_v44 = vpop.f32.mrf.mxu1 }
 0x29e   : > { %v6102_v10 = vpop.f32.mrf.mxu0  ;;  %v12750_v19 = vadd.f32 %v6419_v44, %v6165_v12 }
 0x29f   : > { %v6169_v1 = vadd.f32 %v6102_v10, %v12658_v28  ;;  %v9469_v26 = vpop.f32.mrf.mxu1 }
 0x2a0   : > { %v9425_v8 = vpop.f32.mrf.mxu0  ;;  %v12753_v15 = vadd.f32 %v9469_v26, %v6168_v27 }
 0x2a1   : > { %v6172_v43 = vadd.f32 %v9425_v8, %v12662_v50  ;;  %v6422_v49 = vpop.f32.mrf.mxu1 }
 0x2a2   : > { %13866 = vst [vmem:[#allocation23_spill] sm:$0xff] %v12753_v15  ;;  %v6105_v22 = vpop.f32.mrf.mxu0  ;;  %v12756_v60 = vadd.f32 %v6422_v49, %v6166_v59 }
 0x2a3   : > { %v6170_v18 = vadd.f32 %v6105_v22, %v12666_v38  ;;  %v9472_v41 = vpop.f32.mrf.mxu1 }
 0x2a4   : > { %13867 = vst [vmem:[#allocation13_spill] sm:$0xff] %v12756_v60  ;;  %v9428_v33 = vpop.f32.mrf.mxu0  ;;  %v12759_v32 = vadd.f32 %v9472_v41, %v6171_v51 }
 0x2a5   : > { %v6175_v7 = vadd.f32 %v9428_v33, %v12670_v37  ;;  %v6435_v58 = vpop.f32.mrf.mxu1 }
 0x2a6   : > { %13868 = vst [vmem:[#allocation36_spill] sm:$0xff] %v12759_v32  ;;  %v6118_v28 = vpop.f32.mrf.mxu0  ;;  %v12762_v23 = vadd.f32 %v6435_v58, %v6169_v1 }
 0x2a7   : > { %v6173_v62 = vadd.f32 %v6118_v28, %v12678_v53  ;;  %v9473_v34 = vpop.f32.mrf.mxu1 }
 0x2a8   : > { %13869 = vst [vmem:[#allocation6_spill] sm:$0xff] %v12762_v23  ;;  %v9429_v50 = vpop.f32.mrf.mxu0  ;;  %v12765_v29 = vadd.f32 %v9473_v34, %v6172_v43 }
 0x2a9   : > { %v6176_v36 = vadd.f32 %v9429_v50, %v12681_v54  ;;  %v6438_v13 = vpop.f32.mrf.mxu1 }
 0x2aa   : > { %13870 = vst [vmem:[#allocation8_spill] sm:$0xff] %v12765_v29  ;;  %v6121_v38 = vpop.f32.mrf.mxu0  ;;  %v12768_v56 = vadd.f32 %v6438_v13, %v6170_v18 }
 0x2ab   : > { %v6174_v3 = vadd.f32 %v6121_v38, %v12684_v63  ;;  %v9476_v5 = vpop.f32.mrf.mxu1 }
 0x2ac   : > { %13871 = vst [vmem:[#allocation35_spill] sm:$0xff] %v12768_v56  ;;  %v9432_v37 = vpop.f32.mrf.mxu0  ;;  %v12771_v12 = vadd.f32 %v9476_v5, %v6175_v7 }
 0x2ad   : > { %v6179_v46 = vadd.f32 %v9432_v37, %v12687_v35  ;;  %v6451_v14 = vpop.f32.mrf.mxu1 }
 0x2ae   : > { %13872 = vst [vmem:[#allocation20_spill] sm:$0xff] %v12771_v12  ;;  %v6134_v53 = vpop.f32.mrf.mxu0  ;;  %v12774_v27 = vadd.f32 %v6451_v14, %v6173_v62 }
 0x2af   : > { %v6177_v48 = vadd.f32 %v6134_v53, %v12690_v20  ;;  %v9477_v57 = vpop.f32.mrf.mxu1 }
 0x2b0   : > { %13873 = vst [vmem:[#allocation49_spill] sm:$0xff] %v12774_v27  ;;  %v9433_v54 = vpop.f32.mrf.mxu0  ;;  %v12777_v59 = vadd.f32 %v9477_v57, %v6176_v36 }
 0x2b1   : > { %v6180_v6 = vadd.f32 %v9433_v54, %v12693_v30  ;;  %v6454_v42 = vpop.f32.mrf.mxu1 }
 0x2b2   : > { %13874 = vst [vmem:[#allocation33_spill] sm:$0xff] %v12777_v59  ;;  %v6137_v63 = vpop.f32.mrf.mxu0  ;;  %v12780_v51 = vadd.f32 %v6454_v42, %v6174_v3 }
 0x2b3   : > { %v6178_v44 = vadd.f32 %v6137_v63, %v12696_v45  ;;  %v9480_v10 = vpop.f32.mrf.mxu1 }
 0x2b4   : > { %13875 = vst [vmem:[#allocation37_spill] sm:$0xff] %v12780_v51  ;;  %v12783_v35 = vpop.f32.mrf.mxu0  ;;  %v12785_v1 = vadd.f32 %v9480_v10, %v6179_v46 }
 0x2b5   : > { %v6467_v26 = vpop.f32.mrf.mxu1 }
 0x2b6   : > { %13876 = vst [vmem:[#allocation10_spill] sm:$0xff] %v12785_v1  ;;  %v12787_v8 = vpop.f32.mrf.mxu0  ;;  %v12789_v20 = vadd.f32 %v6467_v26, %v6177_v48 }
 0x2b7   : > { %v9481_v43 = vpop.f32.mrf.mxu1 }
 0x2b8   : > { %13877 = vst [vmem:[#allocation17_spill] sm:$0xff] %v12789_v20  ;;  %v12791_v49 = vpop.f32.mrf.mxu0  ;;  %v12793_v30 = vadd.f32 %v9481_v43, %v6180_v6 }
 0x2b9   : > { %v6470_v22 = vpop.f32.mrf.mxu1 }
 0x2ba   : > { %13878 = vst [vmem:[#allocation64_spill] sm:$0xff] %v12793_v30  ;;  %v12795_v18 = vpop.f32.mrf.mxu0  ;;  %v12797_v41 = vadd.f32 %v6470_v22, %v6178_v44 }
 0x2bb   : > { %v9548_v45 = vpop.f32.mrf.mxu1 }
 0x2bc   : > { %13879 = vst [vmem:[#allocation22_spill] sm:$0xff] %v12797_v41  ;;  %v12799_v33 = vpop.f32.mrf.mxu0 }
 0x2bd   : > { %v12801_v7 = vpop.f32.mrf.mxu1 }
 0x2be   : > { %v12803_v58 = vpop.f32.mrf.mxu0 }
 0x2bf   : > { %v12805_v28 = vpop.f32.mrf.mxu1 }
 0x2c0   : > { %v12807_v62 = vpop.f32.mrf.mxu0 }
 0x2c1   : > { %v12809_v34 = vpop.f32.mrf.mxu1 }
 0x2c2   : > { %v12811_v50 = vpop.f32.mrf.mxu0 }
 0x2c3   : > { %v12813_v36 = vpop.f32.mrf.mxu1 }
 0x2c4   : > { %v12815_v13 = vpop.f32.mrf.mxu0 }
 0x2c5   : > { %v12817_v38 = vpop.f32.mrf.mxu1 }
 0x2c6   : > { %v12819_v3 = vpop.f32.mrf.mxu0 }
 0x2c7   : > { %v12821_v5 = vpop.f32.mrf.mxu1 }
 0x2c8   : > { %v12823_v37 = vpop.f32.mrf.mxu0 }
 0x2c9   : > { %v12825_v46 = vpop.f32.mrf.mxu1 }
 0x2ca   : > { %v12827_v14 = vpop.f32.mrf.mxu0 }
 0x2cb   : > { %v12829_v53 = vpop.f32.mrf.mxu1 }
 0x2cc   : > { %v12831_v48 = vpop.f32.mrf.mxu0 }
 0x2cd   : > { %v12833_v57 = vpop.f32.mrf.mxu1 }
 0x2ce   : > { %v12835_v54 = vpop.f32.mrf.mxu0 }
 0x2cf   : > { %v12837_v6 = vpop.f32.mrf.mxu1 }
 0x2d0   : > { %v12839_v42 = vpop.f32.mrf.mxu0 }
 0x2d1   : > { %v12841_v63 = vpop.f32.mrf.mxu1 }
 0x2d2   : > { %v12843_v44 = vpop.f32.mrf.mxu0 }
 0x2d3   : > { %v12845_v10 = vpop.f32.mrf.mxu1 }
 0x2d4   : > { %v12847_v26 = vpop.f32.mrf.mxu0 }
 0x2d5   : > { %v12849_v43 = vpop.f32.mrf.mxu1 }
 0x2d6   : > { %v12851_v22 = vpop.f32.mrf.mxu0 }
 0x2d7   : > { %v12853_v41 = vpop.f32.mrf.mxu1 }
 0x2d8   : > { %v12855_v30 = vpop.f32.mrf.mxu0 }
 0x2d9   : > { %13880 = vst [vmem:[#allocation27_spill] sm:$0xff] %v12855_v30  ;;  %v12857_v20 = vpop.f32.mrf.mxu1 }
 0x2da   : > { %v12859_v1 = vpop.f32.mrf.mxu0 }
 0x2db   : > { %13881 = vst [vmem:[#allocation63_spill] sm:$0xff] %v12859_v1  ;;  %v12861_v51 = vpop.f32.mrf.mxu1 }
 0x2dc   : > { %v12863_v59 = vpop.f32.mrf.mxu0 }
 0x2dd   : > { %13882 = vst [vmem:[#allocation42_spill] sm:$0xff] %v12863_v59  ;;  %v12865_v27 = vpop.f32.mrf.mxu1 }
 0x2de   : > { %13883 = vst [vmem:[#allocation68_spill] sm:$0xff] %v12865_v27  ;;  %v12867_v12 = vpop.f32.mrf.mxu0 }
 0x2df   : > { %13884 = vst [vmem:[#allocation44_spill] sm:$0xff] %v12867_v12  ;;  %v12869_v56 = vpop.f32.mrf.mxu1 }
 0x2e0   : > { %13885 = vst [vmem:[#allocation46_spill] sm:$0xff] %v12869_v56  ;;  %v12871_v29 = vpop.f32.mrf.mxu0 }
 0x2e1   : > { %13886 = vst [vmem:[#allocation47_spill] sm:$0xff] %v12871_v29  ;;  %v12873_v23 = vpop.f32.mrf.mxu1 }
 0x2e2   : > { %13887 = vst [vmem:[#allocation48_spill] sm:$0xff] %v12873_v23  ;;  %v12875_v32 = vpop.f32.mrf.mxu0 }
 0x2e3   : > { %13888 = vst [vmem:[#allocation45_spill] sm:$0xff] %v12875_v32  ;;  %v12877_v60 = vpop.f32.mrf.mxu1 }
 0x2e4   : > { %13889 = vst [vmem:[#allocation50_spill] sm:$0xff] %v12877_v60  ;;  %v12879_v30 = vpop.f32.mrf.mxu0 }
 0x2e5   : > { %13890 = vst [vmem:[#allocation55_spill] sm:$0xff] %v12879_v30  ;;  %v12881_v1 = vpop.f32.mrf.mxu1 }
 0x2e6   : > { %13891 = vst [vmem:[#allocation65_spill] sm:$0xff] %v12881_v1  ;;  %v12883_v15 = vpop.f32.mrf.mxu0 }
 0x2e7   : > { %13892 = vst [vmem:[#allocation69_spill] sm:$0xff] %v12883_v15  ;;  %v12885_v59 = vpop.f32.mrf.mxu1 }
 0x2e8   : > { %13893 = vst [vmem:[#allocation70_spill] sm:$0xff] %v12885_v59  ;;  %v12887_v27 = vpop.f32.mrf.mxu0 }
 0x2e9   : > { %13894 = vst [vmem:[#allocation5_spill] sm:$0xff] %v12887_v27  ;;  %v12889_v12 = vpop.f32.mrf.mxu1 }
 0x2ea   : > { %13895 = vst [vmem:[#allocation7_spill] sm:$0xff] %v12889_v12  ;;  %v12891_v56 = vpop.f32.mrf.mxu0 }
 0x2eb   : > { %13896 = vst [vmem:[#allocation11_spill] sm:$0xff] %v12891_v56  ;;  %v12893_v29 = vpop.f32.mrf.mxu1  ;;  %v6801_v56 = vadd.f32 %v12783_v35, %v12699_v9  ;;  %v6800_v9 = vadd.f32 %v12795_v18, %v12708_v47 }
 0x2ec   : > { %13897 = vst [vmem:[#allocation40_spill] sm:$0xff] %v12893_v29  ;;  %v12895_v23 = vpop.f32.mrf.mxu0 }
 0x2ed   : > { %13898 = vst [vmem:[#allocation28_spill] sm:$0xff] %v12895_v23  ;;  %v12897_v32 = vpop.f32.mrf.mxu1  ;;  %v6799_v23 = vadd.f32 %v12787_v8, %v12702_v24  ;;  %v7111_v47 = vadd.f32 %v12809_v34, %v6800_v9  ;;  %v6809_v9 = vadd.f32 %v12815_v13, %v12723_v40 }
 0x2ee   : > { %13899 = vst [vmem:[#allocation51_spill] sm:$0xff] %v12897_v32  ;;  %v12899_v60 = vpop.f32.mrf.mxu0 }
 0x2ef   : > { %13900 = vst [vmem:[#allocation58_spill] sm:$0xff] %v12899_v60  ;;  %v12901_v30 = vpop.f32.mrf.mxu1  ;;  %v7120_v13 = vadd.f32 %v12829_v53, %v6809_v9  ;;  %v6817_v9 = vadd.f32 %v12847_v26, %v12747_v4 }
 0x2f0   : > { %13901 = vst [vmem:[#allocation61_spill] sm:$0xff] %v12901_v30  ;;  %v12903_v1 = vpop.f32.mrf.mxu0  ;;  %v7112_v30 = vadd.f32 %v9548_v45, %v6801_v56  ;;  %v6805_v56 = vadd.f32 %v12799_v33, %v12711_v52 }
 0x2f1   : > { %13902 = vst [vmem:[#allocation19_spill] sm:$0xff] %v12903_v1  ;;  %v12905_v15 = vpop.f32.mrf.mxu1  ;;  %v6802_v1 = vadd.f32 %v12791_v49, %v12705_v11  ;;  %v7128_v26 = vadd.f32 %v12861_v51, %v6817_v9 }
 0x2f2   : > { %13903 = vst [vmem:[#allocation29_spill] sm:$0xff] %v12905_v15  ;;  %v12907_v27 = vpop.f32.mrf.mxu0 }
 0x2f3   : > { %13904 = vst [vmem:[#allocation31_spill] sm:$0xff] %v12907_v27  ;;  %v12911_v12 = vpop.f32.mrf.mxu1  ;;  %v7110_v27 = vadd.f32 %v12801_v7, %v6799_v23  ;;  %v7113_v8 = vadd.f32 %v12805_v28, %v6802_v1 }
 0x2f4   : > { %13905 = vst [vmem:[#allocation52_spill] sm:$0xff] %v12911_v12  ;;  %v9596_v29 = vpop.f32.mrf.mxu0 }
 0x2f5   : > { %v12915_v32 = vpop.f32.mrf.mxu1  ;;  %v7445_v35 = vadd.f32 %v9596_v29, %v7112_v30  ;;  %v6803_v29 = vadd.f32 %v12803_v58, %v12714_v61 }
 0x2f6   : > { %v7316_v60 = vpop.f32.mrf.mxu0 }
 0x2f7   : > { %v12919_v59 = vpop.f32.mrf.mxu1  ;;  %v7443_v45 = vadd.f32 %v7316_v60, %v7110_v27  ;;  %v7116_v60 = vadd.f32 %v12813_v36, %v6805_v56  ;;  %v6806_v27 = vadd.f32 %v12807_v62, %v12717_v0  ;;  %v7114_v61 = vadd.f32 %v12817_v38, %v6803_v29 }
 0x2f8   : > { %v9597_v15 = vpop.f32.mrf.mxu0  ;;  %v6808_v29 = vadd.f32 %v12827_v14, %v12732_v17 }
 0x2f9   : > { %v12925_v12 = vpop.f32.mrf.mxu1  ;;  %v7446_v1 = vadd.f32 %v9597_v15, %v7113_v8  ;;  %v6804_v15 = vadd.f32 %v12811_v50, %v12720_v39  ;;  %v7117_v62 = vadd.f32 %v12821_v5, %v6806_v27  ;;  %v6807_v8 = vadd.f32 %v12819_v3, %v12726_v25 }
 0x2fa   : > { %v7319_v24 = vpop.f32.mrf.mxu0  ;;  %v7119_v14 = vadd.f32 %v12841_v63, %v6808_v29 }
 0x2fb   : > { %v9644_v11 = vpop.f32.mrf.mxu1  ;;  %v7444_v33 = vadd.f32 %v7319_v24, %v7111_v47  ;;  %v7115_v50 = vadd.f32 %v12825_v46, %v6804_v15  ;;  %v7118_v3 = vadd.f32 %v12833_v57, %v6807_v8 }
 0x2fc   : > { %v9600_v23 = vpop.f32.mrf.mxu0  ;;  %v12938_v49 = vadd.f32 %v9644_v11, %v7445_v35  ;;  %v6810_v11 = vadd.f32 %v12823_v37, %v12729_v2 }
 0x2fd   : > { %v7633_v30 = vpop.f32.mrf.mxu1  ;;  %v7449_v34 = vadd.f32 %v9600_v23, %v7116_v60 }
 0x2fe   : > { %v7332_v52 = vpop.f32.mrf.mxu0  ;;  %7858 = vst [vmem:[%s12933_s12 + $0x10] sm:$0xff] %v12938_v49  ;;  %v12945_v18 = vadd.f32 %v7633_v30, %v7443_v45  ;;  %v7121_v37 = vadd.f32 %v12837_v6, %v6810_v11 }
 0x2ff   : > { %v9645_v7 = vpop.f32.mrf.mxu1  ;;  %v7447_v35 = vadd.f32 %v7332_v52, %v7114_v61  ;;  %v6813_v52 = vadd.f32 %v12831_v48, %v12735_v21  ;;  %v6814_v61 = vadd.f32 %v12839_v42, %v12741_v31 }
 0x300   : > { %v9601_v28 = vpop.f32.mrf.mxu0  ;;  %7856 = vst [vmem:[%s12933_s12] sm:$0xff] %v12945_v18  ;;  %v12952_v58 = vadd.f32 %v9645_v7, %v7446_v1 }
 0x301   : > { %v7636_v36 = vpop.f32.mrf.mxu1  ;;  %v7450_v56 = vadd.f32 %v9601_v28, %v7117_v62  ;;  %v7124_v48 = vadd.f32 %v12845_v10, %v6813_v52  ;;  %v7125_v42 = vadd.f32 %v12853_v41, %v6814_v61  ;;  %v13912_v52 = vld [vmem:[#allocation36_spill] sm:$0xff] }
 0x302   : > { %v7335_v0 = vpop.f32.mrf.mxu0  ;;  %7859 = vst [vmem:[%s12933_s12 + $0x18] sm:$0xff] %v12952_v58  ;;  %v12959_v38 = vadd.f32 %v7636_v36, %v7444_v33  ;;  %v6811_v33 = vadd.f32 %v12835_v54, %v12738_v55  ;;  %v6812_v36 = vadd.f32 %v12843_v44, %v12744_v16  ;;  %v13916_v61 = vld [vmem:[#allocation44_spill] sm:$0xff] }
 0x303   : > { %v9648_v24 = vpop.f32.mrf.mxu1  ;;  %v7448_v23 = vadd.f32 %v7335_v0, %v7115_v50 }
 0x304   : > { %v9604_v39 = vpop.f32.mrf.mxu0  ;;  %7857 = vst [vmem:[%s12933_s12 + $0x8] sm:$0xff] %v12959_v38  ;;  %v12966_v5 = vadd.f32 %v9648_v24, %v7449_v34  ;;  %v7122_v54 = vadd.f32 %v12849_v43, %v6811_v33  ;;  %v7123_v44 = vadd.f32 %v12857_v20, %v6812_v36 }
 0x305   : > { %v7649_v45 = vpop.f32.mrf.mxu1  ;;  %v7453_v1 = vadd.f32 %v9604_v39, %v7120_v13  ;;  %v6815_v39 = vadd.f32 %v12851_v22, %v12750_v19  ;;  %v13908_v22 = vld [vmem:[#allocation68_spill] sm:$0xff] }
 0x306   : > { %v7348_v40 = vpop.f32.mrf.mxu0  ;;  %7862 = vst [vmem:[%s12933_s12 + $0x30] sm:$0xff] %v12966_v5  ;;  %v12973_v46 = vadd.f32 %v7649_v45, %v7447_v35  ;;  %v13907_v45 = vld [vmem:[#allocation27_spill] sm:$0xff] }
 0x307   : > { %v9649_v47 = vpop.f32.mrf.mxu1  ;;  %v7451_v60 = vadd.f32 %v7348_v40, %v7118_v3 }
 0x308   : > { %v9605_v25 = vpop.f32.mrf.mxu0  ;;  %7860 = vst [vmem:[%s12933_s12 + $0x20] sm:$0xff] %v12973_v46  ;;  %v12980_v53 = vadd.f32 %v9649_v47, %v7450_v56  ;;  %v13906_v56 = vld [vmem:[#allocation23_spill] sm:$0xff]  ;;  %v13909_v47 = vld [vmem:[#allocation13_spill] sm:$0xff] }
 0x309   : > { %v7652_v30 = vpop.f32.mrf.mxu1  ;;  %v7454_v7 = vadd.f32 %v9605_v25, %v7121_v37  ;;  %v6818_v40 = vadd.f32 %v13907_v45, %v13906_v56  ;;  %v13910_v25 = vld [vmem:[#allocation63_spill] sm:$0xff] }
 0x30a   : > { %v7351_v2 = vpop.f32.mrf.mxu0  ;;  %7863 = vst [vmem:[%s12933_s12 + $0x38] sm:$0xff] %v12980_v53  ;;  %v12987_v57 = vadd.f32 %v7652_v30, %v7448_v23  ;;  %v7126_v23 = vadd.f32 %v13908_v22, %v6815_v39  ;;  %v6816_v3 = vadd.f32 %v13910_v25, %v13909_v47  ;;  %v13920_v39 = vld [vmem:[#allocation65_spill] sm:$0xff]  ;;  %v13924_v22 = vld [vmem:[#allocation20_spill] sm:$0xff] }
 0x30b   : > { %v9652_v27 = vpop.f32.mrf.mxu1  ;;  %v7452_v15 = vadd.f32 %v7351_v2, %v7119_v14  ;;  %v13911_v2 = vld [vmem:[#allocation46_spill] sm:$0xff] }
 0x30c   : > { %v9608_v17 = vpop.f32.mrf.mxu0  ;;  %7861 = vst [vmem:[%s12933_s12 + $0x28] sm:$0xff] %v12987_v57  ;;  %v12994_v6 = vadd.f32 %v9652_v27, %v7453_v1  ;;  %v7129_v37 = vadd.f32 %v13911_v2, %v6818_v40 }
 0x30d   : > { %v7665_v28 = vpop.f32.mrf.mxu1  ;;  %v7457_v0 = vadd.f32 %v9608_v17, %v7124_v48  ;;  %v13915_v48 = vld [vmem:[#allocation6_spill] sm:$0xff] }
 0x30e   : > { %v7364_v21 = vpop.f32.mrf.mxu0  ;;  %7866 = vst [vmem:[%s12933_s12 + $0x50] sm:$0xff] %v12994_v6  ;;  %v13001_v63 = vadd.f32 %v7665_v28, %v7451_v60  ;;  %v13913_v60 = vld [vmem:[#allocation42_spill] sm:$0xff]  ;;  %v13914_v28 = vld [vmem:[#allocation48_spill] sm:$0xff] }
 0x30f   : > { %v9653_v34 = vpop.f32.mrf.mxu1  ;;  %v7455_v35 = vadd.f32 %v7364_v21, %v7122_v54  ;;  %v6821_v27 = vadd.f32 %v13913_v60, %v13912_v52  ;;  %v7127_v21 = vadd.f32 %v13914_v28, %v6816_v3  ;;  %v13928_v52 = vld [vmem:[#allocation69_spill] sm:$0xff]  ;;  %v13929_v28 = vld [vmem:[#allocation40_spill] sm:$0xff] }
 0x310   : > { %v9609_v55 = vpop.f32.mrf.mxu0  ;;  %7864 = vst [vmem:[%s12933_s12 + $0x40] sm:$0xff] %v13001_v63  ;;  %v13008_v10 = vadd.f32 %v9653_v34, %v7454_v7 }
 0x311   : > { %v7668_v62 = vpop.f32.mrf.mxu1  ;;  %v7458_v50 = vadd.f32 %v9609_v55, %v7125_v42  ;;  %v13919_v42 = vld [vmem:[#allocation47_spill] sm:$0xff] }
 0x312   : > { %v7367_v31 = vpop.f32.mrf.mxu0  ;;  %7867 = vst [vmem:[%s12933_s12 + $0x58] sm:$0xff] %v13008_v10  ;;  %v13015_v43 = vadd.f32 %v7668_v62, %v7452_v15  ;;  %v6819_v15 = vadd.f32 %v13916_v61, %v13915_v48  ;;  %v13930_v48 = vld [vmem:[#allocation33_spill] sm:$0xff] }
 0x313   : > { %v9656_v24 = vpop.f32.mrf.mxu1  ;;  %v7456_v13 = vadd.f32 %v7367_v31, %v7123_v44  ;;  %v13918_v31 = vld [vmem:[#allocation8_spill] sm:$0xff]  ;;  %v13931_v61 = vld [vmem:[#allocation5_spill] sm:$0xff] }
 0x314   : > { %v9612_v16 = vpop.f32.mrf.mxu0  ;;  %7865 = vst [vmem:[%s12933_s12 + $0x48] sm:$0xff] %v13015_v43  ;;  %v13022_v41 = vadd.f32 %v9656_v24, %v7457_v0  ;;  %v13917_v0 = vld [vmem:[#allocation50_spill] sm:$0xff]  ;;  %v6822_v9 = vadd.f32 %v13919_v42, %v13918_v31  ;;  %v13933_v42 = vld [vmem:[#allocation37_spill] sm:$0xff] }
 0x315   : > { %v7681_v8 = vpop.f32.mrf.mxu1  ;;  %v7461_v29 = vadd.f32 %v9612_v16, %v7128_v26  ;;  %v7132_v62 = vadd.f32 %v13917_v0, %v6821_v27 }
 0x316   : > { %v7380_v4 = vpop.f32.mrf.mxu0  ;;  %7870 = vst [vmem:[%s12933_s12 + $0x70] sm:$0xff] %v13022_v41  ;;  %v13029_v20 = vadd.f32 %v7681_v8, %v7455_v35  ;;  %v13921_v8 = vld [vmem:[#allocation35_spill] sm:$0xff] }
 0x317   : > { %v9657_v11 = vpop.f32.mrf.mxu1  ;;  %v7459_v14 = vadd.f32 %v7380_v4, %v7126_v23  ;;  %v13922_v4 = vld [vmem:[#allocation45_spill] sm:$0xff]  ;;  %v13925_v23 = vld [vmem:[#allocation55_spill] sm:$0xff] }
 0x318   : > { %v9613_v19 = vpop.f32.mrf.mxu0  ;;  %7868 = vst [vmem:[%s12933_s12 + $0x60] sm:$0xff] %v13029_v20  ;;  %v13036_v51 = vadd.f32 %v9657_v11, %v7458_v50  ;;  %v7130_v50 = vadd.f32 %v13920_v39, %v6819_v15  ;;  %v6820_v26 = vadd.f32 %v13922_v4, %v13921_v8  ;;  %v13923_v11 = vld [vmem:[#allocation70_spill] sm:$0xff]  ;;  %v6825_v47 = vadd.f32 %v13925_v23, %v13924_v22  ;;  %v13935_v8 = vld [vmem:[#allocation61_spill] sm:$0xff] }
 0x319   : > { %v7684_v1 = vpop.f32.mrf.mxu1  ;;  %v7462_v55 = vadd.f32 %v9613_v19, %v7129_v37  ;;  %v7133_v19 = vadd.f32 %v13923_v11, %v6822_v9  ;;  %v13927_v37 = vld [vmem:[#allocation49_spill] sm:$0xff]  ;;  %v6826_v15 = vadd.f32 %v13931_v61, %v13930_v48  ;;  %v13934_v9 = vld [vmem:[#allocation11_spill] sm:$0xff] }
 0x31a   : > { %v7383_v30 = vpop.f32.mrf.mxu0  ;;  %7871 = vst [vmem:[%s12933_s12 + $0x78] sm:$0xff] %v13036_v51  ;;  %v13043_v17 = vadd.f32 %v7684_v1, %v7456_v13  ;;  %v6823_v60 = vadd.f32 %v13928_v52, %v13927_v37  ;;  %v13938_v23 = vld [vmem:[#allocation29_spill] sm:$0xff] }
 0x31b   : > { %v9660_v33 = vpop.f32.mrf.mxu1  ;;  %v7460_v24 = vadd.f32 %v7383_v30, %v7127_v21  ;;  %v13926_v30 = vld [vmem:[#allocation7_spill] sm:$0xff]  ;;  %v7136_v21 = vadd.f32 %v13929_v28, %v6825_v47  ;;  %v7137_v4 = vadd.f32 %v13935_v8, %v6826_v15 }
 0x31c   : > { %v9616_v7 = vpop.f32.mrf.mxu0  ;;  %7869 = vst [vmem:[%s12933_s12 + $0x68] sm:$0xff] %v13043_v17  ;;  %v13050_v34 = vadd.f32 %v9660_v33, %v7461_v29  ;;  %v7131_v2 = vadd.f32 %v13926_v30, %v6820_v26  ;;  %v13936_v26 = vld [vmem:[#allocation10_spill] sm:$0xff] }
 0x31d   : > { %v7697_v54 = vpop.f32.mrf.mxu1  ;;  %v7465_v45 = vadd.f32 %v9616_v7, %v7132_v62  ;;  %v13932_v62 = vld [vmem:[#allocation51_spill] sm:$0xff] }
 0x31e   : > { %v7396_v36 = vpop.f32.mrf.mxu0  ;;  %7874 = vst [vmem:[%s12933_s12 + $0x90] sm:$0xff] %v13050_v34  ;;  %v13057_v35 = vadd.f32 %v7697_v54, %v7459_v14  ;;  %v7134_v31 = vadd.f32 %v13932_v62, %v6823_v60  ;;  %v13941_v60 = vld [vmem:[#allocation52_spill] sm:$0xff] }
 0x31f   : > { %v9661_v16 = vpop.f32.mrf.mxu1  ;;  %v7463_v3 = vadd.f32 %v7396_v36, %v7130_v50 }
 0x320   : > { %v9617_v44 = vpop.f32.mrf.mxu0  ;;  %7872 = vst [vmem:[%s12933_s12 + $0x80] sm:$0xff] %v13057_v35  ;;  %v13064_v56 = vadd.f32 %v9661_v16, %v7462_v55 }
 0x321   : > { %v7700_v40 = vpop.f32.mrf.mxu1  ;;  %v7466_v14 = vadd.f32 %v9617_v44, %v7133_v19 }
 0x322   : > { %v7399_v13 = vpop.f32.mrf.mxu0  ;;  %7875 = vst [vmem:[%s12933_s12 + $0x98] sm:$0xff] %v13064_v56  ;;  %v13071_v25 = vadd.f32 %v7700_v40, %v7460_v24  ;;  %v6824_v24 = vadd.f32 %v13934_v9, %v13933_v42 }
 0x323   : > { %v9664_v29 = vpop.f32.mrf.mxu1  ;;  %v7464_v54 = vadd.f32 %v7399_v13, %v7131_v2 }
 0x324   : > { %v9620_v1 = vpop.f32.mrf.mxu0  ;;  %7873 = vst [vmem:[%s12933_s12 + $0x88] sm:$0xff] %v13071_v25  ;;  %v13078_v27 = vadd.f32 %v9664_v29, %v7465_v45  ;;  %v13937_v45 = vld [vmem:[#allocation28_spill] sm:$0xff]  ;;  %v7135_v47 = vadd.f32 %v13938_v23, %v6824_v24  ;;  %v13940_v29 = vld [vmem:[#allocation58_spill] sm:$0xff] }
 0x325   : > { %v7713_v33 = vpop.f32.mrf.mxu1  ;;  %v7469_v44 = vadd.f32 %v9620_v1, %v7136_v21  ;;  %v6829_v40 = vadd.f32 %v13937_v45, %v13936_v26 }
 0x326   : > { %v7412_v7 = vpop.f32.mrf.mxu0  ;;  %7878 = vst [vmem:[%s12933_s12 + $0xb0] sm:$0xff] %v13078_v27  ;;  %v13085_v55 = vadd.f32 %v7713_v33, %v7463_v3  ;;  %v13939_v3 = vld [vmem:[#allocation17_spill] sm:$0xff]  ;;  %v13942_v33 = vld [vmem:[#allocation64_spill] sm:$0xff] }
 0x327   : > { %v9665_v36 = vpop.f32.mrf.mxu1  ;;  %v7467_v11 = vadd.f32 %v7412_v7, %v7134_v31  ;;  %v6827_v1 = vadd.f32 %v13940_v29, %v13939_v3  ;;  %v13943_v7 = vld [vmem:[#allocation19_spill] sm:$0xff] }
 0x328   : > { %v9621_v0 = vpop.f32.mrf.mxu0  ;;  %7876 = vst [vmem:[%s12933_s12 + $0xa0] sm:$0xff] %v13085_v55  ;;  %v13092_v16 = vadd.f32 %v9665_v36, %v7466_v14  ;;  %v7140_v14 = vadd.f32 %v13941_v60, %v6829_v40  ;;  %v6830_v28 = vadd.f32 %v13943_v7, %v13942_v33  ;;  %v13944_v36 = vld [vmem:[#allocation22_spill] sm:$0xff] }
 0x329   : > { %v7716_v39 = vpop.f32.mrf.mxu1  ;;  %v7470_v2 = vadd.f32 %v9621_v0, %v7137_v4  ;;  %v13945_v0 = vld [vmem:[#allocation31_spill] sm:$0xff] }
 0x32a   : > { %v7415_v50 = vpop.f32.mrf.mxu0  ;;  %7879 = vst [vmem:[%s12933_s12 + $0xb8] sm:$0xff] %v13092_v16  ;;  %v13099_v13 = vadd.f32 %v7716_v39, %v7464_v54  ;;  %v7138_v54 = vadd.f32 %v12915_v32, %v6827_v1  ;;  %v6828_v62 = vadd.f32 %v13945_v0, %v13944_v36  ;;  %v7141_v24 = vadd.f32 %v12919_v59, %v6830_v28 }
 0x32b   : > { %v9668_v19 = vpop.f32.mrf.mxu1  ;;  %v7468_v48 = vadd.f32 %v7415_v50, %v7135_v47 }
 0x32c   : > { %v9624_v22 = vpop.f32.mrf.mxu0  ;;  %7877 = vst [vmem:[%s12933_s12 + $0xa8] sm:$0xff] %v13099_v13  ;;  %v13106_v30 = vadd.f32 %v9668_v19, %v7469_v44  ;;  %v7139_v8 = vadd.f32 %v12925_v12, %v6828_v62 }
 0x32d   : > { %v7729_v37 = vpop.f32.mrf.mxu1  ;;  %v7473_v42 = vadd.f32 %v9624_v22, %v7140_v14 }
 0x32e   : > { %v7428_v52 = vpop.f32.mrf.mxu0  ;;  %7882 = vst [vmem:[%s12933_s12 + $0xd0] sm:$0xff] %v13106_v30  ;;  %v13113_v21 = vadd.f32 %v7729_v37, %v7467_v11 }
 0x32f   : > { %v9669_v61 = vpop.f32.mrf.mxu1  ;;  %v7471_v39 = vadd.f32 %v7428_v52, %v7138_v54 }
 0x330   : > { %v9625_v15 = vpop.f32.mrf.mxu0  ;;  %7880 = vst [vmem:[%s12933_s12 + $0xc0] sm:$0xff] %v13113_v21  ;;  %v13120_v31 = vadd.f32 %v9669_v61, %v7470_v2 }
 0x331   : > { %v7732_v9 = vpop.f32.mrf.mxu1  ;;  %v7474_v26 = vadd.f32 %v9625_v15, %v7141_v24 }
 0x332   : > { %7883 = vst [vmem:[%s12933_s12 + $0xd8] sm:$0xff] %v13120_v31  ;;  %v13125_v44 = vadd.f32 %v7732_v9, %v7468_v48  ;;  %v7431_v50 = vpop.f32.mrf.mxu0 }
 0x333   : > { %v9672_v32 = vpop.f32.mrf.mxu1  ;;  %v7472_v40 = vadd.f32 %v7431_v50, %v7139_v8 }
 0x334   : > { %7881 = vst [vmem:[%s12933_s12 + $0xc8] sm:$0xff] %v13125_v44  ;;  %v13130_v4 = vadd.f32 %v9672_v32, %v7473_v42 }
 0x335   : > { %v7745_v45 = vpop.f32.mrf.mxu1 }
 0x336   : > { %7886 = vst [vmem:[%s12933_s12 + $0xf0] sm:$0xff] %v13130_v4  ;;  %v13134_v59 = vadd.f32 %v7745_v45, %v7471_v39 }
 0x337   : > { %v9673_v11 = vpop.f32.mrf.mxu1 }
 0x338   : > { %7884 = vst [vmem:[%s12933_s12 + $0xe0] sm:$0xff] %v13134_v59  ;;  %v13138_v19 = vadd.f32 %v9673_v11, %v7474_v26  ;;  %7891 = sbr.rel (%p8374_p4) target bundleno = 831 (0x33f), region = 40 }
 0x339   : > { %v7748_v22 = vpop.f32.mrf.mxu1 }
 0x33a   : > { %7887 = vst [vmem:[%s12933_s12 + $0xf8] sm:$0xff] %v13138_v19  ;;  %v13142_v12 = vadd.f32 %v7748_v22, %v7472_v40 }
 0x33c   : > { %7885 = vst [vmem:[%s12933_s12 + $0xe8] sm:$0xff] %v13142_v12 }
 0x33d   : > { %v9884_v23 = vmov 0.0  }
 0x33e   : > { %7892 = vst [vmem:[%s13260_s5] sm:$0x3] %v9884_v23 }
 0x33f PF: > { %v7893_v47 = vadd.f32 %v12959_v38, %v12945_v18  ;;  %v7930_v1 = vmul.f32 %v12945_v18, %v12945_v18  ;;  %v7931_v2 = vmul.f32 %v12959_v38, %v12959_v38  ;;  %v7932_v52 = vmul.f32 %v12938_v49, %v12938_v49 }
 0x340   : > { %v7933_v14 = vmul.f32 %v12952_v58, %v12952_v58  ;;  %v7934_v28 = vmul.f32 %v12973_v46, %v12973_v46  ;;  %v7935_v38 = vmul.f32 %v12987_v57, %v12987_v57  ;;  %v7936_v15 = vmul.f32 %v12966_v5, %v12966_v5 }
 0x341   : > { %v7894_v3 = vadd.f32 %v7893_v47, %v12938_v49  ;;  %v7962_v33 = vadd.f32 %v7931_v2, %v7930_v1  ;;  %v7937_v36 = vmul.f32 %v12980_v53, %v12980_v53  ;;  %v7938_v62 = vmul.f32 %v13001_v63, %v13001_v63 }
 0x342   : > { %v7939_v9 = vmul.f32 %v13015_v43, %v13015_v43  ;;  %v7940_v39 = vmul.f32 %v12994_v6, %v12994_v6  ;;  %v7941_v50 = vmul.f32 %v13008_v10, %v13008_v10  ;;  %v7942_v26 = vmul.f32 %v13029_v20, %v13029_v20 }
 0x343   : > { %v7895_v29 = vadd.f32 %v7894_v3, %v12952_v58  ;;  %v7963_v18 = vadd.f32 %v7962_v33, %v7932_v52  ;;  %v7943_v40 = vmul.f32 %v13043_v17, %v13043_v17  ;;  %v7944_v22 = vmul.f32 %v13022_v41, %v13022_v41 }
 0x344   : > { %v7945_v47 = vmul.f32 %v13036_v51, %v13036_v51  ;;  %v7947_v2 = vmul.f32 %v13071_v25, %v13071_v25  ;;  %v7948_v52 = vmul.f32 %v13050_v34, %v13050_v34  ;;  %vm8000_vm6 = vcmask 1040384  }
 0x345   : > { %v7896_v37 = vadd.f32 %v7895_v29, %v12973_v46  ;;  %v7964_v61 = vadd.f32 %v7963_v18, %v7933_v14  ;;  %v7946_v29 = vmul.f32 %v13057_v35, %v13057_v35  ;;  %v7949_v14 = vmul.f32 %v13064_v56, %v13064_v56 }
 0x346   : > { %v7951_v18 = vmul.f32 %v13099_v13, %v13099_v13 }
 0x347   : > { %v7897_v60 = vadd.f32 %v7896_v37, %v12987_v57  ;;  %v7965_v54 = vadd.f32 %v7964_v61, %v7934_v28 }
 0x349   : > { %v7898_v7 = vadd.f32 %v7897_v60, %v12966_v5  ;;  %v7966_v0 = vadd.f32 %v7965_v54, %v7935_v38  ;;  %v7952_v38 = vmul.f32 %v13078_v27, %v13078_v27  ;;  %v7954_v54 = vmul.f32 %v13113_v21, %v13113_v21 }
 0x34b   : > { %v7899_v48 = vadd.f32 %v7898_v7, %v12980_v53  ;;  %v7967_v42 = vadd.f32 %v7966_v0, %v7936_v15  ;;  %v7950_v7 = vmul.f32 %v13085_v55, %v13085_v55 }
 0x34d   : > { %v7900_v49 = vadd.f32 %v7899_v48, %v13001_v63  ;;  %v7968_v24 = vadd.f32 %v7967_v42, %v7937_v36  ;;  %v7955_v36 = vmul.f32 %v13125_v44, %v13125_v44  ;;  %v7957_v42 = vmul.f32 %v13120_v31, %v13120_v31 }
 0x34f   : > { %v7901_v58 = vadd.f32 %v7900_v49, %v13015_v43  ;;  %v7969_v32 = vadd.f32 %v7968_v24, %v7938_v62  ;;  %v7953_v49 = vmul.f32 %v13092_v16, %v13092_v16 }
 0x351   : > { %v7902_v46 = vadd.f32 %v7901_v58, %v12994_v6  ;;  %v7970_v8 = vadd.f32 %v7969_v32, %v7939_v9  ;;  %v7958_v9 = vmul.f32 %v13134_v59, %v13134_v59  ;;  %v7960_v32 = vmul.f32 %v13130_v4, %v13130_v4 }
 0x353   : > { %v7903_v57 = vadd.f32 %v7902_v46, %v13008_v10  ;;  %v7971_v45 = vadd.f32 %v7970_v8, %v7940_v39  ;;  %v7956_v46 = vmul.f32 %v13106_v30, %v13106_v30 }
 0x355   : > { %v7904_v5 = vadd.f32 %v7903_v57, %v13029_v20  ;;  %v7972_v11 = vadd.f32 %v7971_v45, %v7941_v50 }
 0x357   : > { %v7905_v53 = vadd.f32 %v7904_v5, %v13043_v17  ;;  %v7973_v23 = vadd.f32 %v7972_v11, %v7942_v26  ;;  %v7959_v5 = vmul.f32 %v13142_v12, %v13142_v12 }
 0x359   : > { %v7906_v63 = vadd.f32 %v7905_v53, %v13022_v41  ;;  %v7974_v3 = vadd.f32 %v7973_v23, %v7943_v40 }
 0x35b   : > { %v7907_v43 = vadd.f32 %v7906_v63, %v13036_v51  ;;  %v7975_v1 = vadd.f32 %v7974_v3, %v7944_v22 }
 0x35d   : > { %v7908_v6 = vadd.f32 %v7907_v43, %v13057_v35  ;;  %v7976_v37 = vadd.f32 %v7975_v1, %v7945_v47 }
 0x35f   : > { %v7909_v10 = vadd.f32 %v7908_v6, %v13071_v25  ;;  %v7977_v60 = vadd.f32 %v7976_v37, %v7946_v29 }
 0x361   : > { %v7910_v20 = vadd.f32 %v7909_v10, %v13050_v34  ;;  %v7978_v33 = vadd.f32 %v7977_v60, %v7947_v2 }
 0x363   : > { %v7911_v17 = vadd.f32 %v7910_v20, %v13064_v56  ;;  %v7979_v28 = vadd.f32 %v7978_v33, %v7948_v52 }
 0x365   : > { %v7912_v41 = vadd.f32 %v7911_v17, %v13085_v55  ;;  %v7980_v48 = vadd.f32 %v7979_v28, %v7949_v14 }
 0x367   : > { %v7913_v51 = vadd.f32 %v7912_v41, %v13099_v13  ;;  %v7981_v61 = vadd.f32 %v7980_v48, %v7950_v7 }
 0x369   : > { %v7914_v35 = vadd.f32 %v7913_v51, %v13078_v27  ;;  %v7982_v15 = vadd.f32 %v7981_v61, %v7951_v18 }
 0x36b   : > { %v7915_v25 = vadd.f32 %v7914_v35, %v13092_v16  ;;  %v7983_v58 = vadd.f32 %v7982_v15, %v7952_v38 }
 0x36d   : > { %v7916_v34 = vadd.f32 %v7915_v25, %v13113_v21  ;;  %v7984_v0 = vadd.f32 %v7983_v58, %v7953_v49 }
 0x36f   : > { %v7917_v56 = vadd.f32 %v7916_v34, %v13125_v44  ;;  %v7985_v62 = vadd.f32 %v7984_v0, %v7954_v54 }
 0x371   : > { %v7918_v55 = vadd.f32 %v7917_v56, %v13106_v30  ;;  %v7986_v57 = vadd.f32 %v7985_v62, %v7955_v36 }
 0x373   : > { %v7919_v13 = vadd.f32 %v7918_v55, %v13120_v31  ;;  %v7987_v24 = vadd.f32 %v7986_v57, %v7956_v46  ;;  %v7961_v31 = vmul.f32 %v13138_v19, %v13138_v19 }
 0x375   : > { %v7920_v27 = vadd.f32 %v7919_v13, %v13134_v59  ;;  %v7988_v39 = vadd.f32 %v7987_v24, %v7957_v42 }
 0x377   : > { %v7921_v16 = vadd.f32 %v7920_v27, %v13142_v12  ;;  %v7989_v53 = vadd.f32 %v7988_v39, %v7958_v9 }
 0x379   : > { %v7922_v21 = vadd.f32 %v7921_v16, %v13130_v4  ;;  %v7990_v8 = vadd.f32 %v7989_v53, %v7959_v5  ;;  %v7999_v4 = vld [vmem:[%s13260_s5] sm:$0x3] }
 0x37b   : > { %v7923_v44 = vadd.f32 %v7922_v21, %v13138_v19  ;;  %v7991_v26 = vadd.f32 %v7990_v8, %v7960_v32 }
 0x37d   : > { %v7924_v30 = vrot.slane %v7923_v44, 4  ;;  %v7992_v59 = vadd.f32 %v7991_v26, %v7961_v31 }
 0x37f   : > { %v7925_v50 = vadd.f32 %v7924_v30, %v7923_v44  ;;  %v7993_v43 = vrot.slane %v7992_v59, 4 }
 0x381   : > { %v7926_v63 = vrot.slane %v7925_v50, 2  ;;  %v7994_v40 = vadd.f32 %v7993_v43, %v7992_v59 }
 0x383   : > { %v7927_v45 = vadd.f32 %v7926_v63, %v7925_v50  ;;  %v7995_v6 = vrot.slane %v7994_v40, 2 }
 0x385   : > { %v7928_v11 = vrot.slane %v7927_v45, 1  ;;  %v7996_v12 = vadd.f32 %v7995_v6, %v7994_v40 }
 0x387   : > { %v7929_v22 = vadd.f32 %v7928_v11, %v7927_v45  ;;  %v7997_v23 = vrot.slane %v7996_v12, 1 }
 0x389   : > { %v7998_v10 = vadd.f32 %v7997_v23, %v7996_v12 }
 0x38b   : > { %v8001_v47 = vsel %vm8000_vm6, %v7929_v22, %v7998_v10 }
 0x38c   : > { %v8002_v19 = vadd.f32 %v8001_v47, %v7999_v4 }
 0x38e   : > { %8003 = vst [vmem:[%s13260_s5] sm:$0x3] %v8002_v19 }
 0x38f PF: > { %s16_s18 = sadd.s32 1, %s9882_s18  }
 0x390   : > { %p13_p5 = scmp.ge.s32.totalorder %s16_s18, 4  }
 0x392   :  { %15 = sbr.rel (!%p13_p5) target bundleno = 1 (0x1), region = 81 }

</bundles_post_ra>
